<compile_context>
chip_gen: v6e
topology: v6e:2x2x1
jax: 0.10.0
libtpu: 0.0.40
codegen_flags: <defaults>
</compile_context>

<pallas_src>
import functools

import jax
import jax.numpy as jnp
from jax import lax
from jax.experimental import pallas as pl
from jax.experimental.pallas import tpu as pltpu


def _round_up(x, m):
    return (x + m - 1) // m * m


def _lstm_kernel(emb_ref, wih_ref, whh_ref, b_ref, wout_ref, bout_ref,
                 out_ref, h_ref, c_ref, xp_ref, hbuf_ref, *, HP, ts):
    """One grid step processes `ts` timesteps of the recurrence.

    emb_ref  : (ts, D)     f32  embedded inputs for this chunk
    wih_ref  : (D, 4*HP)   cdt  W_ih^T, gate-padded cols, gate order [i,f,o,g]
    whh_ref  : (HP, 4*HP)  cdt  W_hh^T, gate-padded cols AND zero-padded K rows
    b_ref    : (1, 4*HP)   f32  b_ih + b_hh, gate-padded / reordered
    wout_ref : (HP, OP)    cdt  hidden2out^T, zero-padded
    bout_ref : (1, OP)     f32  hidden2out bias, zero-padded
    out_ref  : (ts, OP)    f32  logits for this chunk (lane-dense)
    h_ref    : (1, HP)     f32  hidden-state carry across chunks (scratch)
    c_ref    : (1, HP)     f32  cell-state carry across chunks (scratch)
    xp_ref   : (ts, 4*HP)  f32  input-projection staging (scratch)
    hbuf_ref : (ts, HP)    f32  per-step hidden rows (scratch)
    """
    cdt = wih_ref.dtype  # matmul-input dtype: f32 or bf16 (f32 accumulation)

    @pl.when(pl.program_id(0) == 0)
    def _():
        h_ref[...] = jnp.zeros_like(h_ref)
        c_ref[...] = jnp.zeros_like(c_ref)

    # Input projection for the whole chunk: one MXU matmul with M = ts rows.
    # Staged to VMEM scratch so per-step row reads use the mostly-idle vld
    # slots and nothing large stays live in vregs across the unrolled loop.
    xp_ref[...] = jnp.dot(emb_ref[...].astype(cdt), wih_ref[...],
                          preferred_element_type=jnp.float32) + b_ref[...]

    h = h_ref[...]   # (1, HP) f32; padded lanes provably stay exactly 0
    c = c_ref[...]   # (1, HP) f32

    H3 = 3 * HP

    # Fully-unrolled recurrence (ts is a small compile-time constant).
    for s in range(ts):
        # Recurrent matvec: K padded to HP, so h feeds the MXU directly with
        # no lane-subgroup slice on the serial critical path.
        mm = jnp.dot(h.astype(cdt), whh_ref[...],
                     preferred_element_type=jnp.float32)        # (1, 4*HP)
        gates = xp_ref[s:s + 1, :] + mm                         # (1, 4*HP)
        # Gate order [i, f, o, g]: one fused sigmoid over 3 lane groups.
        sig = jax.nn.sigmoid(gates[:, :H3])
        i_g = sig[:, 0 * HP:1 * HP]
        f_g = sig[:, 1 * HP:2 * HP]
        o_g = sig[:, 2 * HP:3 * HP]
        g_g = jnp.tanh(gates[:, H3:])
        c = f_g * c + i_g * g_g
        h = o_g * jnp.tanh(c)
        # Park this step's hidden row in VMEM (idle vst slot) instead of
        # keeping ts live (1, HP) vreg rows + a sublane-pack concat.
        hbuf_ref[s:s + 1, :] = h

    # Write the h/c carries once per chunk (not per step).
    h_ref[...] = h
    c_ref[...] = c

    # Batched hidden2out for the chunk: (ts, HP) @ (HP, OP), lane-dense store.
    out_ref[...] = (
        jnp.dot(hbuf_ref[...].astype(cdt), wout_ref[...],
                preferred_element_type=jnp.float32) + bout_ref[...]
    ).astype(out_ref.dtype)


def preprocess_params(params, compute_dtype=jnp.float32):
    """One-time parameter prep (transpose / gate-reorder / pad / cast)."""
    D = params["w_ih"].shape[1]
    H = params["w_hh"].shape[1]
    O = params["w_out"].shape[0]
    HP = _round_up(H, 128)   # per-gate lane-padded width
    OP = _round_up(O, 128)   # lane-padded output width

    def gate_pad_cols(w_t):
        # (in, 4H) in torch gate order [i, f, g, o]  ->
        # (in, 4*HP) in kernel gate order [i, f, o, g], each gate occupying
        # its own 128-lane group (zero-padded columns).
        i_, f_, g_, o_ = jnp.split(w_t, 4, axis=1)
        parts = [jnp.pad(p, ((0, 0), (0, HP - H))) for p in (i_, f_, o_, g_)]
        return jnp.concatenate(parts, axis=1)

    whh_t = gate_pad_cols(params["w_hh"].T)
    whh_t = jnp.pad(whh_t, ((0, HP - H), (0, 0)))   # K-pad with zero rows

    return {
        "emb_table": params["emb_table"].astype(jnp.float32),
        "wih_t": gate_pad_cols(params["w_ih"].T).astype(compute_dtype),
        "whh_t": whh_t.astype(compute_dtype),
        "b": gate_pad_cols((params["b_ih"] + params["b_hh"]).reshape(1, 4 * H)
                           ).astype(jnp.float32),
        "wout_t": jnp.pad(params["w_out"].T,
                          ((0, HP - H), (0, OP - O))).astype(compute_dtype),
        "bout": jnp.pad(params["b_out"].reshape(1, O),
                        ((0, 0), (0, OP - O))).astype(jnp.float32),
        "dims": (int(D), int(H), int(O), int(HP), int(OP)),
    }


def lstm_forward(spikes, pp, *, chunk=32):
    """spikes: (S,) int32 token ids. Returns (S, output_dim) float32 logits."""
    D, H, O, HP, OP = pp["dims"]
    assert chunk % 8 == 0

    # TODO(synk): embedding row gather kept as JAX glue (pure index lookup);
    # could be moved in-kernel via scalar-prefetched ids + per-row DMA.
    emb = jnp.take(pp["emb_table"], spikes, axis=0)           # (S, D) f32
    S = emb.shape[0]
    S_pad = _round_up(S, chunk)
    if S_pad != S:
        # Padded timesteps come after the real ones (causal), so they cannot
        # influence the real outputs; their rows are sliced off below.
        emb = jnp.pad(emb, ((0, S_pad - S), (0, 0)))
    num_chunks = S_pad // chunk

    kernel = functools.partial(_lstm_kernel, HP=HP, ts=chunk)

    grid_spec = pltpu.PrefetchScalarGridSpec(
        num_scalar_prefetch=0,
        grid=(num_chunks,),
        in_specs=[
            pl.BlockSpec((chunk, D), lambda ci: (ci, 0)),    # emb chunk (pipelined)
            pl.BlockSpec((D, 4 * HP), lambda ci: (0, 0)),    # weights: constant
            pl.BlockSpec((HP, 4 * HP), lambda ci: (0, 0)),   # blocks, DMA'd once,
            pl.BlockSpec((1, 4 * HP), lambda ci: (0, 0)),    # VMEM-resident
            pl.BlockSpec((HP, OP), lambda ci: (0, 0)),
            pl.BlockSpec((1, OP), lambda ci: (0, 0)),
        ],
        out_specs=pl.BlockSpec((chunk, OP), lambda ci: (ci, 0)),
        scratch_shapes=[
            pltpu.VMEM((1, HP), jnp.float32),                # h carry
            pltpu.VMEM((1, HP), jnp.float32),                # c carry
            pltpu.VMEM((chunk, 4 * HP), jnp.float32),        # xp staging
            pltpu.VMEM((chunk, HP), jnp.float32),            # hidden-row slab
        ],
    )

    weight_bytes = sum(int(pp[k].size) * pp[k].dtype.itemsize
                       for k in ("wih_t", "whh_t", "b", "wout_t", "bout"))
    cost = pl.CostEstimate(
        flops=2 * S_pad * (D * 4 * H + H * 4 * H + H * O),
        transcendentals=5 * S_pad * H,
        bytes_accessed=int(emb.size) * 4 + weight_bytes + S_pad * OP * 4,
    )

    out = pl.pallas_call(
        kernel,
        out_shape=jax.ShapeDtypeStruct((S_pad, OP), jnp.float32),
        grid_spec=grid_spec,
        compiler_params=pltpu.CompilerParams(
            # The chunk axis carries the recurrence through h/c scratch ->
            # it must run sequentially.
            dimension_semantics=("arbitrary",),
            vmem_limit_bytes=32 * 1024 * 1024,
        ),
        cost_estimate=cost,
    )(emb, pp["wih_t"], pp["whh_t"], pp["b"], pp["wout_t"], pp["bout"])

    return out[:S, :O]


def lstm_reference(spikes, params, compute_dtype=jnp.float32):
    """Pure-JAX reference reproducing torch Embedding -> LSTM -> Linear.

    `compute_dtype` mirrors the kernel's optional bf16 matmul-input casts
    (accumulation stays f32), so both modes can be checked tightly.
    """
    H = params["w_hh"].shape[1]
    emb = jnp.take(params["emb_table"], spikes, axis=0)
    wih_t = params["w_ih"].T.astype(compute_dtype)
    whh_t = params["w_hh"].T.astype(compute_dtype)
    wout_t = params["w_out"].T.astype(compute_dtype)

    xproj = jnp.dot(emb.astype(compute_dtype), wih_t,
                    preferred_element_type=jnp.float32)
    xproj = xproj + params["b_ih"] + params["b_hh"]

    def step(carry, xp_row):
        h, c = carry
        gates = xp_row + jnp.dot(h.astype(compute_dtype), whh_t,
                                 preferred_element_type=jnp.float32)
        i_g = jax.nn.sigmoid(gates[0:H])
        f_g = jax.nn.sigmoid(gates[H:2 * H])
        g_g = jnp.tanh(gates[2 * H:3 * H])
        o_g = jax.nn.sigmoid(gates[3 * H:4 * H])
        c_new = f_g * c + i_g * g_g
        h_new = o_g * jnp.tanh(c_new)
        return (h_new, c_new), h_new

    h0 = jnp.zeros((H,), jnp.float32)
    c0 = jnp.zeros((H,), jnp.float32)
    _, hs = lax.scan(step, (h0, c0), xproj)
    return (jnp.dot(hs.astype(compute_dtype), wout_t,
                    preferred_element_type=jnp.float32) + params["b_out"])


def init_params(key, input_dim, hidden_dim, recurr_dim, output_dim):
    ks = jax.random.split(key, 7)
    bound = 1.0 / jnp.sqrt(hidden_dim)
    return {
        # nn.Embedding(recurr_dim, input_dim): N(0, 1)
        "emb_table": jax.random.normal(ks[0], (recurr_dim, input_dim), jnp.float32),
        # nn.LSTM(input_dim, hidden_dim): U(-1/sqrt(H), 1/sqrt(H))
        "w_ih": jax.random.uniform(ks[1], (4 * hidden_dim, input_dim), jnp.float32,
                                   -bound, bound),
        "w_hh": jax.random.uniform(ks[2], (4 * hidden_dim, hidden_dim), jnp.float32,
                                   -bound, bound),
        "b_ih": jax.random.uniform(ks[3], (4 * hidden_dim,), jnp.float32,
                                   -bound, bound),
        "b_hh": jax.random.uniform(ks[4], (4 * hidden_dim,), jnp.float32,
                                   -bound, bound),
        # nn.Linear(hidden_dim, output_dim)
        "w_out": jax.random.uniform(ks[5], (output_dim, hidden_dim), jnp.float32,
                                    -bound, bound),
        "b_out": jax.random.uniform(ks[6], (output_dim,), jnp.float32,
                                    -bound, bound),
    }


if __name__ == "__main__":
    input_dim, hidden_dim, recurr_dim, output_dim = 16, 32, 16, 8
    seq_len = 72  # chunk=32 -> pads to 96, 3 chunks: exercises carry + slicing

    key = jax.random.PRNGKey(0)
    k_params, k_spikes = jax.random.split(key)
    params = init_params(k_params, input_dim, hidden_dim, recurr_dim, output_dim)
    spikes = jax.random.randint(k_spikes, (seq_len,), 0, recurr_dim, jnp.int32)

    # --- f32 matmul path (v5e-friendly): tight check vs the torch-equivalent ref.
    pp32 = preprocess_params(params, jnp.float32)
    out32 = jax.block_until_ready(lstm_forward(spikes, pp32))
    ref32 = lstm_reference(spikes, params, jnp.float32)
    assert out32.shape == (seq_len, output_dim)
    assert jnp.allclose(out32, ref32, rtol=1e-4, atol=1e-4), "f32 kernel != reference"

    # --- bf16 matmul-input path (MXU-native on v5e/v6e/v7x, f32 accumulation):
    #     checked against a reference that applies the same casts.
    ppbf = preprocess_params(params, jnp.bfloat16)
    outbf = jax.block_until_ready(lstm_forward(spikes, ppbf))
    refbf = lstm_reference(spikes, params, jnp.bfloat16)
    assert outbf.shape == (seq_len, output_dim)
    assert jnp.allclose(outbf, refbf, rtol=5e-2, atol=2e-2), "bf16 kernel != bf16 reference"

    print("KERNEL_OK")
</pallas_src>

<mosaic_0001>
module attributes {stable_mosaic.version = 11 : i64} {
  func.func @_lstm_kernel(%arg0: i32, %arg1: memref<32x16xf32, #tpu.memory_space<vmem>>, %arg2: memref<16x512xf32, #tpu.memory_space<vmem>>, %arg3: memref<128x512xf32, #tpu.memory_space<vmem>>, %arg4: memref<1x512xf32, #tpu.memory_space<vmem>>, %arg5: memref<128x128xf32, #tpu.memory_space<vmem>>, %arg6: memref<1x128xf32, #tpu.memory_space<vmem>>, %arg7: memref<32x128xf32, #tpu.memory_space<vmem>>, %arg8: memref<1x128xf32, #tpu.memory_space<vmem>>, %arg9: memref<1x128xf32, #tpu.memory_space<vmem>>, %arg10: memref<32x512xf32, #tpu.memory_space<vmem>>, %arg11: memref<32x128xf32, #tpu.memory_space<vmem>>) attributes {dimension_semantics = [#tpu.dimension_semantics<arbitrary>], iteration_bounds = array<i64: 3>, scalar_prefetch = 0 : i64, scratch_operands = 4 : i64, tpu.core_type = #tpu.core_type<tc>, window_params = [{transform_indices = @transform_0, window_bounds = array<i64: 32, 16>}, {pipeline_mode = #tpu.pipeline_mode<synchronous>, transform_indices = @transform_1, window_bounds = array<i64: 16, 512>}, {pipeline_mode = #tpu.pipeline_mode<synchronous>, transform_indices = @transform_2, window_bounds = array<i64: 128, 512>}, {pipeline_mode = #tpu.pipeline_mode<synchronous>, transform_indices = @transform_3, window_bounds = array<i64: 1, 512>}, {pipeline_mode = #tpu.pipeline_mode<synchronous>, transform_indices = @transform_4, window_bounds = array<i64: 128, 128>}, {pipeline_mode = #tpu.pipeline_mode<synchronous>, transform_indices = @transform_5, window_bounds = array<i64: 1, 128>}, {transform_indices = @transform_6, window_bounds = array<i64: 32, 128>}]} {
    %c0_i32 = arith.constant 0 : i32
    %0 = arith.cmpi eq, %arg0, %c0_i32 : i32
    %1 = arith.extui %0 : i1 to i32
    %c0_i32_0 = arith.constant 0 : i32
    %2 = arith.cmpi ne, %1, %c0_i32_0 : i32
    scf.if %2 {
      %cst_250 = arith.constant 0.000000e+00 : f32
      %693 = vector.broadcast %cst_250 : f32 to vector<1x128xf32>
      %c0_251 = arith.constant 0 : index
      %c0_252 = arith.constant 0 : index
      %694 = vector.load %arg8[%c0_251, %c0_252] : memref<1x128xf32, #tpu.memory_space<vmem>>, vector<1x128xf32>
      tpu.vector_store %arg8[%c0_251, %c0_252], %693 {strides = array<i32>} : memref<1x128xf32, #tpu.memory_space<vmem>>, vector<1x128xf32>,
      %cst_253 = arith.constant 0.000000e+00 : f32
      %695 = vector.broadcast %cst_253 : f32 to vector<1x128xf32>
      %c0_254 = arith.constant 0 : index
      %c0_255 = arith.constant 0 : index
      %696 = vector.load %arg9[%c0_254, %c0_255] : memref<1x128xf32, #tpu.memory_space<vmem>>, vector<1x128xf32>
      tpu.vector_store %arg9[%c0_254, %c0_255], %695 {strides = array<i32>} : memref<1x128xf32, #tpu.memory_space<vmem>>, vector<1x128xf32>,
    } else {
    }
    %c0 = arith.constant 0 : index
    %c0_1 = arith.constant 0 : index
    %3 = vector.load %arg1[%c0, %c0_1] : memref<32x16xf32, #tpu.memory_space<vmem>>, vector<32x16xf32>
    %c0_2 = arith.constant 0 : index
    %c0_3 = arith.constant 0 : index
    %4 = vector.load %arg2[%c0_2, %c0_3] : memref<16x512xf32, #tpu.memory_space<vmem>>, vector<16x512xf32>
    %cst = arith.constant dense<0.000000e+00> : vector<32x512xf32>
    %5 = tpu.matmul %3, %4, %cst {dimension_numbers = #tpu.dot_dimension_numbers<[1], [0], [0], [1], [0, 0, 1, 1], [], []>} : vector<32x16xf32>, vector<16x512xf32>, vector<32x512xf32> -> vector<32x512xf32>
    %c0_4 = arith.constant 0 : index
    %c0_5 = arith.constant 0 : index
    %6 = vector.load %arg4[%c0_4, %c0_5] : memref<1x512xf32, #tpu.memory_space<vmem>>, vector<1x512xf32>
    %7 = vector.broadcast %6 : vector<1x512xf32> to vector<32x512xf32>
    %8 = arith.addf %5, %7 : vector<32x512xf32>
    %c0_6 = arith.constant 0 : index
    %c0_7 = arith.constant 0 : index
    %9 = vector.load %arg10[%c0_6, %c0_7] : memref<32x512xf32, #tpu.memory_space<vmem>>, vector<32x512xf32>
    tpu.vector_store %arg10[%c0_6, %c0_7], %8 {strides = array<i32>} : memref<32x512xf32, #tpu.memory_space<vmem>>, vector<32x512xf32>,
    %c0_8 = arith.constant 0 : index
    %c0_9 = arith.constant 0 : index
    %10 = vector.load %arg8[%c0_8, %c0_9] : memref<1x128xf32, #tpu.memory_space<vmem>>, vector<1x128xf32>
    %c0_10 = arith.constant 0 : index
    %c0_11 = arith.constant 0 : index
    %11 = vector.load %arg9[%c0_10, %c0_11] : memref<1x128xf32, #tpu.memory_space<vmem>>, vector<1x128xf32>
    %c0_12 = arith.constant 0 : index
    %c0_13 = arith.constant 0 : index
    %12 = vector.load %arg3[%c0_12, %c0_13] : memref<128x512xf32, #tpu.memory_space<vmem>>, vector<128x512xf32>
    %cst_14 = arith.constant dense<0.000000e+00> : vector<1x512xf32>
    %13 = tpu.matmul %10, %12, %cst_14 {dimension_numbers = #tpu.dot_dimension_numbers<[1], [0], [0], [1], [0, 0, 1, 1], [], []>} : vector<1x128xf32>, vector<128x512xf32>, vector<1x512xf32> -> vector<1x512xf32>
    %c0_15 = arith.constant 0 : index
    %c0_16 = arith.constant 0 : index
    %14 = vector.load %arg10[%c0_15, %c0_16] : memref<32x512xf32, #tpu.memory_space<vmem>>, vector<1x512xf32>
    %15 = arith.addf %14, %13 : vector<1x512xf32>
    %16 = vector.extract_strided_slice %15 {offsets = [0, 0], sizes = [1, 384], strides = [1, 1]} : vector<1x512xf32> to vector<1x384xf32>
    %17 = arith.negf %16 : vector<1x384xf32>
    %18 = math.exp %17 : vector<1x384xf32>
    %cst_17 = arith.constant 1.000000e+00 : f32
    %19 = vector.broadcast %cst_17 : f32 to vector<1x384xf32>
    %20 = arith.addf %19, %18 : vector<1x384xf32>
    %21 = arith.divf %19, %20 : vector<1x384xf32>
    %22 = vector.extract_strided_slice %21 {offsets = [0, 0], sizes = [1, 128], strides = [1, 1]} : vector<1x384xf32> to vector<1x128xf32>
    %23 = vector.extract_strided_slice %21 {offsets = [0, 128], sizes = [1, 128], strides = [1, 1]} : vector<1x384xf32> to vector<1x128xf32>
    %24 = vector.extract_strided_slice %21 {offsets = [0, 256], sizes = [1, 128], strides = [1, 1]} : vector<1x384xf32> to vector<1x128xf32>
    %25 = vector.extract_strided_slice %15 {offsets = [0, 384], sizes = [1, 128], strides = [1, 1]} : vector<1x512xf32> to vector<1x128xf32>
    %26 = math.tanh %25 : vector<1x128xf32>
    %27 = arith.mulf %23, %11 : vector<1x128xf32>
    %28 = arith.mulf %22, %26 : vector<1x128xf32>
    %29 = arith.addf %27, %28 : vector<1x128xf32>
    %30 = math.tanh %29 : vector<1x128xf32>
    %31 = arith.mulf %24, %30 : vector<1x128xf32>
    %c0_18 = arith.constant 0 : index
    %c0_19 = arith.constant 0 : index
    %32 = vector.load %arg11[%c0_18, %c0_19] : memref<32x128xf32, #tpu.memory_space<vmem>>, vector<1x128xf32>
    tpu.vector_store %arg11[%c0_18, %c0_19], %31 {strides = array<i32>} : memref<32x128xf32, #tpu.memory_space<vmem>>, vector<1x128xf32>,
    %c0_20 = arith.constant 0 : index
    %c0_21 = arith.constant 0 : index
    %33 = vector.load %arg3[%c0_20, %c0_21] : memref<128x512xf32, #tpu.memory_space<vmem>>, vector<128x512xf32>
    %cst_22 = arith.constant dense<0.000000e+00> : vector<1x512xf32>
    %34 = tpu.matmul %31, %33, %cst_22 {dimension_numbers = #tpu.dot_dimension_numbers<[1], [0], [0], [1], [0, 0, 1, 1], [], []>} : vector<1x128xf32>, vector<128x512xf32>, vector<1x512xf32> -> vector<1x512xf32>
    %c1 = arith.constant 1 : index
    %c0_23 = arith.constant 0 : index
    %35 = vector.load %arg10[%c1, %c0_23] : memref<32x512xf32, #tpu.memory_space<vmem>>, vector<1x512xf32>
    %36 = arith.addf %35, %34 : vector<1x512xf32>
    %37 = vector.extract_strided_slice %36 {offsets = [0, 0], sizes = [1, 384], strides = [1, 1]} : vector<1x512xf32> to vector<1x384xf32>
    %38 = arith.negf %37 : vector<1x384xf32>
    %39 = math.exp %38 : vector<1x384xf32>
    %cst_24 = arith.constant 1.000000e+00 : f32
    %40 = vector.broadcast %cst_24 : f32 to vector<1x384xf32>
    %41 = arith.addf %40, %39 : vector<1x384xf32>
    %42 = arith.divf %40, %41 : vector<1x384xf32>
    %43 = vector.extract_strided_slice %42 {offsets = [0, 0], sizes = [1, 128], strides = [1, 1]} : vector<1x384xf32> to vector<1x128xf32>
    %44 = vector.extract_strided_slice %42 {offsets = [0, 128], sizes = [1, 128], strides = [1, 1]} : vector<1x384xf32> to vector<1x128xf32>
    %45 = vector.extract_strided_slice %42 {offsets = [0, 256], sizes = [1, 128], strides = [1, 1]} : vector<1x384xf32> to vector<1x128xf32>
    %46 = vector.extract_strided_slice %36 {offsets = [0, 384], sizes = [1, 128], strides = [1, 1]} : vector<1x512xf32> to vector<1x128xf32>
    %47 = math.tanh %46 : vector<1x128xf32>
    %48 = arith.mulf %44, %29 : vector<1x128xf32>
    %49 = arith.mulf %43, %47 : vector<1x128xf32>
    %50 = arith.addf %48, %49 : vector<1x128xf32>
    %51 = math.tanh %50 : vector<1x128xf32>
    %52 = arith.mulf %45, %51 : vector<1x128xf32>
    %c1_25 = arith.constant 1 : index
    %c0_26 = arith.constant 0 : index
    %53 = vector.load %arg11[%c1_25, %c0_26] : memref<32x128xf32, #tpu.memory_space<vmem>>, vector<1x128xf32>
    tpu.vector_store %arg11[%c1_25, %c0_26], %52 {strides = array<i32>} : memref<32x128xf32, #tpu.memory_space<vmem>>, vector<1x128xf32>,
    %c0_27 = arith.constant 0 : index
    %c0_28 = arith.constant 0 : index
    %54 = vector.load %arg3[%c0_27, %c0_28] : memref<128x512xf32, #tpu.memory_space<vmem>>, vector<128x512xf32>
    %cst_29 = arith.constant dense<0.000000e+00> : vector<1x512xf32>
    %55 = tpu.matmul %52, %54, %cst_29 {dimension_numbers = #tpu.dot_dimension_numbers<[1], [0], [0], [1], [0, 0, 1, 1], [], []>} : vector<1x128xf32>, vector<128x512xf32>, vector<1x512xf32> -> vector<1x512xf32>
    %c2 = arith.constant 2 : index
    %c0_30 = arith.constant 0 : index
    %56 = vector.load %arg10[%c2, %c0_30] : memref<32x512xf32, #tpu.memory_space<vmem>>, vector<1x512xf32>
    %57 = arith.addf %56, %55 : vector<1x512xf32>
    %58 = vector.extract_strided_slice %57 {offsets = [0, 0], sizes = [1, 384], strides = [1, 1]} : vector<1x512xf32> to vector<1x384xf32>
    %59 = arith.negf %58 : vector<1x384xf32>
    %60 = math.exp %59 : vector<1x384xf32>
    %cst_31 = arith.constant 1.000000e+00 : f32
    %61 = vector.broadcast %cst_31 : f32 to vector<1x384xf32>
    %62 = arith.addf %61, %60 : vector<1x384xf32>
    %63 = arith.divf %61, %62 : vector<1x384xf32>
    %64 = vector.extract_strided_slice %63 {offsets = [0, 0], sizes = [1, 128], strides = [1, 1]} : vector<1x384xf32> to vector<1x128xf32>
    %65 = vector.extract_strided_slice %63 {offsets = [0, 128], sizes = [1, 128], strides = [1, 1]} : vector<1x384xf32> to vector<1x128xf32>
    %66 = vector.extract_strided_slice %63 {offsets = [0, 256], sizes = [1, 128], strides = [1, 1]} : vector<1x384xf32> to vector<1x128xf32>
    %67 = vector.extract_strided_slice %57 {offsets = [0, 384], sizes = [1, 128], strides = [1, 1]} : vector<1x512xf32> to vector<1x128xf32>
    %68 = math.tanh %67 : vector<1x128xf32>
    %69 = arith.mulf %65, %50 : vector<1x128xf32>
    %70 = arith.mulf %64, %68 : vector<1x128xf32>
    %71 = arith.addf %69, %70 : vector<1x128xf32>
    %72 = math.tanh %71 : vector<1x128xf32>
    %73 = arith.mulf %66, %72 : vector<1x128xf32>
    %c2_32 = arith.constant 2 : index
    %c0_33 = arith.constant 0 : index
    %74 = vector.load %arg11[%c2_32, %c0_33] : memref<32x128xf32, #tpu.memory_space<vmem>>, vector<1x128xf32>
    tpu.vector_store %arg11[%c2_32, %c0_33], %73 {strides = array<i32>} : memref<32x128xf32, #tpu.memory_space<vmem>>, vector<1x128xf32>,
    %c0_34 = arith.constant 0 : index
    %c0_35 = arith.constant 0 : index
    %75 = vector.load %arg3[%c0_34, %c0_35] : memref<128x512xf32, #tpu.memory_space<vmem>>, vector<128x512xf32>
    %cst_36 = arith.constant dense<0.000000e+00> : vector<1x512xf32>
    %76 = tpu.matmul %73, %75, %cst_36 {dimension_numbers = #tpu.dot_dimension_numbers<[1], [0], [0], [1], [0, 0, 1, 1], [], []>} : vector<1x128xf32>, vector<128x512xf32>, vector<1x512xf32> -> vector<1x512xf32>
    %c3 = arith.constant 3 : index
    %c0_37 = arith.constant 0 : index
    %77 = vector.load %arg10[%c3, %c0_37] : memref<32x512xf32, #tpu.memory_space<vmem>>, vector<1x512xf32>
    %78 = arith.addf %77, %76 : vector<1x512xf32>
    %79 = vector.extract_strided_slice %78 {offsets = [0, 0], sizes = [1, 384], strides = [1, 1]} : vector<1x512xf32> to vector<1x384xf32>
    %80 = arith.negf %79 : vector<1x384xf32>
    %81 = math.exp %80 : vector<1x384xf32>
    %cst_38 = arith.constant 1.000000e+00 : f32
    %82 = vector.broadcast %cst_38 : f32 to vector<1x384xf32>
    %83 = arith.addf %82, %81 : vector<1x384xf32>
    %84 = arith.divf %82, %83 : vector<1x384xf32>
    %85 = vector.extract_strided_slice %84 {offsets = [0, 0], sizes = [1, 128], strides = [1, 1]} : vector<1x384xf32> to vector<1x128xf32>
    %86 = vector.extract_strided_slice %84 {offsets = [0, 128], sizes = [1, 128], strides = [1, 1]} : vector<1x384xf32> to vector<1x128xf32>
    %87 = vector.extract_strided_slice %84 {offsets = [0, 256], sizes = [1, 128], strides = [1, 1]} : vector<1x384xf32> to vector<1x128xf32>
    %88 = vector.extract_strided_slice %78 {offsets = [0, 384], sizes = [1, 128], strides = [1, 1]} : vector<1x512xf32> to vector<1x128xf32>
    %89 = math.tanh %88 : vector<1x128xf32>
    %90 = arith.mulf %86, %71 : vector<1x128xf32>
    %91 = arith.mulf %85, %89 : vector<1x128xf32>
    %92 = arith.addf %90, %91 : vector<1x128xf32>
    %93 = math.tanh %92 : vector<1x128xf32>
    %94 = arith.mulf %87, %93 : vector<1x128xf32>
    %c3_39 = arith.constant 3 : index
    %c0_40 = arith.constant 0 : index
    %95 = vector.load %arg11[%c3_39, %c0_40] : memref<32x128xf32, #tpu.memory_space<vmem>>, vector<1x128xf32>
    tpu.vector_store %arg11[%c3_39, %c0_40], %94 {strides = array<i32>} : memref<32x128xf32, #tpu.memory_space<vmem>>, vector<1x128xf32>,
    %c0_41 = arith.constant 0 : index
    %c0_42 = arith.constant 0 : index
    %96 = vector.load %arg3[%c0_41, %c0_42] : memref<128x512xf32, #tpu.memory_space<vmem>>, vector<128x512xf32>
    %cst_43 = arith.constant dense<0.000000e+00> : vector<1x512xf32>
    %97 = tpu.matmul %94, %96, %cst_43 {dimension_numbers = #tpu.dot_dimension_numbers<[1], [0], [0], [1], [0, 0, 1, 1], [], []>} : vector<1x128xf32>, vector<128x512xf32>, vector<1x512xf32> -> vector<1x512xf32>
    %c4 = arith.constant 4 : index
    %c0_44 = arith.constant 0 : index
    %98 = vector.load %arg10[%c4, %c0_44] : memref<32x512xf32, #tpu.memory_space<vmem>>, vector<1x512xf32>
    %99 = arith.addf %98, %97 : vector<1x512xf32>
    %100 = vector.extract_strided_slice %99 {offsets = [0, 0], sizes = [1, 384], strides = [1, 1]} : vector<1x512xf32> to vector<1x384xf32>
    %101 = arith.negf %100 : vector<1x384xf32>
    %102 = math.exp %101 : vector<1x384xf32>
    %cst_45 = arith.constant 1.000000e+00 : f32
    %103 = vector.broadcast %cst_45 : f32 to vector<1x384xf32>
    %104 = arith.addf %103, %102 : vector<1x384xf32>
    %105 = arith.divf %103, %104 : vector<1x384xf32>
    %106 = vector.extract_strided_slice %105 {offsets = [0, 0], sizes = [1, 128], strides = [1, 1]} : vector<1x384xf32> to vector<1x128xf32>
    %107 = vector.extract_strided_slice %105 {offsets = [0, 128], sizes = [1, 128], strides = [1, 1]} : vector<1x384xf32> to vector<1x128xf32>
    %108 = vector.extract_strided_slice %105 {offsets = [0, 256], sizes = [1, 128], strides = [1, 1]} : vector<1x384xf32> to vector<1x128xf32>
    %109 = vector.extract_strided_slice %99 {offsets = [0, 384], sizes = [1, 128], strides = [1, 1]} : vector<1x512xf32> to vector<1x128xf32>
    %110 = math.tanh %109 : vector<1x128xf32>
    %111 = arith.mulf %107, %92 : vector<1x128xf32>
    %112 = arith.mulf %106, %110 : vector<1x128xf32>
    %113 = arith.addf %111, %112 : vector<1x128xf32>
    %114 = math.tanh %113 : vector<1x128xf32>
    %115 = arith.mulf %108, %114 : vector<1x128xf32>
    %c4_46 = arith.constant 4 : index
    %c0_47 = arith.constant 0 : index
    %116 = vector.load %arg11[%c4_46, %c0_47] : memref<32x128xf32, #tpu.memory_space<vmem>>, vector<1x128xf32>
    tpu.vector_store %arg11[%c4_46, %c0_47], %115 {strides = array<i32>} : memref<32x128xf32, #tpu.memory_space<vmem>>, vector<1x128xf32>,
    %c0_48 = arith.constant 0 : index
    %c0_49 = arith.constant 0 : index
    %117 = vector.load %arg3[%c0_48, %c0_49] : memref<128x512xf32, #tpu.memory_space<vmem>>, vector<128x512xf32>
    %cst_50 = arith.constant dense<0.000000e+00> : vector<1x512xf32>
    %118 = tpu.matmul %115, %117, %cst_50 {dimension_numbers = #tpu.dot_dimension_numbers<[1], [0], [0], [1], [0, 0, 1, 1], [], []>} : vector<1x128xf32>, vector<128x512xf32>, vector<1x512xf32> -> vector<1x512xf32>
    %c5 = arith.constant 5 : index
    %c0_51 = arith.constant 0 : index
    %119 = vector.load %arg10[%c5, %c0_51] : memref<32x512xf32, #tpu.memory_space<vmem>>, vector<1x512xf32>
    %120 = arith.addf %119, %118 : vector<1x512xf32>
    %121 = vector.extract_strided_slice %120 {offsets = [0, 0], sizes = [1, 384], strides = [1, 1]} : vector<1x512xf32> to vector<1x384xf32>
    %122 = arith.negf %121 : vector<1x384xf32>
    %123 = math.exp %122 : vector<1x384xf32>
    %cst_52 = arith.constant 1.000000e+00 : f32
    %124 = vector.broadcast %cst_52 : f32 to vector<1x384xf32>
    %125 = arith.addf %124, %123 : vector<1x384xf32>
    %126 = arith.divf %124, %125 : vector<1x384xf32>
    %127 = vector.extract_strided_slice %126 {offsets = [0, 0], sizes = [1, 128], strides = [1, 1]} : vector<1x384xf32> to vector<1x128xf32>
    %128 = vector.extract_strided_slice %126 {offsets = [0, 128], sizes = [1, 128], strides = [1, 1]} : vector<1x384xf32> to vector<1x128xf32>
    %129 = vector.extract_strided_slice %126 {offsets = [0, 256], sizes = [1, 128], strides = [1, 1]} : vector<1x384xf32> to vector<1x128xf32>
    %130 = vector.extract_strided_slice %120 {offsets = [0, 384], sizes = [1, 128], strides = [1, 1]} : vector<1x512xf32> to vector<1x128xf32>
    %131 = math.tanh %130 : vector<1x128xf32>
    %132 = arith.mulf %128, %113 : vector<1x128xf32>
    %133 = arith.mulf %127, %131 : vector<1x128xf32>
    %134 = arith.addf %132, %133 : vector<1x128xf32>
    %135 = math.tanh %134 : vector<1x128xf32>
    %136 = arith.mulf %129, %135 : vector<1x128xf32>
    %c5_53 = arith.constant 5 : index
    %c0_54 = arith.constant 0 : index
    %137 = vector.load %arg11[%c5_53, %c0_54] : memref<32x128xf32, #tpu.memory_space<vmem>>, vector<1x128xf32>
    tpu.vector_store %arg11[%c5_53, %c0_54], %136 {strides = array<i32>} : memref<32x128xf32, #tpu.memory_space<vmem>>, vector<1x128xf32>,
    %c0_55 = arith.constant 0 : index
    %c0_56 = arith.constant 0 : index
    %138 = vector.load %arg3[%c0_55, %c0_56] : memref<128x512xf32, #tpu.memory_space<vmem>>, vector<128x512xf32>
    %cst_57 = arith.constant dense<0.000000e+00> : vector<1x512xf32>
    %139 = tpu.matmul %136, %138, %cst_57 {dimension_numbers = #tpu.dot_dimension_numbers<[1], [0], [0], [1], [0, 0, 1, 1], [], []>} : vector<1x128xf32>, vector<128x512xf32>, vector<1x512xf32> -> vector<1x512xf32>
    %c6 = arith.constant 6 : index
    %c0_58 = arith.constant 0 : index
    %140 = vector.load %arg10[%c6, %c0_58] : memref<32x512xf32, #tpu.memory_space<vmem>>, vector<1x512xf32>
    %141 = arith.addf %140, %139 : vector<1x512xf32>
    %142 = vector.extract_strided_slice %141 {offsets = [0, 0], sizes = [1, 384], strides = [1, 1]} : vector<1x512xf32> to vector<1x384xf32>
    %143 = arith.negf %142 : vector<1x384xf32>
    %144 = math.exp %143 : vector<1x384xf32>
    %cst_59 = arith.constant 1.000000e+00 : f32
    %145 = vector.broadcast %cst_59 : f32 to vector<1x384xf32>
    %146 = arith.addf %145, %144 : vector<1x384xf32>
    %147 = arith.divf %145, %146 : vector<1x384xf32>
    %148 = vector.extract_strided_slice %147 {offsets = [0, 0], sizes = [1, 128], strides = [1, 1]} : vector<1x384xf32> to vector<1x128xf32>
    %149 = vector.extract_strided_slice %147 {offsets = [0, 128], sizes = [1, 128], strides = [1, 1]} : vector<1x384xf32> to vector<1x128xf32>
    %150 = vector.extract_strided_slice %147 {offsets = [0, 256], sizes = [1, 128], strides = [1, 1]} : vector<1x384xf32> to vector<1x128xf32>
    %151 = vector.extract_strided_slice %141 {offsets = [0, 384], sizes = [1, 128], strides = [1, 1]} : vector<1x512xf32> to vector<1x128xf32>
    %152 = math.tanh %151 : vector<1x128xf32>
    %153 = arith.mulf %149, %134 : vector<1x128xf32>
    %154 = arith.mulf %148, %152 : vector<1x128xf32>
    %155 = arith.addf %153, %154 : vector<1x128xf32>
    %156 = math.tanh %155 : vector<1x128xf32>
    %157 = arith.mulf %150, %156 : vector<1x128xf32>
    %c6_60 = arith.constant 6 : index
    %c0_61 = arith.constant 0 : index
    %158 = vector.load %arg11[%c6_60, %c0_61] : memref<32x128xf32, #tpu.memory_space<vmem>>, vector<1x128xf32>
    tpu.vector_store %arg11[%c6_60, %c0_61], %157 {strides = array<i32>} : memref<32x128xf32, #tpu.memory_space<vmem>>, vector<1x128xf32>,
    %c0_62 = arith.constant 0 : index
    %c0_63 = arith.constant 0 : index
    %159 = vector.load %arg3[%c0_62, %c0_63] : memref<128x512xf32, #tpu.memory_space<vmem>>, vector<128x512xf32>
    %cst_64 = arith.constant dense<0.000000e+00> : vector<1x512xf32>
    %160 = tpu.matmul %157, %159, %cst_64 {dimension_numbers = #tpu.dot_dimension_numbers<[1], [0], [0], [1], [0, 0, 1, 1], [], []>} : vector<1x128xf32>, vector<128x512xf32>, vector<1x512xf32> -> vector<1x512xf32>
    %c7 = arith.constant 7 : index
    %c0_65 = arith.constant 0 : index
    %161 = vector.load %arg10[%c7, %c0_65] : memref<32x512xf32, #tpu.memory_space<vmem>>, vector<1x512xf32>
    %162 = arith.addf %161, %160 : vector<1x512xf32>
    %163 = vector.extract_strided_slice %162 {offsets = [0, 0], sizes = [1, 384], strides = [1, 1]} : vector<1x512xf32> to vector<1x384xf32>
    %164 = arith.negf %163 : vector<1x384xf32>
    %165 = math.exp %164 : vector<1x384xf32>
    %cst_66 = arith.constant 1.000000e+00 : f32
    %166 = vector.broadcast %cst_66 : f32 to vector<1x384xf32>
    %167 = arith.addf %166, %165 : vector<1x384xf32>
    %168 = arith.divf %166, %167 : vector<1x384xf32>
    %169 = vector.extract_strided_slice %168 {offsets = [0, 0], sizes = [1, 128], strides = [1, 1]} : vector<1x384xf32> to vector<1x128xf32>
    %170 = vector.extract_strided_slice %168 {offsets = [0, 128], sizes = [1, 128], strides = [1, 1]} : vector<1x384xf32> to vector<1x128xf32>
    %171 = vector.extract_strided_slice %168 {offsets = [0, 256], sizes = [1, 128], strides = [1, 1]} : vector<1x384xf32> to vector<1x128xf32>
    %172 = vector.extract_strided_slice %162 {offsets = [0, 384], sizes = [1, 128], strides = [1, 1]} : vector<1x512xf32> to vector<1x128xf32>
    %173 = math.tanh %172 : vector<1x128xf32>
    %174 = arith.mulf %170, %155 : vector<1x128xf32>
    %175 = arith.mulf %169, %173 : vector<1x128xf32>
    %176 = arith.addf %174, %175 : vector<1x128xf32>
    %177 = math.tanh %176 : vector<1x128xf32>
    %178 = arith.mulf %171, %177 : vector<1x128xf32>
    %c7_67 = arith.constant 7 : index
    %c0_68 = arith.constant 0 : index
    %179 = vector.load %arg11[%c7_67, %c0_68] : memref<32x128xf32, #tpu.memory_space<vmem>>, vector<1x128xf32>
    tpu.vector_store %arg11[%c7_67, %c0_68], %178 {strides = array<i32>} : memref<32x128xf32, #tpu.memory_space<vmem>>, vector<1x128xf32>,
    %c0_69 = arith.constant 0 : index
    %c0_70 = arith.constant 0 : index
    %180 = vector.load %arg3[%c0_69, %c0_70] : memref<128x512xf32, #tpu.memory_space<vmem>>, vector<128x512xf32>
    %cst_71 = arith.constant dense<0.000000e+00> : vector<1x512xf32>
    %181 = tpu.matmul %178, %180, %cst_71 {dimension_numbers = #tpu.dot_dimension_numbers<[1], [0], [0], [1], [0, 0, 1, 1], [], []>} : vector<1x128xf32>, vector<128x512xf32>, vector<1x512xf32> -> vector<1x512xf32>
    %c8 = arith.constant 8 : index
    %c0_72 = arith.constant 0 : index
    %182 = vector.load %arg10[%c8, %c0_72] : memref<32x512xf32, #tpu.memory_space<vmem>>, vector<1x512xf32>
    %183 = arith.addf %182, %181 : vector<1x512xf32>
    %184 = vector.extract_strided_slice %183 {offsets = [0, 0], sizes = [1, 384], strides = [1, 1]} : vector<1x512xf32> to vector<1x384xf32>
    %185 = arith.negf %184 : vector<1x384xf32>
    %186 = math.exp %185 : vector<1x384xf32>
    %cst_73 = arith.constant 1.000000e+00 : f32
    %187 = vector.broadcast %cst_73 : f32 to vector<1x384xf32>
    %188 = arith.addf %187, %186 : vector<1x384xf32>
    %189 = arith.divf %187, %188 : vector<1x384xf32>
    %190 = vector.extract_strided_slice %189 {offsets = [0, 0], sizes = [1, 128], strides = [1, 1]} : vector<1x384xf32> to vector<1x128xf32>
    %191 = vector.extract_strided_slice %189 {offsets = [0, 128], sizes = [1, 128], strides = [1, 1]} : vector<1x384xf32> to vector<1x128xf32>
    %192 = vector.extract_strided_slice %189 {offsets = [0, 256], sizes = [1, 128], strides = [1, 1]} : vector<1x384xf32> to vector<1x128xf32>
    %193 = vector.extract_strided_slice %183 {offsets = [0, 384], sizes = [1, 128], strides = [1, 1]} : vector<1x512xf32> to vector<1x128xf32>
    %194 = math.tanh %193 : vector<1x128xf32>
    %195 = arith.mulf %191, %176 : vector<1x128xf32>
    %196 = arith.mulf %190, %194 : vector<1x128xf32>
    %197 = arith.addf %195, %196 : vector<1x128xf32>
    %198 = math.tanh %197 : vector<1x128xf32>
    %199 = arith.mulf %192, %198 : vector<1x128xf32>
    %c8_74 = arith.constant 8 : index
    %c0_75 = arith.constant 0 : index
    %200 = vector.load %arg11[%c8_74, %c0_75] : memref<32x128xf32, #tpu.memory_space<vmem>>, vector<1x128xf32>
    tpu.vector_store %arg11[%c8_74, %c0_75], %199 {strides = array<i32>} : memref<32x128xf32, #tpu.memory_space<vmem>>, vector<1x128xf32>,
    %c0_76 = arith.constant 0 : index
    %c0_77 = arith.constant 0 : index
    %201 = vector.load %arg3[%c0_76, %c0_77] : memref<128x512xf32, #tpu.memory_space<vmem>>, vector<128x512xf32>
    %cst_78 = arith.constant dense<0.000000e+00> : vector<1x512xf32>
    %202 = tpu.matmul %199, %201, %cst_78 {dimension_numbers = #tpu.dot_dimension_numbers<[1], [0], [0], [1], [0, 0, 1, 1], [], []>} : vector<1x128xf32>, vector<128x512xf32>, vector<1x512xf32> -> vector<1x512xf32>
    %c9 = arith.constant 9 : index
    %c0_79 = arith.constant 0 : index
    %203 = vector.load %arg10[%c9, %c0_79] : memref<32x512xf32, #tpu.memory_space<vmem>>, vector<1x512xf32>
    %204 = arith.addf %203, %202 : vector<1x512xf32>
    %205 = vector.extract_strided_slice %204 {offsets = [0, 0], sizes = [1, 384], strides = [1, 1]} : vector<1x512xf32> to vector<1x384xf32>
    %206 = arith.negf %205 : vector<1x384xf32>
    %207 = math.exp %206 : vector<1x384xf32>
    %cst_80 = arith.constant 1.000000e+00 : f32
    %208 = vector.broadcast %cst_80 : f32 to vector<1x384xf32>
    %209 = arith.addf %208, %207 : vector<1x384xf32>
    %210 = arith.divf %208, %209 : vector<1x384xf32>
    %211 = vector.extract_strided_slice %210 {offsets = [0, 0], sizes = [1, 128], strides = [1, 1]} : vector<1x384xf32> to vector<1x128xf32>
    %212 = vector.extract_strided_slice %210 {offsets = [0, 128], sizes = [1, 128], strides = [1, 1]} : vector<1x384xf32> to vector<1x128xf32>
    %213 = vector.extract_strided_slice %210 {offsets = [0, 256], sizes = [1, 128], strides = [1, 1]} : vector<1x384xf32> to vector<1x128xf32>
    %214 = vector.extract_strided_slice %204 {offsets = [0, 384], sizes = [1, 128], strides = [1, 1]} : vector<1x512xf32> to vector<1x128xf32>
    %215 = math.tanh %214 : vector<1x128xf32>
    %216 = arith.mulf %212, %197 : vector<1x128xf32>
    %217 = arith.mulf %211, %215 : vector<1x128xf32>
    %218 = arith.addf %216, %217 : vector<1x128xf32>
    %219 = math.tanh %218 : vector<1x128xf32>
    %220 = arith.mulf %213, %219 : vector<1x128xf32>
    %c9_81 = arith.constant 9 : index
    %c0_82 = arith.constant 0 : index
    %221 = vector.load %arg11[%c9_81, %c0_82] : memref<32x128xf32, #tpu.memory_space<vmem>>, vector<1x128xf32>
    tpu.vector_store %arg11[%c9_81, %c0_82], %220 {strides = array<i32>} : memref<32x128xf32, #tpu.memory_space<vmem>>, vector<1x128xf32>,
    %c0_83 = arith.constant 0 : index
    %c0_84 = arith.constant 0 : index
    %222 = vector.load %arg3[%c0_83, %c0_84] : memref<128x512xf32, #tpu.memory_space<vmem>>, vector<128x512xf32>
    %cst_85 = arith.constant dense<0.000000e+00> : vector<1x512xf32>
    %223 = tpu.matmul %220, %222, %cst_85 {dimension_numbers = #tpu.dot_dimension_numbers<[1], [0], [0], [1], [0, 0, 1, 1], [], []>} : vector<1x128xf32>, vector<128x512xf32>, vector<1x512xf32> -> vector<1x512xf32>
    %c10 = arith.constant 10 : index
    %c0_86 = arith.constant 0 : index
    %224 = vector.load %arg10[%c10, %c0_86] : memref<32x512xf32, #tpu.memory_space<vmem>>, vector<1x512xf32>
    %225 = arith.addf %224, %223 : vector<1x512xf32>
    %226 = vector.extract_strided_slice %225 {offsets = [0, 0], sizes = [1, 384], strides = [1, 1]} : vector<1x512xf32> to vector<1x384xf32>
    %227 = arith.negf %226 : vector<1x384xf32>
    %228 = math.exp %227 : vector<1x384xf32>
    %cst_87 = arith.constant 1.000000e+00 : f32
    %229 = vector.broadcast %cst_87 : f32 to vector<1x384xf32>
    %230 = arith.addf %229, %228 : vector<1x384xf32>
    %231 = arith.divf %229, %230 : vector<1x384xf32>
    %232 = vector.extract_strided_slice %231 {offsets = [0, 0], sizes = [1, 128], strides = [1, 1]} : vector<1x384xf32> to vector<1x128xf32>
    %233 = vector.extract_strided_slice %231 {offsets = [0, 128], sizes = [1, 128], strides = [1, 1]} : vector<1x384xf32> to vector<1x128xf32>
    %234 = vector.extract_strided_slice %231 {offsets = [0, 256], sizes = [1, 128], strides = [1, 1]} : vector<1x384xf32> to vector<1x128xf32>
    %235 = vector.extract_strided_slice %225 {offsets = [0, 384], sizes = [1, 128], strides = [1, 1]} : vector<1x512xf32> to vector<1x128xf32>
    %236 = math.tanh %235 : vector<1x128xf32>
    %237 = arith.mulf %233, %218 : vector<1x128xf32>
    %238 = arith.mulf %232, %236 : vector<1x128xf32>
    %239 = arith.addf %237, %238 : vector<1x128xf32>
    %240 = math.tanh %239 : vector<1x128xf32>
    %241 = arith.mulf %234, %240 : vector<1x128xf32>
    %c10_88 = arith.constant 10 : index
    %c0_89 = arith.constant 0 : index
    %242 = vector.load %arg11[%c10_88, %c0_89] : memref<32x128xf32, #tpu.memory_space<vmem>>, vector<1x128xf32>
    tpu.vector_store %arg11[%c10_88, %c0_89], %241 {strides = array<i32>} : memref<32x128xf32, #tpu.memory_space<vmem>>, vector<1x128xf32>,
    %c0_90 = arith.constant 0 : index
    %c0_91 = arith.constant 0 : index
    %243 = vector.load %arg3[%c0_90, %c0_91] : memref<128x512xf32, #tpu.memory_space<vmem>>, vector<128x512xf32>
    %cst_92 = arith.constant dense<0.000000e+00> : vector<1x512xf32>
    %244 = tpu.matmul %241, %243, %cst_92 {dimension_numbers = #tpu.dot_dimension_numbers<[1], [0], [0], [1], [0, 0, 1, 1], [], []>} : vector<1x128xf32>, vector<128x512xf32>, vector<1x512xf32> -> vector<1x512xf32>
    %c11 = arith.constant 11 : index
    %c0_93 = arith.constant 0 : index
    %245 = vector.load %arg10[%c11, %c0_93] : memref<32x512xf32, #tpu.memory_space<vmem>>, vector<1x512xf32>
    %246 = arith.addf %245, %244 : vector<1x512xf32>
    %247 = vector.extract_strided_slice %246 {offsets = [0, 0], sizes = [1, 384], strides = [1, 1]} : vector<1x512xf32> to vector<1x384xf32>
    %248 = arith.negf %247 : vector<1x384xf32>
    %249 = math.exp %248 : vector<1x384xf32>
    %cst_94 = arith.constant 1.000000e+00 : f32
    %250 = vector.broadcast %cst_94 : f32 to vector<1x384xf32>
    %251 = arith.addf %250, %249 : vector<1x384xf32>
    %252 = arith.divf %250, %251 : vector<1x384xf32>
    %253 = vector.extract_strided_slice %252 {offsets = [0, 0], sizes = [1, 128], strides = [1, 1]} : vector<1x384xf32> to vector<1x128xf32>
    %254 = vector.extract_strided_slice %252 {offsets = [0, 128], sizes = [1, 128], strides = [1, 1]} : vector<1x384xf32> to vector<1x128xf32>
    %255 = vector.extract_strided_slice %252 {offsets = [0, 256], sizes = [1, 128], strides = [1, 1]} : vector<1x384xf32> to vector<1x128xf32>
    %256 = vector.extract_strided_slice %246 {offsets = [0, 384], sizes = [1, 128], strides = [1, 1]} : vector<1x512xf32> to vector<1x128xf32>
    %257 = math.tanh %256 : vector<1x128xf32>
    %258 = arith.mulf %254, %239 : vector<1x128xf32>
    %259 = arith.mulf %253, %257 : vector<1x128xf32>
    %260 = arith.addf %258, %259 : vector<1x128xf32>
    %261 = math.tanh %260 : vector<1x128xf32>
    %262 = arith.mulf %255, %261 : vector<1x128xf32>
    %c11_95 = arith.constant 11 : index
    %c0_96 = arith.constant 0 : index
    %263 = vector.load %arg11[%c11_95, %c0_96] : memref<32x128xf32, #tpu.memory_space<vmem>>, vector<1x128xf32>
    tpu.vector_store %arg11[%c11_95, %c0_96], %262 {strides = array<i32>} : memref<32x128xf32, #tpu.memory_space<vmem>>, vector<1x128xf32>,
    %c0_97 = arith.constant 0 : index
    %c0_98 = arith.constant 0 : index
    %264 = vector.load %arg3[%c0_97, %c0_98] : memref<128x512xf32, #tpu.memory_space<vmem>>, vector<128x512xf32>
    %cst_99 = arith.constant dense<0.000000e+00> : vector<1x512xf32>
    %265 = tpu.matmul %262, %264, %cst_99 {dimension_numbers = #tpu.dot_dimension_numbers<[1], [0], [0], [1], [0, 0, 1, 1], [], []>} : vector<1x128xf32>, vector<128x512xf32>, vector<1x512xf32> -> vector<1x512xf32>
    %c12 = arith.constant 12 : index
    %c0_100 = arith.constant 0 : index
    %266 = vector.load %arg10[%c12, %c0_100] : memref<32x512xf32, #tpu.memory_space<vmem>>, vector<1x512xf32>
    %267 = arith.addf %266, %265 : vector<1x512xf32>
    %268 = vector.extract_strided_slice %267 {offsets = [0, 0], sizes = [1, 384], strides = [1, 1]} : vector<1x512xf32> to vector<1x384xf32>
    %269 = arith.negf %268 : vector<1x384xf32>
    %270 = math.exp %269 : vector<1x384xf32>
    %cst_101 = arith.constant 1.000000e+00 : f32
    %271 = vector.broadcast %cst_101 : f32 to vector<1x384xf32>
    %272 = arith.addf %271, %270 : vector<1x384xf32>
    %273 = arith.divf %271, %272 : vector<1x384xf32>
    %274 = vector.extract_strided_slice %273 {offsets = [0, 0], sizes = [1, 128], strides = [1, 1]} : vector<1x384xf32> to vector<1x128xf32>
    %275 = vector.extract_strided_slice %273 {offsets = [0, 128], sizes = [1, 128], strides = [1, 1]} : vector<1x384xf32> to vector<1x128xf32>
    %276 = vector.extract_strided_slice %273 {offsets = [0, 256], sizes = [1, 128], strides = [1, 1]} : vector<1x384xf32> to vector<1x128xf32>
    %277 = vector.extract_strided_slice %267 {offsets = [0, 384], sizes = [1, 128], strides = [1, 1]} : vector<1x512xf32> to vector<1x128xf32>
    %278 = math.tanh %277 : vector<1x128xf32>
    %279 = arith.mulf %275, %260 : vector<1x128xf32>
    %280 = arith.mulf %274, %278 : vector<1x128xf32>
    %281 = arith.addf %279, %280 : vector<1x128xf32>
    %282 = math.tanh %281 : vector<1x128xf32>
    %283 = arith.mulf %276, %282 : vector<1x128xf32>
    %c12_102 = arith.constant 12 : index
    %c0_103 = arith.constant 0 : index
    %284 = vector.load %arg11[%c12_102, %c0_103] : memref<32x128xf32, #tpu.memory_space<vmem>>, vector<1x128xf32>
    tpu.vector_store %arg11[%c12_102, %c0_103], %283 {strides = array<i32>} : memref<32x128xf32, #tpu.memory_space<vmem>>, vector<1x128xf32>,
    %c0_104 = arith.constant 0 : index
    %c0_105 = arith.constant 0 : index
    %285 = vector.load %arg3[%c0_104, %c0_105] : memref<128x512xf32, #tpu.memory_space<vmem>>, vector<128x512xf32>
    %cst_106 = arith.constant dense<0.000000e+00> : vector<1x512xf32>
    %286 = tpu.matmul %283, %285, %cst_106 {dimension_numbers = #tpu.dot_dimension_numbers<[1], [0], [0], [1], [0, 0, 1, 1], [], []>} : vector<1x128xf32>, vector<128x512xf32>, vector<1x512xf32> -> vector<1x512xf32>
    %c13 = arith.constant 13 : index
    %c0_107 = arith.constant 0 : index
    %287 = vector.load %arg10[%c13, %c0_107] : memref<32x512xf32, #tpu.memory_space<vmem>>, vector<1x512xf32>
    %288 = arith.addf %287, %286 : vector<1x512xf32>
    %289 = vector.extract_strided_slice %288 {offsets = [0, 0], sizes = [1, 384], strides = [1, 1]} : vector<1x512xf32> to vector<1x384xf32>
    %290 = arith.negf %289 : vector<1x384xf32>
    %291 = math.exp %290 : vector<1x384xf32>
    %cst_108 = arith.constant 1.000000e+00 : f32
    %292 = vector.broadcast %cst_108 : f32 to vector<1x384xf32>
    %293 = arith.addf %292, %291 : vector<1x384xf32>
    %294 = arith.divf %292, %293 : vector<1x384xf32>
    %295 = vector.extract_strided_slice %294 {offsets = [0, 0], sizes = [1, 128], strides = [1, 1]} : vector<1x384xf32> to vector<1x128xf32>
    %296 = vector.extract_strided_slice %294 {offsets = [0, 128], sizes = [1, 128], strides = [1, 1]} : vector<1x384xf32> to vector<1x128xf32>
    %297 = vector.extract_strided_slice %294 {offsets = [0, 256], sizes = [1, 128], strides = [1, 1]} : vector<1x384xf32> to vector<1x128xf32>
    %298 = vector.extract_strided_slice %288 {offsets = [0, 384], sizes = [1, 128], strides = [1, 1]} : vector<1x512xf32> to vector<1x128xf32>
    %299 = math.tanh %298 : vector<1x128xf32>
    %300 = arith.mulf %296, %281 : vector<1x128xf32>
    %301 = arith.mulf %295, %299 : vector<1x128xf32>
    %302 = arith.addf %300, %301 : vector<1x128xf32>
    %303 = math.tanh %302 : vector<1x128xf32>
    %304 = arith.mulf %297, %303 : vector<1x128xf32>
    %c13_109 = arith.constant 13 : index
    %c0_110 = arith.constant 0 : index
    %305 = vector.load %arg11[%c13_109, %c0_110] : memref<32x128xf32, #tpu.memory_space<vmem>>, vector<1x128xf32>
    tpu.vector_store %arg11[%c13_109, %c0_110], %304 {strides = array<i32>} : memref<32x128xf32, #tpu.memory_space<vmem>>, vector<1x128xf32>,
    %c0_111 = arith.constant 0 : index
    %c0_112 = arith.constant 0 : index
    %306 = vector.load %arg3[%c0_111, %c0_112] : memref<128x512xf32, #tpu.memory_space<vmem>>, vector<128x512xf32>
    %cst_113 = arith.constant dense<0.000000e+00> : vector<1x512xf32>
    %307 = tpu.matmul %304, %306, %cst_113 {dimension_numbers = #tpu.dot_dimension_numbers<[1], [0], [0], [1], [0, 0, 1, 1], [], []>} : vector<1x128xf32>, vector<128x512xf32>, vector<1x512xf32> -> vector<1x512xf32>
    %c14 = arith.constant 14 : index
    %c0_114 = arith.constant 0 : index
    %308 = vector.load %arg10[%c14, %c0_114] : memref<32x512xf32, #tpu.memory_space<vmem>>, vector<1x512xf32>
    %309 = arith.addf %308, %307 : vector<1x512xf32>
    %310 = vector.extract_strided_slice %309 {offsets = [0, 0], sizes = [1, 384], strides = [1, 1]} : vector<1x512xf32> to vector<1x384xf32>
    %311 = arith.negf %310 : vector<1x384xf32>
    %312 = math.exp %311 : vector<1x384xf32>
    %cst_115 = arith.constant 1.000000e+00 : f32
    %313 = vector.broadcast %cst_115 : f32 to vector<1x384xf32>
    %314 = arith.addf %313, %312 : vector<1x384xf32>
    %315 = arith.divf %313, %314 : vector<1x384xf32>
    %316 = vector.extract_strided_slice %315 {offsets = [0, 0], sizes = [1, 128], strides = [1, 1]} : vector<1x384xf32> to vector<1x128xf32>
    %317 = vector.extract_strided_slice %315 {offsets = [0, 128], sizes = [1, 128], strides = [1, 1]} : vector<1x384xf32> to vector<1x128xf32>
    %318 = vector.extract_strided_slice %315 {offsets = [0, 256], sizes = [1, 128], strides = [1, 1]} : vector<1x384xf32> to vector<1x128xf32>
    %319 = vector.extract_strided_slice %309 {offsets = [0, 384], sizes = [1, 128], strides = [1, 1]} : vector<1x512xf32> to vector<1x128xf32>
    %320 = math.tanh %319 : vector<1x128xf32>
    %321 = arith.mulf %317, %302 : vector<1x128xf32>
    %322 = arith.mulf %316, %320 : vector<1x128xf32>
    %323 = arith.addf %321, %322 : vector<1x128xf32>
    %324 = math.tanh %323 : vector<1x128xf32>
    %325 = arith.mulf %318, %324 : vector<1x128xf32>
    %c14_116 = arith.constant 14 : index
    %c0_117 = arith.constant 0 : index
    %326 = vector.load %arg11[%c14_116, %c0_117] : memref<32x128xf32, #tpu.memory_space<vmem>>, vector<1x128xf32>
    tpu.vector_store %arg11[%c14_116, %c0_117], %325 {strides = array<i32>} : memref<32x128xf32, #tpu.memory_space<vmem>>, vector<1x128xf32>,
    %c0_118 = arith.constant 0 : index
    %c0_119 = arith.constant 0 : index
    %327 = vector.load %arg3[%c0_118, %c0_119] : memref<128x512xf32, #tpu.memory_space<vmem>>, vector<128x512xf32>
    %cst_120 = arith.constant dense<0.000000e+00> : vector<1x512xf32>
    %328 = tpu.matmul %325, %327, %cst_120 {dimension_numbers = #tpu.dot_dimension_numbers<[1], [0], [0], [1], [0, 0, 1, 1], [], []>} : vector<1x128xf32>, vector<128x512xf32>, vector<1x512xf32> -> vector<1x512xf32>
    %c15 = arith.constant 15 : index
    %c0_121 = arith.constant 0 : index
    %329 = vector.load %arg10[%c15, %c0_121] : memref<32x512xf32, #tpu.memory_space<vmem>>, vector<1x512xf32>
    %330 = arith.addf %329, %328 : vector<1x512xf32>
    %331 = vector.extract_strided_slice %330 {offsets = [0, 0], sizes = [1, 384], strides = [1, 1]} : vector<1x512xf32> to vector<1x384xf32>
    %332 = arith.negf %331 : vector<1x384xf32>
    %333 = math.exp %332 : vector<1x384xf32>
    %cst_122 = arith.constant 1.000000e+00 : f32
    %334 = vector.broadcast %cst_122 : f32 to vector<1x384xf32>
    %335 = arith.addf %334, %333 : vector<1x384xf32>
    %336 = arith.divf %334, %335 : vector<1x384xf32>
    %337 = vector.extract_strided_slice %336 {offsets = [0, 0], sizes = [1, 128], strides = [1, 1]} : vector<1x384xf32> to vector<1x128xf32>
    %338 = vector.extract_strided_slice %336 {offsets = [0, 128], sizes = [1, 128], strides = [1, 1]} : vector<1x384xf32> to vector<1x128xf32>
    %339 = vector.extract_strided_slice %336 {offsets = [0, 256], sizes = [1, 128], strides = [1, 1]} : vector<1x384xf32> to vector<1x128xf32>
    %340 = vector.extract_strided_slice %330 {offsets = [0, 384], sizes = [1, 128], strides = [1, 1]} : vector<1x512xf32> to vector<1x128xf32>
    %341 = math.tanh %340 : vector<1x128xf32>
    %342 = arith.mulf %338, %323 : vector<1x128xf32>
    %343 = arith.mulf %337, %341 : vector<1x128xf32>
    %344 = arith.addf %342, %343 : vector<1x128xf32>
    %345 = math.tanh %344 : vector<1x128xf32>
    %346 = arith.mulf %339, %345 : vector<1x128xf32>
    %c15_123 = arith.constant 15 : index
    %c0_124 = arith.constant 0 : index
    %347 = vector.load %arg11[%c15_123, %c0_124] : memref<32x128xf32, #tpu.memory_space<vmem>>, vector<1x128xf32>
    tpu.vector_store %arg11[%c15_123, %c0_124], %346 {strides = array<i32>} : memref<32x128xf32, #tpu.memory_space<vmem>>, vector<1x128xf32>,
    %c0_125 = arith.constant 0 : index
    %c0_126 = arith.constant 0 : index
    %348 = vector.load %arg3[%c0_125, %c0_126] : memref<128x512xf32, #tpu.memory_space<vmem>>, vector<128x512xf32>
    %cst_127 = arith.constant dense<0.000000e+00> : vector<1x512xf32>
    %349 = tpu.matmul %346, %348, %cst_127 {dimension_numbers = #tpu.dot_dimension_numbers<[1], [0], [0], [1], [0, 0, 1, 1], [], []>} : vector<1x128xf32>, vector<128x512xf32>, vector<1x512xf32> -> vector<1x512xf32>
    %c16 = arith.constant 16 : index
    %c0_128 = arith.constant 0 : index
    %350 = vector.load %arg10[%c16, %c0_128] : memref<32x512xf32, #tpu.memory_space<vmem>>, vector<1x512xf32>
    %351 = arith.addf %350, %349 : vector<1x512xf32>
    %352 = vector.extract_strided_slice %351 {offsets = [0, 0], sizes = [1, 384], strides = [1, 1]} : vector<1x512xf32> to vector<1x384xf32>
    %353 = arith.negf %352 : vector<1x384xf32>
    %354 = math.exp %353 : vector<1x384xf32>
    %cst_129 = arith.constant 1.000000e+00 : f32
    %355 = vector.broadcast %cst_129 : f32 to vector<1x384xf32>
    %356 = arith.addf %355, %354 : vector<1x384xf32>
    %357 = arith.divf %355, %356 : vector<1x384xf32>
    %358 = vector.extract_strided_slice %357 {offsets = [0, 0], sizes = [1, 128], strides = [1, 1]} : vector<1x384xf32> to vector<1x128xf32>
    %359 = vector.extract_strided_slice %357 {offsets = [0, 128], sizes = [1, 128], strides = [1, 1]} : vector<1x384xf32> to vector<1x128xf32>
    %360 = vector.extract_strided_slice %357 {offsets = [0, 256], sizes = [1, 128], strides = [1, 1]} : vector<1x384xf32> to vector<1x128xf32>
    %361 = vector.extract_strided_slice %351 {offsets = [0, 384], sizes = [1, 128], strides = [1, 1]} : vector<1x512xf32> to vector<1x128xf32>
    %362 = math.tanh %361 : vector<1x128xf32>
    %363 = arith.mulf %359, %344 : vector<1x128xf32>
    %364 = arith.mulf %358, %362 : vector<1x128xf32>
    %365 = arith.addf %363, %364 : vector<1x128xf32>
    %366 = math.tanh %365 : vector<1x128xf32>
    %367 = arith.mulf %360, %366 : vector<1x128xf32>
    %c16_130 = arith.constant 16 : index
    %c0_131 = arith.constant 0 : index
    %368 = vector.load %arg11[%c16_130, %c0_131] : memref<32x128xf32, #tpu.memory_space<vmem>>, vector<1x128xf32>
    tpu.vector_store %arg11[%c16_130, %c0_131], %367 {strides = array<i32>} : memref<32x128xf32, #tpu.memory_space<vmem>>, vector<1x128xf32>,
    %c0_132 = arith.constant 0 : index
    %c0_133 = arith.constant 0 : index
    %369 = vector.load %arg3[%c0_132, %c0_133] : memref<128x512xf32, #tpu.memory_space<vmem>>, vector<128x512xf32>
    %cst_134 = arith.constant dense<0.000000e+00> : vector<1x512xf32>
    %370 = tpu.matmul %367, %369, %cst_134 {dimension_numbers = #tpu.dot_dimension_numbers<[1], [0], [0], [1], [0, 0, 1, 1], [], []>} : vector<1x128xf32>, vector<128x512xf32>, vector<1x512xf32> -> vector<1x512xf32>
    %c17 = arith.constant 17 : index
    %c0_135 = arith.constant 0 : index
    %371 = vector.load %arg10[%c17, %c0_135] : memref<32x512xf32, #tpu.memory_space<vmem>>, vector<1x512xf32>
    %372 = arith.addf %371, %370 : vector<1x512xf32>
    %373 = vector.extract_strided_slice %372 {offsets = [0, 0], sizes = [1, 384], strides = [1, 1]} : vector<1x512xf32> to vector<1x384xf32>
    %374 = arith.negf %373 : vector<1x384xf32>
    %375 = math.exp %374 : vector<1x384xf32>
    %cst_136 = arith.constant 1.000000e+00 : f32
    %376 = vector.broadcast %cst_136 : f32 to vector<1x384xf32>
    %377 = arith.addf %376, %375 : vector<1x384xf32>
    %378 = arith.divf %376, %377 : vector<1x384xf32>
    %379 = vector.extract_strided_slice %378 {offsets = [0, 0], sizes = [1, 128], strides = [1, 1]} : vector<1x384xf32> to vector<1x128xf32>
    %380 = vector.extract_strided_slice %378 {offsets = [0, 128], sizes = [1, 128], strides = [1, 1]} : vector<1x384xf32> to vector<1x128xf32>
    %381 = vector.extract_strided_slice %378 {offsets = [0, 256], sizes = [1, 128], strides = [1, 1]} : vector<1x384xf32> to vector<1x128xf32>
    %382 = vector.extract_strided_slice %372 {offsets = [0, 384], sizes = [1, 128], strides = [1, 1]} : vector<1x512xf32> to vector<1x128xf32>
    %383 = math.tanh %382 : vector<1x128xf32>
    %384 = arith.mulf %380, %365 : vector<1x128xf32>
    %385 = arith.mulf %379, %383 : vector<1x128xf32>
    %386 = arith.addf %384, %385 : vector<1x128xf32>
    %387 = math.tanh %386 : vector<1x128xf32>
    %388 = arith.mulf %381, %387 : vector<1x128xf32>
    %c17_137 = arith.constant 17 : index
    %c0_138 = arith.constant 0 : index
    %389 = vector.load %arg11[%c17_137, %c0_138] : memref<32x128xf32, #tpu.memory_space<vmem>>, vector<1x128xf32>
    tpu.vector_store %arg11[%c17_137, %c0_138], %388 {strides = array<i32>} : memref<32x128xf32, #tpu.memory_space<vmem>>, vector<1x128xf32>,
    %c0_139 = arith.constant 0 : index
    %c0_140 = arith.constant 0 : index
    %390 = vector.load %arg3[%c0_139, %c0_140] : memref<128x512xf32, #tpu.memory_space<vmem>>, vector<128x512xf32>
    %cst_141 = arith.constant dense<0.000000e+00> : vector<1x512xf32>
    %391 = tpu.matmul %388, %390, %cst_141 {dimension_numbers = #tpu.dot_dimension_numbers<[1], [0], [0], [1], [0, 0, 1, 1], [], []>} : vector<1x128xf32>, vector<128x512xf32>, vector<1x512xf32> -> vector<1x512xf32>
    %c18 = arith.constant 18 : index
    %c0_142 = arith.constant 0 : index
    %392 = vector.load %arg10[%c18, %c0_142] : memref<32x512xf32, #tpu.memory_space<vmem>>, vector<1x512xf32>
    %393 = arith.addf %392, %391 : vector<1x512xf32>
    %394 = vector.extract_strided_slice %393 {offsets = [0, 0], sizes = [1, 384], strides = [1, 1]} : vector<1x512xf32> to vector<1x384xf32>
    %395 = arith.negf %394 : vector<1x384xf32>
    %396 = math.exp %395 : vector<1x384xf32>
    %cst_143 = arith.constant 1.000000e+00 : f32
    %397 = vector.broadcast %cst_143 : f32 to vector<1x384xf32>
    %398 = arith.addf %397, %396 : vector<1x384xf32>
    %399 = arith.divf %397, %398 : vector<1x384xf32>
    %400 = vector.extract_strided_slice %399 {offsets = [0, 0], sizes = [1, 128], strides = [1, 1]} : vector<1x384xf32> to vector<1x128xf32>
    %401 = vector.extract_strided_slice %399 {offsets = [0, 128], sizes = [1, 128], strides = [1, 1]} : vector<1x384xf32> to vector<1x128xf32>
    %402 = vector.extract_strided_slice %399 {offsets = [0, 256], sizes = [1, 128], strides = [1, 1]} : vector<1x384xf32> to vector<1x128xf32>
    %403 = vector.extract_strided_slice %393 {offsets = [0, 384], sizes = [1, 128], strides = [1, 1]} : vector<1x512xf32> to vector<1x128xf32>
    %404 = math.tanh %403 : vector<1x128xf32>
    %405 = arith.mulf %401, %386 : vector<1x128xf32>
    %406 = arith.mulf %400, %404 : vector<1x128xf32>
    %407 = arith.addf %405, %406 : vector<1x128xf32>
    %408 = math.tanh %407 : vector<1x128xf32>
    %409 = arith.mulf %402, %408 : vector<1x128xf32>
    %c18_144 = arith.constant 18 : index
    %c0_145 = arith.constant 0 : index
    %410 = vector.load %arg11[%c18_144, %c0_145] : memref<32x128xf32, #tpu.memory_space<vmem>>, vector<1x128xf32>
    tpu.vector_store %arg11[%c18_144, %c0_145], %409 {strides = array<i32>} : memref<32x128xf32, #tpu.memory_space<vmem>>, vector<1x128xf32>,
    %c0_146 = arith.constant 0 : index
    %c0_147 = arith.constant 0 : index
    %411 = vector.load %arg3[%c0_146, %c0_147] : memref<128x512xf32, #tpu.memory_space<vmem>>, vector<128x512xf32>
    %cst_148 = arith.constant dense<0.000000e+00> : vector<1x512xf32>
    %412 = tpu.matmul %409, %411, %cst_148 {dimension_numbers = #tpu.dot_dimension_numbers<[1], [0], [0], [1], [0, 0, 1, 1], [], []>} : vector<1x128xf32>, vector<128x512xf32>, vector<1x512xf32> -> vector<1x512xf32>
    %c19 = arith.constant 19 : index
    %c0_149 = arith.constant 0 : index
    %413 = vector.load %arg10[%c19, %c0_149] : memref<32x512xf32, #tpu.memory_space<vmem>>, vector<1x512xf32>
    %414 = arith.addf %413, %412 : vector<1x512xf32>
    %415 = vector.extract_strided_slice %414 {offsets = [0, 0], sizes = [1, 384], strides = [1, 1]} : vector<1x512xf32> to vector<1x384xf32>
    %416 = arith.negf %415 : vector<1x384xf32>
    %417 = math.exp %416 : vector<1x384xf32>
    %cst_150 = arith.constant 1.000000e+00 : f32
    %418 = vector.broadcast %cst_150 : f32 to vector<1x384xf32>
    %419 = arith.addf %418, %417 : vector<1x384xf32>
    %420 = arith.divf %418, %419 : vector<1x384xf32>
    %421 = vector.extract_strided_slice %420 {offsets = [0, 0], sizes = [1, 128], strides = [1, 1]} : vector<1x384xf32> to vector<1x128xf32>
    %422 = vector.extract_strided_slice %420 {offsets = [0, 128], sizes = [1, 128], strides = [1, 1]} : vector<1x384xf32> to vector<1x128xf32>
    %423 = vector.extract_strided_slice %420 {offsets = [0, 256], sizes = [1, 128], strides = [1, 1]} : vector<1x384xf32> to vector<1x128xf32>
    %424 = vector.extract_strided_slice %414 {offsets = [0, 384], sizes = [1, 128], strides = [1, 1]} : vector<1x512xf32> to vector<1x128xf32>
    %425 = math.tanh %424 : vector<1x128xf32>
    %426 = arith.mulf %422, %407 : vector<1x128xf32>
    %427 = arith.mulf %421, %425 : vector<1x128xf32>
    %428 = arith.addf %426, %427 : vector<1x128xf32>
    %429 = math.tanh %428 : vector<1x128xf32>
    %430 = arith.mulf %423, %429 : vector<1x128xf32>
    %c19_151 = arith.constant 19 : index
    %c0_152 = arith.constant 0 : index
    %431 = vector.load %arg11[%c19_151, %c0_152] : memref<32x128xf32, #tpu.memory_space<vmem>>, vector<1x128xf32>
    tpu.vector_store %arg11[%c19_151, %c0_152], %430 {strides = array<i32>} : memref<32x128xf32, #tpu.memory_space<vmem>>, vector<1x128xf32>,
    %c0_153 = arith.constant 0 : index
    %c0_154 = arith.constant 0 : index
    %432 = vector.load %arg3[%c0_153, %c0_154] : memref<128x512xf32, #tpu.memory_space<vmem>>, vector<128x512xf32>
    %cst_155 = arith.constant dense<0.000000e+00> : vector<1x512xf32>
    %433 = tpu.matmul %430, %432, %cst_155 {dimension_numbers = #tpu.dot_dimension_numbers<[1], [0], [0], [1], [0, 0, 1, 1], [], []>} : vector<1x128xf32>, vector<128x512xf32>, vector<1x512xf32> -> vector<1x512xf32>
    %c20 = arith.constant 20 : index
    %c0_156 = arith.constant 0 : index
    %434 = vector.load %arg10[%c20, %c0_156] : memref<32x512xf32, #tpu.memory_space<vmem>>, vector<1x512xf32>
    %435 = arith.addf %434, %433 : vector<1x512xf32>
    %436 = vector.extract_strided_slice %435 {offsets = [0, 0], sizes = [1, 384], strides = [1, 1]} : vector<1x512xf32> to vector<1x384xf32>
    %437 = arith.negf %436 : vector<1x384xf32>
    %438 = math.exp %437 : vector<1x384xf32>
    %cst_157 = arith.constant 1.000000e+00 : f32
    %439 = vector.broadcast %cst_157 : f32 to vector<1x384xf32>
    %440 = arith.addf %439, %438 : vector<1x384xf32>
    %441 = arith.divf %439, %440 : vector<1x384xf32>
    %442 = vector.extract_strided_slice %441 {offsets = [0, 0], sizes = [1, 128], strides = [1, 1]} : vector<1x384xf32> to vector<1x128xf32>
    %443 = vector.extract_strided_slice %441 {offsets = [0, 128], sizes = [1, 128], strides = [1, 1]} : vector<1x384xf32> to vector<1x128xf32>
    %444 = vector.extract_strided_slice %441 {offsets = [0, 256], sizes = [1, 128], strides = [1, 1]} : vector<1x384xf32> to vector<1x128xf32>
    %445 = vector.extract_strided_slice %435 {offsets = [0, 384], sizes = [1, 128], strides = [1, 1]} : vector<1x512xf32> to vector<1x128xf32>
    %446 = math.tanh %445 : vector<1x128xf32>
    %447 = arith.mulf %443, %428 : vector<1x128xf32>
    %448 = arith.mulf %442, %446 : vector<1x128xf32>
    %449 = arith.addf %447, %448 : vector<1x128xf32>
    %450 = math.tanh %449 : vector<1x128xf32>
    %451 = arith.mulf %444, %450 : vector<1x128xf32>
    %c20_158 = arith.constant 20 : index
    %c0_159 = arith.constant 0 : index
    %452 = vector.load %arg11[%c20_158, %c0_159] : memref<32x128xf32, #tpu.memory_space<vmem>>, vector<1x128xf32>
    tpu.vector_store %arg11[%c20_158, %c0_159], %451 {strides = array<i32>} : memref<32x128xf32, #tpu.memory_space<vmem>>, vector<1x128xf32>,
    %c0_160 = arith.constant 0 : index
    %c0_161 = arith.constant 0 : index
    %453 = vector.load %arg3[%c0_160, %c0_161] : memref<128x512xf32, #tpu.memory_space<vmem>>, vector<128x512xf32>
    %cst_162 = arith.constant dense<0.000000e+00> : vector<1x512xf32>
    %454 = tpu.matmul %451, %453, %cst_162 {dimension_numbers = #tpu.dot_dimension_numbers<[1], [0], [0], [1], [0, 0, 1, 1], [], []>} : vector<1x128xf32>, vector<128x512xf32>, vector<1x512xf32> -> vector<1x512xf32>
    %c21 = arith.constant 21 : index
    %c0_163 = arith.constant 0 : index
    %455 = vector.load %arg10[%c21, %c0_163] : memref<32x512xf32, #tpu.memory_space<vmem>>, vector<1x512xf32>
    %456 = arith.addf %455, %454 : vector<1x512xf32>
    %457 = vector.extract_strided_slice %456 {offsets = [0, 0], sizes = [1, 384], strides = [1, 1]} : vector<1x512xf32> to vector<1x384xf32>
    %458 = arith.negf %457 : vector<1x384xf32>
    %459 = math.exp %458 : vector<1x384xf32>
    %cst_164 = arith.constant 1.000000e+00 : f32
    %460 = vector.broadcast %cst_164 : f32 to vector<1x384xf32>
    %461 = arith.addf %460, %459 : vector<1x384xf32>
    %462 = arith.divf %460, %461 : vector<1x384xf32>
    %463 = vector.extract_strided_slice %462 {offsets = [0, 0], sizes = [1, 128], strides = [1, 1]} : vector<1x384xf32> to vector<1x128xf32>
    %464 = vector.extract_strided_slice %462 {offsets = [0, 128], sizes = [1, 128], strides = [1, 1]} : vector<1x384xf32> to vector<1x128xf32>
    %465 = vector.extract_strided_slice %462 {offsets = [0, 256], sizes = [1, 128], strides = [1, 1]} : vector<1x384xf32> to vector<1x128xf32>
    %466 = vector.extract_strided_slice %456 {offsets = [0, 384], sizes = [1, 128], strides = [1, 1]} : vector<1x512xf32> to vector<1x128xf32>
    %467 = math.tanh %466 : vector<1x128xf32>
    %468 = arith.mulf %464, %449 : vector<1x128xf32>
    %469 = arith.mulf %463, %467 : vector<1x128xf32>
    %470 = arith.addf %468, %469 : vector<1x128xf32>
    %471 = math.tanh %470 : vector<1x128xf32>
    %472 = arith.mulf %465, %471 : vector<1x128xf32>
    %c21_165 = arith.constant 21 : index
    %c0_166 = arith.constant 0 : index
    %473 = vector.load %arg11[%c21_165, %c0_166] : memref<32x128xf32, #tpu.memory_space<vmem>>, vector<1x128xf32>
    tpu.vector_store %arg11[%c21_165, %c0_166], %472 {strides = array<i32>} : memref<32x128xf32, #tpu.memory_space<vmem>>, vector<1x128xf32>,
    %c0_167 = arith.constant 0 : index
    %c0_168 = arith.constant 0 : index
    %474 = vector.load %arg3[%c0_167, %c0_168] : memref<128x512xf32, #tpu.memory_space<vmem>>, vector<128x512xf32>
    %cst_169 = arith.constant dense<0.000000e+00> : vector<1x512xf32>
    %475 = tpu.matmul %472, %474, %cst_169 {dimension_numbers = #tpu.dot_dimension_numbers<[1], [0], [0], [1], [0, 0, 1, 1], [], []>} : vector<1x128xf32>, vector<128x512xf32>, vector<1x512xf32> -> vector<1x512xf32>
    %c22 = arith.constant 22 : index
    %c0_170 = arith.constant 0 : index
    %476 = vector.load %arg10[%c22, %c0_170] : memref<32x512xf32, #tpu.memory_space<vmem>>, vector<1x512xf32>
    %477 = arith.addf %476, %475 : vector<1x512xf32>
    %478 = vector.extract_strided_slice %477 {offsets = [0, 0], sizes = [1, 384], strides = [1, 1]} : vector<1x512xf32> to vector<1x384xf32>
    %479 = arith.negf %478 : vector<1x384xf32>
    %480 = math.exp %479 : vector<1x384xf32>
    %cst_171 = arith.constant 1.000000e+00 : f32
    %481 = vector.broadcast %cst_171 : f32 to vector<1x384xf32>
    %482 = arith.addf %481, %480 : vector<1x384xf32>
    %483 = arith.divf %481, %482 : vector<1x384xf32>
    %484 = vector.extract_strided_slice %483 {offsets = [0, 0], sizes = [1, 128], strides = [1, 1]} : vector<1x384xf32> to vector<1x128xf32>
    %485 = vector.extract_strided_slice %483 {offsets = [0, 128], sizes = [1, 128], strides = [1, 1]} : vector<1x384xf32> to vector<1x128xf32>
    %486 = vector.extract_strided_slice %483 {offsets = [0, 256], sizes = [1, 128], strides = [1, 1]} : vector<1x384xf32> to vector<1x128xf32>
    %487 = vector.extract_strided_slice %477 {offsets = [0, 384], sizes = [1, 128], strides = [1, 1]} : vector<1x512xf32> to vector<1x128xf32>
    %488 = math.tanh %487 : vector<1x128xf32>
    %489 = arith.mulf %485, %470 : vector<1x128xf32>
    %490 = arith.mulf %484, %488 : vector<1x128xf32>
    %491 = arith.addf %489, %490 : vector<1x128xf32>
    %492 = math.tanh %491 : vector<1x128xf32>
    %493 = arith.mulf %486, %492 : vector<1x128xf32>
    %c22_172 = arith.constant 22 : index
    %c0_173 = arith.constant 0 : index
    %494 = vector.load %arg11[%c22_172, %c0_173] : memref<32x128xf32, #tpu.memory_space<vmem>>, vector<1x128xf32>
    tpu.vector_store %arg11[%c22_172, %c0_173], %493 {strides = array<i32>} : memref<32x128xf32, #tpu.memory_space<vmem>>, vector<1x128xf32>,
    %c0_174 = arith.constant 0 : index
    %c0_175 = arith.constant 0 : index
    %495 = vector.load %arg3[%c0_174, %c0_175] : memref<128x512xf32, #tpu.memory_space<vmem>>, vector<128x512xf32>
    %cst_176 = arith.constant dense<0.000000e+00> : vector<1x512xf32>
    %496 = tpu.matmul %493, %495, %cst_176 {dimension_numbers = #tpu.dot_dimension_numbers<[1], [0], [0], [1], [0, 0, 1, 1], [], []>} : vector<1x128xf32>, vector<128x512xf32>, vector<1x512xf32> -> vector<1x512xf32>
    %c23 = arith.constant 23 : index
    %c0_177 = arith.constant 0 : index
    %497 = vector.load %arg10[%c23, %c0_177] : memref<32x512xf32, #tpu.memory_space<vmem>>, vector<1x512xf32>
    %498 = arith.addf %497, %496 : vector<1x512xf32>
    %499 = vector.extract_strided_slice %498 {offsets = [0, 0], sizes = [1, 384], strides = [1, 1]} : vector<1x512xf32> to vector<1x384xf32>
    %500 = arith.negf %499 : vector<1x384xf32>
    %501 = math.exp %500 : vector<1x384xf32>
    %cst_178 = arith.constant 1.000000e+00 : f32
    %502 = vector.broadcast %cst_178 : f32 to vector<1x384xf32>
    %503 = arith.addf %502, %501 : vector<1x384xf32>
    %504 = arith.divf %502, %503 : vector<1x384xf32>
    %505 = vector.extract_strided_slice %504 {offsets = [0, 0], sizes = [1, 128], strides = [1, 1]} : vector<1x384xf32> to vector<1x128xf32>
    %506 = vector.extract_strided_slice %504 {offsets = [0, 128], sizes = [1, 128], strides = [1, 1]} : vector<1x384xf32> to vector<1x128xf32>
    %507 = vector.extract_strided_slice %504 {offsets = [0, 256], sizes = [1, 128], strides = [1, 1]} : vector<1x384xf32> to vector<1x128xf32>
    %508 = vector.extract_strided_slice %498 {offsets = [0, 384], sizes = [1, 128], strides = [1, 1]} : vector<1x512xf32> to vector<1x128xf32>
    %509 = math.tanh %508 : vector<1x128xf32>
    %510 = arith.mulf %506, %491 : vector<1x128xf32>
    %511 = arith.mulf %505, %509 : vector<1x128xf32>
    %512 = arith.addf %510, %511 : vector<1x128xf32>
    %513 = math.tanh %512 : vector<1x128xf32>
    %514 = arith.mulf %507, %513 : vector<1x128xf32>
    %c23_179 = arith.constant 23 : index
    %c0_180 = arith.constant 0 : index
    %515 = vector.load %arg11[%c23_179, %c0_180] : memref<32x128xf32, #tpu.memory_space<vmem>>, vector<1x128xf32>
    tpu.vector_store %arg11[%c23_179, %c0_180], %514 {strides = array<i32>} : memref<32x128xf32, #tpu.memory_space<vmem>>, vector<1x128xf32>,
    %c0_181 = arith.constant 0 : index
    %c0_182 = arith.constant 0 : index
    %516 = vector.load %arg3[%c0_181, %c0_182] : memref<128x512xf32, #tpu.memory_space<vmem>>, vector<128x512xf32>
    %cst_183 = arith.constant dense<0.000000e+00> : vector<1x512xf32>
    %517 = tpu.matmul %514, %516, %cst_183 {dimension_numbers = #tpu.dot_dimension_numbers<[1], [0], [0], [1], [0, 0, 1, 1], [], []>} : vector<1x128xf32>, vector<128x512xf32>, vector<1x512xf32> -> vector<1x512xf32>
    %c24 = arith.constant 24 : index
    %c0_184 = arith.constant 0 : index
    %518 = vector.load %arg10[%c24, %c0_184] : memref<32x512xf32, #tpu.memory_space<vmem>>, vector<1x512xf32>
    %519 = arith.addf %518, %517 : vector<1x512xf32>
    %520 = vector.extract_strided_slice %519 {offsets = [0, 0], sizes = [1, 384], strides = [1, 1]} : vector<1x512xf32> to vector<1x384xf32>
    %521 = arith.negf %520 : vector<1x384xf32>
    %522 = math.exp %521 : vector<1x384xf32>
    %cst_185 = arith.constant 1.000000e+00 : f32
    %523 = vector.broadcast %cst_185 : f32 to vector<1x384xf32>
    %524 = arith.addf %523, %522 : vector<1x384xf32>
    %525 = arith.divf %523, %524 : vector<1x384xf32>
    %526 = vector.extract_strided_slice %525 {offsets = [0, 0], sizes = [1, 128], strides = [1, 1]} : vector<1x384xf32> to vector<1x128xf32>
    %527 = vector.extract_strided_slice %525 {offsets = [0, 128], sizes = [1, 128], strides = [1, 1]} : vector<1x384xf32> to vector<1x128xf32>
    %528 = vector.extract_strided_slice %525 {offsets = [0, 256], sizes = [1, 128], strides = [1, 1]} : vector<1x384xf32> to vector<1x128xf32>
    %529 = vector.extract_strided_slice %519 {offsets = [0, 384], sizes = [1, 128], strides = [1, 1]} : vector<1x512xf32> to vector<1x128xf32>
    %530 = math.tanh %529 : vector<1x128xf32>
    %531 = arith.mulf %527, %512 : vector<1x128xf32>
    %532 = arith.mulf %526, %530 : vector<1x128xf32>
    %533 = arith.addf %531, %532 : vector<1x128xf32>
    %534 = math.tanh %533 : vector<1x128xf32>
    %535 = arith.mulf %528, %534 : vector<1x128xf32>
    %c24_186 = arith.constant 24 : index
    %c0_187 = arith.constant 0 : index
    %536 = vector.load %arg11[%c24_186, %c0_187] : memref<32x128xf32, #tpu.memory_space<vmem>>, vector<1x128xf32>
    tpu.vector_store %arg11[%c24_186, %c0_187], %535 {strides = array<i32>} : memref<32x128xf32, #tpu.memory_space<vmem>>, vector<1x128xf32>,
    %c0_188 = arith.constant 0 : index
    %c0_189 = arith.constant 0 : index
    %537 = vector.load %arg3[%c0_188, %c0_189] : memref<128x512xf32, #tpu.memory_space<vmem>>, vector<128x512xf32>
    %cst_190 = arith.constant dense<0.000000e+00> : vector<1x512xf32>
    %538 = tpu.matmul %535, %537, %cst_190 {dimension_numbers = #tpu.dot_dimension_numbers<[1], [0], [0], [1], [0, 0, 1, 1], [], []>} : vector<1x128xf32>, vector<128x512xf32>, vector<1x512xf32> -> vector<1x512xf32>
    %c25 = arith.constant 25 : index
    %c0_191 = arith.constant 0 : index
    %539 = vector.load %arg10[%c25, %c0_191] : memref<32x512xf32, #tpu.memory_space<vmem>>, vector<1x512xf32>
    %540 = arith.addf %539, %538 : vector<1x512xf32>
    %541 = vector.extract_strided_slice %540 {offsets = [0, 0], sizes = [1, 384], strides = [1, 1]} : vector<1x512xf32> to vector<1x384xf32>
    %542 = arith.negf %541 : vector<1x384xf32>
    %543 = math.exp %542 : vector<1x384xf32>
    %cst_192 = arith.constant 1.000000e+00 : f32
    %544 = vector.broadcast %cst_192 : f32 to vector<1x384xf32>
    %545 = arith.addf %544, %543 : vector<1x384xf32>
    %546 = arith.divf %544, %545 : vector<1x384xf32>
    %547 = vector.extract_strided_slice %546 {offsets = [0, 0], sizes = [1, 128], strides = [1, 1]} : vector<1x384xf32> to vector<1x128xf32>
    %548 = vector.extract_strided_slice %546 {offsets = [0, 128], sizes = [1, 128], strides = [1, 1]} : vector<1x384xf32> to vector<1x128xf32>
    %549 = vector.extract_strided_slice %546 {offsets = [0, 256], sizes = [1, 128], strides = [1, 1]} : vector<1x384xf32> to vector<1x128xf32>
    %550 = vector.extract_strided_slice %540 {offsets = [0, 384], sizes = [1, 128], strides = [1, 1]} : vector<1x512xf32> to vector<1x128xf32>
    %551 = math.tanh %550 : vector<1x128xf32>
    %552 = arith.mulf %548, %533 : vector<1x128xf32>
    %553 = arith.mulf %547, %551 : vector<1x128xf32>
    %554 = arith.addf %552, %553 : vector<1x128xf32>
    %555 = math.tanh %554 : vector<1x128xf32>
    %556 = arith.mulf %549, %555 : vector<1x128xf32>
    %c25_193 = arith.constant 25 : index
    %c0_194 = arith.constant 0 : index
    %557 = vector.load %arg11[%c25_193, %c0_194] : memref<32x128xf32, #tpu.memory_space<vmem>>, vector<1x128xf32>
    tpu.vector_store %arg11[%c25_193, %c0_194], %556 {strides = array<i32>} : memref<32x128xf32, #tpu.memory_space<vmem>>, vector<1x128xf32>,
    %c0_195 = arith.constant 0 : index
    %c0_196 = arith.constant 0 : index
    %558 = vector.load %arg3[%c0_195, %c0_196] : memref<128x512xf32, #tpu.memory_space<vmem>>, vector<128x512xf32>
    %cst_197 = arith.constant dense<0.000000e+00> : vector<1x512xf32>
    %559 = tpu.matmul %556, %558, %cst_197 {dimension_numbers = #tpu.dot_dimension_numbers<[1], [0], [0], [1], [0, 0, 1, 1], [], []>} : vector<1x128xf32>, vector<128x512xf32>, vector<1x512xf32> -> vector<1x512xf32>
    %c26 = arith.constant 26 : index
    %c0_198 = arith.constant 0 : index
    %560 = vector.load %arg10[%c26, %c0_198] : memref<32x512xf32, #tpu.memory_space<vmem>>, vector<1x512xf32>
    %561 = arith.addf %560, %559 : vector<1x512xf32>
    %562 = vector.extract_strided_slice %561 {offsets = [0, 0], sizes = [1, 384], strides = [1, 1]} : vector<1x512xf32> to vector<1x384xf32>
    %563 = arith.negf %562 : vector<1x384xf32>
    %564 = math.exp %563 : vector<1x384xf32>
    %cst_199 = arith.constant 1.000000e+00 : f32
    %565 = vector.broadcast %cst_199 : f32 to vector<1x384xf32>
    %566 = arith.addf %565, %564 : vector<1x384xf32>
    %567 = arith.divf %565, %566 : vector<1x384xf32>
    %568 = vector.extract_strided_slice %567 {offsets = [0, 0], sizes = [1, 128], strides = [1, 1]} : vector<1x384xf32> to vector<1x128xf32>
    %569 = vector.extract_strided_slice %567 {offsets = [0, 128], sizes = [1, 128], strides = [1, 1]} : vector<1x384xf32> to vector<1x128xf32>
    %570 = vector.extract_strided_slice %567 {offsets = [0, 256], sizes = [1, 128], strides = [1, 1]} : vector<1x384xf32> to vector<1x128xf32>
    %571 = vector.extract_strided_slice %561 {offsets = [0, 384], sizes = [1, 128], strides = [1, 1]} : vector<1x512xf32> to vector<1x128xf32>
    %572 = math.tanh %571 : vector<1x128xf32>
    %573 = arith.mulf %569, %554 : vector<1x128xf32>
    %574 = arith.mulf %568, %572 : vector<1x128xf32>
    %575 = arith.addf %573, %574 : vector<1x128xf32>
    %576 = math.tanh %575 : vector<1x128xf32>
    %577 = arith.mulf %570, %576 : vector<1x128xf32>
    %c26_200 = arith.constant 26 : index
    %c0_201 = arith.constant 0 : index
    %578 = vector.load %arg11[%c26_200, %c0_201] : memref<32x128xf32, #tpu.memory_space<vmem>>, vector<1x128xf32>
    tpu.vector_store %arg11[%c26_200, %c0_201], %577 {strides = array<i32>} : memref<32x128xf32, #tpu.memory_space<vmem>>, vector<1x128xf32>,
    %c0_202 = arith.constant 0 : index
    %c0_203 = arith.constant 0 : index
    %579 = vector.load %arg3[%c0_202, %c0_203] : memref<128x512xf32, #tpu.memory_space<vmem>>, vector<128x512xf32>
    %cst_204 = arith.constant dense<0.000000e+00> : vector<1x512xf32>
    %580 = tpu.matmul %577, %579, %cst_204 {dimension_numbers = #tpu.dot_dimension_numbers<[1], [0], [0], [1], [0, 0, 1, 1], [], []>} : vector<1x128xf32>, vector<128x512xf32>, vector<1x512xf32> -> vector<1x512xf32>
    %c27 = arith.constant 27 : index
    %c0_205 = arith.constant 0 : index
    %581 = vector.load %arg10[%c27, %c0_205] : memref<32x512xf32, #tpu.memory_space<vmem>>, vector<1x512xf32>
    %582 = arith.addf %581, %580 : vector<1x512xf32>
    %583 = vector.extract_strided_slice %582 {offsets = [0, 0], sizes = [1, 384], strides = [1, 1]} : vector<1x512xf32> to vector<1x384xf32>
    %584 = arith.negf %583 : vector<1x384xf32>
    %585 = math.exp %584 : vector<1x384xf32>
    %cst_206 = arith.constant 1.000000e+00 : f32
    %586 = vector.broadcast %cst_206 : f32 to vector<1x384xf32>
    %587 = arith.addf %586, %585 : vector<1x384xf32>
    %588 = arith.divf %586, %587 : vector<1x384xf32>
    %589 = vector.extract_strided_slice %588 {offsets = [0, 0], sizes = [1, 128], strides = [1, 1]} : vector<1x384xf32> to vector<1x128xf32>
    %590 = vector.extract_strided_slice %588 {offsets = [0, 128], sizes = [1, 128], strides = [1, 1]} : vector<1x384xf32> to vector<1x128xf32>
    %591 = vector.extract_strided_slice %588 {offsets = [0, 256], sizes = [1, 128], strides = [1, 1]} : vector<1x384xf32> to vector<1x128xf32>
    %592 = vector.extract_strided_slice %582 {offsets = [0, 384], sizes = [1, 128], strides = [1, 1]} : vector<1x512xf32> to vector<1x128xf32>
    %593 = math.tanh %592 : vector<1x128xf32>
    %594 = arith.mulf %590, %575 : vector<1x128xf32>
    %595 = arith.mulf %589, %593 : vector<1x128xf32>
    %596 = arith.addf %594, %595 : vector<1x128xf32>
    %597 = math.tanh %596 : vector<1x128xf32>
    %598 = arith.mulf %591, %597 : vector<1x128xf32>
    %c27_207 = arith.constant 27 : index
    %c0_208 = arith.constant 0 : index
    %599 = vector.load %arg11[%c27_207, %c0_208] : memref<32x128xf32, #tpu.memory_space<vmem>>, vector<1x128xf32>
    tpu.vector_store %arg11[%c27_207, %c0_208], %598 {strides = array<i32>} : memref<32x128xf32, #tpu.memory_space<vmem>>, vector<1x128xf32>,
    %c0_209 = arith.constant 0 : index
    %c0_210 = arith.constant 0 : index
    %600 = vector.load %arg3[%c0_209, %c0_210] : memref<128x512xf32, #tpu.memory_space<vmem>>, vector<128x512xf32>
    %cst_211 = arith.constant dense<0.000000e+00> : vector<1x512xf32>
    %601 = tpu.matmul %598, %600, %cst_211 {dimension_numbers = #tpu.dot_dimension_numbers<[1], [0], [0], [1], [0, 0, 1, 1], [], []>} : vector<1x128xf32>, vector<128x512xf32>, vector<1x512xf32> -> vector<1x512xf32>
    %c28 = arith.constant 28 : index
    %c0_212 = arith.constant 0 : index
    %602 = vector.load %arg10[%c28, %c0_212] : memref<32x512xf32, #tpu.memory_space<vmem>>, vector<1x512xf32>
    %603 = arith.addf %602, %601 : vector<1x512xf32>
    %604 = vector.extract_strided_slice %603 {offsets = [0, 0], sizes = [1, 384], strides = [1, 1]} : vector<1x512xf32> to vector<1x384xf32>
    %605 = arith.negf %604 : vector<1x384xf32>
    %606 = math.exp %605 : vector<1x384xf32>
    %cst_213 = arith.constant 1.000000e+00 : f32
    %607 = vector.broadcast %cst_213 : f32 to vector<1x384xf32>
    %608 = arith.addf %607, %606 : vector<1x384xf32>
    %609 = arith.divf %607, %608 : vector<1x384xf32>
    %610 = vector.extract_strided_slice %609 {offsets = [0, 0], sizes = [1, 128], strides = [1, 1]} : vector<1x384xf32> to vector<1x128xf32>
    %611 = vector.extract_strided_slice %609 {offsets = [0, 128], sizes = [1, 128], strides = [1, 1]} : vector<1x384xf32> to vector<1x128xf32>
    %612 = vector.extract_strided_slice %609 {offsets = [0, 256], sizes = [1, 128], strides = [1, 1]} : vector<1x384xf32> to vector<1x128xf32>
    %613 = vector.extract_strided_slice %603 {offsets = [0, 384], sizes = [1, 128], strides = [1, 1]} : vector<1x512xf32> to vector<1x128xf32>
    %614 = math.tanh %613 : vector<1x128xf32>
    %615 = arith.mulf %611, %596 : vector<1x128xf32>
    %616 = arith.mulf %610, %614 : vector<1x128xf32>
    %617 = arith.addf %615, %616 : vector<1x128xf32>
    %618 = math.tanh %617 : vector<1x128xf32>
    %619 = arith.mulf %612, %618 : vector<1x128xf32>
    %c28_214 = arith.constant 28 : index
    %c0_215 = arith.constant 0 : index
    %620 = vector.load %arg11[%c28_214, %c0_215] : memref<32x128xf32, #tpu.memory_space<vmem>>, vector<1x128xf32>
    tpu.vector_store %arg11[%c28_214, %c0_215], %619 {strides = array<i32>} : memref<32x128xf32, #tpu.memory_space<vmem>>, vector<1x128xf32>,
    %c0_216 = arith.constant 0 : index
    %c0_217 = arith.constant 0 : index
    %621 = vector.load %arg3[%c0_216, %c0_217] : memref<128x512xf32, #tpu.memory_space<vmem>>, vector<128x512xf32>
    %cst_218 = arith.constant dense<0.000000e+00> : vector<1x512xf32>
    %622 = tpu.matmul %619, %621, %cst_218 {dimension_numbers = #tpu.dot_dimension_numbers<[1], [0], [0], [1], [0, 0, 1, 1], [], []>} : vector<1x128xf32>, vector<128x512xf32>, vector<1x512xf32> -> vector<1x512xf32>
    %c29 = arith.constant 29 : index
    %c0_219 = arith.constant 0 : index
    %623 = vector.load %arg10[%c29, %c0_219] : memref<32x512xf32, #tpu.memory_space<vmem>>, vector<1x512xf32>
    %624 = arith.addf %623, %622 : vector<1x512xf32>
    %625 = vector.extract_strided_slice %624 {offsets = [0, 0], sizes = [1, 384], strides = [1, 1]} : vector<1x512xf32> to vector<1x384xf32>
    %626 = arith.negf %625 : vector<1x384xf32>
    %627 = math.exp %626 : vector<1x384xf32>
    %cst_220 = arith.constant 1.000000e+00 : f32
    %628 = vector.broadcast %cst_220 : f32 to vector<1x384xf32>
    %629 = arith.addf %628, %627 : vector<1x384xf32>
    %630 = arith.divf %628, %629 : vector<1x384xf32>
    %631 = vector.extract_strided_slice %630 {offsets = [0, 0], sizes = [1, 128], strides = [1, 1]} : vector<1x384xf32> to vector<1x128xf32>
    %632 = vector.extract_strided_slice %630 {offsets = [0, 128], sizes = [1, 128], strides = [1, 1]} : vector<1x384xf32> to vector<1x128xf32>
    %633 = vector.extract_strided_slice %630 {offsets = [0, 256], sizes = [1, 128], strides = [1, 1]} : vector<1x384xf32> to vector<1x128xf32>
    %634 = vector.extract_strided_slice %624 {offsets = [0, 384], sizes = [1, 128], strides = [1, 1]} : vector<1x512xf32> to vector<1x128xf32>
    %635 = math.tanh %634 : vector<1x128xf32>
    %636 = arith.mulf %632, %617 : vector<1x128xf32>
    %637 = arith.mulf %631, %635 : vector<1x128xf32>
    %638 = arith.addf %636, %637 : vector<1x128xf32>
    %639 = math.tanh %638 : vector<1x128xf32>
    %640 = arith.mulf %633, %639 : vector<1x128xf32>
    %c29_221 = arith.constant 29 : index
    %c0_222 = arith.constant 0 : index
    %641 = vector.load %arg11[%c29_221, %c0_222] : memref<32x128xf32, #tpu.memory_space<vmem>>, vector<1x128xf32>
    tpu.vector_store %arg11[%c29_221, %c0_222], %640 {strides = array<i32>} : memref<32x128xf32, #tpu.memory_space<vmem>>, vector<1x128xf32>,
    %c0_223 = arith.constant 0 : index
    %c0_224 = arith.constant 0 : index
    %642 = vector.load %arg3[%c0_223, %c0_224] : memref<128x512xf32, #tpu.memory_space<vmem>>, vector<128x512xf32>
    %cst_225 = arith.constant dense<0.000000e+00> : vector<1x512xf32>
    %643 = tpu.matmul %640, %642, %cst_225 {dimension_numbers = #tpu.dot_dimension_numbers<[1], [0], [0], [1], [0, 0, 1, 1], [], []>} : vector<1x128xf32>, vector<128x512xf32>, vector<1x512xf32> -> vector<1x512xf32>
    %c30 = arith.constant 30 : index
    %c0_226 = arith.constant 0 : index
    %644 = vector.load %arg10[%c30, %c0_226] : memref<32x512xf32, #tpu.memory_space<vmem>>, vector<1x512xf32>
    %645 = arith.addf %644, %643 : vector<1x512xf32>
    %646 = vector.extract_strided_slice %645 {offsets = [0, 0], sizes = [1, 384], strides = [1, 1]} : vector<1x512xf32> to vector<1x384xf32>
    %647 = arith.negf %646 : vector<1x384xf32>
    %648 = math.exp %647 : vector<1x384xf32>
    %cst_227 = arith.constant 1.000000e+00 : f32
    %649 = vector.broadcast %cst_227 : f32 to vector<1x384xf32>
    %650 = arith.addf %649, %648 : vector<1x384xf32>
    %651 = arith.divf %649, %650 : vector<1x384xf32>
    %652 = vector.extract_strided_slice %651 {offsets = [0, 0], sizes = [1, 128], strides = [1, 1]} : vector<1x384xf32> to vector<1x128xf32>
    %653 = vector.extract_strided_slice %651 {offsets = [0, 128], sizes = [1, 128], strides = [1, 1]} : vector<1x384xf32> to vector<1x128xf32>
    %654 = vector.extract_strided_slice %651 {offsets = [0, 256], sizes = [1, 128], strides = [1, 1]} : vector<1x384xf32> to vector<1x128xf32>
    %655 = vector.extract_strided_slice %645 {offsets = [0, 384], sizes = [1, 128], strides = [1, 1]} : vector<1x512xf32> to vector<1x128xf32>
    %656 = math.tanh %655 : vector<1x128xf32>
    %657 = arith.mulf %653, %638 : vector<1x128xf32>
    %658 = arith.mulf %652, %656 : vector<1x128xf32>
    %659 = arith.addf %657, %658 : vector<1x128xf32>
    %660 = math.tanh %659 : vector<1x128xf32>
    %661 = arith.mulf %654, %660 : vector<1x128xf32>
    %c30_228 = arith.constant 30 : index
    %c0_229 = arith.constant 0 : index
    %662 = vector.load %arg11[%c30_228, %c0_229] : memref<32x128xf32, #tpu.memory_space<vmem>>, vector<1x128xf32>
    tpu.vector_store %arg11[%c30_228, %c0_229], %661 {strides = array<i32>} : memref<32x128xf32, #tpu.memory_space<vmem>>, vector<1x128xf32>,
    %c0_230 = arith.constant 0 : index
    %c0_231 = arith.constant 0 : index
    %663 = vector.load %arg3[%c0_230, %c0_231] : memref<128x512xf32, #tpu.memory_space<vmem>>, vector<128x512xf32>
    %cst_232 = arith.constant dense<0.000000e+00> : vector<1x512xf32>
    %664 = tpu.matmul %661, %663, %cst_232 {dimension_numbers = #tpu.dot_dimension_numbers<[1], [0], [0], [1], [0, 0, 1, 1], [], []>} : vector<1x128xf32>, vector<128x512xf32>, vector<1x512xf32> -> vector<1x512xf32>
    %c31 = arith.constant 31 : index
    %c0_233 = arith.constant 0 : index
    %665 = vector.load %arg10[%c31, %c0_233] : memref<32x512xf32, #tpu.memory_space<vmem>>, vector<1x512xf32>
    %666 = arith.addf %665, %664 : vector<1x512xf32>
    %667 = vector.extract_strided_slice %666 {offsets = [0, 0], sizes = [1, 384], strides = [1, 1]} : vector<1x512xf32> to vector<1x384xf32>
    %668 = arith.negf %667 : vector<1x384xf32>
    %669 = math.exp %668 : vector<1x384xf32>
    %cst_234 = arith.constant 1.000000e+00 : f32
    %670 = vector.broadcast %cst_234 : f32 to vector<1x384xf32>
    %671 = arith.addf %670, %669 : vector<1x384xf32>
    %672 = arith.divf %670, %671 : vector<1x384xf32>
    %673 = vector.extract_strided_slice %672 {offsets = [0, 0], sizes = [1, 128], strides = [1, 1]} : vector<1x384xf32> to vector<1x128xf32>
    %674 = vector.extract_strided_slice %672 {offsets = [0, 128], sizes = [1, 128], strides = [1, 1]} : vector<1x384xf32> to vector<1x128xf32>
    %675 = vector.extract_strided_slice %672 {offsets = [0, 256], sizes = [1, 128], strides = [1, 1]} : vector<1x384xf32> to vector<1x128xf32>
    %676 = vector.extract_strided_slice %666 {offsets = [0, 384], sizes = [1, 128], strides = [1, 1]} : vector<1x512xf32> to vector<1x128xf32>
    %677 = math.tanh %676 : vector<1x128xf32>
    %678 = arith.mulf %674, %659 : vector<1x128xf32>
    %679 = arith.mulf %673, %677 : vector<1x128xf32>
    %680 = arith.addf %678, %679 : vector<1x128xf32>
    %681 = math.tanh %680 : vector<1x128xf32>
    %682 = arith.mulf %675, %681 : vector<1x128xf32>
    %c31_235 = arith.constant 31 : index
    %c0_236 = arith.constant 0 : index
    %683 = vector.load %arg11[%c31_235, %c0_236] : memref<32x128xf32, #tpu.memory_space<vmem>>, vector<1x128xf32>
    tpu.vector_store %arg11[%c31_235, %c0_236], %682 {strides = array<i32>} : memref<32x128xf32, #tpu.memory_space<vmem>>, vector<1x128xf32>,
    %c0_237 = arith.constant 0 : index
    %c0_238 = arith.constant 0 : index
    %684 = vector.load %arg8[%c0_237, %c0_238] : memref<1x128xf32, #tpu.memory_space<vmem>>, vector<1x128xf32>
    tpu.vector_store %arg8[%c0_237, %c0_238], %682 {strides = array<i32>} : memref<1x128xf32, #tpu.memory_space<vmem>>, vector<1x128xf32>,
    %c0_239 = arith.constant 0 : index
    %c0_240 = arith.constant 0 : index
    %685 = vector.load %arg9[%c0_239, %c0_240] : memref<1x128xf32, #tpu.memory_space<vmem>>, vector<1x128xf32>
    tpu.vector_store %arg9[%c0_239, %c0_240], %680 {strides = array<i32>} : memref<1x128xf32, #tpu.memory_space<vmem>>, vector<1x128xf32>,
    %c0_241 = arith.constant 0 : index
    %c0_242 = arith.constant 0 : index
    %686 = vector.load %arg11[%c0_241, %c0_242] : memref<32x128xf32, #tpu.memory_space<vmem>>, vector<32x128xf32>
    %c0_243 = arith.constant 0 : index
    %c0_244 = arith.constant 0 : index
    %687 = vector.load %arg5[%c0_243, %c0_244] : memref<128x128xf32, #tpu.memory_space<vmem>>, vector<128x128xf32>
    %cst_245 = arith.constant dense<0.000000e+00> : vector<32x128xf32>
    %688 = tpu.matmul %686, %687, %cst_245 {dimension_numbers = #tpu.dot_dimension_numbers<[1], [0], [0], [1], [0, 0, 1, 1], [], []>} : vector<32x128xf32>, vector<128x128xf32>, vector<32x128xf32> -> vector<32x128xf32>
    %c0_246 = arith.constant 0 : index
    %c0_247 = arith.constant 0 : index
    %689 = vector.load %arg6[%c0_246, %c0_247] : memref<1x128xf32, #tpu.memory_space<vmem>>, vector<1x128xf32>
    %690 = vector.broadcast %689 : vector<1x128xf32> to vector<32x128xf32>
    %691 = arith.addf %688, %690 : vector<32x128xf32>
    %c0_248 = arith.constant 0 : index
    %c0_249 = arith.constant 0 : index
    %692 = vector.load %arg7[%c0_248, %c0_249] : memref<32x128xf32, #tpu.memory_space<vmem>>, vector<32x128xf32>
    tpu.vector_store %arg7[%c0_248, %c0_249], %691 {strides = array<i32>} : memref<32x128xf32, #tpu.memory_space<vmem>>, vector<32x128xf32>,
    return
  }
  func.func @transform_0(%arg0: i32) -> (i32, i32) {
    %c0_i32 = arith.constant 0 : i32
    %c0_i32_0 = arith.constant 0 : i32
    return %arg0, %c0_i32 : i32, i32
  }
  func.func @transform_1(%arg0: i32) -> (i32, i32) {
    %c0_i32 = arith.constant 0 : i32
    %c0_i32_0 = arith.constant 0 : i32
    %c0_i32_1 = arith.constant 0 : i32
    return %c0_i32, %c0_i32_0 : i32, i32
  }
  func.func @transform_2(%arg0: i32) -> (i32, i32) {
    %c0_i32 = arith.constant 0 : i32
    %c0_i32_0 = arith.constant 0 : i32
    %c0_i32_1 = arith.constant 0 : i32
    return %c0_i32, %c0_i32_0 : i32, i32
  }
  func.func @transform_3(%arg0: i32) -> (i32, i32) {
    %c0_i32 = arith.constant 0 : i32
    %c0_i32_0 = arith.constant 0 : i32
    %c0_i32_1 = arith.constant 0 : i32
    return %c0_i32, %c0_i32_0 : i32, i32
  }
  func.func @transform_4(%arg0: i32) -> (i32, i32) {
    %c0_i32 = arith.constant 0 : i32
    %c0_i32_0 = arith.constant 0 : i32
    %c0_i32_1 = arith.constant 0 : i32
    return %c0_i32, %c0_i32_0 : i32, i32
  }
  func.func @transform_5(%arg0: i32) -> (i32, i32) {
    %c0_i32 = arith.constant 0 : i32
    %c0_i32_0 = arith.constant 0 : i32
    %c0_i32_1 = arith.constant 0 : i32
    return %c0_i32, %c0_i32_0 : i32, i32
  }
  func.func @transform_6(%arg0: i32) -> (i32, i32) {
    %c0_i32 = arith.constant 0 : i32
    %c0_i32_0 = arith.constant 0 : i32
    return %arg0, %c0_i32 : i32, i32
  }
}

</mosaic_0001>

<bundles_post_ra>
// kernel: tpu_custom_call.1
= control target key start
LH: loop header
LB: loop body
LE: loop exit
PB: predicated region body
PF: predicated region fallthrough
CT: control target
= control target key end

     0   :  { %11 = vsyncpa [#allocation7], 0  ;;  %s13155_s0 = inlined_call_operand.vmem [shape: f32[96,16], index: 0, kind: input, shape index: {}]   ;;  %s13156_s1 = inlined_call_operand.vmem [shape: f32[16,512], index: 1, kind: input, shape index: {}]   ;;  %s13157_s2 = inlined_call_operand.hbm [shape: f32[128,512], index: 2, kind: input, shape index: {}]   ;;  %s13158_s3 = inlined_call_operand.vmem [shape: f32[1,512], index: 3, kind: input, shape index: {}]   ;;  %s13159_s4 = inlined_call_operand.hbm [shape: f32[128,128], index: 4, kind: input, shape index: {}]   ;;  %s13160_s5 = inlined_call_operand.vmem [shape: f32[1,128], index: 5, kind: input, shape index: {}]   ;;  %s13161_s6 = inlined_call_operand.hbm [shape: f32[96,128], index: 6, kind: output, shape index: {}]  }
   0x1   :  { %12 = vsyncpa [#allocation10], 0 }
   0x2   :  { %13 = vsyncpa [#allocation8], 0 }
   0x3   :  { %15 = vsyncpa [#allocation8 + $0x1], 0  ;;  %s9646_s21 = smov 0   ;;  %s9648_s22 = smov 0  }
   0x4   :  { %s9650_s23 = smov 0   ;;  %s9652_s24 = smov 0  }
   0x5 LB: > { %s9667_s25 = sadd.s32 4294967295, %s9597_s24   ;;  %s9035_s26 = sadd.s32 4294967294, %s9597_s24   ;;  %s9597_s24 = sphi %s9652_s24, %s14113_s24   ;;  %s9593_s23 = sphi %s9650_s23, %s14112_s23   ;;  %s9589_s22 = sphi %s9648_s22, %s14111_s22   ;;  %s9585_s21 = sphi %s9646_s21, %s14110_s21  }
   0x6   : > { %s9671_s27 = sadd.s32 1, %s9597_s24   ;;  %s159_s28 = sadd.s32 1, %s9593_s23 }
   0x7   : > { %s156_s29 = ssub.s32 %s9597_s24, %s9671_s27  ;;  %p169_p0 = scmp.ne.s32.totalorder %s9593_s23, %s9589_s22 }
   0x8   : > { %p157_p1 = scmp.eq.s32.totalorder %s156_s29, 0  ;;  %p170_p2 = scmp.eq.s32.totalorder %s9667_s25, 2 }
   0x9   : > { %p175_p3 = scmp.ne.s32.totalorder %s9589_s22, %s9585_s21  ;;  %p176_p4 = scmp.eq.s32.totalorder %s9035_s26, 2 }
   0xa   : > { %s9682_s30 = scalar_select %p157_p1, %s9593_s23, %s159_s28  }
   0xb   : > { %p9684_p5 = por %p170_p2, %p169_p0  ;;  %p9688_p6 = por %p176_p4, %p175_p3 }
   0xc   : > { %p9036_p7 = scmp.ge.s32.totalorder %s9597_s24, 1  ;;  %p183_p8 = scmp.lt.s32.totalorder %s9597_s24, 4 }
   0xd   : > { %s13490_s8 = scalar_select %p9688_p6, 1, 0 }
   0xe   : > { %p13162_p10 = scmp.eq.s32.totalorder %s9667_s25, 0  ;;  %p9696_p11 = pnand %p9036_p7, %p183_p8 }
   0xf   : > { %s9599_s10 = smov [#allocation6]   ;;  %s9600_s13 = smov [#allocation9]  }
  0x10   : > { %s198_s11 = sshll.u32 %s9599_s10, 4  ;;  %p9162_p12 = pneg %p9696_p11  ;;  %s199_s11 = int_to_ptr.vmem [resolvable:$true] %s198_s11 }
  0x11   : > { %s214_s14 = sshll.u32 %s9600_s13, 4  ;;  %s9488_s15 = scalar_lea.vmem %s199_s11, 8192  ;;  %s215_s14 = int_to_ptr.vmem [resolvable:$true] %s214_s14 }
  0x12   : > { %p9704_p13 = pnand %p13162_p10, %p9162_p12  ;;  %p9489_p1 = scmp.ne.s32.totalorder %s199_s11, %s9488_s15 }
  0x13   : > { %p9496_p4 = scmp.lt.s32.totalorder %s199_s11, %s199_s11  ;;  %p9497_p7 = scmp.lt.s32.totalorder %s9488_s15, %s9488_s15 }
  0x14   : > { %p9479_p0 = pneg %p9704_p13 }
  0x15   : > { %p9498_p8 = por %p9497_p7, %p9496_p4 }
  0x16   : > { %p9491_p2 = pnand %p9489_p1, %p9479_p0 }
  0x18   : > { %p9492_p3 = pneg %p9491_p2 }
  0x1a   : > { %p9499_p12 = pnand %p9498_p8, %p9492_p3 }
  0x1c   : > { %9502 = shalt.err (!%p9499_p12)
}
  0x1d   : > { %s9601_s16 = smov 512   ;;  %s9602_s17 = smov 32  }
  0x1e   : > { %9165 = dma.hbm_to_vmem [thread:$0]  (!%p9704_p13), %s13157_s2, 8192, %s199_s11, [#allocation7], %s9601_s16, %s9601_s16, %s9602_s17  }
  0x1f   : > { %s9514_s20 = scalar_lea.vmem %s215_s14, 2048  ;;  %p9522_p10 = scmp.lt.s32.totalorder %s215_s14, %s215_s14 }
  0x20   : > { %p9515_p9 = scmp.ne.s32.totalorder %s215_s14, %s9514_s20  ;;  %p9523_p6 = scmp.lt.s32.totalorder %s9514_s20, %s9514_s20 }
  0x22   : > { %p9517_p1 = pnand %p9515_p9, %p9479_p0  ;;  %p9524_p4 = por %p9523_p6, %p9522_p10 }
  0x24   : > { %p9518_p2 = pneg %p9517_p1 }
  0x26   : > { %p9525_p3 = pnand %p9524_p4, %p9518_p2 }
  0x28   : > { %9528 = shalt.err (!%p9525_p3)
}
  0x29   : > { %s9603_s26 = smov 128   ;;  %s9604_s28 = smov 8  }
  0x2a   : > { %9168 = dma.hbm_to_vmem [thread:$0]  (!%p9704_p13), %s13159_s4, 2048, %s215_s14, [#allocation10], %s9603_s26, %s9603_s26, %s9604_s28  }
  0x2b   : > { %242 = sbr.rel (%p9696_p11) target bundleno = 8625 (0x21b1), region = 44 }
  0x30   : > { %p13493_p7 = scmp.eq.s32.totalorder %s9667_s25, 0 }
  0x32   : > { %9572 = dma.done.wait (%p13493_p7), [#allocation7], 8192   ;;  %p13494_p9 = pmov %p13493_p7 }
  0x33   : > { %p13495_p6 = pmov %p13493_p7 }
  0x34   : > { %9574 = vsyncadd (%p13494_p9), [#allocation7], 4294959104 }
  0x35   : > { %9576 = dma.done.wait (%p13495_p6), [#allocation10], 2048   ;;  %p13496_p10 = pmov %p13495_p6 }
  0x36   : > { %s273_s11 = sand.u32 1, %s9589_s22   ;;  %s9044_s12 = sshll.u32 %s9667_s25, 2 }
  0x37   : > { %9578 = vsyncadd (%p13496_p10), [#allocation10], 4294965248  ;;  %s9043_s9 = sshll.u32 %s273_s11, 5  ;;  %p277_p11 = scmp.lt.s32.totalorder %s9044_s12, 11 }
  0x38   : > { %s9745_s17 = scalar_lea.vmem [#allocation11], %s9043_s9  ;;  %p13497_p13 = scmp.ne.s32.totalorder %s9667_s25, 0 }
  0x39   : > { %s14115_s12 = smov (!%p277_p11, %s9044_s12), 11 }
  0x3a   : > { %s9045_s13 = sshll.u32 %s14115_s12, 3  ;;  %286 = sbr.rel (%p13497_p13) target bundleno = 65 (0x41), region = 56 }
  0x3b   : > { %s9743_s16 = scalar_lea.vmem %s13155_s0, %s9045_s13 }
  0x3f   : > { %v9605_v0 = vmov 0.0  }
  0x40   : > { %287 = vst [vmem:[#allocation2] sm:$0x1] %v9605_v0  ;;  %288 = vst [vmem:[#allocation3] sm:$0x1] %v9605_v0 }
  0x41 PF: > { %v298_v1 = vld [vmem:[%s13156_s1 + $0x28] sm:$0xff]  ;;  %v297_v2 = vld [vmem:[%s13156_s1 + $0x20] sm:$0xff]  ;;  %v13167_v5 = vmov 0.0   ;;  %vm323_vm0 = vcmask 130048   ;;  %v300_v7 = vld [vmem:[%s13156_s1 + $0x38] sm:$0xff]  ;;  %s9093_s12 = sshll.u32 %s9667_s25, 9 }
  0x42   : > { %v294_v3 = vld [vmem:[%s13156_s1 + $0x8] sm:$0xff]  ;;  %364 = vmatprep.subr.mxu1 %v298_v1  ;;  %v293_v4 = vld [vmem:[%s13156_s1] sm:$0xff]  ;;  %400 = vmatprep.mubr.f32.mxu1 %v13167_v5  ;;  %v299_v8 = vld [vmem:[%s13156_s1 + $0x30] sm:$0xff]  ;;  %s8951_s9 = sshll.u32 %s9745_s17, 4  ;;  %s13107_s15 = scalar_lea.hbm %s13161_s6, %s9093_s12  ;;  %s13109_s9 = int_to_ptr.vmem [resolvable:$true] %s8951_s9 }
  0x43   : > { %365 = vmatpush1.msra.mxu1 %v297_v2  ;;  %v289_v6 = vld [vmem:[%s9743_s16] sm:$0xff]  ;;  %660 = vmatprep.mubr.f32.mxu0 %v13167_v5  ;;  %v296_v9 = vld [vmem:[%s13156_s1 + $0x18] sm:$0xff]  ;;  %v9773_v10 = vld [vmem:[#allocation6 + $0x1e8] sm:$0xff]  ;;  %s13115_s18 = scalar_lea.sflag [#allocation8], %s273_s11  ;;  %s9529_s25 = scalar_lea.vmem %s13109_s9, 512 }
  0x44   : > { %366 = vmatprep.subr.mxu1 %v294_v3  ;;  %v295_v11 = vld [vmem:[%s13156_s1 + $0x10] sm:$0xff]  ;;  %v9779_v12 = vld [vmem:[#allocation6 + $0x1e0] sm:$0xff]  ;;  %v9783_v14 = vld [vmem:[#allocation6 + $0x1f8] sm:$0xff]  ;;  %596 = vmatprep.subr.mxu0 %v9773_v10  ;;  %p9530_p0 = scmp.ne.s32.totalorder %s13109_s9, %s9529_s25  ;;  %s9608_s19 = smov [#allocation11]  }
  0x45   : > { %367 = vmatpush1.msra.mxu1 %v293_v4  ;;  %v290_v13 = vld [vmem:[%s9743_s16 + $0x8] sm:$0xff]  ;;  %597 = vmatpush1.msra.mxu0 %v9779_v12  ;;  %v291_v18 = vld [vmem:[%s9743_s16 + $0x10] sm:$0xff]  ;;  %v292_v23 = vld [vmem:[%s9743_s16 + $0x18] sm:$0xff]  ;;  %s9533_s20 = sshll.u32 %s9608_s19, 4  ;;  %s9534_s20 = int_to_ptr.vmem [resolvable:$false] %s9533_s20 }
  0x46   : > { %9047 = vmatmul.mubr.msk.f32.vlgmr.msra.gmra.mxu1 %vm323_vm0, %v289_v6  ;;  %453 = vmatprep.subr.mxu1 %v300_v7  ;;  %v9786_v15 = vld [vmem:[#allocation6 + $0x1c8] sm:$0xff]  ;;  %v9789_v16 = vld [vmem:[#allocation6 + $0x1c0] sm:$0xff]  ;;  %v9829_v29 = vld [vmem:[#allocation6 + $0x1f0] sm:$0xff]  ;;  %p9531_p8 = pnand %p9530_p0, %p9684_p5  ;;  %s9535_s26 = scalar_lea.vmem %s9534_s20, 1024 }
  0x47   : > { %454 = vmatpush1.msra.mxu1 %v299_v8  ;;  %406 = vmatprep.mubr.f32.mxu1 %v13167_v5  ;;  %v9793_v17 = vld [vmem:[#allocation6 + $0x1a8] sm:$0xff]  ;;  %v9798_v19 = vld [vmem:[#allocation6 + $0x1a0] sm:$0xff]  ;;  %v9832_v30 = vld [vmem:[#allocation6 + $0x1d8] sm:$0xff]  ;;  %p9536_p1 = scmp.lt.s32.totalorder %s13109_s9, %s9534_s20  ;;  %p9537_p2 = scmp.lt.s32.totalorder %s9535_s26, %s9529_s25 }
  0x48   : > { %455 = vmatprep.subr.mxu1 %v296_v9  ;;  %598 = vmatprep.subr.mxu0 %v9786_v15  ;;  %v9801_v20 = vld [vmem:[#allocation6 + $0x188] sm:$0xff]  ;;  %v9804_v21 = vld [vmem:[#allocation6 + $0x180] sm:$0xff]  ;;  %v9838_v32 = vld [vmem:[#allocation6 + $0x1d0] sm:$0xff]  ;;  %p9532_p12 = pneg %p9531_p8 }
  0x49   : > { %456 = vmatpush1.msra.mxu1 %v295_v11  ;;  %599 = vmatpush1.msra.mxu0 %v9789_v16  ;;  %v9808_v22 = vld [vmem:[#allocation6 + $0x168] sm:$0xff]  ;;  %v9813_v24 = vld [vmem:[#allocation6 + $0x160] sm:$0xff]  ;;  %v9845_v34 = vld [vmem:[#allocation6 + $0x1b8] sm:$0xff]  ;;  %p9538_p4 = por %p9537_p2, %p9536_p1 }
  0x4a   : > { %9048 = vmatmul.mubr.msk.f32.gmra.mxu1 %vm323_vm0, %v290_v13  ;;  %667 = vmatprep.subr.mxu1 %v9783_v14  ;;  %v9816_v25 = vld [vmem:[#allocation6 + $0x148] sm:$0xff]  ;;  %v9819_v26 = vld [vmem:[#allocation6 + $0x140] sm:$0xff]  ;;  %v9848_v35 = vld [vmem:[#allocation6 + $0x1b0] sm:$0xff] }
  0x4b   : > { %412 = vmatprep.mubr.f32.mxu1 %v13167_v5  ;;  %600 = vmatprep.subr.mxu0 %v9793_v17  ;;  %v9823_v27 = vld [vmem:[#allocation6 + $0x128] sm:$0xff]  ;;  %v9827_v28 = vld [vmem:[#allocation6 + $0x120] sm:$0xff]  ;;  %v9852_v36 = vld [vmem:[#allocation6 + $0x198] sm:$0xff]  ;;  %p9539_p3 = pnand %p9538_p4, %p9532_p12 }
  0x4c   : > { %601 = vmatpush1.msra.mxu0 %v9798_v19  ;;  %v9835_v31 = vld [vmem:[#allocation6 + $0x108] sm:$0xff]  ;;  %v9841_v33 = vld [vmem:[#allocation6 + $0x100] sm:$0xff]  ;;  %v9859_v38 = vld [vmem:[#allocation6 + $0x190] sm:$0xff] }
  0x4d   : > { %602 = vmatprep.subr.mxu0 %v9801_v20  ;;  %v9855_v37 = vld [vmem:[#allocation6 + $0xe8] sm:$0xff]  ;;  %v9861_v39 = vld [vmem:[#allocation6 + $0xe0] sm:$0xff]  ;;  %v9865_v40 = vld [vmem:[#allocation6 + $0x178] sm:$0xff] }
  0x4e   : > { %9049 = vmatmul.mubr.msk.f32.gmra.mxu1 %vm323_vm0, %v291_v18  ;;  %603 = vmatpush1.msra.mxu0 %v9804_v21  ;;  %v9868_v41 = vld [vmem:[#allocation6 + $0x170] sm:$0xff]  ;;  %v9872_v42 = vld [vmem:[#allocation6 + $0x158] sm:$0xff]  ;;  %v9875_v43 = vld [vmem:[#allocation6 + $0xc8] sm:$0xff] }
  0x4f   : > { %418 = vmatprep.mubr.f32.mxu1 %v13167_v5  ;;  %604 = vmatprep.subr.mxu0 %v9808_v22  ;;  %v9879_v44 = vld [vmem:[#allocation6 + $0x150] sm:$0xff]  ;;  %v9881_v45 = vld [vmem:[#allocation6 + $0xc0] sm:$0xff]  ;;  %v9885_v46 = vld [vmem:[#allocation6 + $0x138] sm:$0xff] }
  0x50   : > { %605 = vmatpush1.msra.mxu0 %v9813_v24  ;;  %v9888_v47 = vld [vmem:[#allocation6 + $0x130] sm:$0xff]  ;;  %v9891_v48 = vld [vmem:[#allocation6 + $0xa8] sm:$0xff]  ;;  %v9894_v49 = vld [vmem:[#allocation6 + $0x118] sm:$0xff] }
  0x51   : > { %606 = vmatprep.subr.mxu0 %v9816_v25  ;;  %v9897_v50 = vld [vmem:[#allocation6 + $0xa0] sm:$0xff]  ;;  %v9901_v51 = vld [vmem:[#allocation6 + $0x110] sm:$0xff]  ;;  %v9903_v52 = vld [vmem:[#allocation6 + $0x88] sm:$0xff] }
  0x52   : > { %9050 = vmatmul.mubr.msk.f32.gmra.mxu1 %vm323_vm0, %v292_v23  ;;  %607 = vmatpush1.msra.mxu0 %v9819_v26  ;;  %13498 = vst [vmem:[#allocation15_spill] sm:$0xff] %v9903_v52  ;;  %v9906_v53 = vld [vmem:[#allocation6 + $0xf8] sm:$0xff]  ;;  %v9909_v54 = vld [vmem:[#allocation6 + $0x80] sm:$0xff]  ;;  %v9912_v55 = vld [vmem:[#allocation6 + $0xf0] sm:$0xff] }
  0x53   : > { %489 = vmatprep.mubr.f32.mxu1 %v13167_v5  ;;  %608 = vmatprep.subr.mxu0 %v9823_v27  ;;  %13499 = vst [vmem:[#allocation16_spill] sm:$0xff] %v9909_v54  ;;  %v9915_v56 = vld [vmem:[#allocation6 + $0x68] sm:$0xff]  ;;  %v9918_v57 = vld [vmem:[#allocation6 + $0xd8] sm:$0xff]  ;;  %v9921_v58 = vld [vmem:[#allocation6 + $0x60] sm:$0xff] }
  0x54   : > { %609 = vmatpush1.msra.mxu0 %v9827_v28  ;;  %13500 = vst [vmem:[#allocation17_spill] sm:$0xff] %v9915_v56  ;;  %13501 = vst [vmem:[#allocation18_spill] sm:$0xff] %v9921_v58  ;;  %v9924_v59 = vld [vmem:[#allocation6 + $0xd0] sm:$0xff]  ;;  %v9927_v60 = vld [vmem:[#allocation6 + $0x48] sm:$0xff] }
  0x55   : > { %610 = vmatprep.subr.mxu0 %v9835_v31  ;;  %13502 = vst [vmem:[#allocation19_spill] sm:$0xff] %v9927_v60  ;;  %v9930_v61 = vld [vmem:[#allocation6 + $0xb8] sm:$0xff]  ;;  %v9933_v62 = vld [vmem:[#allocation6 + $0x40] sm:$0xff]  ;;  %v9936_v63 = vld [vmem:[#allocation6 + $0xb0] sm:$0xff] }
  0x56   : > { %9051 = vmatmul.mubr.msk.f32.vlgmr.msra.gmra.mxu1 %vm323_vm0, %v289_v6  ;;  %611 = vmatpush1.msra.mxu0 %v9841_v33  ;;  %13503 = vst [vmem:[#allocation20_spill] sm:$0xff] %v9933_v62  ;;  %v9939_v0 = vld [vmem:[#allocation6 + $0x28] sm:$0xff]  ;;  %v9942_v1 = vld [vmem:[#allocation6 + $0x98] sm:$0xff]  ;;  %v9945_v2 = vld [vmem:[#allocation6 + $0x20] sm:$0xff] }
  0x57   : > { %668 = vmatpush1.msra.mxu1 %v9829_v29  ;;  %495 = vmatprep.mubr.f32.mxu1 %v13167_v5  ;;  %13504 = vst [vmem:[#allocation21_spill] sm:$0xff] %v9939_v0  ;;  %13505 = vst [vmem:[#allocation22_spill] sm:$0xff] %v9942_v1  ;;  %v9948_v3 = vld [vmem:[#allocation6 + $0x90] sm:$0xff]  ;;  %v9951_v4 = vld [vmem:[#allocation6 + $0x8] sm:$0xff] }
  0x58   : > { %669 = vmatprep.subr.mxu1 %v9832_v30  ;;  %612 = vmatprep.subr.mxu0 %v9855_v37  ;;  %13506 = vst [vmem:[#allocation23_spill] sm:$0xff] %v9945_v2  ;;  %13507 = vst [vmem:[#allocation24_spill] sm:$0xff] %v9948_v3  ;;  %v9954_v6 = vld [vmem:[#allocation6 + $0x78] sm:$0xff]  ;;  %v9957_v7 = vld [vmem:[#allocation6] sm:$0xff] }
  0x59   : > { %670 = vmatpush1.msra.mxu1 %v9838_v32  ;;  %613 = vmatpush1.msra.mxu0 %v9861_v39  ;;  %13508 = vst [vmem:[#allocation25_spill] sm:$0xff] %v9951_v4  ;;  %13509 = vst [vmem:[#allocation26_spill] sm:$0xff] %v9954_v6  ;;  %v9960_v8 = vld [vmem:[#allocation6 + $0x70] sm:$0xff]  ;;  %v530_v9 = vld [vmem:[#allocation2] sm:$0x1] }
  0x5a   : > { %671 = vmatprep.subr.mxu1 %v9845_v34  ;;  %9052 = vmatmul.mubr.msk.f32.gmra.mxu1 %vm323_vm0, %v290_v13  ;;  %13510 = vst [vmem:[#allocation27_spill] sm:$0xff] %v9957_v7  ;;  %13511 = vst [vmem:[#allocation28_spill] sm:$0xff] %v9960_v8  ;;  %v9964_v11 = vld [vmem:[#allocation6 + $0x58] sm:$0xff]  ;;  %v9968_v13 = vld [vmem:[#allocation6 + $0x50] sm:$0xff] }
  0x5b   : > { %672 = vmatpush1.msra.mxu1 %v9848_v35  ;;  %501 = vmatprep.mubr.f32.mxu1 %v13167_v5  ;;  %13512 = vst [vmem:[#allocation29_spill] sm:$0xff] %v9964_v11  ;;  %13513 = vst [vmem:[#allocation30_spill] sm:$0xff] %v9968_v13 }
  0x5c   : > { %673 = vmatprep.subr.mxu1 %v9852_v36  ;;  %614 = vmatprep.subr.mxu0 %v9875_v43 }
  0x5d   : > { %674 = vmatpush1.msra.mxu1 %v9859_v38  ;;  %615 = vmatpush1.msra.mxu0 %v9881_v45 }
  0x5e   : > { %675 = vmatprep.subr.mxu1 %v9865_v40  ;;  %9053 = vmatmul.mubr.msk.f32.gmra.mxu1 %vm323_vm0, %v291_v18  ;;  %v9972_v18 = vld [vmem:[#allocation6 + $0x38] sm:$0xff] }
  0x5f   : > { %676 = vmatpush1.msra.mxu1 %v9868_v41  ;;  %507 = vmatprep.mubr.f32.mxu1 %v13167_v5  ;;  %13514 = vst [vmem:[#allocation31_spill] sm:$0xff] %v9972_v18 }
  0x60   : > { %677 = vmatprep.subr.mxu1 %v9872_v42  ;;  %616 = vmatprep.subr.mxu0 %v9891_v48 }
  0x61   : > { %678 = vmatpush1.msra.mxu1 %v9879_v44  ;;  %617 = vmatpush1.msra.mxu0 %v9897_v50 }
  0x62   : > { %679 = vmatprep.subr.mxu1 %v9885_v46  ;;  %9054 = vmatmul.mubr.msk.f32.gmra.mxu1 %vm323_vm0, %v292_v23  ;;  %v9975_v23 = vld [vmem:[#allocation6 + $0x30] sm:$0xff] }
  0x63   : > { %680 = vmatpush1.msra.mxu1 %v9888_v47  ;;  %618 = vmatprep.subr.mxu0 %v9903_v52  ;;  %13515 = vst [vmem:[#allocation32_spill] sm:$0xff] %v9975_v23 }
  0x64   : > { %681 = vmatprep.subr.mxu1 %v9894_v49  ;;  %619 = vmatpush1.msra.mxu0 %v9909_v54 }
  0x65   : > { %682 = vmatpush1.msra.mxu1 %v9901_v51  ;;  %620 = vmatprep.subr.mxu0 %v9915_v56 }
  0x66   : > { %683 = vmatprep.subr.mxu1 %v9906_v53  ;;  %621 = vmatpush1.msra.mxu0 %v9921_v58 }
  0x67   : > { %684 = vmatpush1.msra.mxu1 %v9912_v55  ;;  %622 = vmatprep.subr.mxu0 %v9927_v60 }
  0x68   : > { %685 = vmatprep.subr.mxu1 %v9918_v57  ;;  %623 = vmatpush1.msra.mxu0 %v9933_v62 }
  0x69   : > { %686 = vmatpush1.msra.mxu1 %v9924_v59  ;;  %624 = vmatprep.subr.mxu0 %v9939_v0 }
  0x6a   : > { %687 = vmatprep.subr.mxu1 %v9930_v61  ;;  %625 = vmatpush1.msra.mxu0 %v9945_v2 }
  0x6b   : > { %688 = vmatpush1.msra.mxu1 %v9936_v63  ;;  %626 = vmatprep.subr.mxu0 %v9951_v4  ;;  %v9979_v4 = vld [vmem:[#allocation6 + $0x18] sm:$0xff] }
  0x6c   : > { %689 = vmatprep.subr.mxu1 %v9942_v1  ;;  %627 = vmatpush1.msra.mxu0 %v9957_v7  ;;  %13516 = vst [vmem:[#allocation33_spill] sm:$0xff] %v9979_v4  ;;  %v9983_v7 = vld [vmem:[#allocation6 + $0x10] sm:$0xff] }
  0x6d   : > { %690 = vmatpush1.msra.mxu1 %v9948_v3  ;;  %661 = vmatmul.mubr.f32.vlgmr.msra.gmra.mxu0 %v530_v9  ;;  %13517 = vst [vmem:[#allocation34_spill] sm:$0xff] %v9983_v7 }
  0x6e   : > { %691 = vmatprep.subr.mxu1 %v9954_v6  ;;  %731 = vmatprep.mubr.f32.mxu1 %v13167_v5  ;;  %v13519_v5 = vld [vmem:[#allocation27_spill] sm:$0xff] }
  0x6f   : > { %692 = vmatpush1.msra.mxu1 %v9960_v8  ;;  %854 = vmatprep.subr.mxu0 %v9773_v10 }
  0x70   : > { %693 = vmatprep.subr.mxu1 %v9964_v11  ;;  %855 = vmatpush1.msra.mxu0 %v9779_v12 }
  0x71   : > { %694 = vmatpush1.msra.mxu1 %v9968_v13  ;;  %856 = vmatprep.subr.mxu0 %v9786_v15 }
  0x72   : > { %695 = vmatprep.subr.mxu1 %v9972_v18  ;;  %857 = vmatpush1.msra.mxu0 %v9789_v16 }
  0x73   : > { %696 = vmatpush1.msra.mxu1 %v9975_v23  ;;  %858 = vmatprep.subr.mxu0 %v9793_v17 }
  0x74   : > { %697 = vmatprep.subr.mxu1 %v9979_v4  ;;  %859 = vmatpush1.msra.mxu0 %v9798_v19 }
  0x75   : > { %698 = vmatpush1.msra.mxu1 %v9983_v7  ;;  %860 = vmatprep.subr.mxu0 %v9801_v20 }
  0x76   : > { %732 = vmatmul.mubr.f32.vlgmr.msra.gmra.mxu1 %v530_v9  ;;  %925 = vmatprep.subr.mxu1 %v9783_v14  ;;  %v13518_v9 = vld [vmem:[#allocation25_spill] sm:$0xff] }
  0x77   : > { %926 = vmatpush1.msra.mxu1 %v9829_v29  ;;  %861 = vmatpush1.msra.mxu0 %v9804_v21 }
  0x78   : > { %927 = vmatprep.subr.mxu1 %v9832_v30  ;;  %862 = vmatprep.subr.mxu0 %v9808_v22 }
  0x79   : > { %928 = vmatpush1.msra.mxu1 %v9838_v32  ;;  %863 = vmatpush1.msra.mxu0 %v9813_v24 }
  0x7a   : > { %929 = vmatprep.subr.mxu1 %v9845_v34  ;;  %864 = vmatprep.subr.mxu0 %v9816_v25 }
  0x7b   : > { %930 = vmatpush1.msra.mxu1 %v9848_v35  ;;  %865 = vmatpush1.msra.mxu0 %v9819_v26 }
  0x7c   : > { %931 = vmatprep.subr.mxu1 %v9852_v36  ;;  %866 = vmatprep.subr.mxu0 %v9823_v27 }
  0x7d   : > { %932 = vmatpush1.msra.mxu1 %v9859_v38  ;;  %867 = vmatpush1.msra.mxu0 %v9827_v28 }
  0x7e   : > { %933 = vmatprep.subr.mxu1 %v9865_v40  ;;  %868 = vmatprep.subr.mxu0 %v9835_v31 }
  0x7f   : > { %934 = vmatpush1.msra.mxu1 %v9868_v41  ;;  %869 = vmatpush1.msra.mxu0 %v9841_v33 }
  0x80   : > { %935 = vmatprep.subr.mxu1 %v9872_v42  ;;  %870 = vmatprep.subr.mxu0 %v9855_v37 }
  0x81   : > { %936 = vmatpush1.msra.mxu1 %v9879_v44  ;;  %871 = vmatpush1.msra.mxu0 %v9861_v39 }
  0x82   : > { %937 = vmatprep.subr.mxu1 %v9885_v46  ;;  %872 = vmatprep.subr.mxu0 %v9875_v43 }
  0x83   : > { %938 = vmatpush1.msra.mxu1 %v9888_v47  ;;  %873 = vmatpush1.msra.mxu0 %v9881_v45 }
  0x84   : > { %939 = vmatprep.subr.mxu1 %v9894_v49  ;;  %874 = vmatprep.subr.mxu0 %v9891_v48 }
  0x85   : > { %940 = vmatpush1.msra.mxu1 %v9901_v51  ;;  %875 = vmatpush1.msra.mxu0 %v9897_v50 }
  0x86   : > { %941 = vmatprep.subr.mxu1 %v9906_v53  ;;  %876 = vmatprep.subr.mxu0 %v9903_v52 }
  0x87   : > { %942 = vmatpush1.msra.mxu1 %v9912_v55  ;;  %877 = vmatpush1.msra.mxu0 %v9909_v54 }
  0x88   : > { %943 = vmatprep.subr.mxu1 %v9918_v57  ;;  %878 = vmatprep.subr.mxu0 %v9915_v56 }
  0x89   : > { %944 = vmatpush1.msra.mxu1 %v9924_v59  ;;  %879 = vmatpush1.msra.mxu0 %v9921_v58 }
  0x8a   : > { %945 = vmatprep.subr.mxu1 %v9930_v61  ;;  %880 = vmatprep.subr.mxu0 %v9927_v60  ;;  %v13520_v60 = vmov 0.0  }
  0x8b   : > { %946 = vmatpush1.msra.mxu1 %v9936_v63  ;;  %881 = vmatpush1.msra.mxu0 %v9933_v62 }
  0x8c   : > { %947 = vmatprep.subr.mxu1 %v9942_v1  ;;  %882 = vmatprep.subr.mxu0 %v9939_v0 }
  0x8d   : > { %948 = vmatpush1.msra.mxu1 %v9948_v3  ;;  %883 = vmatpush1.msra.mxu0 %v9945_v2 }
  0x8e   : > { %949 = vmatprep.subr.mxu1 %v9954_v6  ;;  %884 = vmatprep.subr.mxu0 %v13518_v9  ;;  %v303_v9 = vlaneseq }
  0x8f   : > { %950 = vmatpush1.msra.mxu1 %v9960_v8  ;;  %885 = vmatpush1.msra.mxu0 %v13519_v5 }
  0x90   : > { %951 = vmatprep.subr.mxu1 %v9964_v11  ;;  %918 = vmatprep.mubr.f32.mxu0 %v13520_v60  ;;  %v10055_v2 = vshrl.u32 %v303_v9, 7 }
  0x91   : > { %952 = vmatpush1.msra.mxu1 %v9968_v13  ;;  %989 = vmatprep.mubr.f32.mxu1 %v13520_v60 }
  0x92   : > { %953 = vmatprep.subr.mxu1 %v9972_v18  ;;  %1113 = vmatprep.subr.mxu0 %v9773_v10  ;;  %v305_v5 = vsub.s32 0, %v10055_v2  ;;  %v301_v18 = vld [vmem:[%s13158_s3] sm:$0xf]  ;;  %v313_v6 = vsub.s32 2, %v10055_v2 }
  0x93   : > { %954 = vmatpush1.msra.mxu1 %v9975_v23  ;;  %v309_v23 = vsub.s32 1, %v10055_v2 }
  0x94   : > { %955 = vmatprep.subr.mxu1 %v9979_v4  ;;  %v306_v60 = vrot.slane %v301_v18, %v305_v5 }
  0x95   : > { %956 = vmatpush1.msra.mxu1 %v9983_v7  ;;  %v310_v0 = vrot.slane %v301_v18, %v309_v23  ;;  %v317_v23 = vsub.s32 3, %v10055_v2 }
  0x96   : > { %1184 = vmatprep.subr.mxu1 %v9783_v14 }
 0x106   : > { %v402_v4 = vpop.f32.mrf.mxu1 }
 0x107   : > { %v403_v13 = vadd.f32 %v402_v4, %v306_v60 }
 0x108   : > { %v404_v10 = vpop.f32.mrf.mxu1 }
 0x109   : > { %514 = vst [vmem:[#allocation4] sm:$0xff] %v403_v13  ;;  %v405_v7 = vadd.f32 %v404_v10, %v310_v0  ;;  %v314_v10 = vrot.slane %v301_v18, %v313_v6 }
 0x10a   : > { %v408_v62 = vpop.f32.mrf.mxu1 }
 0x10b   : > { %515 = vst [vmem:[#allocation4 + $0x8] sm:$0xff] %v405_v7  ;;  %v409_v14 = vadd.f32 %v408_v62, %v306_v60  ;;  %v318_v7 = vrot.slane %v301_v18, %v317_v23 }
 0x10c   : > { %v410_v9 = vpop.f32.mrf.mxu1 }
 0x10d   : > { %518 = vst [vmem:[#allocation4 + $0x20] sm:$0xff] %v409_v14  ;;  %v411_v11 = vadd.f32 %v410_v9, %v310_v0 }
 0x10e   : > { %v414_v8 = vpop.f32.mrf.mxu1 }
 0x10f   : > { %519 = vst [vmem:[#allocation4 + $0x28] sm:$0xff] %v411_v11  ;;  %v415_v58 = vadd.f32 %v414_v8, %v306_v60 }
 0x110   : > { %v416_v56 = vpop.f32.mrf.mxu1 }
 0x111   : > { %522 = vst [vmem:[#allocation4 + $0x40] sm:$0xff] %v415_v58  ;;  %v417_v5 = vadd.f32 %v416_v56, %v310_v0 }
 0x112   : > { %v420_v4 = vpop.f32.mrf.mxu1 }
 0x113   : > { %523 = vst [vmem:[#allocation4 + $0x48] sm:$0xff] %v417_v5  ;;  %v421_v13 = vadd.f32 %v420_v4, %v306_v60  ;;  %v9607_v4 = vmov 1966171168  }
 0x114   : > { %v422_v3 = vpop.f32.mrf.mxu1 }
 0x115   : > { %526 = vst [vmem:[#allocation4 + $0x60] sm:$0xff] %v421_v13  ;;  %v423_v62 = vadd.f32 %v422_v3, %v310_v0  ;;  %v746_v13 = vunpack.c.l.s4 %v9607_v4 }
 0x116   : > { %v491_v14 = vpop.f32.mrf.mxu1 }
 0x117   : > { %527 = vst [vmem:[#allocation4 + $0x68] sm:$0xff] %v423_v62  ;;  %v492_v9 = vadd.f32 %v491_v14, %v314_v10 }
 0x118   : > { %v493_v11 = vpop.f32.mrf.mxu1 }
 0x119   : > { %516 = vst [vmem:[#allocation4 + $0x10] sm:$0xff] %v492_v9  ;;  %v494_v8 = vadd.f32 %v493_v11, %v318_v7 }
 0x11a   : > { %v497_v54 = vpop.f32.mrf.mxu1 }
 0x11b   : > { %517 = vst [vmem:[#allocation4 + $0x18] sm:$0xff] %v494_v8  ;;  %v498_v58 = vadd.f32 %v497_v54, %v314_v10  ;;  %v747_v54 = vunpack.c.0.s8 %v746_v13 }
 0x11c   : > { %v499_v56 = vpop.f32.mrf.mxu1 }
 0x11d   : > { %520 = vst [vmem:[#allocation4 + $0x30] sm:$0xff] %v498_v58  ;;  %v500_v1 = vadd.f32 %v499_v56, %v318_v7  ;;  %v10065_v11 = vsub.s32 %v747_v54, %v10055_v2 }
 0x11e   : > { %v503_v52 = vpop.f32.mrf.mxu1 }
 0x11f   : > { %521 = vst [vmem:[#allocation4 + $0x38] sm:$0xff] %v500_v1  ;;  %v504_v60 = vadd.f32 %v503_v52, %v314_v10 }
 0x120   : > { %v505_v6 = vpop.f32.mrf.mxu1 }
 0x121   : > { %524 = vst [vmem:[#allocation4 + $0x50] sm:$0xff] %v504_v60  ;;  %v506_v5 = vadd.f32 %v505_v6, %v318_v7 }
 0x122   : > { %v509_v0 = vpop.f32.mrf.mxu1  ;;  %v738_v60 = vld [vmem:[#allocation4] ss:$8 sm:$0xf] }
 0x123   : > { %525 = vst [vmem:[#allocation4 + $0x58] sm:$0xff] %v506_v5  ;;  %v510_v3 = vadd.f32 %v509_v0, %v314_v10 }
 0x124   : > { %v511_v18 = vpop.f32.mrf.mxu1 }
 0x125   : > { %528 = vst [vmem:[#allocation4 + $0x70] sm:$0xff] %v510_v3  ;;  %v512_v23 = vadd.f32 %v511_v18, %v318_v7 }
 0x127   : > { %529 = vst [vmem:[#allocation4 + $0x78] sm:$0xff] %v512_v23  ;;  %v531_v23 = vld [vmem:[#allocation3] sm:$0x1] }
 0x12d   : > { %v662_v62 = vpop.f32.mrf.mxu0 }
 0x12f   : > { %v664_v14 = vpop.f32.mrf.mxu0 }
 0x130   : > { %v743_v52 = vcombine.low %v662_v62, %v664_v14 }
 0x132   : > { %v751_v58 = vrot.slane %v743_v52, %v10065_v11 }
 0x136   : > { %v733_v9 = vpop.f32.mrf.mxu1 }
 0x138   : > { %v735_v1 = vpop.f32.mrf.mxu1 }
 0x139   : > { %v744_v8 = vcombine.low %v733_v9, %v735_v1 }
 0x13b   : > { %v758_v10 = vrot.slane %v744_v8, %v10065_v11 }
 0x13d   : > { %v759_v56 = vcombine.low %v751_v58, %v758_v10 }
 0x13f   : > { %v766_v7 = vrot.slane %v759_v56, %v10065_v11 }
 0x141   : > { %v768_v6 = vadd.f32 %v766_v7, %v738_v60  ;;  %v10146_v7 = vld [vmem:[#allocation6 + $0x1e8] sm:$0xff]  ;;  %v10148_v60 = vld [vmem:[#allocation6 + $0x1f8] sm:$0xff] }
 0x143   : > { %v9055_v5 = vmul.f32 -1.442695, %v768_v6  ;;  %v776_v18 = vrot.slane %v768_v6, 3  ;;  %v10152_v6 = vld [vmem:[#allocation6 + $0x1e0] sm:$0xff] }
 0x145   : > { %9221 = vpow2.f32 %v9055_v5  ;;  %v10154_v5 = vld [vmem:[#allocation6 + $0x1f0] sm:$0xff] }
 0x152   : > { %v9222_v0 = vpop.eup %9221 }
 0x153   : > { %v772_v3 = vadd.f32 1.0, %v9222_v0  ;;  %v10158_v0 = vld [vmem:[#allocation6 + $0x1c8] sm:$0xff] }
 0x155   : > { %9223 = vrcp.f32 %v772_v3  ;;  %v10160_v3 = vld [vmem:[#allocation6 + $0x1d8] sm:$0xff] }
 0x156   : > { %9225 = vtanh.f32 %v776_v18  ;;  %v10164_v18 = vld [vmem:[#allocation6 + $0x1c0] sm:$0xff] }
 0x162   : > { %v9224_v2 = vpop.eup %9223 }
 0x163   : > { %v780_v4 = vrot.slane %v9224_v2, 1  ;;  %v9226_v13 = vpop.eup %9225  ;;  %v786_v9 = vrot.slane %v9224_v2, 2 }
 0x164   : > { %v783_v62 = vmul.f32 %v9226_v13, %v9224_v2  ;;  %v10166_v2 = vld [vmem:[#allocation6 + $0x1d0] sm:$0xff]  ;;  %v10176_v13 = vld [vmem:[#allocation6 + $0x1a0] sm:$0xff] }
 0x165   : > { %v782_v54 = vmul.f32 %v780_v4, %v531_v23  ;;  %v10170_v23 = vld [vmem:[#allocation6 + $0x1a8] sm:$0xff]  ;;  %v10172_v4 = vld [vmem:[#allocation6 + $0x1b8] sm:$0xff] }
 0x167   : > { %v10070_v14 = vadd.f32 %v783_v62, %v782_v54  ;;  %v10178_v62 = vld [vmem:[#allocation6 + $0x1b0] sm:$0xff]  ;;  %v10182_v54 = vld [vmem:[#allocation6 + $0x188] sm:$0xff] }
 0x169   : > { %9227 = vtanh.f32 %v10070_v14 }
 0x176   : > { %v9228_v52 = vpop.eup %9227 }
 0x177   : > { %v788_v1 = vmul.f32 %v9228_v52, %v786_v9  ;;  %v10188_v9 = vld [vmem:[#allocation6 + $0x180] sm:$0xff]  ;;  %v10190_v52 = vld [vmem:[#allocation6 + $0x190] sm:$0xff] }
 0x179   : > { %789 = vst [vmem:[#allocation5] sm:$0x1] %v788_v1  ;;  %919 = vmatmul.mubr.f32.vlgmr.msra.gmra.mxu0 %v788_v1  ;;  %990 = vmatmul.mubr.f32.vlgmr.msra.gmra.mxu1 %v788_v1  ;;  %v10194_v1 = vld [vmem:[#allocation6 + $0x168] sm:$0xff] }
 0x17a   : > { %1114 = vmatpush1.msra.mxu0 %v9779_v12  ;;  %1185 = vmatpush1.msra.mxu1 %v9829_v29  ;;  %v13521_v12 = vld [vmem:[#allocation15_spill] sm:$0xff] }
 0x17b   : > { %1115 = vmatprep.subr.mxu0 %v9786_v15  ;;  %1186 = vmatprep.subr.mxu1 %v9832_v30  ;;  %v13522_v15 = vld [vmem:[#allocation22_spill] sm:$0xff]  ;;  %v13534_v29 = vld [vmem:[#allocation31_spill] sm:$0xff]  ;;  %13542 = vst [vmem:[#allocation15_spill] sm:$0xff] %v10146_v7 }
 0x17c   : > { %1116 = vmatpush1.msra.mxu0 %v9789_v16  ;;  %1187 = vmatpush1.msra.mxu1 %v9838_v32  ;;  %v13523_v16 = vld [vmem:[#allocation16_spill] sm:$0xff]  ;;  %v13535_v30 = vld [vmem:[#allocation23_spill] sm:$0xff]  ;;  %v13537_v32 = vld [vmem:[#allocation25_spill] sm:$0xff]  ;;  %13543 = vst [vmem:[#allocation22_spill] sm:$0xff] %v10148_v60 }
 0x17d   : > { %1117 = vmatprep.subr.mxu0 %v9793_v17  ;;  %1188 = vmatprep.subr.mxu1 %v9845_v34  ;;  %v13524_v17 = vld [vmem:[#allocation24_spill] sm:$0xff]  ;;  %v13539_v34 = vld [vmem:[#allocation27_spill] sm:$0xff] }
 0x17e   : > { %1118 = vmatpush1.msra.mxu0 %v9798_v19  ;;  %1189 = vmatpush1.msra.mxu1 %v9848_v35  ;;  %v13525_v19 = vld [vmem:[#allocation17_spill] sm:$0xff]  ;;  %v13540_v35 = vmov 0.0  }
 0x17f   : > { %1119 = vmatprep.subr.mxu0 %v9801_v20  ;;  %1190 = vmatprep.subr.mxu1 %v9852_v36  ;;  %v13526_v20 = vld [vmem:[#allocation26_spill] sm:$0xff] }
 0x180   : > { %1120 = vmatpush1.msra.mxu0 %v9804_v21  ;;  %1191 = vmatpush1.msra.mxu1 %v9859_v38  ;;  %v13527_v21 = vld [vmem:[#allocation18_spill] sm:$0xff] }
 0x181   : > { %1121 = vmatprep.subr.mxu0 %v9808_v22  ;;  %1192 = vmatprep.subr.mxu1 %v9865_v40  ;;  %v13528_v22 = vld [vmem:[#allocation28_spill] sm:$0xff]  ;;  %v13541_v36 = vld [vmem:[#allocation34_spill] sm:$0xff] }
 0x182   : > { %1122 = vmatpush1.msra.mxu0 %v9813_v24  ;;  %1193 = vmatpush1.msra.mxu1 %v9868_v41  ;;  %v13529_v24 = vld [vmem:[#allocation19_spill] sm:$0xff] }
 0x183   : > { %1123 = vmatprep.subr.mxu0 %v9816_v25  ;;  %1194 = vmatprep.subr.mxu1 %v9872_v42  ;;  %v13530_v25 = vld [vmem:[#allocation29_spill] sm:$0xff] }
 0x184   : > { %1124 = vmatpush1.msra.mxu0 %v9819_v26  ;;  %1195 = vmatpush1.msra.mxu1 %v9879_v44  ;;  %v13531_v26 = vld [vmem:[#allocation20_spill] sm:$0xff] }
 0x185   : > { %1125 = vmatprep.subr.mxu0 %v9823_v27  ;;  %1196 = vmatprep.subr.mxu1 %v9885_v46  ;;  %v13532_v27 = vld [vmem:[#allocation30_spill] sm:$0xff] }
 0x186   : > { %1126 = vmatpush1.msra.mxu0 %v9827_v28  ;;  %1197 = vmatpush1.msra.mxu1 %v9888_v47  ;;  %v13533_v28 = vld [vmem:[#allocation21_spill] sm:$0xff] }
 0x187   : > { %1127 = vmatprep.subr.mxu0 %v9835_v31  ;;  %1198 = vmatprep.subr.mxu1 %v9894_v49  ;;  %v13536_v31 = vld [vmem:[#allocation32_spill] sm:$0xff] }
 0x188   : > { %1128 = vmatpush1.msra.mxu0 %v9841_v33  ;;  %1199 = vmatpush1.msra.mxu1 %v9901_v51  ;;  %v13538_v33 = vld [vmem:[#allocation33_spill] sm:$0xff] }
 0x189   : > { %1129 = vmatprep.subr.mxu0 %v9855_v37  ;;  %1200 = vmatprep.subr.mxu1 %v9906_v53  ;;  %v997_v47 = vld [vmem:[#allocation4 + $0x1] ss:$8 sm:$0xf] }
 0x18a   : > { %1130 = vmatpush1.msra.mxu0 %v9861_v39  ;;  %1201 = vmatpush1.msra.mxu1 %v9912_v55 }
 0x18b   : > { %1131 = vmatprep.subr.mxu0 %v9875_v43  ;;  %1202 = vmatprep.subr.mxu1 %v9918_v57 }
 0x18c   : > { %1132 = vmatpush1.msra.mxu0 %v9881_v45  ;;  %1203 = vmatpush1.msra.mxu1 %v9924_v59 }
 0x18d   : > { %1133 = vmatprep.subr.mxu0 %v9891_v48  ;;  %1204 = vmatprep.subr.mxu1 %v9930_v61 }
 0x18e   : > { %1134 = vmatpush1.msra.mxu0 %v9897_v50  ;;  %1205 = vmatpush1.msra.mxu1 %v9936_v63 }
 0x18f   : > { %1135 = vmatprep.subr.mxu0 %v13521_v12  ;;  %1206 = vmatprep.subr.mxu1 %v13522_v15  ;;  %v10196_v12 = vld [vmem:[#allocation6 + $0x178] sm:$0xff]  ;;  %v10200_v15 = vld [vmem:[#allocation6 + $0x160] sm:$0xff] }
 0x190   : > { %1136 = vmatpush1.msra.mxu0 %v13523_v16  ;;  %1207 = vmatpush1.msra.mxu1 %v13524_v17  ;;  %v10202_v16 = vld [vmem:[#allocation6 + $0x170] sm:$0xff]  ;;  %v10206_v17 = vld [vmem:[#allocation6 + $0x148] sm:$0xff] }
 0x191   : > { %1137 = vmatprep.subr.mxu0 %v13525_v19  ;;  %1208 = vmatprep.subr.mxu1 %v13526_v20  ;;  %v10208_v19 = vld [vmem:[#allocation6 + $0x158] sm:$0xff]  ;;  %v10210_v20 = vld [vmem:[#allocation6 + $0x140] sm:$0xff] }
 0x192   : > { %1138 = vmatpush1.msra.mxu0 %v13527_v21  ;;  %1209 = vmatpush1.msra.mxu1 %v13528_v22  ;;  %v10214_v21 = vld [vmem:[#allocation6 + $0x150] sm:$0xff]  ;;  %v10216_v22 = vld [vmem:[#allocation6 + $0x128] sm:$0xff] }
 0x193   : > { %1139 = vmatprep.subr.mxu0 %v13529_v24  ;;  %1210 = vmatprep.subr.mxu1 %v13530_v25  ;;  %v10218_v24 = vld [vmem:[#allocation6 + $0x138] sm:$0xff]  ;;  %v10222_v25 = vld [vmem:[#allocation6 + $0x120] sm:$0xff] }
 0x194   : > { %1140 = vmatpush1.msra.mxu0 %v13531_v26  ;;  %1211 = vmatpush1.msra.mxu1 %v13532_v27  ;;  %v10224_v26 = vld [vmem:[#allocation6 + $0x130] sm:$0xff]  ;;  %v10226_v27 = vld [vmem:[#allocation6 + $0x108] sm:$0xff] }
 0x195   : > { %1141 = vmatprep.subr.mxu0 %v13533_v28  ;;  %1212 = vmatprep.subr.mxu1 %v13534_v29  ;;  %v10230_v28 = vld [vmem:[#allocation6 + $0x118] sm:$0xff]  ;;  %v10232_v29 = vld [vmem:[#allocation6 + $0x100] sm:$0xff] }
 0x196   : > { %1142 = vmatpush1.msra.mxu0 %v13535_v30  ;;  %1213 = vmatpush1.msra.mxu1 %v13536_v31  ;;  %v10234_v30 = vld [vmem:[#allocation6 + $0x110] sm:$0xff]  ;;  %v10238_v31 = vld [vmem:[#allocation6 + $0xe8] sm:$0xff] }
 0x197   : > { %1143 = vmatprep.subr.mxu0 %v13537_v32  ;;  %1214 = vmatprep.subr.mxu1 %v13538_v33  ;;  %v10240_v32 = vld [vmem:[#allocation6 + $0xf8] sm:$0xff]  ;;  %v10244_v33 = vld [vmem:[#allocation6 + $0xe0] sm:$0xff] }
 0x198   : > { %1144 = vmatpush1.msra.mxu0 %v13539_v34  ;;  %1177 = vmatprep.mubr.f32.mxu0 %v13540_v35  ;;  %v10246_v34 = vld [vmem:[#allocation6 + $0xf0] sm:$0xff] }
 0x199   : > { %1215 = vmatpush1.msra.mxu1 %v13541_v36  ;;  %1248 = vmatprep.mubr.f32.mxu1 %v13540_v35  ;;  %v10250_v36 = vld [vmem:[#allocation6 + $0xc8] sm:$0xff] }
 0x19a   : > { %1372 = vmatprep.subr.mxu0 %v10146_v7  ;;  %1443 = vmatprep.subr.mxu1 %v10148_v60 }
 0x239   : > { %v920_v37 = vpop.f32.mrf.mxu0  ;;  %v991_v38 = vpop.f32.mrf.mxu1 }
 0x23b   : > { %v922_v39 = vpop.f32.mrf.mxu0  ;;  %v993_v40 = vpop.f32.mrf.mxu1 }
 0x23c   : > { %v1002_v41 = vcombine.low %v920_v37, %v922_v39  ;;  %v1003_v42 = vcombine.low %v991_v38, %v993_v40  ;;  %v10252_v37 = vld [vmem:[#allocation6 + $0xd8] sm:$0xff]  ;;  %v10256_v38 = vld [vmem:[#allocation6 + $0xc0] sm:$0xff]  ;;  %v10258_v39 = vld [vmem:[#allocation6 + $0xd0] sm:$0xff] }
 0x23d   : > { %v10262_v40 = vld [vmem:[#allocation6 + $0xa8] sm:$0xff] }
 0x23e   : > { %v1010_v43 = vrot.slane %v1002_v41, %v10065_v11  ;;  %v1017_v44 = vrot.slane %v1003_v42, %v10065_v11  ;;  %v10264_v41 = vld [vmem:[#allocation6 + $0xb8] sm:$0xff]  ;;  %v10268_v42 = vld [vmem:[#allocation6 + $0xa0] sm:$0xff] }
 0x240   : > { %v1018_v45 = vcombine.low %v1010_v43, %v1017_v44  ;;  %v10270_v43 = vld [vmem:[#allocation6 + $0xb0] sm:$0xff]  ;;  %v10274_v44 = vld [vmem:[#allocation6 + $0x88] sm:$0xff] }
 0x242   : > { %v1025_v46 = vrot.slane %v1018_v45, %v10065_v11  ;;  %v10276_v45 = vld [vmem:[#allocation6 + $0x98] sm:$0xff] }
 0x244   : > { %v1027_v48 = vadd.f32 %v1025_v46, %v997_v47  ;;  %v10280_v46 = vld [vmem:[#allocation6 + $0x80] sm:$0xff]  ;;  %v10282_v47 = vld [vmem:[#allocation6 + $0x90] sm:$0xff] }
 0x245   : > { %13544 = vst [vmem:[#allocation16_spill] sm:$0xff] %v10280_v46  ;;  %13545 = vst [vmem:[#allocation24_spill] sm:$0xff] %v10282_v47 }
 0x246   : > { %v9056_v49 = vmul.f32 -1.442695, %v1027_v48  ;;  %v1035_v53 = vrot.slane %v1027_v48, 3  ;;  %v10286_v48 = vld [vmem:[#allocation6 + $0x68] sm:$0xff] }
 0x247   : > { %13546 = vst [vmem:[#allocation17_spill] sm:$0xff] %v10286_v48 }
 0x248   : > { %9229 = vpow2.f32 %v9056_v49  ;;  %v10288_v49 = vld [vmem:[#allocation6 + $0x78] sm:$0xff] }
 0x249   : > { %13547 = vst [vmem:[#allocation26_spill] sm:$0xff] %v10288_v49 }
 0x255   : > { %v9230_v50 = vpop.eup %9229 }
 0x256   : > { %v1031_v51 = vadd.f32 1.0, %v9230_v50  ;;  %v10292_v50 = vld [vmem:[#allocation6 + $0x60] sm:$0xff] }
 0x257   : > { %13548 = vst [vmem:[#allocation18_spill] sm:$0xff] %v10292_v50 }
 0x258   : > { %9231 = vrcp.f32 %v1031_v51  ;;  %v10294_v51 = vld [vmem:[#allocation6 + $0x70] sm:$0xff] }
 0x259   : > { %9233 = vtanh.f32 %v1035_v53  ;;  %13549 = vst [vmem:[#allocation28_spill] sm:$0xff] %v10294_v51  ;;  %v10298_v53 = vld [vmem:[#allocation6 + $0x48] sm:$0xff] }
 0x25a   : > { %13550 = vst [vmem:[#allocation19_spill] sm:$0xff] %v10298_v53 }
 0x265   : > { %v9232_v55 = vpop.eup %9231 }
 0x266   : > { %v1039_v57 = vrot.slane %v9232_v55, 1  ;;  %v9234_v59 = vpop.eup %9233  ;;  %v1045_v58 = vrot.slane %v9232_v55, 2 }
 0x267   : > { %v1042_v61 = vmul.f32 %v9234_v59, %v9232_v55  ;;  %v10300_v55 = vld [vmem:[#allocation6 + $0x58] sm:$0xff]  ;;  %v10306_v59 = vld [vmem:[#allocation6 + $0x50] sm:$0xff] }
 0x268   : > { %v1041_v63 = vmul.f32 %v1039_v57, %v10070_v14  ;;  %v10184_v14 = vld [vmem:[#allocation6 + $0x198] sm:$0xff]  ;;  %13551 = vst [vmem:[#allocation29_spill] sm:$0xff] %v10300_v55  ;;  %v10304_v57 = vld [vmem:[#allocation6 + $0x40] sm:$0xff]  ;;  %13553 = vst [vmem:[#allocation30_spill] sm:$0xff] %v10306_v59 }
 0x269   : > { %13552 = vst [vmem:[#allocation20_spill] sm:$0xff] %v10304_v57 }
 0x26a   : > { %v10141_v8 = vadd.f32 %v1042_v61, %v1041_v63  ;;  %v10310_v61 = vld [vmem:[#allocation6 + $0x28] sm:$0xff]  ;;  %v10312_v63 = vld [vmem:[#allocation6 + $0x38] sm:$0xff] }
 0x26b   : > { %13554 = vst [vmem:[#allocation21_spill] sm:$0xff] %v10310_v61  ;;  %13555 = vst [vmem:[#allocation31_spill] sm:$0xff] %v10312_v63 }
 0x26c   : > { %9235 = vtanh.f32 %v10141_v8 }
 0x279   : > { %v9236_v10 = vpop.eup %9235 }
 0x27a   : > { %v1047_v56 = vmul.f32 %v9236_v10, %v1045_v58  ;;  %v10316_v58 = vld [vmem:[#allocation6 + $0x20] sm:$0xff]  ;;  %v10318_v10 = vld [vmem:[#allocation6 + $0x30] sm:$0xff] }
 0x27b   : > { %13556 = vst [vmem:[#allocation23_spill] sm:$0xff] %v10316_v58  ;;  %13557 = vst [vmem:[#allocation32_spill] sm:$0xff] %v10318_v10 }
 0x27c   : > { %1048 = vst [vmem:[#allocation5 + $0x1] sm:$0x1] %v1047_v56  ;;  %1178 = vmatmul.mubr.f32.vlgmr.msra.gmra.mxu0 %v1047_v56  ;;  %1249 = vmatmul.mubr.f32.vlgmr.msra.gmra.mxu1 %v1047_v56  ;;  %v10322_v56 = vld [vmem:[#allocation6 + $0x8] sm:$0xff] }
 0x27d   : > { %1436 = vmatprep.mubr.f32.mxu0 %v13540_v35  ;;  %1507 = vmatprep.mubr.f32.mxu1 %v13540_v35  ;;  %13558 = vst [vmem:[#allocation25_spill] sm:$0xff] %v10322_v56  ;;  %v10324_v35 = vld [vmem:[#allocation6 + $0x18] sm:$0xff] }
 0x27e   : > { %1373 = vmatpush1.msra.mxu0 %v10152_v6  ;;  %1444 = vmatpush1.msra.mxu1 %v10154_v5  ;;  %13559 = vst [vmem:[#allocation33_spill] sm:$0xff] %v10324_v35 }
 0x27f   : > { %1374 = vmatprep.subr.mxu0 %v10158_v0  ;;  %1445 = vmatprep.subr.mxu1 %v10160_v3 }
 0x280   : > { %1375 = vmatpush1.msra.mxu0 %v10164_v18  ;;  %1446 = vmatpush1.msra.mxu1 %v10166_v2 }
 0x281   : > { %1376 = vmatprep.subr.mxu0 %v10170_v23  ;;  %1447 = vmatprep.subr.mxu1 %v10172_v4 }
 0x282   : > { %1377 = vmatpush1.msra.mxu0 %v10176_v13  ;;  %1448 = vmatpush1.msra.mxu1 %v10178_v62 }
 0x283   : > { %1378 = vmatprep.subr.mxu0 %v10182_v54  ;;  %1449 = vmatprep.subr.mxu1 %v10184_v14 }
 0x284   : > { %1379 = vmatpush1.msra.mxu0 %v10188_v9  ;;  %1450 = vmatpush1.msra.mxu1 %v10190_v52 }
 0x285   : > { %1380 = vmatprep.subr.mxu0 %v10194_v1  ;;  %1451 = vmatprep.subr.mxu1 %v10196_v12 }
 0x286   : > { %1381 = vmatpush1.msra.mxu0 %v10200_v15  ;;  %1452 = vmatpush1.msra.mxu1 %v10202_v16 }
 0x287   : > { %1382 = vmatprep.subr.mxu0 %v10206_v17  ;;  %1453 = vmatprep.subr.mxu1 %v10208_v19 }
 0x288   : > { %1383 = vmatpush1.msra.mxu0 %v10210_v20  ;;  %1454 = vmatpush1.msra.mxu1 %v10214_v21 }
 0x289   : > { %1384 = vmatprep.subr.mxu0 %v10216_v22  ;;  %1455 = vmatprep.subr.mxu1 %v10218_v24 }
 0x28a   : > { %1385 = vmatpush1.msra.mxu0 %v10222_v25  ;;  %1456 = vmatpush1.msra.mxu1 %v10224_v26 }
 0x28b   : > { %1386 = vmatprep.subr.mxu0 %v10226_v27  ;;  %1457 = vmatprep.subr.mxu1 %v10230_v28 }
 0x28c   : > { %1387 = vmatpush1.msra.mxu0 %v10232_v29  ;;  %1458 = vmatpush1.msra.mxu1 %v10234_v30 }
 0x28d   : > { %1388 = vmatprep.subr.mxu0 %v10238_v31  ;;  %1459 = vmatprep.subr.mxu1 %v10240_v32 }
 0x28e   : > { %1389 = vmatpush1.msra.mxu0 %v10244_v33  ;;  %1460 = vmatpush1.msra.mxu1 %v10246_v34 }
 0x28f   : > { %1390 = vmatprep.subr.mxu0 %v10250_v36  ;;  %1461 = vmatprep.subr.mxu1 %v10252_v37 }
 0x290   : > { %1391 = vmatpush1.msra.mxu0 %v10256_v38  ;;  %1462 = vmatpush1.msra.mxu1 %v10258_v39 }
 0x291   : > { %1392 = vmatprep.subr.mxu0 %v10262_v40  ;;  %1463 = vmatprep.subr.mxu1 %v10264_v41 }
 0x292   : > { %1393 = vmatpush1.msra.mxu0 %v10268_v42  ;;  %1464 = vmatpush1.msra.mxu1 %v10270_v43 }
 0x293   : > { %1394 = vmatprep.subr.mxu0 %v10274_v44  ;;  %1465 = vmatprep.subr.mxu1 %v10276_v45 }
 0x294   : > { %1395 = vmatpush1.msra.mxu0 %v10280_v46  ;;  %1466 = vmatpush1.msra.mxu1 %v10282_v47 }
 0x295   : > { %1396 = vmatprep.subr.mxu0 %v10286_v48  ;;  %1467 = vmatprep.subr.mxu1 %v10288_v49 }
 0x296   : > { %1397 = vmatpush1.msra.mxu0 %v10292_v50  ;;  %1468 = vmatpush1.msra.mxu1 %v10294_v51  ;;  %v10328_v51 = vld [vmem:[#allocation6] sm:$0xff] }
 0x297   : > { %1398 = vmatprep.subr.mxu0 %v10298_v53  ;;  %1469 = vmatprep.subr.mxu1 %v10300_v55  ;;  %13560 = vst [vmem:[#allocation27_spill] sm:$0xff] %v10328_v51  ;;  %v10330_v53 = vld [vmem:[#allocation6 + $0x10] sm:$0xff] }
 0x298   : > { %1399 = vmatpush1.msra.mxu0 %v10304_v57  ;;  %1470 = vmatpush1.msra.mxu1 %v10306_v59  ;;  %13561 = vst [vmem:[#allocation34_spill] sm:$0xff] %v10330_v53 }
 0x299   : > { %1400 = vmatprep.subr.mxu0 %v10310_v61  ;;  %1471 = vmatprep.subr.mxu1 %v10312_v63 }
 0x29a   : > { %1401 = vmatpush1.msra.mxu0 %v10316_v58  ;;  %1472 = vmatpush1.msra.mxu1 %v10318_v10 }
 0x29b   : > { %1402 = vmatprep.subr.mxu0 %v10322_v56  ;;  %1473 = vmatprep.subr.mxu1 %v10324_v35 }
 0x29c   : > { %1403 = vmatpush1.msra.mxu0 %v10328_v51  ;;  %1474 = vmatpush1.msra.mxu1 %v10330_v53  ;;  %v1256_v51 = vld [vmem:[#allocation4 + $0x2] ss:$8 sm:$0xf] }
 0x29d   : > { %1631 = vmatprep.subr.mxu0 %v10146_v7  ;;  %1702 = vmatprep.subr.mxu1 %v10148_v60 }
 0x33c   : > { %v1179_v63 = vpop.f32.mrf.mxu0  ;;  %v1250_v61 = vpop.f32.mrf.mxu1 }
 0x33e   : > { %v1181_v59 = vpop.f32.mrf.mxu0  ;;  %v1252_v57 = vpop.f32.mrf.mxu1 }
 0x33f   : > { %v1261_v55 = vcombine.low %v1179_v63, %v1181_v59  ;;  %v1262_v58 = vcombine.low %v1250_v61, %v1252_v57 }
 0x341   : > { %v1269_v10 = vrot.slane %v1261_v55, %v10065_v11  ;;  %v1276_v56 = vrot.slane %v1262_v58, %v10065_v11  ;;  %v13571_v58 = vld [vmem:[#allocation30_spill] sm:$0xff] }
 0x343   : > { %v1277_v50 = vcombine.low %v1269_v10, %v1276_v56  ;;  %v13572_v10 = vld [vmem:[#allocation21_spill] sm:$0xff]  ;;  %v13573_v56 = vld [vmem:[#allocation31_spill] sm:$0xff] }
 0x345   : > { %v1284_v35 = vrot.slane %v1277_v50, %v10065_v11 }
 0x347   : > { %v1286_v49 = vadd.f32 %v1284_v35, %v1256_v51  ;;  %v13569_v51 = vld [vmem:[#allocation29_spill] sm:$0xff] }
 0x349   : > { %v9057_v53 = vmul.f32 -1.442695, %v1286_v49  ;;  %v1294_v60 = vrot.slane %v1286_v49, 3  ;;  %v13568_v49 = vld [vmem:[#allocation19_spill] sm:$0xff] }
 0x34b   : > { %9237 = vpow2.f32 %v9057_v53  ;;  %v13570_v53 = vld [vmem:[#allocation20_spill] sm:$0xff] }
 0x358   : > { %v9238_v7 = vpop.eup %9237 }
 0x359   : > { %v1290_v48 = vadd.f32 1.0, %v9238_v7  ;;  %v13563_v7 = vld [vmem:[#allocation24_spill] sm:$0xff] }
 0x35b   : > { %9239 = vrcp.f32 %v1290_v48  ;;  %v13567_v48 = vld [vmem:[#allocation28_spill] sm:$0xff] }
 0x35c   : > { %9241 = vtanh.f32 %v1294_v60  ;;  %v13564_v60 = vld [vmem:[#allocation17_spill] sm:$0xff] }
 0x368   : > { %v9240_v47 = vpop.eup %9239 }
 0x369   : > { %v1298_v46 = vrot.slane %v9240_v47, 1  ;;  %v9242_v59 = vpop.eup %9241  ;;  %v1304_v50 = vrot.slane %v9240_v47, 2 }
 0x36a   : > { %v1301_v57 = vmul.f32 %v9242_v59, %v9240_v47  ;;  %v13566_v47 = vld [vmem:[#allocation18_spill] sm:$0xff]  ;;  %v13574_v59 = vld [vmem:[#allocation23_spill] sm:$0xff] }
 0x36b   : > { %v1300_v55 = vmul.f32 %v1298_v46, %v10141_v8  ;;  %v13562_v8 = vld [vmem:[#allocation16_spill] sm:$0xff]  ;;  %v13565_v46 = vld [vmem:[#allocation26_spill] sm:$0xff] }
 0x36d   : > { %v10344_v61 = vadd.f32 %v1301_v57, %v1300_v55  ;;  %v13575_v57 = vld [vmem:[#allocation32_spill] sm:$0xff]  ;;  %v13576_v55 = vld [vmem:[#allocation25_spill] sm:$0xff] }
 0x36f   : > { %9243 = vtanh.f32 %v10344_v61 }
 0x37c   : > { %v9244_v63 = vpop.eup %9243 }
 0x37d   : > { %v1306_v35 = vmul.f32 %v9244_v63, %v1304_v50  ;;  %v13577_v50 = vld [vmem:[#allocation33_spill] sm:$0xff]  ;;  %v13578_v63 = vld [vmem:[#allocation27_spill] sm:$0xff] }
 0x37f   : > { %1307 = vst [vmem:[#allocation5 + $0x2] sm:$0x1] %v1306_v35  ;;  %1437 = vmatmul.mubr.f32.vlgmr.msra.gmra.mxu0 %v1306_v35  ;;  %1508 = vmatmul.mubr.f32.vlgmr.msra.gmra.mxu1 %v1306_v35  ;;  %v13579_v35 = vmov 0.0  }
 0x380   : > { %1632 = vmatpush1.msra.mxu0 %v10152_v6  ;;  %1703 = vmatpush1.msra.mxu1 %v10154_v5 }
 0x381   : > { %1633 = vmatprep.subr.mxu0 %v10158_v0  ;;  %1704 = vmatprep.subr.mxu1 %v10160_v3 }
 0x382   : > { %1634 = vmatpush1.msra.mxu0 %v10164_v18  ;;  %1705 = vmatpush1.msra.mxu1 %v10166_v2 }
 0x383   : > { %1635 = vmatprep.subr.mxu0 %v10170_v23  ;;  %1706 = vmatprep.subr.mxu1 %v10172_v4 }
 0x384   : > { %1636 = vmatpush1.msra.mxu0 %v10176_v13  ;;  %1707 = vmatpush1.msra.mxu1 %v10178_v62 }
 0x385   : > { %1637 = vmatprep.subr.mxu0 %v10182_v54  ;;  %1708 = vmatprep.subr.mxu1 %v10184_v14 }
 0x386   : > { %1638 = vmatpush1.msra.mxu0 %v10188_v9  ;;  %1709 = vmatpush1.msra.mxu1 %v10190_v52 }
 0x387   : > { %1639 = vmatprep.subr.mxu0 %v10194_v1  ;;  %1710 = vmatprep.subr.mxu1 %v10196_v12 }
 0x388   : > { %1640 = vmatpush1.msra.mxu0 %v10200_v15  ;;  %1711 = vmatpush1.msra.mxu1 %v10202_v16 }
 0x389   : > { %1641 = vmatprep.subr.mxu0 %v10206_v17  ;;  %1712 = vmatprep.subr.mxu1 %v10208_v19 }
 0x38a   : > { %1642 = vmatpush1.msra.mxu0 %v10210_v20  ;;  %1713 = vmatpush1.msra.mxu1 %v10214_v21 }
 0x38b   : > { %1643 = vmatprep.subr.mxu0 %v10216_v22  ;;  %1714 = vmatprep.subr.mxu1 %v10218_v24 }
 0x38c   : > { %1644 = vmatpush1.msra.mxu0 %v10222_v25  ;;  %1715 = vmatpush1.msra.mxu1 %v10224_v26 }
 0x38d   : > { %1645 = vmatprep.subr.mxu0 %v10226_v27  ;;  %1716 = vmatprep.subr.mxu1 %v10230_v28 }
 0x38e   : > { %1646 = vmatpush1.msra.mxu0 %v10232_v29  ;;  %1717 = vmatpush1.msra.mxu1 %v10234_v30 }
 0x38f   : > { %1647 = vmatprep.subr.mxu0 %v10238_v31  ;;  %1718 = vmatprep.subr.mxu1 %v10240_v32 }
 0x390   : > { %1648 = vmatpush1.msra.mxu0 %v10244_v33  ;;  %1719 = vmatpush1.msra.mxu1 %v10246_v34 }
 0x391   : > { %1649 = vmatprep.subr.mxu0 %v10250_v36  ;;  %1720 = vmatprep.subr.mxu1 %v10252_v37 }
 0x392   : > { %1650 = vmatpush1.msra.mxu0 %v10256_v38  ;;  %1721 = vmatpush1.msra.mxu1 %v10258_v39 }
 0x393   : > { %1651 = vmatprep.subr.mxu0 %v10262_v40  ;;  %1722 = vmatprep.subr.mxu1 %v10264_v41 }
 0x394   : > { %1652 = vmatpush1.msra.mxu0 %v10268_v42  ;;  %1723 = vmatpush1.msra.mxu1 %v10270_v43 }
 0x395   : > { %1653 = vmatprep.subr.mxu0 %v10274_v44  ;;  %1724 = vmatprep.subr.mxu1 %v10276_v45 }
 0x396   : > { %1654 = vmatpush1.msra.mxu0 %v13562_v8  ;;  %1725 = vmatpush1.msra.mxu1 %v13563_v7 }
 0x397   : > { %1655 = vmatprep.subr.mxu0 %v13564_v60  ;;  %1726 = vmatprep.subr.mxu1 %v13565_v46 }
 0x398   : > { %1656 = vmatpush1.msra.mxu0 %v13566_v47  ;;  %1727 = vmatpush1.msra.mxu1 %v13567_v48 }
 0x399   : > { %1657 = vmatprep.subr.mxu0 %v13568_v49  ;;  %1728 = vmatprep.subr.mxu1 %v13569_v51  ;;  %v13580_v51 = vld [vmem:[#allocation34_spill] sm:$0xff] }
 0x39a   : > { %1658 = vmatpush1.msra.mxu0 %v13570_v53  ;;  %1729 = vmatpush1.msra.mxu1 %v13571_v58  ;;  %v13581_v58 = vld [vmem:[#allocation15_spill] sm:$0xff] }
 0x39b   : > { %1659 = vmatprep.subr.mxu0 %v13572_v10  ;;  %1730 = vmatprep.subr.mxu1 %v13573_v56  ;;  %v13582_v10 = vld [vmem:[#allocation22_spill] sm:$0xff] }
 0x39c   : > { %1660 = vmatpush1.msra.mxu0 %v13574_v59  ;;  %1731 = vmatpush1.msra.mxu1 %v13575_v57 }
 0x39d   : > { %1661 = vmatprep.subr.mxu0 %v13576_v55  ;;  %1732 = vmatprep.subr.mxu1 %v13577_v50 }
 0x39e   : > { %1662 = vmatpush1.msra.mxu0 %v13578_v63  ;;  %1695 = vmatprep.mubr.f32.mxu0 %v13579_v35 }
 0x39f   : > { %1733 = vmatpush1.msra.mxu1 %v13580_v51  ;;  %1766 = vmatprep.mubr.f32.mxu1 %v13579_v35  ;;  %v1515_v51 = vld [vmem:[#allocation4 + $0x3] ss:$8 sm:$0xf] }
 0x3a0   : > { %1890 = vmatprep.subr.mxu0 %v13581_v58  ;;  %1961 = vmatprep.subr.mxu1 %v13582_v10 }
 0x43f   : > { %v1438_v56 = vpop.f32.mrf.mxu0  ;;  %v1509_v59 = vpop.f32.mrf.mxu1 }
 0x441   : > { %v1440_v53 = vpop.f32.mrf.mxu0  ;;  %v1511_v57 = vpop.f32.mrf.mxu1 }
 0x442   : > { %v1520_v49 = vcombine.low %v1438_v56, %v1440_v53  ;;  %v1521_v55 = vcombine.low %v1509_v59, %v1511_v57 }
 0x444   : > { %v1528_v50 = vrot.slane %v1520_v49, %v10065_v11  ;;  %v1535_v63 = vrot.slane %v1521_v55, %v10065_v11  ;;  %v13591_v55 = vld [vmem:[#allocation20_spill] sm:$0xff] }
 0x446   : > { %v1536_v48 = vcombine.low %v1528_v50, %v1535_v63  ;;  %v13592_v50 = vld [vmem:[#allocation30_spill] sm:$0xff]  ;;  %v13593_v63 = vld [vmem:[#allocation21_spill] sm:$0xff] }
 0x448   : > { %v1543_v47 = vrot.slane %v1536_v48, %v10065_v11 }
 0x44a   : > { %v1545_v46 = vadd.f32 %v1543_v47, %v1515_v51  ;;  %v13588_v51 = vld [vmem:[#allocation28_spill] sm:$0xff] }
 0x44c   : > { %v9058_v35 = vmul.f32 -1.442695, %v1545_v46  ;;  %v1553_v10 = vrot.slane %v1545_v46, 3  ;;  %v13587_v46 = vld [vmem:[#allocation18_spill] sm:$0xff] }
 0x44e   : > { %9245 = vpow2.f32 %v9058_v35  ;;  %v13594_v35 = vld [vmem:[#allocation31_spill] sm:$0xff] }
 0x45b   : > { %v9246_v58 = vpop.eup %9245 }
 0x45c   : > { %v1549_v60 = vadd.f32 1.0, %v9246_v58  ;;  %v13589_v58 = vld [vmem:[#allocation19_spill] sm:$0xff] }
 0x45e   : > { %9247 = vrcp.f32 %v1549_v60  ;;  %v13586_v60 = vld [vmem:[#allocation26_spill] sm:$0xff] }
 0x45f   : > { %9249 = vtanh.f32 %v1553_v10  ;;  %v13590_v10 = vld [vmem:[#allocation29_spill] sm:$0xff] }
 0x46b   : > { %v9248_v7 = vpop.eup %9247 }
 0x46c   : > { %v1557_v8 = vrot.slane %v9248_v7, 1  ;;  %v9250_v53 = vpop.eup %9249  ;;  %v1563_v48 = vrot.slane %v9248_v7, 2 }
 0x46d   : > { %v1560_v56 = vmul.f32 %v9250_v53, %v9248_v7  ;;  %v13585_v7 = vld [vmem:[#allocation17_spill] sm:$0xff]  ;;  %v13595_v53 = vld [vmem:[#allocation23_spill] sm:$0xff] }
 0x46e   : > { %v1559_v49 = vmul.f32 %v1557_v8, %v10344_v61  ;;  %v13583_v61 = vld [vmem:[#allocation16_spill] sm:$0xff] }
 0x46f   : > { %v13584_v8 = vld [vmem:[#allocation24_spill] sm:$0xff] }
 0x470   : > { %v10417_v59 = vadd.f32 %v1560_v56, %v1559_v49  ;;  %v13596_v56 = vld [vmem:[#allocation32_spill] sm:$0xff]  ;;  %v13597_v49 = vld [vmem:[#allocation25_spill] sm:$0xff] }
 0x472   : > { %9251 = vtanh.f32 %v10417_v59 }
 0x47f   : > { %v9252_v57 = vpop.eup %9251 }
 0x480   : > { %v1565_v47 = vmul.f32 %v9252_v57, %v1563_v48  ;;  %v13598_v48 = vld [vmem:[#allocation33_spill] sm:$0xff]  ;;  %v13599_v57 = vld [vmem:[#allocation27_spill] sm:$0xff] }
 0x482   : > { %1566 = vst [vmem:[#allocation5 + $0x3] sm:$0x1] %v1565_v47  ;;  %1696 = vmatmul.mubr.f32.vlgmr.msra.gmra.mxu0 %v1565_v47  ;;  %1767 = vmatmul.mubr.f32.vlgmr.msra.gmra.mxu1 %v1565_v47  ;;  %v13600_v47 = vmov 0.0  }
 0x483   : > { %1891 = vmatpush1.msra.mxu0 %v10152_v6  ;;  %1962 = vmatpush1.msra.mxu1 %v10154_v5 }
 0x484   : > { %1892 = vmatprep.subr.mxu0 %v10158_v0  ;;  %1963 = vmatprep.subr.mxu1 %v10160_v3 }
 0x485   : > { %1893 = vmatpush1.msra.mxu0 %v10164_v18  ;;  %1964 = vmatpush1.msra.mxu1 %v10166_v2 }
 0x486   : > { %1894 = vmatprep.subr.mxu0 %v10170_v23  ;;  %1965 = vmatprep.subr.mxu1 %v10172_v4 }
 0x487   : > { %1895 = vmatpush1.msra.mxu0 %v10176_v13  ;;  %1966 = vmatpush1.msra.mxu1 %v10178_v62 }
 0x488   : > { %1896 = vmatprep.subr.mxu0 %v10182_v54  ;;  %1967 = vmatprep.subr.mxu1 %v10184_v14 }
 0x489   : > { %1897 = vmatpush1.msra.mxu0 %v10188_v9  ;;  %1968 = vmatpush1.msra.mxu1 %v10190_v52 }
 0x48a   : > { %1898 = vmatprep.subr.mxu0 %v10194_v1  ;;  %1969 = vmatprep.subr.mxu1 %v10196_v12 }
 0x48b   : > { %1899 = vmatpush1.msra.mxu0 %v10200_v15  ;;  %1970 = vmatpush1.msra.mxu1 %v10202_v16 }
 0x48c   : > { %1900 = vmatprep.subr.mxu0 %v10206_v17  ;;  %1971 = vmatprep.subr.mxu1 %v10208_v19 }
 0x48d   : > { %1901 = vmatpush1.msra.mxu0 %v10210_v20  ;;  %1972 = vmatpush1.msra.mxu1 %v10214_v21 }
 0x48e   : > { %1902 = vmatprep.subr.mxu0 %v10216_v22  ;;  %1973 = vmatprep.subr.mxu1 %v10218_v24 }
 0x48f   : > { %1903 = vmatpush1.msra.mxu0 %v10222_v25  ;;  %1974 = vmatpush1.msra.mxu1 %v10224_v26 }
 0x490   : > { %1904 = vmatprep.subr.mxu0 %v10226_v27  ;;  %1975 = vmatprep.subr.mxu1 %v10230_v28 }
 0x491   : > { %1905 = vmatpush1.msra.mxu0 %v10232_v29  ;;  %1976 = vmatpush1.msra.mxu1 %v10234_v30 }
 0x492   : > { %1906 = vmatprep.subr.mxu0 %v10238_v31  ;;  %1977 = vmatprep.subr.mxu1 %v10240_v32 }
 0x493   : > { %1907 = vmatpush1.msra.mxu0 %v10244_v33  ;;  %1978 = vmatpush1.msra.mxu1 %v10246_v34 }
 0x494   : > { %1908 = vmatprep.subr.mxu0 %v10250_v36  ;;  %1979 = vmatprep.subr.mxu1 %v10252_v37 }
 0x495   : > { %1909 = vmatpush1.msra.mxu0 %v10256_v38  ;;  %1980 = vmatpush1.msra.mxu1 %v10258_v39 }
 0x496   : > { %1910 = vmatprep.subr.mxu0 %v10262_v40  ;;  %1981 = vmatprep.subr.mxu1 %v10264_v41 }
 0x497   : > { %1911 = vmatpush1.msra.mxu0 %v10268_v42  ;;  %1982 = vmatpush1.msra.mxu1 %v10270_v43 }
 0x498   : > { %1912 = vmatprep.subr.mxu0 %v10274_v44  ;;  %1983 = vmatprep.subr.mxu1 %v10276_v45 }
 0x499   : > { %1913 = vmatpush1.msra.mxu0 %v13583_v61  ;;  %1984 = vmatpush1.msra.mxu1 %v13584_v8 }
 0x49a   : > { %1914 = vmatprep.subr.mxu0 %v13585_v7  ;;  %1985 = vmatprep.subr.mxu1 %v13586_v60 }
 0x49b   : > { %1915 = vmatpush1.msra.mxu0 %v13587_v46  ;;  %1986 = vmatpush1.msra.mxu1 %v13588_v51 }
 0x49c   : > { %1916 = vmatprep.subr.mxu0 %v13589_v58  ;;  %1987 = vmatprep.subr.mxu1 %v13590_v10  ;;  %v13601_v10 = vld [vmem:[#allocation34_spill] sm:$0xff] }
 0x49d   : > { %1917 = vmatpush1.msra.mxu0 %v13591_v55  ;;  %1988 = vmatpush1.msra.mxu1 %v13592_v50  ;;  %v13602_v50 = vld [vmem:[#allocation15_spill] sm:$0xff] }
 0x49e   : > { %1918 = vmatprep.subr.mxu0 %v13593_v63  ;;  %1989 = vmatprep.subr.mxu1 %v13594_v35  ;;  %v13603_v63 = vld [vmem:[#allocation22_spill] sm:$0xff] }
 0x49f   : > { %1919 = vmatpush1.msra.mxu0 %v13595_v53  ;;  %1990 = vmatpush1.msra.mxu1 %v13596_v56 }
 0x4a0   : > { %1920 = vmatprep.subr.mxu0 %v13597_v49  ;;  %1991 = vmatprep.subr.mxu1 %v13598_v48 }
 0x4a1   : > { %1921 = vmatpush1.msra.mxu0 %v13599_v57  ;;  %1954 = vmatprep.mubr.f32.mxu0 %v13600_v47 }
 0x4a2   : > { %1992 = vmatpush1.msra.mxu1 %v13601_v10  ;;  %2025 = vmatprep.mubr.f32.mxu1 %v13600_v47  ;;  %v1774_v10 = vld [vmem:[#allocation4 + $0x4] ss:$8 sm:$0xf] }
 0x4a3   : > { %2149 = vmatprep.subr.mxu0 %v13602_v50  ;;  %2220 = vmatprep.subr.mxu1 %v13603_v63 }
 0x542   : > { %v1697_v35 = vpop.f32.mrf.mxu0  ;;  %v1768_v53 = vpop.f32.mrf.mxu1 }
 0x544   : > { %v1699_v55 = vpop.f32.mrf.mxu0  ;;  %v1770_v56 = vpop.f32.mrf.mxu1 }
 0x545   : > { %v1779_v58 = vcombine.low %v1697_v35, %v1699_v55  ;;  %v1780_v49 = vcombine.low %v1768_v53, %v1770_v56 }
 0x547   : > { %v1787_v48 = vrot.slane %v1779_v58, %v10065_v11  ;;  %v1794_v57 = vrot.slane %v1780_v49, %v10065_v11  ;;  %v10584_v49 = vld [vmem:[#allocation6 + $0x1c0] sm:$0xff] }
 0x549   : > { %v1795_v51 = vcombine.low %v1787_v48, %v1794_v57  ;;  %v10586_v48 = vld [vmem:[#allocation6 + $0x1d0] sm:$0xff]  ;;  %v10590_v57 = vld [vmem:[#allocation6 + $0x1a8] sm:$0xff] }
 0x54b   : > { %v1802_v46 = vrot.slane %v1795_v51, %v10065_v11 }
 0x54d   : > { %v1804_v60 = vadd.f32 %v1802_v46, %v1774_v10  ;;  %v10580_v10 = vld [vmem:[#allocation6 + $0x1d8] sm:$0xff] }
 0x54f   : > { %v9059_v47 = vmul.f32 -1.442695, %v1804_v60  ;;  %v1812_v63 = vrot.slane %v1804_v60, 3  ;;  %v10578_v60 = vld [vmem:[#allocation6 + $0x1c8] sm:$0xff] }
 0x551   : > { %9253 = vpow2.f32 %v9059_v47  ;;  %v10592_v47 = vld [vmem:[#allocation6 + $0x1b8] sm:$0xff] }
 0x55e   : > { %v9254_v50 = vpop.eup %9253 }
 0x55f   : > { %v1808_v7 = vadd.f32 1.0, %v9254_v50  ;;  %v10596_v50 = vld [vmem:[#allocation6 + $0x1a0] sm:$0xff] }
 0x561   : > { %9255 = vrcp.f32 %v1808_v7  ;;  %v10574_v7 = vld [vmem:[#allocation6 + $0x1f0] sm:$0xff] }
 0x562   : > { %9257 = vtanh.f32 %v1812_v63  ;;  %v10598_v63 = vld [vmem:[#allocation6 + $0x1b0] sm:$0xff] }
 0x56e   : > { %v9256_v8 = vpop.eup %9255 }
 0x56f   : > { %v1816_v61 = vrot.slane %v9256_v8, 1  ;;  %v9258_v55 = vpop.eup %9257  ;;  %v1822_v51 = vrot.slane %v9256_v8, 2 }
 0x570   : > { %v1819_v35 = vmul.f32 %v9258_v55, %v9256_v8  ;;  %v10572_v8 = vld [vmem:[#allocation6 + $0x1e0] sm:$0xff]  ;;  %v10602_v55 = vld [vmem:[#allocation6 + $0x188] sm:$0xff] }
 0x571   : > { %v1818_v58 = vmul.f32 %v1816_v61, %v10417_v59  ;;  %v10566_v59 = vld [vmem:[#allocation6 + $0x1e8] sm:$0xff]  ;;  %v10568_v61 = vld [vmem:[#allocation6 + $0x1f8] sm:$0xff] }
 0x572   : > { %13623 = vst [vmem:[#allocation15_spill] sm:$0xff] %v10566_v59  ;;  %13624 = vst [vmem:[#allocation22_spill] sm:$0xff] %v10568_v61 }
 0x573   : > { %v10490_v53 = vadd.f32 %v1819_v35, %v1818_v58  ;;  %v10604_v35 = vld [vmem:[#allocation6 + $0x198] sm:$0xff]  ;;  %v10608_v58 = vld [vmem:[#allocation6 + $0x180] sm:$0xff] }
 0x575   : > { %9259 = vtanh.f32 %v10490_v53 }
 0x582   : > { %v9260_v56 = vpop.eup %9259 }
 0x583   : > { %v1824_v46 = vmul.f32 %v9260_v56, %v1822_v51  ;;  %v10614_v51 = vld [vmem:[#allocation6 + $0x168] sm:$0xff]  ;;  %v10616_v56 = vld [vmem:[#allocation6 + $0x178] sm:$0xff] }
 0x585   : > { %1825 = vst [vmem:[#allocation5 + $0x4] sm:$0x1] %v1824_v46  ;;  %1955 = vmatmul.mubr.f32.vlgmr.msra.gmra.mxu0 %v1824_v46  ;;  %2026 = vmatmul.mubr.f32.vlgmr.msra.gmra.mxu1 %v1824_v46  ;;  %v10620_v46 = vld [vmem:[#allocation6 + $0x160] sm:$0xff] }
 0x586   : > { %2150 = vmatpush1.msra.mxu0 %v10152_v6  ;;  %2221 = vmatpush1.msra.mxu1 %v10154_v5  ;;  %v13604_v6 = vld [vmem:[#allocation16_spill] sm:$0xff] }
 0x587   : > { %2151 = vmatprep.subr.mxu0 %v10158_v0  ;;  %2222 = vmatprep.subr.mxu1 %v10160_v3  ;;  %v13605_v5 = vld [vmem:[#allocation24_spill] sm:$0xff]  ;;  %v13606_v0 = vld [vmem:[#allocation17_spill] sm:$0xff]  ;;  %v13607_v3 = vld [vmem:[#allocation26_spill] sm:$0xff] }
 0x588   : > { %2152 = vmatpush1.msra.mxu0 %v10164_v18  ;;  %2223 = vmatpush1.msra.mxu1 %v10166_v2  ;;  %v13608_v18 = vld [vmem:[#allocation18_spill] sm:$0xff]  ;;  %v13609_v2 = vld [vmem:[#allocation28_spill] sm:$0xff] }
 0x589   : > { %2153 = vmatprep.subr.mxu0 %v10170_v23  ;;  %2224 = vmatprep.subr.mxu1 %v10172_v4  ;;  %v13610_v23 = vld [vmem:[#allocation19_spill] sm:$0xff]  ;;  %v13611_v4 = vld [vmem:[#allocation29_spill] sm:$0xff] }
 0x58a   : > { %2154 = vmatpush1.msra.mxu0 %v10176_v13  ;;  %2225 = vmatpush1.msra.mxu1 %v10178_v62  ;;  %v13612_v13 = vld [vmem:[#allocation20_spill] sm:$0xff]  ;;  %v13613_v62 = vld [vmem:[#allocation30_spill] sm:$0xff] }
 0x58b   : > { %2155 = vmatprep.subr.mxu0 %v10182_v54  ;;  %2226 = vmatprep.subr.mxu1 %v10184_v14  ;;  %v13614_v54 = vld [vmem:[#allocation21_spill] sm:$0xff]  ;;  %v13615_v14 = vld [vmem:[#allocation31_spill] sm:$0xff] }
 0x58c   : > { %2156 = vmatpush1.msra.mxu0 %v10188_v9  ;;  %2227 = vmatpush1.msra.mxu1 %v10190_v52  ;;  %v13616_v9 = vld [vmem:[#allocation23_spill] sm:$0xff]  ;;  %v13617_v52 = vld [vmem:[#allocation32_spill] sm:$0xff] }
 0x58d   : > { %2157 = vmatprep.subr.mxu0 %v10194_v1  ;;  %2228 = vmatprep.subr.mxu1 %v10196_v12  ;;  %v13618_v1 = vld [vmem:[#allocation25_spill] sm:$0xff] }
 0x58e   : > { %2158 = vmatpush1.msra.mxu0 %v10200_v15  ;;  %2229 = vmatpush1.msra.mxu1 %v10202_v16  ;;  %v13619_v12 = vld [vmem:[#allocation33_spill] sm:$0xff]  ;;  %v13620_v15 = vld [vmem:[#allocation27_spill] sm:$0xff]  ;;  %v13621_v16 = vmov 0.0  }
 0x58f   : > { %2159 = vmatprep.subr.mxu0 %v10206_v17  ;;  %2230 = vmatprep.subr.mxu1 %v10208_v19  ;;  %v13622_v17 = vld [vmem:[#allocation34_spill] sm:$0xff] }
 0x590   : > { %2160 = vmatpush1.msra.mxu0 %v10210_v20  ;;  %2231 = vmatpush1.msra.mxu1 %v10214_v21 }
 0x591   : > { %2161 = vmatprep.subr.mxu0 %v10216_v22  ;;  %2232 = vmatprep.subr.mxu1 %v10218_v24 }
 0x592   : > { %2162 = vmatpush1.msra.mxu0 %v10222_v25  ;;  %2233 = vmatpush1.msra.mxu1 %v10224_v26 }
 0x593   : > { %2163 = vmatprep.subr.mxu0 %v10226_v27  ;;  %2234 = vmatprep.subr.mxu1 %v10230_v28 }
 0x594   : > { %2164 = vmatpush1.msra.mxu0 %v10232_v29  ;;  %2235 = vmatpush1.msra.mxu1 %v10234_v30  ;;  %v2033_v30 = vld [vmem:[#allocation4 + $0x5] ss:$8 sm:$0xf] }
 0x595   : > { %2165 = vmatprep.subr.mxu0 %v10238_v31  ;;  %2236 = vmatprep.subr.mxu1 %v10240_v32 }
 0x596   : > { %2166 = vmatpush1.msra.mxu0 %v10244_v33  ;;  %2237 = vmatpush1.msra.mxu1 %v10246_v34 }
 0x597   : > { %2167 = vmatprep.subr.mxu0 %v10250_v36  ;;  %2238 = vmatprep.subr.mxu1 %v10252_v37 }
 0x598   : > { %2168 = vmatpush1.msra.mxu0 %v10256_v38  ;;  %2239 = vmatpush1.msra.mxu1 %v10258_v39 }
 0x599   : > { %2169 = vmatprep.subr.mxu0 %v10262_v40  ;;  %2240 = vmatprep.subr.mxu1 %v10264_v41 }
 0x59a   : > { %2170 = vmatpush1.msra.mxu0 %v10268_v42  ;;  %2241 = vmatpush1.msra.mxu1 %v10270_v43 }
 0x59b   : > { %2171 = vmatprep.subr.mxu0 %v10274_v44  ;;  %2242 = vmatprep.subr.mxu1 %v10276_v45 }
 0x59c   : > { %2172 = vmatpush1.msra.mxu0 %v13604_v6  ;;  %2243 = vmatpush1.msra.mxu1 %v13605_v5  ;;  %v10622_v6 = vld [vmem:[#allocation6 + $0x170] sm:$0xff]  ;;  %v10624_v5 = vld [vmem:[#allocation6 + $0x148] sm:$0xff] }
 0x59d   : > { %2173 = vmatprep.subr.mxu0 %v13606_v0  ;;  %2244 = vmatprep.subr.mxu1 %v13607_v3  ;;  %v10628_v0 = vld [vmem:[#allocation6 + $0x158] sm:$0xff]  ;;  %v10630_v3 = vld [vmem:[#allocation6 + $0x140] sm:$0xff] }
 0x59e   : > { %2174 = vmatpush1.msra.mxu0 %v13608_v18  ;;  %2245 = vmatpush1.msra.mxu1 %v13609_v2  ;;  %v10632_v18 = vld [vmem:[#allocation6 + $0x150] sm:$0xff]  ;;  %v10636_v2 = vld [vmem:[#allocation6 + $0x128] sm:$0xff] }
 0x59f   : > { %2175 = vmatprep.subr.mxu0 %v13610_v23  ;;  %2246 = vmatprep.subr.mxu1 %v13611_v4  ;;  %v10638_v23 = vld [vmem:[#allocation6 + $0x138] sm:$0xff]  ;;  %v10640_v4 = vld [vmem:[#allocation6 + $0x120] sm:$0xff] }
 0x5a0   : > { %2176 = vmatpush1.msra.mxu0 %v13612_v13  ;;  %2247 = vmatpush1.msra.mxu1 %v13613_v62  ;;  %v10644_v13 = vld [vmem:[#allocation6 + $0x130] sm:$0xff]  ;;  %v10646_v62 = vld [vmem:[#allocation6 + $0x108] sm:$0xff] }
 0x5a1   : > { %2177 = vmatprep.subr.mxu0 %v13614_v54  ;;  %2248 = vmatprep.subr.mxu1 %v13615_v14  ;;  %v10648_v54 = vld [vmem:[#allocation6 + $0x118] sm:$0xff]  ;;  %v10652_v14 = vld [vmem:[#allocation6 + $0x100] sm:$0xff] }
 0x5a2   : > { %2178 = vmatpush1.msra.mxu0 %v13616_v9  ;;  %2249 = vmatpush1.msra.mxu1 %v13617_v52  ;;  %v10654_v9 = vld [vmem:[#allocation6 + $0x110] sm:$0xff]  ;;  %v10658_v52 = vld [vmem:[#allocation6 + $0xe8] sm:$0xff] }
 0x5a3   : > { %2179 = vmatprep.subr.mxu0 %v13618_v1  ;;  %2250 = vmatprep.subr.mxu1 %v13619_v12  ;;  %v10660_v1 = vld [vmem:[#allocation6 + $0xf8] sm:$0xff]  ;;  %v10664_v12 = vld [vmem:[#allocation6 + $0xe0] sm:$0xff] }
 0x5a4   : > { %2180 = vmatpush1.msra.mxu0 %v13620_v15  ;;  %2213 = vmatprep.mubr.f32.mxu0 %v13621_v16  ;;  %v10666_v15 = vld [vmem:[#allocation6 + $0xf0] sm:$0xff] }
 0x5a5   : > { %2251 = vmatpush1.msra.mxu1 %v13622_v17  ;;  %2284 = vmatprep.mubr.f32.mxu1 %v13621_v16  ;;  %v10670_v17 = vld [vmem:[#allocation6 + $0xc8] sm:$0xff] }
 0x5a6   : > { %2408 = vmatprep.subr.mxu0 %v10566_v59  ;;  %2479 = vmatprep.subr.mxu1 %v10568_v61 }
 0x645   : > { %v1956_v19 = vpop.f32.mrf.mxu0  ;;  %v2027_v20 = vpop.f32.mrf.mxu1 }
 0x647   : > { %v1958_v21 = vpop.f32.mrf.mxu0  ;;  %v2029_v22 = vpop.f32.mrf.mxu1 }
 0x648   : > { %v2038_v24 = vcombine.low %v1956_v19, %v1958_v21  ;;  %v2039_v25 = vcombine.low %v2027_v20, %v2029_v22  ;;  %v10672_v19 = vld [vmem:[#allocation6 + $0xd8] sm:$0xff]  ;;  %v10676_v20 = vld [vmem:[#allocation6 + $0xc0] sm:$0xff]  ;;  %v10678_v21 = vld [vmem:[#allocation6 + $0xd0] sm:$0xff] }
 0x649   : > { %v10682_v22 = vld [vmem:[#allocation6 + $0xa8] sm:$0xff] }
 0x64a   : > { %v2046_v26 = vrot.slane %v2038_v24, %v10065_v11  ;;  %v2053_v27 = vrot.slane %v2039_v25, %v10065_v11  ;;  %v10684_v24 = vld [vmem:[#allocation6 + $0xb8] sm:$0xff]  ;;  %v10688_v25 = vld [vmem:[#allocation6 + $0xa0] sm:$0xff] }
 0x64c   : > { %v2054_v28 = vcombine.low %v2046_v26, %v2053_v27  ;;  %v10690_v26 = vld [vmem:[#allocation6 + $0xb0] sm:$0xff]  ;;  %v10694_v27 = vld [vmem:[#allocation6 + $0x88] sm:$0xff] }
 0x64e   : > { %v2061_v29 = vrot.slane %v2054_v28, %v10065_v11  ;;  %v10696_v28 = vld [vmem:[#allocation6 + $0x98] sm:$0xff] }
 0x650   : > { %v2063_v31 = vadd.f32 %v2061_v29, %v2033_v30  ;;  %v10700_v29 = vld [vmem:[#allocation6 + $0x80] sm:$0xff]  ;;  %v10702_v30 = vld [vmem:[#allocation6 + $0x90] sm:$0xff] }
 0x651   : > { %13625 = vst [vmem:[#allocation16_spill] sm:$0xff] %v10700_v29  ;;  %13626 = vst [vmem:[#allocation24_spill] sm:$0xff] %v10702_v30 }
 0x652   : > { %v9060_v32 = vmul.f32 -1.442695, %v2063_v31  ;;  %v2071_v36 = vrot.slane %v2063_v31, 3  ;;  %v10706_v31 = vld [vmem:[#allocation6 + $0x68] sm:$0xff] }
 0x653   : > { %13627 = vst [vmem:[#allocation17_spill] sm:$0xff] %v10706_v31 }
 0x654   : > { %9261 = vpow2.f32 %v9060_v32  ;;  %v10708_v32 = vld [vmem:[#allocation6 + $0x78] sm:$0xff] }
 0x655   : > { %13628 = vst [vmem:[#allocation26_spill] sm:$0xff] %v10708_v32 }
 0x661   : > { %v9262_v33 = vpop.eup %9261 }
 0x662   : > { %v2067_v34 = vadd.f32 1.0, %v9262_v33  ;;  %v10712_v33 = vld [vmem:[#allocation6 + $0x60] sm:$0xff] }
 0x663   : > { %13629 = vst [vmem:[#allocation18_spill] sm:$0xff] %v10712_v33 }
 0x664   : > { %9263 = vrcp.f32 %v2067_v34  ;;  %v10714_v34 = vld [vmem:[#allocation6 + $0x70] sm:$0xff] }
 0x665   : > { %9265 = vtanh.f32 %v2071_v36  ;;  %13630 = vst [vmem:[#allocation28_spill] sm:$0xff] %v10714_v34  ;;  %v10718_v36 = vld [vmem:[#allocation6 + $0x48] sm:$0xff] }
 0x666   : > { %13631 = vst [vmem:[#allocation19_spill] sm:$0xff] %v10718_v36 }
 0x671   : > { %v9264_v37 = vpop.eup %9263 }
 0x672   : > { %v2075_v38 = vrot.slane %v9264_v37, 1  ;;  %v9266_v39 = vpop.eup %9265  ;;  %v2081_v43 = vrot.slane %v9264_v37, 2 }
 0x673   : > { %v2078_v40 = vmul.f32 %v9266_v39, %v9264_v37  ;;  %v10720_v37 = vld [vmem:[#allocation6 + $0x58] sm:$0xff]  ;;  %v10726_v39 = vld [vmem:[#allocation6 + $0x50] sm:$0xff] }
 0x674   : > { %v2077_v41 = vmul.f32 %v2075_v38, %v10490_v53  ;;  %v10610_v53 = vld [vmem:[#allocation6 + $0x190] sm:$0xff]  ;;  %13632 = vst [vmem:[#allocation29_spill] sm:$0xff] %v10720_v37  ;;  %v10724_v38 = vld [vmem:[#allocation6 + $0x40] sm:$0xff]  ;;  %13634 = vst [vmem:[#allocation30_spill] sm:$0xff] %v10726_v39 }
 0x675   : > { %13633 = vst [vmem:[#allocation20_spill] sm:$0xff] %v10724_v38 }
 0x676   : > { %v10561_v42 = vadd.f32 %v2078_v40, %v2077_v41  ;;  %v10730_v40 = vld [vmem:[#allocation6 + $0x28] sm:$0xff]  ;;  %v10732_v41 = vld [vmem:[#allocation6 + $0x38] sm:$0xff] }
 0x677   : > { %13635 = vst [vmem:[#allocation21_spill] sm:$0xff] %v10730_v40  ;;  %13636 = vst [vmem:[#allocation31_spill] sm:$0xff] %v10732_v41 }
 0x678   : > { %9267 = vtanh.f32 %v10561_v42 }
 0x685   : > { %v9268_v44 = vpop.eup %9267 }
 0x686   : > { %v2083_v45 = vmul.f32 %v9268_v44, %v2081_v43  ;;  %v10736_v43 = vld [vmem:[#allocation6 + $0x20] sm:$0xff]  ;;  %v10738_v44 = vld [vmem:[#allocation6 + $0x30] sm:$0xff] }
 0x687   : > { %13637 = vst [vmem:[#allocation23_spill] sm:$0xff] %v10736_v43  ;;  %13638 = vst [vmem:[#allocation32_spill] sm:$0xff] %v10738_v44 }
 0x688   : > { %2084 = vst [vmem:[#allocation5 + $0x5] sm:$0x1] %v2083_v45  ;;  %2214 = vmatmul.mubr.f32.vlgmr.msra.gmra.mxu0 %v2083_v45  ;;  %2285 = vmatmul.mubr.f32.vlgmr.msra.gmra.mxu1 %v2083_v45  ;;  %v10742_v45 = vld [vmem:[#allocation6 + $0x8] sm:$0xff] }
 0x689   : > { %2472 = vmatprep.mubr.f32.mxu0 %v13621_v16  ;;  %2543 = vmatprep.mubr.f32.mxu1 %v13621_v16  ;;  %13639 = vst [vmem:[#allocation25_spill] sm:$0xff] %v10742_v45  ;;  %v10744_v16 = vld [vmem:[#allocation6 + $0x18] sm:$0xff] }
 0x68a   : > { %2409 = vmatpush1.msra.mxu0 %v10572_v8  ;;  %2480 = vmatpush1.msra.mxu1 %v10574_v7  ;;  %13640 = vst [vmem:[#allocation33_spill] sm:$0xff] %v10744_v16 }
 0x68b   : > { %2410 = vmatprep.subr.mxu0 %v10578_v60  ;;  %2481 = vmatprep.subr.mxu1 %v10580_v10 }
 0x68c   : > { %2411 = vmatpush1.msra.mxu0 %v10584_v49  ;;  %2482 = vmatpush1.msra.mxu1 %v10586_v48 }
 0x68d   : > { %2412 = vmatprep.subr.mxu0 %v10590_v57  ;;  %2483 = vmatprep.subr.mxu1 %v10592_v47 }
 0x68e   : > { %2413 = vmatpush1.msra.mxu0 %v10596_v50  ;;  %2484 = vmatpush1.msra.mxu1 %v10598_v63 }
 0x68f   : > { %2414 = vmatprep.subr.mxu0 %v10602_v55  ;;  %2485 = vmatprep.subr.mxu1 %v10604_v35 }
 0x690   : > { %2415 = vmatpush1.msra.mxu0 %v10608_v58  ;;  %2486 = vmatpush1.msra.mxu1 %v10610_v53 }
 0x691   : > { %2416 = vmatprep.subr.mxu0 %v10614_v51  ;;  %2487 = vmatprep.subr.mxu1 %v10616_v56 }
 0x692   : > { %2417 = vmatpush1.msra.mxu0 %v10620_v46  ;;  %2488 = vmatpush1.msra.mxu1 %v10622_v6 }
 0x693   : > { %2418 = vmatprep.subr.mxu0 %v10624_v5  ;;  %2489 = vmatprep.subr.mxu1 %v10628_v0 }
 0x694   : > { %2419 = vmatpush1.msra.mxu0 %v10630_v3  ;;  %2490 = vmatpush1.msra.mxu1 %v10632_v18 }
 0x695   : > { %2420 = vmatprep.subr.mxu0 %v10636_v2  ;;  %2491 = vmatprep.subr.mxu1 %v10638_v23 }
 0x696   : > { %2421 = vmatpush1.msra.mxu0 %v10640_v4  ;;  %2492 = vmatpush1.msra.mxu1 %v10644_v13 }
 0x697   : > { %2422 = vmatprep.subr.mxu0 %v10646_v62  ;;  %2493 = vmatprep.subr.mxu1 %v10648_v54 }
 0x698   : > { %2423 = vmatpush1.msra.mxu0 %v10652_v14  ;;  %2494 = vmatpush1.msra.mxu1 %v10654_v9 }
 0x699   : > { %2424 = vmatprep.subr.mxu0 %v10658_v52  ;;  %2495 = vmatprep.subr.mxu1 %v10660_v1 }
 0x69a   : > { %2425 = vmatpush1.msra.mxu0 %v10664_v12  ;;  %2496 = vmatpush1.msra.mxu1 %v10666_v15 }
 0x69b   : > { %2426 = vmatprep.subr.mxu0 %v10670_v17  ;;  %2497 = vmatprep.subr.mxu1 %v10672_v19 }
 0x69c   : > { %2427 = vmatpush1.msra.mxu0 %v10676_v20  ;;  %2498 = vmatpush1.msra.mxu1 %v10678_v21 }
 0x69d   : > { %2428 = vmatprep.subr.mxu0 %v10682_v22  ;;  %2499 = vmatprep.subr.mxu1 %v10684_v24 }
 0x69e   : > { %2429 = vmatpush1.msra.mxu0 %v10688_v25  ;;  %2500 = vmatpush1.msra.mxu1 %v10690_v26 }
 0x69f   : > { %2430 = vmatprep.subr.mxu0 %v10694_v27  ;;  %2501 = vmatprep.subr.mxu1 %v10696_v28 }
 0x6a0   : > { %2431 = vmatpush1.msra.mxu0 %v10700_v29  ;;  %2502 = vmatpush1.msra.mxu1 %v10702_v30 }
 0x6a1   : > { %2432 = vmatprep.subr.mxu0 %v10706_v31  ;;  %2503 = vmatprep.subr.mxu1 %v10708_v32 }
 0x6a2   : > { %2433 = vmatpush1.msra.mxu0 %v10712_v33  ;;  %2504 = vmatpush1.msra.mxu1 %v10714_v34  ;;  %v10748_v34 = vld [vmem:[#allocation6] sm:$0xff] }
 0x6a3   : > { %2434 = vmatprep.subr.mxu0 %v10718_v36  ;;  %2505 = vmatprep.subr.mxu1 %v10720_v37  ;;  %13641 = vst [vmem:[#allocation27_spill] sm:$0xff] %v10748_v34  ;;  %v10750_v36 = vld [vmem:[#allocation6 + $0x10] sm:$0xff] }
 0x6a4   : > { %2435 = vmatpush1.msra.mxu0 %v10724_v38  ;;  %2506 = vmatpush1.msra.mxu1 %v10726_v39  ;;  %13642 = vst [vmem:[#allocation34_spill] sm:$0xff] %v10750_v36 }
 0x6a5   : > { %2436 = vmatprep.subr.mxu0 %v10730_v40  ;;  %2507 = vmatprep.subr.mxu1 %v10732_v41 }
 0x6a6   : > { %2437 = vmatpush1.msra.mxu0 %v10736_v43  ;;  %2508 = vmatpush1.msra.mxu1 %v10738_v44 }
 0x6a7   : > { %2438 = vmatprep.subr.mxu0 %v10742_v45  ;;  %2509 = vmatprep.subr.mxu1 %v10744_v16 }
 0x6a8   : > { %2439 = vmatpush1.msra.mxu0 %v10748_v34  ;;  %2510 = vmatpush1.msra.mxu1 %v10750_v36  ;;  %v2292_v34 = vld [vmem:[#allocation4 + $0x6] ss:$8 sm:$0xf] }
 0x6a9   : > { %2667 = vmatprep.subr.mxu0 %v10566_v59  ;;  %2738 = vmatprep.subr.mxu1 %v10568_v61 }
 0x748   : > { %v2215_v41 = vpop.f32.mrf.mxu0  ;;  %v2286_v40 = vpop.f32.mrf.mxu1 }
 0x74a   : > { %v2217_v39 = vpop.f32.mrf.mxu0  ;;  %v2288_v38 = vpop.f32.mrf.mxu1 }
 0x74b   : > { %v2297_v37 = vcombine.low %v2215_v41, %v2217_v39  ;;  %v2298_v43 = vcombine.low %v2286_v40, %v2288_v38 }
 0x74d   : > { %v2305_v44 = vrot.slane %v2297_v37, %v10065_v11  ;;  %v2312_v45 = vrot.slane %v2298_v43, %v10065_v11  ;;  %v13652_v43 = vld [vmem:[#allocation30_spill] sm:$0xff] }
 0x74f   : > { %v2313_v33 = vcombine.low %v2305_v44, %v2312_v45  ;;  %v13653_v44 = vld [vmem:[#allocation21_spill] sm:$0xff]  ;;  %v13654_v45 = vld [vmem:[#allocation31_spill] sm:$0xff] }
 0x751   : > { %v2320_v16 = vrot.slane %v2313_v33, %v10065_v11 }
 0x753   : > { %v2322_v32 = vadd.f32 %v2320_v16, %v2292_v34  ;;  %v13650_v34 = vld [vmem:[#allocation29_spill] sm:$0xff] }
 0x755   : > { %v9061_v36 = vmul.f32 -1.442695, %v2322_v32  ;;  %v2330_v61 = vrot.slane %v2322_v32, 3  ;;  %v13649_v32 = vld [vmem:[#allocation19_spill] sm:$0xff] }
 0x757   : > { %9269 = vpow2.f32 %v9061_v36  ;;  %v13651_v36 = vld [vmem:[#allocation20_spill] sm:$0xff] }
 0x764   : > { %v9270_v59 = vpop.eup %9269 }
 0x765   : > { %v2326_v31 = vadd.f32 1.0, %v9270_v59  ;;  %v13644_v59 = vld [vmem:[#allocation24_spill] sm:$0xff] }
 0x767   : > { %9271 = vrcp.f32 %v2326_v31  ;;  %v13648_v31 = vld [vmem:[#allocation28_spill] sm:$0xff] }
 0x768   : > { %9273 = vtanh.f32 %v2330_v61  ;;  %v13645_v61 = vld [vmem:[#allocation17_spill] sm:$0xff] }
 0x774   : > { %v9272_v30 = vpop.eup %9271 }
 0x775   : > { %v2334_v29 = vrot.slane %v9272_v30, 1  ;;  %v9274_v39 = vpop.eup %9273  ;;  %v2340_v33 = vrot.slane %v9272_v30, 2 }
 0x776   : > { %v2337_v38 = vmul.f32 %v9274_v39, %v9272_v30  ;;  %v13647_v30 = vld [vmem:[#allocation18_spill] sm:$0xff]  ;;  %v13655_v39 = vld [vmem:[#allocation23_spill] sm:$0xff] }
 0x777   : > { %v2336_v37 = vmul.f32 %v2334_v29, %v10561_v42  ;;  %v13643_v42 = vld [vmem:[#allocation16_spill] sm:$0xff]  ;;  %v13646_v29 = vld [vmem:[#allocation26_spill] sm:$0xff] }
 0x779   : > { %v10764_v40 = vadd.f32 %v2337_v38, %v2336_v37  ;;  %v13656_v38 = vld [vmem:[#allocation32_spill] sm:$0xff]  ;;  %v13657_v37 = vld [vmem:[#allocation25_spill] sm:$0xff] }
 0x77b   : > { %9275 = vtanh.f32 %v10764_v40 }
 0x788   : > { %v9276_v41 = vpop.eup %9275 }
 0x789   : > { %v2342_v16 = vmul.f32 %v9276_v41, %v2340_v33  ;;  %v13658_v33 = vld [vmem:[#allocation33_spill] sm:$0xff]  ;;  %v13659_v41 = vld [vmem:[#allocation27_spill] sm:$0xff] }
 0x78b   : > { %2343 = vst [vmem:[#allocation5 + $0x6] sm:$0x1] %v2342_v16  ;;  %2473 = vmatmul.mubr.f32.vlgmr.msra.gmra.mxu0 %v2342_v16  ;;  %2544 = vmatmul.mubr.f32.vlgmr.msra.gmra.mxu1 %v2342_v16  ;;  %v13660_v16 = vmov 0.0  }
 0x78c   : > { %2668 = vmatpush1.msra.mxu0 %v10572_v8  ;;  %2739 = vmatpush1.msra.mxu1 %v10574_v7 }
 0x78d   : > { %2669 = vmatprep.subr.mxu0 %v10578_v60  ;;  %2740 = vmatprep.subr.mxu1 %v10580_v10 }
 0x78e   : > { %2670 = vmatpush1.msra.mxu0 %v10584_v49  ;;  %2741 = vmatpush1.msra.mxu1 %v10586_v48 }
 0x78f   : > { %2671 = vmatprep.subr.mxu0 %v10590_v57  ;;  %2742 = vmatprep.subr.mxu1 %v10592_v47 }
 0x790   : > { %2672 = vmatpush1.msra.mxu0 %v10596_v50  ;;  %2743 = vmatpush1.msra.mxu1 %v10598_v63 }
 0x791   : > { %2673 = vmatprep.subr.mxu0 %v10602_v55  ;;  %2744 = vmatprep.subr.mxu1 %v10604_v35 }
 0x792   : > { %2674 = vmatpush1.msra.mxu0 %v10608_v58  ;;  %2745 = vmatpush1.msra.mxu1 %v10610_v53 }
 0x793   : > { %2675 = vmatprep.subr.mxu0 %v10614_v51  ;;  %2746 = vmatprep.subr.mxu1 %v10616_v56 }
 0x794   : > { %2676 = vmatpush1.msra.mxu0 %v10620_v46  ;;  %2747 = vmatpush1.msra.mxu1 %v10622_v6 }
 0x795   : > { %2677 = vmatprep.subr.mxu0 %v10624_v5  ;;  %2748 = vmatprep.subr.mxu1 %v10628_v0 }
 0x796   : > { %2678 = vmatpush1.msra.mxu0 %v10630_v3  ;;  %2749 = vmatpush1.msra.mxu1 %v10632_v18 }
 0x797   : > { %2679 = vmatprep.subr.mxu0 %v10636_v2  ;;  %2750 = vmatprep.subr.mxu1 %v10638_v23 }
 0x798   : > { %2680 = vmatpush1.msra.mxu0 %v10640_v4  ;;  %2751 = vmatpush1.msra.mxu1 %v10644_v13 }
 0x799   : > { %2681 = vmatprep.subr.mxu0 %v10646_v62  ;;  %2752 = vmatprep.subr.mxu1 %v10648_v54 }
 0x79a   : > { %2682 = vmatpush1.msra.mxu0 %v10652_v14  ;;  %2753 = vmatpush1.msra.mxu1 %v10654_v9 }
 0x79b   : > { %2683 = vmatprep.subr.mxu0 %v10658_v52  ;;  %2754 = vmatprep.subr.mxu1 %v10660_v1 }
 0x79c   : > { %2684 = vmatpush1.msra.mxu0 %v10664_v12  ;;  %2755 = vmatpush1.msra.mxu1 %v10666_v15 }
 0x79d   : > { %2685 = vmatprep.subr.mxu0 %v10670_v17  ;;  %2756 = vmatprep.subr.mxu1 %v10672_v19 }
 0x79e   : > { %2686 = vmatpush1.msra.mxu0 %v10676_v20  ;;  %2757 = vmatpush1.msra.mxu1 %v10678_v21 }
 0x79f   : > { %2687 = vmatprep.subr.mxu0 %v10682_v22  ;;  %2758 = vmatprep.subr.mxu1 %v10684_v24 }
 0x7a0   : > { %2688 = vmatpush1.msra.mxu0 %v10688_v25  ;;  %2759 = vmatpush1.msra.mxu1 %v10690_v26 }
 0x7a1   : > { %2689 = vmatprep.subr.mxu0 %v10694_v27  ;;  %2760 = vmatprep.subr.mxu1 %v10696_v28 }
 0x7a2   : > { %2690 = vmatpush1.msra.mxu0 %v13643_v42  ;;  %2761 = vmatpush1.msra.mxu1 %v13644_v59 }
 0x7a3   : > { %2691 = vmatprep.subr.mxu0 %v13645_v61  ;;  %2762 = vmatprep.subr.mxu1 %v13646_v29 }
 0x7a4   : > { %2692 = vmatpush1.msra.mxu0 %v13647_v30  ;;  %2763 = vmatpush1.msra.mxu1 %v13648_v31 }
 0x7a5   : > { %2693 = vmatprep.subr.mxu0 %v13649_v32  ;;  %2764 = vmatprep.subr.mxu1 %v13650_v34  ;;  %v13661_v34 = vld [vmem:[#allocation34_spill] sm:$0xff] }
 0x7a6   : > { %2694 = vmatpush1.msra.mxu0 %v13651_v36  ;;  %2765 = vmatpush1.msra.mxu1 %v13652_v43  ;;  %v13662_v43 = vld [vmem:[#allocation15_spill] sm:$0xff] }
 0x7a7   : > { %2695 = vmatprep.subr.mxu0 %v13653_v44  ;;  %2766 = vmatprep.subr.mxu1 %v13654_v45  ;;  %v13663_v44 = vld [vmem:[#allocation22_spill] sm:$0xff] }
 0x7a8   : > { %2696 = vmatpush1.msra.mxu0 %v13655_v39  ;;  %2767 = vmatpush1.msra.mxu1 %v13656_v38 }
 0x7a9   : > { %2697 = vmatprep.subr.mxu0 %v13657_v37  ;;  %2768 = vmatprep.subr.mxu1 %v13658_v33 }
 0x7aa   : > { %2698 = vmatpush1.msra.mxu0 %v13659_v41  ;;  %2731 = vmatprep.mubr.f32.mxu0 %v13660_v16 }
 0x7ab   : > { %2769 = vmatpush1.msra.mxu1 %v13661_v34  ;;  %2802 = vmatprep.mubr.f32.mxu1 %v13660_v16  ;;  %v2551_v34 = vld [vmem:[#allocation4 + $0x7] ss:$8 sm:$0xf] }
 0x7ac   : > { %2926 = vmatprep.subr.mxu0 %v13662_v43  ;;  %2997 = vmatprep.subr.mxu1 %v13663_v44 }
 0x84b   : > { %v2474_v45 = vpop.f32.mrf.mxu0  ;;  %v2545_v39 = vpop.f32.mrf.mxu1 }
 0x84d   : > { %v2476_v36 = vpop.f32.mrf.mxu0  ;;  %v2547_v38 = vpop.f32.mrf.mxu1 }
 0x84e   : > { %v2556_v32 = vcombine.low %v2474_v45, %v2476_v36  ;;  %v2557_v37 = vcombine.low %v2545_v39, %v2547_v38 }
 0x850   : > { %v2564_v33 = vrot.slane %v2556_v32, %v10065_v11  ;;  %v2571_v41 = vrot.slane %v2557_v37, %v10065_v11  ;;  %v13672_v37 = vld [vmem:[#allocation20_spill] sm:$0xff] }
 0x852   : > { %v2572_v31 = vcombine.low %v2564_v33, %v2571_v41  ;;  %v13673_v33 = vld [vmem:[#allocation30_spill] sm:$0xff]  ;;  %v13674_v41 = vld [vmem:[#allocation21_spill] sm:$0xff] }
 0x854   : > { %v2579_v30 = vrot.slane %v2572_v31, %v10065_v11 }
 0x856   : > { %v2581_v29 = vadd.f32 %v2579_v30, %v2551_v34  ;;  %v13669_v34 = vld [vmem:[#allocation28_spill] sm:$0xff] }
 0x858   : > { %v9062_v16 = vmul.f32 -1.442695, %v2581_v29  ;;  %v2589_v44 = vrot.slane %v2581_v29, 3  ;;  %v13668_v29 = vld [vmem:[#allocation18_spill] sm:$0xff] }
 0x85a   : > { %9277 = vpow2.f32 %v9062_v16  ;;  %v13675_v16 = vld [vmem:[#allocation31_spill] sm:$0xff] }
 0x867   : > { %v9278_v43 = vpop.eup %9277 }
 0x868   : > { %v2585_v61 = vadd.f32 1.0, %v9278_v43  ;;  %v13670_v43 = vld [vmem:[#allocation19_spill] sm:$0xff] }
 0x86a   : > { %9279 = vrcp.f32 %v2585_v61  ;;  %v13667_v61 = vld [vmem:[#allocation26_spill] sm:$0xff] }
 0x86b   : > { %9281 = vtanh.f32 %v2589_v44  ;;  %v13671_v44 = vld [vmem:[#allocation29_spill] sm:$0xff] }
 0x877   : > { %v9280_v59 = vpop.eup %9279 }
 0x878   : > { %v2593_v42 = vrot.slane %v9280_v59, 1  ;;  %v9282_v36 = vpop.eup %9281  ;;  %v2599_v31 = vrot.slane %v9280_v59, 2 }
 0x879   : > { %v2596_v45 = vmul.f32 %v9282_v36, %v9280_v59  ;;  %v13666_v59 = vld [vmem:[#allocation17_spill] sm:$0xff]  ;;  %v13676_v36 = vld [vmem:[#allocation23_spill] sm:$0xff] }
 0x87a   : > { %v2595_v32 = vmul.f32 %v2593_v42, %v10764_v40  ;;  %v13664_v40 = vld [vmem:[#allocation16_spill] sm:$0xff] }
 0x87b   : > { %v13665_v42 = vld [vmem:[#allocation24_spill] sm:$0xff] }
 0x87c   : > { %v10837_v39 = vadd.f32 %v2596_v45, %v2595_v32  ;;  %v13677_v45 = vld [vmem:[#allocation32_spill] sm:$0xff]  ;;  %v13678_v32 = vld [vmem:[#allocation25_spill] sm:$0xff] }
 0x87e   : > { %9283 = vtanh.f32 %v10837_v39 }
 0x88b   : > { %v9284_v38 = vpop.eup %9283 }
 0x88c   : > { %v2601_v30 = vmul.f32 %v9284_v38, %v2599_v31  ;;  %v13679_v31 = vld [vmem:[#allocation33_spill] sm:$0xff]  ;;  %v13680_v38 = vld [vmem:[#allocation27_spill] sm:$0xff] }
 0x88e   : > { %2602 = vst [vmem:[#allocation5 + $0x7] sm:$0x1] %v2601_v30  ;;  %2732 = vmatmul.mubr.f32.vlgmr.msra.gmra.mxu0 %v2601_v30  ;;  %2803 = vmatmul.mubr.f32.vlgmr.msra.gmra.mxu1 %v2601_v30  ;;  %v13681_v30 = vmov 0.0  }
 0x88f   : > { %2927 = vmatpush1.msra.mxu0 %v10572_v8  ;;  %2998 = vmatpush1.msra.mxu1 %v10574_v7 }
 0x890   : > { %2928 = vmatprep.subr.mxu0 %v10578_v60  ;;  %2999 = vmatprep.subr.mxu1 %v10580_v10 }
 0x891   : > { %2929 = vmatpush1.msra.mxu0 %v10584_v49  ;;  %3000 = vmatpush1.msra.mxu1 %v10586_v48 }
 0x892   : > { %2930 = vmatprep.subr.mxu0 %v10590_v57  ;;  %3001 = vmatprep.subr.mxu1 %v10592_v47 }
 0x893   : > { %2931 = vmatpush1.msra.mxu0 %v10596_v50  ;;  %3002 = vmatpush1.msra.mxu1 %v10598_v63 }
 0x894   : > { %2932 = vmatprep.subr.mxu0 %v10602_v55  ;;  %3003 = vmatprep.subr.mxu1 %v10604_v35 }
 0x895   : > { %2933 = vmatpush1.msra.mxu0 %v10608_v58  ;;  %3004 = vmatpush1.msra.mxu1 %v10610_v53 }
 0x896   : > { %2934 = vmatprep.subr.mxu0 %v10614_v51  ;;  %3005 = vmatprep.subr.mxu1 %v10616_v56 }
 0x897   : > { %2935 = vmatpush1.msra.mxu0 %v10620_v46  ;;  %3006 = vmatpush1.msra.mxu1 %v10622_v6 }
 0x898   : > { %2936 = vmatprep.subr.mxu0 %v10624_v5  ;;  %3007 = vmatprep.subr.mxu1 %v10628_v0 }
 0x899   : > { %2937 = vmatpush1.msra.mxu0 %v10630_v3  ;;  %3008 = vmatpush1.msra.mxu1 %v10632_v18 }
 0x89a   : > { %2938 = vmatprep.subr.mxu0 %v10636_v2  ;;  %3009 = vmatprep.subr.mxu1 %v10638_v23 }
 0x89b   : > { %2939 = vmatpush1.msra.mxu0 %v10640_v4  ;;  %3010 = vmatpush1.msra.mxu1 %v10644_v13 }
 0x89c   : > { %2940 = vmatprep.subr.mxu0 %v10646_v62  ;;  %3011 = vmatprep.subr.mxu1 %v10648_v54 }
 0x89d   : > { %2941 = vmatpush1.msra.mxu0 %v10652_v14  ;;  %3012 = vmatpush1.msra.mxu1 %v10654_v9 }
 0x89e   : > { %2942 = vmatprep.subr.mxu0 %v10658_v52  ;;  %3013 = vmatprep.subr.mxu1 %v10660_v1 }
 0x89f   : > { %2943 = vmatpush1.msra.mxu0 %v10664_v12  ;;  %3014 = vmatpush1.msra.mxu1 %v10666_v15 }
 0x8a0   : > { %2944 = vmatprep.subr.mxu0 %v10670_v17  ;;  %3015 = vmatprep.subr.mxu1 %v10672_v19 }
 0x8a1   : > { %2945 = vmatpush1.msra.mxu0 %v10676_v20  ;;  %3016 = vmatpush1.msra.mxu1 %v10678_v21 }
 0x8a2   : > { %2946 = vmatprep.subr.mxu0 %v10682_v22  ;;  %3017 = vmatprep.subr.mxu1 %v10684_v24 }
 0x8a3   : > { %2947 = vmatpush1.msra.mxu0 %v10688_v25  ;;  %3018 = vmatpush1.msra.mxu1 %v10690_v26 }
 0x8a4   : > { %2948 = vmatprep.subr.mxu0 %v10694_v27  ;;  %3019 = vmatprep.subr.mxu1 %v10696_v28 }
 0x8a5   : > { %2949 = vmatpush1.msra.mxu0 %v13664_v40  ;;  %3020 = vmatpush1.msra.mxu1 %v13665_v42 }
 0x8a6   : > { %2950 = vmatprep.subr.mxu0 %v13666_v59  ;;  %3021 = vmatprep.subr.mxu1 %v13667_v61 }
 0x8a7   : > { %2951 = vmatpush1.msra.mxu0 %v13668_v29  ;;  %3022 = vmatpush1.msra.mxu1 %v13669_v34 }
 0x8a8   : > { %2952 = vmatprep.subr.mxu0 %v13670_v43  ;;  %3023 = vmatprep.subr.mxu1 %v13671_v44  ;;  %v13682_v44 = vld [vmem:[#allocation34_spill] sm:$0xff] }
 0x8a9   : > { %2953 = vmatpush1.msra.mxu0 %v13672_v37  ;;  %3024 = vmatpush1.msra.mxu1 %v13673_v33  ;;  %v13683_v33 = vld [vmem:[#allocation15_spill] sm:$0xff] }
 0x8aa   : > { %2954 = vmatprep.subr.mxu0 %v13674_v41  ;;  %3025 = vmatprep.subr.mxu1 %v13675_v16  ;;  %v13684_v41 = vld [vmem:[#allocation22_spill] sm:$0xff] }
 0x8ab   : > { %2955 = vmatpush1.msra.mxu0 %v13676_v36  ;;  %3026 = vmatpush1.msra.mxu1 %v13677_v45 }
 0x8ac   : > { %2956 = vmatprep.subr.mxu0 %v13678_v32  ;;  %3027 = vmatprep.subr.mxu1 %v13679_v31 }
 0x8ad   : > { %2957 = vmatpush1.msra.mxu0 %v13680_v38  ;;  %2990 = vmatprep.mubr.f32.mxu0 %v13681_v30 }
 0x8ae   : > { %3028 = vmatpush1.msra.mxu1 %v13682_v44  ;;  %3061 = vmatprep.mubr.f32.mxu1 %v13681_v30  ;;  %v2810_v44 = vld [vmem:[#allocation4 + $0x20] ss:$8 sm:$0xf] }
 0x8af   : > { %3185 = vmatprep.subr.mxu0 %v13683_v33  ;;  %3256 = vmatprep.subr.mxu1 %v13684_v41 }
 0x94e   : > { %v2733_v16 = vpop.f32.mrf.mxu0  ;;  %v2804_v36 = vpop.f32.mrf.mxu1 }
 0x950   : > { %v2735_v37 = vpop.f32.mrf.mxu0  ;;  %v2806_v45 = vpop.f32.mrf.mxu1 }
 0x951   : > { %v2815_v43 = vcombine.low %v2733_v16, %v2735_v37  ;;  %v2816_v32 = vcombine.low %v2804_v36, %v2806_v45 }
 0x953   : > { %v2823_v31 = vrot.slane %v2815_v43, %v10065_v11  ;;  %v2830_v38 = vrot.slane %v2816_v32, %v10065_v11  ;;  %v11004_v32 = vld [vmem:[#allocation6 + $0x1c0] sm:$0xff] }
 0x955   : > { %v2831_v34 = vcombine.low %v2823_v31, %v2830_v38  ;;  %v11006_v31 = vld [vmem:[#allocation6 + $0x1d0] sm:$0xff]  ;;  %v11010_v38 = vld [vmem:[#allocation6 + $0x1a8] sm:$0xff] }
 0x957   : > { %v2838_v29 = vrot.slane %v2831_v34, %v10065_v11 }
 0x959   : > { %v2840_v61 = vadd.f32 %v2838_v29, %v2810_v44  ;;  %v11000_v44 = vld [vmem:[#allocation6 + $0x1d8] sm:$0xff] }
 0x95b   : > { %v9063_v30 = vmul.f32 -1.442695, %v2840_v61  ;;  %v2848_v41 = vrot.slane %v2840_v61, 3  ;;  %v10998_v61 = vld [vmem:[#allocation6 + $0x1c8] sm:$0xff] }
 0x95d   : > { %9285 = vpow2.f32 %v9063_v30  ;;  %v11012_v30 = vld [vmem:[#allocation6 + $0x1b8] sm:$0xff] }
 0x96a   : > { %v9286_v33 = vpop.eup %9285 }
 0x96b   : > { %v2844_v59 = vadd.f32 1.0, %v9286_v33  ;;  %v11016_v33 = vld [vmem:[#allocation6 + $0x1a0] sm:$0xff] }
 0x96d   : > { %9287 = vrcp.f32 %v2844_v59  ;;  %v10994_v59 = vld [vmem:[#allocation6 + $0x1f0] sm:$0xff] }
 0x96e   : > { %9289 = vtanh.f32 %v2848_v41  ;;  %v11018_v41 = vld [vmem:[#allocation6 + $0x1b0] sm:$0xff] }
 0x97a   : > { %v9288_v42 = vpop.eup %9287 }
 0x97b   : > { %v2852_v40 = vrot.slane %v9288_v42, 1  ;;  %v9290_v37 = vpop.eup %9289  ;;  %v2858_v34 = vrot.slane %v9288_v42, 2 }
 0x97c   : > { %v2855_v16 = vmul.f32 %v9290_v37, %v9288_v42  ;;  %v10992_v42 = vld [vmem:[#allocation6 + $0x1e0] sm:$0xff]  ;;  %v11022_v37 = vld [vmem:[#allocation6 + $0x188] sm:$0xff] }
 0x97d   : > { %v2854_v43 = vmul.f32 %v2852_v40, %v10837_v39  ;;  %v10986_v39 = vld [vmem:[#allocation6 + $0x1e8] sm:$0xff]  ;;  %v10988_v40 = vld [vmem:[#allocation6 + $0x1f8] sm:$0xff] }
 0x97e   : > { %13704 = vst [vmem:[#allocation15_spill] sm:$0xff] %v10986_v39  ;;  %13705 = vst [vmem:[#allocation22_spill] sm:$0xff] %v10988_v40 }
 0x97f   : > { %v10910_v36 = vadd.f32 %v2855_v16, %v2854_v43  ;;  %v11024_v16 = vld [vmem:[#allocation6 + $0x198] sm:$0xff]  ;;  %v11028_v43 = vld [vmem:[#allocation6 + $0x180] sm:$0xff] }
 0x981   : > { %9291 = vtanh.f32 %v10910_v36 }
 0x98e   : > { %v9292_v45 = vpop.eup %9291 }
 0x98f   : > { %v2860_v29 = vmul.f32 %v9292_v45, %v2858_v34  ;;  %v11034_v34 = vld [vmem:[#allocation6 + $0x168] sm:$0xff]  ;;  %v11036_v45 = vld [vmem:[#allocation6 + $0x178] sm:$0xff] }
 0x991   : > { %2861 = vst [vmem:[#allocation5 + $0x8] sm:$0x1] %v2860_v29  ;;  %2991 = vmatmul.mubr.f32.vlgmr.msra.gmra.mxu0 %v2860_v29  ;;  %3062 = vmatmul.mubr.f32.vlgmr.msra.gmra.mxu1 %v2860_v29  ;;  %v11040_v29 = vld [vmem:[#allocation6 + $0x160] sm:$0xff] }
 0x992   : > { %3186 = vmatpush1.msra.mxu0 %v10572_v8  ;;  %3257 = vmatpush1.msra.mxu1 %v10574_v7  ;;  %v13685_v8 = vld [vmem:[#allocation16_spill] sm:$0xff] }
 0x993   : > { %3187 = vmatprep.subr.mxu0 %v10578_v60  ;;  %3258 = vmatprep.subr.mxu1 %v10580_v10  ;;  %v13686_v7 = vld [vmem:[#allocation24_spill] sm:$0xff]  ;;  %v13687_v60 = vld [vmem:[#allocation17_spill] sm:$0xff]  ;;  %v13688_v10 = vld [vmem:[#allocation26_spill] sm:$0xff] }
 0x994   : > { %3188 = vmatpush1.msra.mxu0 %v10584_v49  ;;  %3259 = vmatpush1.msra.mxu1 %v10586_v48  ;;  %v13689_v49 = vld [vmem:[#allocation18_spill] sm:$0xff]  ;;  %v13690_v48 = vld [vmem:[#allocation28_spill] sm:$0xff] }
 0x995   : > { %3189 = vmatprep.subr.mxu0 %v10590_v57  ;;  %3260 = vmatprep.subr.mxu1 %v10592_v47  ;;  %v13691_v57 = vld [vmem:[#allocation19_spill] sm:$0xff]  ;;  %v13692_v47 = vld [vmem:[#allocation29_spill] sm:$0xff] }
 0x996   : > { %3190 = vmatpush1.msra.mxu0 %v10596_v50  ;;  %3261 = vmatpush1.msra.mxu1 %v10598_v63  ;;  %v13693_v50 = vld [vmem:[#allocation20_spill] sm:$0xff]  ;;  %v13694_v63 = vld [vmem:[#allocation30_spill] sm:$0xff] }
 0x997   : > { %3191 = vmatprep.subr.mxu0 %v10602_v55  ;;  %3262 = vmatprep.subr.mxu1 %v10604_v35  ;;  %v13695_v55 = vld [vmem:[#allocation21_spill] sm:$0xff]  ;;  %v13696_v35 = vld [vmem:[#allocation31_spill] sm:$0xff] }
 0x998   : > { %3192 = vmatpush1.msra.mxu0 %v10608_v58  ;;  %3263 = vmatpush1.msra.mxu1 %v10610_v53  ;;  %v13697_v58 = vld [vmem:[#allocation23_spill] sm:$0xff]  ;;  %v13698_v53 = vld [vmem:[#allocation32_spill] sm:$0xff] }
 0x999   : > { %3193 = vmatprep.subr.mxu0 %v10614_v51  ;;  %3264 = vmatprep.subr.mxu1 %v10616_v56  ;;  %v13699_v51 = vld [vmem:[#allocation25_spill] sm:$0xff] }
 0x99a   : > { %3194 = vmatpush1.msra.mxu0 %v10620_v46  ;;  %3265 = vmatpush1.msra.mxu1 %v10622_v6  ;;  %v13700_v56 = vld [vmem:[#allocation33_spill] sm:$0xff]  ;;  %v13701_v46 = vld [vmem:[#allocation27_spill] sm:$0xff]  ;;  %v13702_v6 = vmov 0.0  }
 0x99b   : > { %3195 = vmatprep.subr.mxu0 %v10624_v5  ;;  %3266 = vmatprep.subr.mxu1 %v10628_v0  ;;  %v13703_v5 = vld [vmem:[#allocation34_spill] sm:$0xff] }
 0x99c   : > { %3196 = vmatpush1.msra.mxu0 %v10630_v3  ;;  %3267 = vmatpush1.msra.mxu1 %v10632_v18 }
 0x99d   : > { %3197 = vmatprep.subr.mxu0 %v10636_v2  ;;  %3268 = vmatprep.subr.mxu1 %v10638_v23 }
 0x99e   : > { %3198 = vmatpush1.msra.mxu0 %v10640_v4  ;;  %3269 = vmatpush1.msra.mxu1 %v10644_v13 }
 0x99f   : > { %3199 = vmatprep.subr.mxu0 %v10646_v62  ;;  %3270 = vmatprep.subr.mxu1 %v10648_v54 }
 0x9a0   : > { %3200 = vmatpush1.msra.mxu0 %v10652_v14  ;;  %3271 = vmatpush1.msra.mxu1 %v10654_v9  ;;  %v3069_v9 = vld [vmem:[#allocation4 + $0x21] ss:$8 sm:$0xf] }
 0x9a1   : > { %3201 = vmatprep.subr.mxu0 %v10658_v52  ;;  %3272 = vmatprep.subr.mxu1 %v10660_v1 }
 0x9a2   : > { %3202 = vmatpush1.msra.mxu0 %v10664_v12  ;;  %3273 = vmatpush1.msra.mxu1 %v10666_v15 }
 0x9a3   : > { %3203 = vmatprep.subr.mxu0 %v10670_v17  ;;  %3274 = vmatprep.subr.mxu1 %v10672_v19 }
 0x9a4   : > { %3204 = vmatpush1.msra.mxu0 %v10676_v20  ;;  %3275 = vmatpush1.msra.mxu1 %v10678_v21 }
 0x9a5   : > { %3205 = vmatprep.subr.mxu0 %v10682_v22  ;;  %3276 = vmatprep.subr.mxu1 %v10684_v24 }
 0x9a6   : > { %3206 = vmatpush1.msra.mxu0 %v10688_v25  ;;  %3277 = vmatpush1.msra.mxu1 %v10690_v26 }
 0x9a7   : > { %3207 = vmatprep.subr.mxu0 %v10694_v27  ;;  %3278 = vmatprep.subr.mxu1 %v10696_v28 }
 0x9a8   : > { %3208 = vmatpush1.msra.mxu0 %v13685_v8  ;;  %3279 = vmatpush1.msra.mxu1 %v13686_v7  ;;  %v11042_v8 = vld [vmem:[#allocation6 + $0x170] sm:$0xff]  ;;  %v11044_v7 = vld [vmem:[#allocation6 + $0x148] sm:$0xff] }
 0x9a9   : > { %3209 = vmatprep.subr.mxu0 %v13687_v60  ;;  %3280 = vmatprep.subr.mxu1 %v13688_v10  ;;  %v11048_v60 = vld [vmem:[#allocation6 + $0x158] sm:$0xff]  ;;  %v11050_v10 = vld [vmem:[#allocation6 + $0x140] sm:$0xff] }
 0x9aa   : > { %3210 = vmatpush1.msra.mxu0 %v13689_v49  ;;  %3281 = vmatpush1.msra.mxu1 %v13690_v48  ;;  %v11052_v49 = vld [vmem:[#allocation6 + $0x150] sm:$0xff]  ;;  %v11056_v48 = vld [vmem:[#allocation6 + $0x128] sm:$0xff] }
 0x9ab   : > { %3211 = vmatprep.subr.mxu0 %v13691_v57  ;;  %3282 = vmatprep.subr.mxu1 %v13692_v47  ;;  %v11058_v57 = vld [vmem:[#allocation6 + $0x138] sm:$0xff]  ;;  %v11060_v47 = vld [vmem:[#allocation6 + $0x120] sm:$0xff] }
 0x9ac   : > { %3212 = vmatpush1.msra.mxu0 %v13693_v50  ;;  %3283 = vmatpush1.msra.mxu1 %v13694_v63  ;;  %v11064_v50 = vld [vmem:[#allocation6 + $0x130] sm:$0xff]  ;;  %v11066_v63 = vld [vmem:[#allocation6 + $0x108] sm:$0xff] }
 0x9ad   : > { %3213 = vmatprep.subr.mxu0 %v13695_v55  ;;  %3284 = vmatprep.subr.mxu1 %v13696_v35  ;;  %v11068_v55 = vld [vmem:[#allocation6 + $0x118] sm:$0xff]  ;;  %v11072_v35 = vld [vmem:[#allocation6 + $0x100] sm:$0xff] }
 0x9ae   : > { %3214 = vmatpush1.msra.mxu0 %v13697_v58  ;;  %3285 = vmatpush1.msra.mxu1 %v13698_v53  ;;  %v11074_v58 = vld [vmem:[#allocation6 + $0x110] sm:$0xff]  ;;  %v11078_v53 = vld [vmem:[#allocation6 + $0xe8] sm:$0xff] }
 0x9af   : > { %3215 = vmatprep.subr.mxu0 %v13699_v51  ;;  %3286 = vmatprep.subr.mxu1 %v13700_v56  ;;  %v11080_v51 = vld [vmem:[#allocation6 + $0xf8] sm:$0xff]  ;;  %v11084_v56 = vld [vmem:[#allocation6 + $0xe0] sm:$0xff] }
 0x9b0   : > { %3216 = vmatpush1.msra.mxu0 %v13701_v46  ;;  %3249 = vmatprep.mubr.f32.mxu0 %v13702_v6  ;;  %v11086_v46 = vld [vmem:[#allocation6 + $0xf0] sm:$0xff] }
 0x9b1   : > { %3287 = vmatpush1.msra.mxu1 %v13703_v5  ;;  %3320 = vmatprep.mubr.f32.mxu1 %v13702_v6  ;;  %v11090_v5 = vld [vmem:[#allocation6 + $0xc8] sm:$0xff] }
 0x9b2   : > { %3444 = vmatprep.subr.mxu0 %v10986_v39  ;;  %3515 = vmatprep.subr.mxu1 %v10988_v40 }
 0xa51   : > { %v2992_v0 = vpop.f32.mrf.mxu0  ;;  %v3063_v3 = vpop.f32.mrf.mxu1 }
 0xa53   : > { %v2994_v18 = vpop.f32.mrf.mxu0  ;;  %v3065_v2 = vpop.f32.mrf.mxu1 }
 0xa54   : > { %v3074_v23 = vcombine.low %v2992_v0, %v2994_v18  ;;  %v3075_v4 = vcombine.low %v3063_v3, %v3065_v2  ;;  %v11092_v0 = vld [vmem:[#allocation6 + $0xd8] sm:$0xff]  ;;  %v11096_v3 = vld [vmem:[#allocation6 + $0xc0] sm:$0xff]  ;;  %v11098_v18 = vld [vmem:[#allocation6 + $0xd0] sm:$0xff] }
 0xa55   : > { %v11102_v2 = vld [vmem:[#allocation6 + $0xa8] sm:$0xff] }
 0xa56   : > { %v3082_v13 = vrot.slane %v3074_v23, %v10065_v11  ;;  %v3089_v62 = vrot.slane %v3075_v4, %v10065_v11  ;;  %v11104_v23 = vld [vmem:[#allocation6 + $0xb8] sm:$0xff]  ;;  %v11108_v4 = vld [vmem:[#allocation6 + $0xa0] sm:$0xff] }
 0xa58   : > { %v3090_v54 = vcombine.low %v3082_v13, %v3089_v62  ;;  %v11110_v13 = vld [vmem:[#allocation6 + $0xb0] sm:$0xff]  ;;  %v11114_v62 = vld [vmem:[#allocation6 + $0x88] sm:$0xff] }
 0xa5a   : > { %v3097_v14 = vrot.slane %v3090_v54, %v10065_v11  ;;  %v11116_v54 = vld [vmem:[#allocation6 + $0x98] sm:$0xff] }
 0xa5c   : > { %v3099_v52 = vadd.f32 %v3097_v14, %v3069_v9  ;;  %v11120_v14 = vld [vmem:[#allocation6 + $0x80] sm:$0xff]  ;;  %v11122_v9 = vld [vmem:[#allocation6 + $0x90] sm:$0xff] }
 0xa5d   : > { %13706 = vst [vmem:[#allocation16_spill] sm:$0xff] %v11120_v14  ;;  %13707 = vst [vmem:[#allocation24_spill] sm:$0xff] %v11122_v9 }
 0xa5e   : > { %v9064_v1 = vmul.f32 -1.442695, %v3099_v52  ;;  %v3107_v17 = vrot.slane %v3099_v52, 3  ;;  %v11126_v52 = vld [vmem:[#allocation6 + $0x68] sm:$0xff] }
 0xa5f   : > { %13708 = vst [vmem:[#allocation17_spill] sm:$0xff] %v11126_v52 }
 0xa60   : > { %9293 = vpow2.f32 %v9064_v1  ;;  %v11128_v1 = vld [vmem:[#allocation6 + $0x78] sm:$0xff] }
 0xa61   : > { %13709 = vst [vmem:[#allocation26_spill] sm:$0xff] %v11128_v1 }
 0xa6d   : > { %v9294_v12 = vpop.eup %9293 }
 0xa6e   : > { %v3103_v15 = vadd.f32 1.0, %v9294_v12  ;;  %v11132_v12 = vld [vmem:[#allocation6 + $0x60] sm:$0xff] }
 0xa6f   : > { %13710 = vst [vmem:[#allocation18_spill] sm:$0xff] %v11132_v12 }
 0xa70   : > { %9295 = vrcp.f32 %v3103_v15  ;;  %v11134_v15 = vld [vmem:[#allocation6 + $0x70] sm:$0xff] }
 0xa71   : > { %9297 = vtanh.f32 %v3107_v17  ;;  %13711 = vst [vmem:[#allocation28_spill] sm:$0xff] %v11134_v15  ;;  %v11138_v17 = vld [vmem:[#allocation6 + $0x48] sm:$0xff] }
 0xa72   : > { %13712 = vst [vmem:[#allocation19_spill] sm:$0xff] %v11138_v17 }
 0xa7d   : > { %v9296_v19 = vpop.eup %9295 }
 0xa7e   : > { %v3111_v20 = vrot.slane %v9296_v19, 1  ;;  %v9298_v21 = vpop.eup %9297  ;;  %v3117_v26 = vrot.slane %v9296_v19, 2 }
 0xa7f   : > { %v3114_v22 = vmul.f32 %v9298_v21, %v9296_v19  ;;  %v11140_v19 = vld [vmem:[#allocation6 + $0x58] sm:$0xff]  ;;  %v11146_v21 = vld [vmem:[#allocation6 + $0x50] sm:$0xff] }
 0xa80   : > { %v3113_v24 = vmul.f32 %v3111_v20, %v10910_v36  ;;  %v11030_v36 = vld [vmem:[#allocation6 + $0x190] sm:$0xff]  ;;  %13713 = vst [vmem:[#allocation29_spill] sm:$0xff] %v11140_v19  ;;  %v11144_v20 = vld [vmem:[#allocation6 + $0x40] sm:$0xff]  ;;  %13715 = vst [vmem:[#allocation30_spill] sm:$0xff] %v11146_v21 }
 0xa81   : > { %13714 = vst [vmem:[#allocation20_spill] sm:$0xff] %v11144_v20 }
 0xa82   : > { %v10981_v25 = vadd.f32 %v3114_v22, %v3113_v24  ;;  %v11150_v22 = vld [vmem:[#allocation6 + $0x28] sm:$0xff]  ;;  %v11152_v24 = vld [vmem:[#allocation6 + $0x38] sm:$0xff] }
 0xa83   : > { %13716 = vst [vmem:[#allocation21_spill] sm:$0xff] %v11150_v22  ;;  %13717 = vst [vmem:[#allocation31_spill] sm:$0xff] %v11152_v24 }
 0xa84   : > { %9299 = vtanh.f32 %v10981_v25 }
 0xa91   : > { %v9300_v27 = vpop.eup %9299 }
 0xa92   : > { %v3119_v28 = vmul.f32 %v9300_v27, %v3117_v26  ;;  %v11156_v26 = vld [vmem:[#allocation6 + $0x20] sm:$0xff]  ;;  %v11158_v27 = vld [vmem:[#allocation6 + $0x30] sm:$0xff] }
 0xa93   : > { %13718 = vst [vmem:[#allocation23_spill] sm:$0xff] %v11156_v26  ;;  %13719 = vst [vmem:[#allocation32_spill] sm:$0xff] %v11158_v27 }
 0xa94   : > { %3120 = vst [vmem:[#allocation5 + $0x9] sm:$0x1] %v3119_v28  ;;  %3250 = vmatmul.mubr.f32.vlgmr.msra.gmra.mxu0 %v3119_v28  ;;  %3321 = vmatmul.mubr.f32.vlgmr.msra.gmra.mxu1 %v3119_v28  ;;  %v11162_v28 = vld [vmem:[#allocation6 + $0x8] sm:$0xff] }
 0xa95   : > { %3508 = vmatprep.mubr.f32.mxu0 %v13702_v6  ;;  %3579 = vmatprep.mubr.f32.mxu1 %v13702_v6  ;;  %13720 = vst [vmem:[#allocation25_spill] sm:$0xff] %v11162_v28  ;;  %v11164_v6 = vld [vmem:[#allocation6 + $0x18] sm:$0xff] }
 0xa96   : > { %3445 = vmatpush1.msra.mxu0 %v10992_v42  ;;  %3516 = vmatpush1.msra.mxu1 %v10994_v59  ;;  %13721 = vst [vmem:[#allocation33_spill] sm:$0xff] %v11164_v6 }
 0xa97   : > { %3446 = vmatprep.subr.mxu0 %v10998_v61  ;;  %3517 = vmatprep.subr.mxu1 %v11000_v44 }
 0xa98   : > { %3447 = vmatpush1.msra.mxu0 %v11004_v32  ;;  %3518 = vmatpush1.msra.mxu1 %v11006_v31 }
 0xa99   : > { %3448 = vmatprep.subr.mxu0 %v11010_v38  ;;  %3519 = vmatprep.subr.mxu1 %v11012_v30 }
 0xa9a   : > { %3449 = vmatpush1.msra.mxu0 %v11016_v33  ;;  %3520 = vmatpush1.msra.mxu1 %v11018_v41 }
 0xa9b   : > { %3450 = vmatprep.subr.mxu0 %v11022_v37  ;;  %3521 = vmatprep.subr.mxu1 %v11024_v16 }
 0xa9c   : > { %3451 = vmatpush1.msra.mxu0 %v11028_v43  ;;  %3522 = vmatpush1.msra.mxu1 %v11030_v36 }
 0xa9d   : > { %3452 = vmatprep.subr.mxu0 %v11034_v34  ;;  %3523 = vmatprep.subr.mxu1 %v11036_v45 }
 0xa9e   : > { %3453 = vmatpush1.msra.mxu0 %v11040_v29  ;;  %3524 = vmatpush1.msra.mxu1 %v11042_v8 }
 0xa9f   : > { %3454 = vmatprep.subr.mxu0 %v11044_v7  ;;  %3525 = vmatprep.subr.mxu1 %v11048_v60 }
 0xaa0   : > { %3455 = vmatpush1.msra.mxu0 %v11050_v10  ;;  %3526 = vmatpush1.msra.mxu1 %v11052_v49 }
 0xaa1   : > { %3456 = vmatprep.subr.mxu0 %v11056_v48  ;;  %3527 = vmatprep.subr.mxu1 %v11058_v57 }
 0xaa2   : > { %3457 = vmatpush1.msra.mxu0 %v11060_v47  ;;  %3528 = vmatpush1.msra.mxu1 %v11064_v50 }
 0xaa3   : > { %3458 = vmatprep.subr.mxu0 %v11066_v63  ;;  %3529 = vmatprep.subr.mxu1 %v11068_v55 }
 0xaa4   : > { %3459 = vmatpush1.msra.mxu0 %v11072_v35  ;;  %3530 = vmatpush1.msra.mxu1 %v11074_v58 }
 0xaa5   : > { %3460 = vmatprep.subr.mxu0 %v11078_v53  ;;  %3531 = vmatprep.subr.mxu1 %v11080_v51 }
 0xaa6   : > { %3461 = vmatpush1.msra.mxu0 %v11084_v56  ;;  %3532 = vmatpush1.msra.mxu1 %v11086_v46 }
 0xaa7   : > { %3462 = vmatprep.subr.mxu0 %v11090_v5  ;;  %3533 = vmatprep.subr.mxu1 %v11092_v0 }
 0xaa8   : > { %3463 = vmatpush1.msra.mxu0 %v11096_v3  ;;  %3534 = vmatpush1.msra.mxu1 %v11098_v18 }
 0xaa9   : > { %3464 = vmatprep.subr.mxu0 %v11102_v2  ;;  %3535 = vmatprep.subr.mxu1 %v11104_v23 }
 0xaaa   : > { %3465 = vmatpush1.msra.mxu0 %v11108_v4  ;;  %3536 = vmatpush1.msra.mxu1 %v11110_v13 }
 0xaab   : > { %3466 = vmatprep.subr.mxu0 %v11114_v62  ;;  %3537 = vmatprep.subr.mxu1 %v11116_v54 }
 0xaac   : > { %3467 = vmatpush1.msra.mxu0 %v11120_v14  ;;  %3538 = vmatpush1.msra.mxu1 %v11122_v9 }
 0xaad   : > { %3468 = vmatprep.subr.mxu0 %v11126_v52  ;;  %3539 = vmatprep.subr.mxu1 %v11128_v1 }
 0xaae   : > { %3469 = vmatpush1.msra.mxu0 %v11132_v12  ;;  %3540 = vmatpush1.msra.mxu1 %v11134_v15  ;;  %v11168_v15 = vld [vmem:[#allocation6] sm:$0xff] }
 0xaaf   : > { %3470 = vmatprep.subr.mxu0 %v11138_v17  ;;  %3541 = vmatprep.subr.mxu1 %v11140_v19  ;;  %13722 = vst [vmem:[#allocation27_spill] sm:$0xff] %v11168_v15  ;;  %v11170_v17 = vld [vmem:[#allocation6 + $0x10] sm:$0xff] }
 0xab0   : > { %3471 = vmatpush1.msra.mxu0 %v11144_v20  ;;  %3542 = vmatpush1.msra.mxu1 %v11146_v21  ;;  %13723 = vst [vmem:[#allocation34_spill] sm:$0xff] %v11170_v17 }
 0xab1   : > { %3472 = vmatprep.subr.mxu0 %v11150_v22  ;;  %3543 = vmatprep.subr.mxu1 %v11152_v24 }
 0xab2   : > { %3473 = vmatpush1.msra.mxu0 %v11156_v26  ;;  %3544 = vmatpush1.msra.mxu1 %v11158_v27 }
 0xab3   : > { %3474 = vmatprep.subr.mxu0 %v11162_v28  ;;  %3545 = vmatprep.subr.mxu1 %v11164_v6 }
 0xab4   : > { %3475 = vmatpush1.msra.mxu0 %v11168_v15  ;;  %3546 = vmatpush1.msra.mxu1 %v11170_v17  ;;  %v3328_v15 = vld [vmem:[#allocation4 + $0x22] ss:$8 sm:$0xf] }
 0xab5   : > { %3703 = vmatprep.subr.mxu0 %v10986_v39  ;;  %3774 = vmatprep.subr.mxu1 %v10988_v40 }
 0xb54   : > { %v3251_v24 = vpop.f32.mrf.mxu0  ;;  %v3322_v22 = vpop.f32.mrf.mxu1 }
 0xb56   : > { %v3253_v21 = vpop.f32.mrf.mxu0  ;;  %v3324_v20 = vpop.f32.mrf.mxu1 }
 0xb57   : > { %v3333_v19 = vcombine.low %v3251_v24, %v3253_v21  ;;  %v3334_v26 = vcombine.low %v3322_v22, %v3324_v20 }
 0xb59   : > { %v3341_v27 = vrot.slane %v3333_v19, %v10065_v11  ;;  %v3348_v28 = vrot.slane %v3334_v26, %v10065_v11  ;;  %v13733_v26 = vld [vmem:[#allocation30_spill] sm:$0xff] }
 0xb5b   : > { %v3349_v12 = vcombine.low %v3341_v27, %v3348_v28  ;;  %v13734_v27 = vld [vmem:[#allocation21_spill] sm:$0xff]  ;;  %v13735_v28 = vld [vmem:[#allocation31_spill] sm:$0xff] }
 0xb5d   : > { %v3356_v6 = vrot.slane %v3349_v12, %v10065_v11 }
 0xb5f   : > { %v3358_v1 = vadd.f32 %v3356_v6, %v3328_v15  ;;  %v13731_v15 = vld [vmem:[#allocation29_spill] sm:$0xff] }
 0xb61   : > { %v9065_v17 = vmul.f32 -1.442695, %v3358_v1  ;;  %v3366_v40 = vrot.slane %v3358_v1, 3  ;;  %v13730_v1 = vld [vmem:[#allocation19_spill] sm:$0xff] }
 0xb63   : > { %9301 = vpow2.f32 %v9065_v17  ;;  %v13732_v17 = vld [vmem:[#allocation20_spill] sm:$0xff] }
 0xb70   : > { %v9302_v39 = vpop.eup %9301 }
 0xb71   : > { %v3362_v52 = vadd.f32 1.0, %v9302_v39  ;;  %v13725_v39 = vld [vmem:[#allocation24_spill] sm:$0xff] }
 0xb73   : > { %9303 = vrcp.f32 %v3362_v52  ;;  %v13729_v52 = vld [vmem:[#allocation28_spill] sm:$0xff] }
 0xb74   : > { %9305 = vtanh.f32 %v3366_v40  ;;  %v13726_v40 = vld [vmem:[#allocation17_spill] sm:$0xff] }
 0xb80   : > { %v9304_v9 = vpop.eup %9303 }
 0xb81   : > { %v3370_v14 = vrot.slane %v9304_v9, 1  ;;  %v9306_v21 = vpop.eup %9305  ;;  %v3376_v12 = vrot.slane %v9304_v9, 2 }
 0xb82   : > { %v3373_v20 = vmul.f32 %v9306_v21, %v9304_v9  ;;  %v13728_v9 = vld [vmem:[#allocation18_spill] sm:$0xff]  ;;  %v13736_v21 = vld [vmem:[#allocation23_spill] sm:$0xff] }
 0xb83   : > { %v3372_v19 = vmul.f32 %v3370_v14, %v10981_v25  ;;  %v13724_v25 = vld [vmem:[#allocation16_spill] sm:$0xff]  ;;  %v13727_v14 = vld [vmem:[#allocation26_spill] sm:$0xff] }
 0xb85   : > { %v11184_v22 = vadd.f32 %v3373_v20, %v3372_v19  ;;  %v13737_v20 = vld [vmem:[#allocation32_spill] sm:$0xff]  ;;  %v13738_v19 = vld [vmem:[#allocation25_spill] sm:$0xff] }
 0xb87   : > { %9307 = vtanh.f32 %v11184_v22 }
 0xb94   : > { %v9308_v24 = vpop.eup %9307 }
 0xb95   : > { %v3378_v6 = vmul.f32 %v9308_v24, %v3376_v12  ;;  %v13739_v12 = vld [vmem:[#allocation33_spill] sm:$0xff]  ;;  %v13740_v24 = vld [vmem:[#allocation27_spill] sm:$0xff] }
 0xb97   : > { %3379 = vst [vmem:[#allocation5 + $0xa] sm:$0x1] %v3378_v6  ;;  %3509 = vmatmul.mubr.f32.vlgmr.msra.gmra.mxu0 %v3378_v6  ;;  %3580 = vmatmul.mubr.f32.vlgmr.msra.gmra.mxu1 %v3378_v6  ;;  %v13741_v6 = vmov 0.0  }
 0xb98   : > { %3704 = vmatpush1.msra.mxu0 %v10992_v42  ;;  %3775 = vmatpush1.msra.mxu1 %v10994_v59 }
 0xb99   : > { %3705 = vmatprep.subr.mxu0 %v10998_v61  ;;  %3776 = vmatprep.subr.mxu1 %v11000_v44 }
 0xb9a   : > { %3706 = vmatpush1.msra.mxu0 %v11004_v32  ;;  %3777 = vmatpush1.msra.mxu1 %v11006_v31 }
 0xb9b   : > { %3707 = vmatprep.subr.mxu0 %v11010_v38  ;;  %3778 = vmatprep.subr.mxu1 %v11012_v30 }
 0xb9c   : > { %3708 = vmatpush1.msra.mxu0 %v11016_v33  ;;  %3779 = vmatpush1.msra.mxu1 %v11018_v41 }
 0xb9d   : > { %3709 = vmatprep.subr.mxu0 %v11022_v37  ;;  %3780 = vmatprep.subr.mxu1 %v11024_v16 }
 0xb9e   : > { %3710 = vmatpush1.msra.mxu0 %v11028_v43  ;;  %3781 = vmatpush1.msra.mxu1 %v11030_v36 }
 0xb9f   : > { %3711 = vmatprep.subr.mxu0 %v11034_v34  ;;  %3782 = vmatprep.subr.mxu1 %v11036_v45 }
 0xba0   : > { %3712 = vmatpush1.msra.mxu0 %v11040_v29  ;;  %3783 = vmatpush1.msra.mxu1 %v11042_v8 }
 0xba1   : > { %3713 = vmatprep.subr.mxu0 %v11044_v7  ;;  %3784 = vmatprep.subr.mxu1 %v11048_v60 }
 0xba2   : > { %3714 = vmatpush1.msra.mxu0 %v11050_v10  ;;  %3785 = vmatpush1.msra.mxu1 %v11052_v49 }
 0xba3   : > { %3715 = vmatprep.subr.mxu0 %v11056_v48  ;;  %3786 = vmatprep.subr.mxu1 %v11058_v57 }
 0xba4   : > { %3716 = vmatpush1.msra.mxu0 %v11060_v47  ;;  %3787 = vmatpush1.msra.mxu1 %v11064_v50 }
 0xba5   : > { %3717 = vmatprep.subr.mxu0 %v11066_v63  ;;  %3788 = vmatprep.subr.mxu1 %v11068_v55 }
 0xba6   : > { %3718 = vmatpush1.msra.mxu0 %v11072_v35  ;;  %3789 = vmatpush1.msra.mxu1 %v11074_v58 }
 0xba7   : > { %3719 = vmatprep.subr.mxu0 %v11078_v53  ;;  %3790 = vmatprep.subr.mxu1 %v11080_v51 }
 0xba8   : > { %3720 = vmatpush1.msra.mxu0 %v11084_v56  ;;  %3791 = vmatpush1.msra.mxu1 %v11086_v46 }
 0xba9   : > { %3721 = vmatprep.subr.mxu0 %v11090_v5  ;;  %3792 = vmatprep.subr.mxu1 %v11092_v0 }
 0xbaa   : > { %3722 = vmatpush1.msra.mxu0 %v11096_v3  ;;  %3793 = vmatpush1.msra.mxu1 %v11098_v18 }
 0xbab   : > { %3723 = vmatprep.subr.mxu0 %v11102_v2  ;;  %3794 = vmatprep.subr.mxu1 %v11104_v23 }
 0xbac   : > { %3724 = vmatpush1.msra.mxu0 %v11108_v4  ;;  %3795 = vmatpush1.msra.mxu1 %v11110_v13 }
 0xbad   : > { %3725 = vmatprep.subr.mxu0 %v11114_v62  ;;  %3796 = vmatprep.subr.mxu1 %v11116_v54 }
 0xbae   : > { %3726 = vmatpush1.msra.mxu0 %v13724_v25  ;;  %3797 = vmatpush1.msra.mxu1 %v13725_v39 }
 0xbaf   : > { %3727 = vmatprep.subr.mxu0 %v13726_v40  ;;  %3798 = vmatprep.subr.mxu1 %v13727_v14 }
 0xbb0   : > { %3728 = vmatpush1.msra.mxu0 %v13728_v9  ;;  %3799 = vmatpush1.msra.mxu1 %v13729_v52 }
 0xbb1   : > { %3729 = vmatprep.subr.mxu0 %v13730_v1  ;;  %3800 = vmatprep.subr.mxu1 %v13731_v15  ;;  %v13742_v15 = vld [vmem:[#allocation34_spill] sm:$0xff] }
 0xbb2   : > { %3730 = vmatpush1.msra.mxu0 %v13732_v17  ;;  %3801 = vmatpush1.msra.mxu1 %v13733_v26  ;;  %v13743_v26 = vld [vmem:[#allocation15_spill] sm:$0xff] }
 0xbb3   : > { %3731 = vmatprep.subr.mxu0 %v13734_v27  ;;  %3802 = vmatprep.subr.mxu1 %v13735_v28  ;;  %v13744_v27 = vld [vmem:[#allocation22_spill] sm:$0xff] }
 0xbb4   : > { %3732 = vmatpush1.msra.mxu0 %v13736_v21  ;;  %3803 = vmatpush1.msra.mxu1 %v13737_v20 }
 0xbb5   : > { %3733 = vmatprep.subr.mxu0 %v13738_v19  ;;  %3804 = vmatprep.subr.mxu1 %v13739_v12 }
 0xbb6   : > { %3734 = vmatpush1.msra.mxu0 %v13740_v24  ;;  %3767 = vmatprep.mubr.f32.mxu0 %v13741_v6 }
 0xbb7   : > { %3805 = vmatpush1.msra.mxu1 %v13742_v15  ;;  %3838 = vmatprep.mubr.f32.mxu1 %v13741_v6  ;;  %v3587_v15 = vld [vmem:[#allocation4 + $0x23] ss:$8 sm:$0xf] }
 0xbb8   : > { %3962 = vmatprep.subr.mxu0 %v13743_v26  ;;  %4033 = vmatprep.subr.mxu1 %v13744_v27 }
 0xc57   : > { %v3510_v28 = vpop.f32.mrf.mxu0  ;;  %v3581_v21 = vpop.f32.mrf.mxu1 }
 0xc59   : > { %v3512_v17 = vpop.f32.mrf.mxu0  ;;  %v3583_v20 = vpop.f32.mrf.mxu1 }
 0xc5a   : > { %v3592_v1 = vcombine.low %v3510_v28, %v3512_v17  ;;  %v3593_v19 = vcombine.low %v3581_v21, %v3583_v20 }
 0xc5c   : > { %v3600_v12 = vrot.slane %v3592_v1, %v10065_v11  ;;  %v3607_v24 = vrot.slane %v3593_v19, %v10065_v11  ;;  %v13753_v19 = vld [vmem:[#allocation20_spill] sm:$0xff] }
 0xc5e   : > { %v3608_v52 = vcombine.low %v3600_v12, %v3607_v24  ;;  %v13754_v12 = vld [vmem:[#allocation30_spill] sm:$0xff]  ;;  %v13755_v24 = vld [vmem:[#allocation21_spill] sm:$0xff] }
 0xc60   : > { %v3615_v9 = vrot.slane %v3608_v52, %v10065_v11 }
 0xc62   : > { %v3617_v14 = vadd.f32 %v3615_v9, %v3587_v15  ;;  %v13750_v15 = vld [vmem:[#allocation28_spill] sm:$0xff] }
 0xc64   : > { %v9066_v6 = vmul.f32 -1.442695, %v3617_v14  ;;  %v3625_v27 = vrot.slane %v3617_v14, 3  ;;  %v13749_v14 = vld [vmem:[#allocation18_spill] sm:$0xff] }
 0xc66   : > { %9309 = vpow2.f32 %v9066_v6  ;;  %v13756_v6 = vld [vmem:[#allocation31_spill] sm:$0xff] }
 0xc73   : > { %v9310_v26 = vpop.eup %9309 }
 0xc74   : > { %v3621_v40 = vadd.f32 1.0, %v9310_v26  ;;  %v13751_v26 = vld [vmem:[#allocation19_spill] sm:$0xff] }
 0xc76   : > { %9311 = vrcp.f32 %v3621_v40  ;;  %v13748_v40 = vld [vmem:[#allocation26_spill] sm:$0xff] }
 0xc77   : > { %9313 = vtanh.f32 %v3625_v27  ;;  %v13752_v27 = vld [vmem:[#allocation29_spill] sm:$0xff] }
 0xc83   : > { %v9312_v39 = vpop.eup %9311 }
 0xc84   : > { %v3629_v25 = vrot.slane %v9312_v39, 1  ;;  %v9314_v17 = vpop.eup %9313  ;;  %v3635_v52 = vrot.slane %v9312_v39, 2 }
 0xc85   : > { %v3632_v28 = vmul.f32 %v9314_v17, %v9312_v39  ;;  %v13747_v39 = vld [vmem:[#allocation17_spill] sm:$0xff]  ;;  %v13757_v17 = vld [vmem:[#allocation23_spill] sm:$0xff] }
 0xc86   : > { %v3631_v1 = vmul.f32 %v3629_v25, %v11184_v22  ;;  %v13745_v22 = vld [vmem:[#allocation16_spill] sm:$0xff] }
 0xc87   : > { %v13746_v25 = vld [vmem:[#allocation24_spill] sm:$0xff] }
 0xc88   : > { %v11257_v21 = vadd.f32 %v3632_v28, %v3631_v1  ;;  %v13758_v28 = vld [vmem:[#allocation32_spill] sm:$0xff]  ;;  %v13759_v1 = vld [vmem:[#allocation25_spill] sm:$0xff] }
 0xc8a   : > { %9315 = vtanh.f32 %v11257_v21 }
 0xc97   : > { %v9316_v20 = vpop.eup %9315 }
 0xc98   : > { %v3637_v9 = vmul.f32 %v9316_v20, %v3635_v52  ;;  %v13760_v52 = vld [vmem:[#allocation33_spill] sm:$0xff]  ;;  %v13761_v20 = vld [vmem:[#allocation27_spill] sm:$0xff] }
 0xc9a   : > { %3638 = vst [vmem:[#allocation5 + $0xb] sm:$0x1] %v3637_v9  ;;  %3768 = vmatmul.mubr.f32.vlgmr.msra.gmra.mxu0 %v3637_v9  ;;  %3839 = vmatmul.mubr.f32.vlgmr.msra.gmra.mxu1 %v3637_v9  ;;  %v13762_v9 = vmov 0.0  }
 0xc9b   : > { %3963 = vmatpush1.msra.mxu0 %v10992_v42  ;;  %4034 = vmatpush1.msra.mxu1 %v10994_v59 }
 0xc9c   : > { %3964 = vmatprep.subr.mxu0 %v10998_v61  ;;  %4035 = vmatprep.subr.mxu1 %v11000_v44 }
 0xc9d   : > { %3965 = vmatpush1.msra.mxu0 %v11004_v32  ;;  %4036 = vmatpush1.msra.mxu1 %v11006_v31 }
 0xc9e   : > { %3966 = vmatprep.subr.mxu0 %v11010_v38  ;;  %4037 = vmatprep.subr.mxu1 %v11012_v30 }
 0xc9f   : > { %3967 = vmatpush1.msra.mxu0 %v11016_v33  ;;  %4038 = vmatpush1.msra.mxu1 %v11018_v41 }
 0xca0   : > { %3968 = vmatprep.subr.mxu0 %v11022_v37  ;;  %4039 = vmatprep.subr.mxu1 %v11024_v16 }
 0xca1   : > { %3969 = vmatpush1.msra.mxu0 %v11028_v43  ;;  %4040 = vmatpush1.msra.mxu1 %v11030_v36 }
 0xca2   : > { %3970 = vmatprep.subr.mxu0 %v11034_v34  ;;  %4041 = vmatprep.subr.mxu1 %v11036_v45 }
 0xca3   : > { %3971 = vmatpush1.msra.mxu0 %v11040_v29  ;;  %4042 = vmatpush1.msra.mxu1 %v11042_v8 }
 0xca4   : > { %3972 = vmatprep.subr.mxu0 %v11044_v7  ;;  %4043 = vmatprep.subr.mxu1 %v11048_v60 }
 0xca5   : > { %3973 = vmatpush1.msra.mxu0 %v11050_v10  ;;  %4044 = vmatpush1.msra.mxu1 %v11052_v49 }
 0xca6   : > { %3974 = vmatprep.subr.mxu0 %v11056_v48  ;;  %4045 = vmatprep.subr.mxu1 %v11058_v57 }
 0xca7   : > { %3975 = vmatpush1.msra.mxu0 %v11060_v47  ;;  %4046 = vmatpush1.msra.mxu1 %v11064_v50 }
 0xca8   : > { %3976 = vmatprep.subr.mxu0 %v11066_v63  ;;  %4047 = vmatprep.subr.mxu1 %v11068_v55 }
 0xca9   : > { %3977 = vmatpush1.msra.mxu0 %v11072_v35  ;;  %4048 = vmatpush1.msra.mxu1 %v11074_v58 }
 0xcaa   : > { %3978 = vmatprep.subr.mxu0 %v11078_v53  ;;  %4049 = vmatprep.subr.mxu1 %v11080_v51 }
 0xcab   : > { %3979 = vmatpush1.msra.mxu0 %v11084_v56  ;;  %4050 = vmatpush1.msra.mxu1 %v11086_v46 }
 0xcac   : > { %3980 = vmatprep.subr.mxu0 %v11090_v5  ;;  %4051 = vmatprep.subr.mxu1 %v11092_v0 }
 0xcad   : > { %3981 = vmatpush1.msra.mxu0 %v11096_v3  ;;  %4052 = vmatpush1.msra.mxu1 %v11098_v18 }
 0xcae   : > { %3982 = vmatprep.subr.mxu0 %v11102_v2  ;;  %4053 = vmatprep.subr.mxu1 %v11104_v23 }
 0xcaf   : > { %3983 = vmatpush1.msra.mxu0 %v11108_v4  ;;  %4054 = vmatpush1.msra.mxu1 %v11110_v13 }
 0xcb0   : > { %3984 = vmatprep.subr.mxu0 %v11114_v62  ;;  %4055 = vmatprep.subr.mxu1 %v11116_v54 }
 0xcb1   : > { %3985 = vmatpush1.msra.mxu0 %v13745_v22  ;;  %4056 = vmatpush1.msra.mxu1 %v13746_v25 }
 0xcb2   : > { %3986 = vmatprep.subr.mxu0 %v13747_v39  ;;  %4057 = vmatprep.subr.mxu1 %v13748_v40 }
 0xcb3   : > { %3987 = vmatpush1.msra.mxu0 %v13749_v14  ;;  %4058 = vmatpush1.msra.mxu1 %v13750_v15 }
 0xcb4   : > { %3988 = vmatprep.subr.mxu0 %v13751_v26  ;;  %4059 = vmatprep.subr.mxu1 %v13752_v27  ;;  %v13763_v27 = vld [vmem:[#allocation34_spill] sm:$0xff] }
 0xcb5   : > { %3989 = vmatpush1.msra.mxu0 %v13753_v19  ;;  %4060 = vmatpush1.msra.mxu1 %v13754_v12  ;;  %v13764_v12 = vld [vmem:[#allocation15_spill] sm:$0xff] }
 0xcb6   : > { %3990 = vmatprep.subr.mxu0 %v13755_v24  ;;  %4061 = vmatprep.subr.mxu1 %v13756_v6  ;;  %v13765_v24 = vld [vmem:[#allocation22_spill] sm:$0xff] }
 0xcb7   : > { %3991 = vmatpush1.msra.mxu0 %v13757_v17  ;;  %4062 = vmatpush1.msra.mxu1 %v13758_v28 }
 0xcb8   : > { %3992 = vmatprep.subr.mxu0 %v13759_v1  ;;  %4063 = vmatprep.subr.mxu1 %v13760_v52 }
 0xcb9   : > { %3993 = vmatpush1.msra.mxu0 %v13761_v20  ;;  %4026 = vmatprep.mubr.f32.mxu0 %v13762_v9 }
 0xcba   : > { %4064 = vmatpush1.msra.mxu1 %v13763_v27  ;;  %4097 = vmatprep.mubr.f32.mxu1 %v13762_v9  ;;  %v3846_v27 = vld [vmem:[#allocation4 + $0x24] ss:$8 sm:$0xf] }
 0xcbb   : > { %4221 = vmatprep.subr.mxu0 %v13764_v12  ;;  %4292 = vmatprep.subr.mxu1 %v13765_v24 }
 0xd5a   : > { %v3769_v6 = vpop.f32.mrf.mxu0  ;;  %v3840_v17 = vpop.f32.mrf.mxu1 }
 0xd5c   : > { %v3771_v19 = vpop.f32.mrf.mxu0  ;;  %v3842_v28 = vpop.f32.mrf.mxu1 }
 0xd5d   : > { %v3851_v26 = vcombine.low %v3769_v6, %v3771_v19  ;;  %v3852_v1 = vcombine.low %v3840_v17, %v3842_v28 }
 0xd5f   : > { %v3859_v52 = vrot.slane %v3851_v26, %v10065_v11  ;;  %v3866_v20 = vrot.slane %v3852_v1, %v10065_v11  ;;  %v11424_v1 = vld [vmem:[#allocation6 + $0x1c0] sm:$0xff] }
 0xd61   : > { %v3867_v15 = vcombine.low %v3859_v52, %v3866_v20  ;;  %v11426_v52 = vld [vmem:[#allocation6 + $0x1d0] sm:$0xff]  ;;  %v11430_v20 = vld [vmem:[#allocation6 + $0x1a8] sm:$0xff] }
 0xd63   : > { %v3874_v14 = vrot.slane %v3867_v15, %v10065_v11 }
 0xd65   : > { %v3876_v40 = vadd.f32 %v3874_v14, %v3846_v27  ;;  %v11420_v27 = vld [vmem:[#allocation6 + $0x1d8] sm:$0xff] }
 0xd67   : > { %v9067_v9 = vmul.f32 -1.442695, %v3876_v40  ;;  %v3884_v24 = vrot.slane %v3876_v40, 3  ;;  %v11418_v40 = vld [vmem:[#allocation6 + $0x1c8] sm:$0xff] }
 0xd69   : > { %9317 = vpow2.f32 %v9067_v9  ;;  %v11432_v9 = vld [vmem:[#allocation6 + $0x1b8] sm:$0xff] }
 0xd76   : > { %v9318_v12 = vpop.eup %9317 }
 0xd77   : > { %v3880_v39 = vadd.f32 1.0, %v9318_v12  ;;  %v11436_v12 = vld [vmem:[#allocation6 + $0x1a0] sm:$0xff] }
 0xd79   : > { %9319 = vrcp.f32 %v3880_v39  ;;  %v11414_v39 = vld [vmem:[#allocation6 + $0x1f0] sm:$0xff] }
 0xd7a   : > { %9321 = vtanh.f32 %v3884_v24  ;;  %v11438_v24 = vld [vmem:[#allocation6 + $0x1b0] sm:$0xff] }
 0xd86   : > { %v9320_v25 = vpop.eup %9319 }
 0xd87   : > { %v3888_v22 = vrot.slane %v9320_v25, 1  ;;  %v9322_v19 = vpop.eup %9321  ;;  %v3894_v15 = vrot.slane %v9320_v25, 2 }
 0xd88   : > { %v3891_v6 = vmul.f32 %v9322_v19, %v9320_v25  ;;  %v11412_v25 = vld [vmem:[#allocation6 + $0x1e0] sm:$0xff]  ;;  %v11442_v19 = vld [vmem:[#allocation6 + $0x188] sm:$0xff] }
 0xd89   : > { %v3890_v26 = vmul.f32 %v3888_v22, %v11257_v21  ;;  %v11406_v21 = vld [vmem:[#allocation6 + $0x1e8] sm:$0xff]  ;;  %v11408_v22 = vld [vmem:[#allocation6 + $0x1f8] sm:$0xff] }
 0xd8a   : > { %13785 = vst [vmem:[#allocation15_spill] sm:$0xff] %v11406_v21  ;;  %13786 = vst [vmem:[#allocation22_spill] sm:$0xff] %v11408_v22 }
 0xd8b   : > { %v11330_v17 = vadd.f32 %v3891_v6, %v3890_v26  ;;  %v11444_v6 = vld [vmem:[#allocation6 + $0x198] sm:$0xff]  ;;  %v11448_v26 = vld [vmem:[#allocation6 + $0x180] sm:$0xff] }
 0xd8d   : > { %9323 = vtanh.f32 %v11330_v17 }
 0xd9a   : > { %v9324_v28 = vpop.eup %9323 }
 0xd9b   : > { %v3896_v14 = vmul.f32 %v9324_v28, %v3894_v15  ;;  %v11454_v15 = vld [vmem:[#allocation6 + $0x168] sm:$0xff]  ;;  %v11456_v28 = vld [vmem:[#allocation6 + $0x178] sm:$0xff] }
 0xd9d   : > { %3897 = vst [vmem:[#allocation5 + $0xc] sm:$0x1] %v3896_v14  ;;  %4027 = vmatmul.mubr.f32.vlgmr.msra.gmra.mxu0 %v3896_v14  ;;  %4098 = vmatmul.mubr.f32.vlgmr.msra.gmra.mxu1 %v3896_v14  ;;  %v11460_v14 = vld [vmem:[#allocation6 + $0x160] sm:$0xff] }
 0xd9e   : > { %4222 = vmatpush1.msra.mxu0 %v10992_v42  ;;  %4293 = vmatpush1.msra.mxu1 %v10994_v59  ;;  %v13766_v42 = vld [vmem:[#allocation16_spill] sm:$0xff] }
 0xd9f   : > { %4223 = vmatprep.subr.mxu0 %v10998_v61  ;;  %4294 = vmatprep.subr.mxu1 %v11000_v44  ;;  %v13767_v59 = vld [vmem:[#allocation24_spill] sm:$0xff]  ;;  %v13768_v61 = vld [vmem:[#allocation17_spill] sm:$0xff]  ;;  %v13769_v44 = vld [vmem:[#allocation26_spill] sm:$0xff] }
 0xda0   : > { %4224 = vmatpush1.msra.mxu0 %v11004_v32  ;;  %4295 = vmatpush1.msra.mxu1 %v11006_v31  ;;  %v13770_v32 = vld [vmem:[#allocation18_spill] sm:$0xff]  ;;  %v13771_v31 = vld [vmem:[#allocation28_spill] sm:$0xff] }
 0xda1   : > { %4225 = vmatprep.subr.mxu0 %v11010_v38  ;;  %4296 = vmatprep.subr.mxu1 %v11012_v30  ;;  %v13772_v38 = vld [vmem:[#allocation19_spill] sm:$0xff]  ;;  %v13773_v30 = vld [vmem:[#allocation29_spill] sm:$0xff] }
 0xda2   : > { %4226 = vmatpush1.msra.mxu0 %v11016_v33  ;;  %4297 = vmatpush1.msra.mxu1 %v11018_v41  ;;  %v13774_v33 = vld [vmem:[#allocation20_spill] sm:$0xff]  ;;  %v13775_v41 = vld [vmem:[#allocation30_spill] sm:$0xff] }
 0xda3   : > { %4227 = vmatprep.subr.mxu0 %v11022_v37  ;;  %4298 = vmatprep.subr.mxu1 %v11024_v16  ;;  %v13776_v37 = vld [vmem:[#allocation21_spill] sm:$0xff]  ;;  %v13777_v16 = vld [vmem:[#allocation31_spill] sm:$0xff] }
 0xda4   : > { %4228 = vmatpush1.msra.mxu0 %v11028_v43  ;;  %4299 = vmatpush1.msra.mxu1 %v11030_v36  ;;  %v13778_v43 = vld [vmem:[#allocation23_spill] sm:$0xff]  ;;  %v13779_v36 = vld [vmem:[#allocation32_spill] sm:$0xff] }
 0xda5   : > { %4229 = vmatprep.subr.mxu0 %v11034_v34  ;;  %4300 = vmatprep.subr.mxu1 %v11036_v45  ;;  %v13780_v34 = vld [vmem:[#allocation25_spill] sm:$0xff] }
 0xda6   : > { %4230 = vmatpush1.msra.mxu0 %v11040_v29  ;;  %4301 = vmatpush1.msra.mxu1 %v11042_v8  ;;  %v13781_v45 = vld [vmem:[#allocation33_spill] sm:$0xff]  ;;  %v13782_v29 = vld [vmem:[#allocation27_spill] sm:$0xff]  ;;  %v13783_v8 = vmov 0.0  }
 0xda7   : > { %4231 = vmatprep.subr.mxu0 %v11044_v7  ;;  %4302 = vmatprep.subr.mxu1 %v11048_v60  ;;  %v13784_v7 = vld [vmem:[#allocation34_spill] sm:$0xff] }
 0xda8   : > { %4232 = vmatpush1.msra.mxu0 %v11050_v10  ;;  %4303 = vmatpush1.msra.mxu1 %v11052_v49 }
 0xda9   : > { %4233 = vmatprep.subr.mxu0 %v11056_v48  ;;  %4304 = vmatprep.subr.mxu1 %v11058_v57 }
 0xdaa   : > { %4234 = vmatpush1.msra.mxu0 %v11060_v47  ;;  %4305 = vmatpush1.msra.mxu1 %v11064_v50 }
 0xdab   : > { %4235 = vmatprep.subr.mxu0 %v11066_v63  ;;  %4306 = vmatprep.subr.mxu1 %v11068_v55 }
 0xdac   : > { %4236 = vmatpush1.msra.mxu0 %v11072_v35  ;;  %4307 = vmatpush1.msra.mxu1 %v11074_v58  ;;  %v4105_v58 = vld [vmem:[#allocation4 + $0x25] ss:$8 sm:$0xf] }
 0xdad   : > { %4237 = vmatprep.subr.mxu0 %v11078_v53  ;;  %4308 = vmatprep.subr.mxu1 %v11080_v51 }
 0xdae   : > { %4238 = vmatpush1.msra.mxu0 %v11084_v56  ;;  %4309 = vmatpush1.msra.mxu1 %v11086_v46 }
 0xdaf   : > { %4239 = vmatprep.subr.mxu0 %v11090_v5  ;;  %4310 = vmatprep.subr.mxu1 %v11092_v0 }
 0xdb0   : > { %4240 = vmatpush1.msra.mxu0 %v11096_v3  ;;  %4311 = vmatpush1.msra.mxu1 %v11098_v18 }
 0xdb1   : > { %4241 = vmatprep.subr.mxu0 %v11102_v2  ;;  %4312 = vmatprep.subr.mxu1 %v11104_v23 }
 0xdb2   : > { %4242 = vmatpush1.msra.mxu0 %v11108_v4  ;;  %4313 = vmatpush1.msra.mxu1 %v11110_v13 }
 0xdb3   : > { %4243 = vmatprep.subr.mxu0 %v11114_v62  ;;  %4314 = vmatprep.subr.mxu1 %v11116_v54 }
 0xdb4   : > { %4244 = vmatpush1.msra.mxu0 %v13766_v42  ;;  %4315 = vmatpush1.msra.mxu1 %v13767_v59  ;;  %v11462_v42 = vld [vmem:[#allocation6 + $0x170] sm:$0xff]  ;;  %v11464_v59 = vld [vmem:[#allocation6 + $0x148] sm:$0xff] }
 0xdb5   : > { %4245 = vmatprep.subr.mxu0 %v13768_v61  ;;  %4316 = vmatprep.subr.mxu1 %v13769_v44  ;;  %v11468_v61 = vld [vmem:[#allocation6 + $0x158] sm:$0xff]  ;;  %v11470_v44 = vld [vmem:[#allocation6 + $0x140] sm:$0xff] }
 0xdb6   : > { %4246 = vmatpush1.msra.mxu0 %v13770_v32  ;;  %4317 = vmatpush1.msra.mxu1 %v13771_v31  ;;  %v11472_v32 = vld [vmem:[#allocation6 + $0x150] sm:$0xff]  ;;  %v11476_v31 = vld [vmem:[#allocation6 + $0x128] sm:$0xff] }
 0xdb7   : > { %4247 = vmatprep.subr.mxu0 %v13772_v38  ;;  %4318 = vmatprep.subr.mxu1 %v13773_v30  ;;  %v11478_v38 = vld [vmem:[#allocation6 + $0x138] sm:$0xff]  ;;  %v11480_v30 = vld [vmem:[#allocation6 + $0x120] sm:$0xff] }
 0xdb8   : > { %4248 = vmatpush1.msra.mxu0 %v13774_v33  ;;  %4319 = vmatpush1.msra.mxu1 %v13775_v41  ;;  %v11484_v33 = vld [vmem:[#allocation6 + $0x130] sm:$0xff]  ;;  %v11486_v41 = vld [vmem:[#allocation6 + $0x108] sm:$0xff] }
 0xdb9   : > { %4249 = vmatprep.subr.mxu0 %v13776_v37  ;;  %4320 = vmatprep.subr.mxu1 %v13777_v16  ;;  %v11488_v37 = vld [vmem:[#allocation6 + $0x118] sm:$0xff]  ;;  %v11492_v16 = vld [vmem:[#allocation6 + $0x100] sm:$0xff] }
 0xdba   : > { %4250 = vmatpush1.msra.mxu0 %v13778_v43  ;;  %4321 = vmatpush1.msra.mxu1 %v13779_v36  ;;  %v11494_v43 = vld [vmem:[#allocation6 + $0x110] sm:$0xff]  ;;  %v11498_v36 = vld [vmem:[#allocation6 + $0xe8] sm:$0xff] }
 0xdbb   : > { %4251 = vmatprep.subr.mxu0 %v13780_v34  ;;  %4322 = vmatprep.subr.mxu1 %v13781_v45  ;;  %v11500_v34 = vld [vmem:[#allocation6 + $0xf8] sm:$0xff]  ;;  %v11504_v45 = vld [vmem:[#allocation6 + $0xe0] sm:$0xff] }
 0xdbc   : > { %4252 = vmatpush1.msra.mxu0 %v13782_v29  ;;  %4285 = vmatprep.mubr.f32.mxu0 %v13783_v8  ;;  %v11506_v29 = vld [vmem:[#allocation6 + $0xf0] sm:$0xff] }
 0xdbd   : > { %4323 = vmatpush1.msra.mxu1 %v13784_v7  ;;  %4356 = vmatprep.mubr.f32.mxu1 %v13783_v8  ;;  %v11510_v7 = vld [vmem:[#allocation6 + $0xc8] sm:$0xff] }
 0xdbe   : > { %4480 = vmatprep.subr.mxu0 %v11406_v21  ;;  %4551 = vmatprep.subr.mxu1 %v11408_v22 }
 0xe5d   : > { %v4028_v60 = vpop.f32.mrf.mxu0  ;;  %v4099_v10 = vpop.f32.mrf.mxu1 }
 0xe5f   : > { %v4030_v49 = vpop.f32.mrf.mxu0  ;;  %v4101_v48 = vpop.f32.mrf.mxu1 }
 0xe60   : > { %v4110_v57 = vcombine.low %v4028_v60, %v4030_v49  ;;  %v4111_v47 = vcombine.low %v4099_v10, %v4101_v48  ;;  %v11512_v60 = vld [vmem:[#allocation6 + $0xd8] sm:$0xff]  ;;  %v11516_v10 = vld [vmem:[#allocation6 + $0xc0] sm:$0xff]  ;;  %v11518_v49 = vld [vmem:[#allocation6 + $0xd0] sm:$0xff] }
 0xe61   : > { %v11522_v48 = vld [vmem:[#allocation6 + $0xa8] sm:$0xff] }
 0xe62   : > { %v4118_v50 = vrot.slane %v4110_v57, %v10065_v11  ;;  %v4125_v63 = vrot.slane %v4111_v47, %v10065_v11  ;;  %v11524_v57 = vld [vmem:[#allocation6 + $0xb8] sm:$0xff]  ;;  %v11528_v47 = vld [vmem:[#allocation6 + $0xa0] sm:$0xff] }
 0xe64   : > { %v4126_v55 = vcombine.low %v4118_v50, %v4125_v63  ;;  %v11530_v50 = vld [vmem:[#allocation6 + $0xb0] sm:$0xff]  ;;  %v11534_v63 = vld [vmem:[#allocation6 + $0x88] sm:$0xff] }
 0xe66   : > { %v4133_v35 = vrot.slane %v4126_v55, %v10065_v11  ;;  %v11536_v55 = vld [vmem:[#allocation6 + $0x98] sm:$0xff] }
 0xe68   : > { %v4135_v53 = vadd.f32 %v4133_v35, %v4105_v58  ;;  %v11540_v35 = vld [vmem:[#allocation6 + $0x80] sm:$0xff]  ;;  %v11542_v58 = vld [vmem:[#allocation6 + $0x90] sm:$0xff] }
 0xe69   : > { %13787 = vst [vmem:[#allocation16_spill] sm:$0xff] %v11540_v35  ;;  %13788 = vst [vmem:[#allocation24_spill] sm:$0xff] %v11542_v58 }
 0xe6a   : > { %v9068_v51 = vmul.f32 -1.442695, %v4135_v53  ;;  %v4143_v5 = vrot.slane %v4135_v53, 3  ;;  %v11546_v53 = vld [vmem:[#allocation6 + $0x68] sm:$0xff] }
 0xe6b   : > { %13789 = vst [vmem:[#allocation17_spill] sm:$0xff] %v11546_v53 }
 0xe6c   : > { %9325 = vpow2.f32 %v9068_v51  ;;  %v11548_v51 = vld [vmem:[#allocation6 + $0x78] sm:$0xff] }
 0xe6d   : > { %13790 = vst [vmem:[#allocation26_spill] sm:$0xff] %v11548_v51 }
 0xe79   : > { %v9326_v56 = vpop.eup %9325 }
 0xe7a   : > { %v4139_v46 = vadd.f32 1.0, %v9326_v56  ;;  %v11552_v56 = vld [vmem:[#allocation6 + $0x60] sm:$0xff] }
 0xe7b   : > { %13791 = vst [vmem:[#allocation18_spill] sm:$0xff] %v11552_v56 }
 0xe7c   : > { %9327 = vrcp.f32 %v4139_v46  ;;  %v11554_v46 = vld [vmem:[#allocation6 + $0x70] sm:$0xff] }
 0xe7d   : > { %9329 = vtanh.f32 %v4143_v5  ;;  %13792 = vst [vmem:[#allocation28_spill] sm:$0xff] %v11554_v46  ;;  %v11558_v5 = vld [vmem:[#allocation6 + $0x48] sm:$0xff] }
 0xe7e   : > { %13793 = vst [vmem:[#allocation19_spill] sm:$0xff] %v11558_v5 }
 0xe89   : > { %v9328_v0 = vpop.eup %9327 }
 0xe8a   : > { %v4147_v3 = vrot.slane %v9328_v0, 1  ;;  %v9330_v18 = vpop.eup %9329  ;;  %v4153_v13 = vrot.slane %v9328_v0, 2 }
 0xe8b   : > { %v4150_v2 = vmul.f32 %v9330_v18, %v9328_v0  ;;  %v11560_v0 = vld [vmem:[#allocation6 + $0x58] sm:$0xff]  ;;  %v11566_v18 = vld [vmem:[#allocation6 + $0x50] sm:$0xff] }
 0xe8c   : > { %v4149_v23 = vmul.f32 %v4147_v3, %v11330_v17  ;;  %v11450_v17 = vld [vmem:[#allocation6 + $0x190] sm:$0xff]  ;;  %13794 = vst [vmem:[#allocation29_spill] sm:$0xff] %v11560_v0  ;;  %v11564_v3 = vld [vmem:[#allocation6 + $0x40] sm:$0xff]  ;;  %13796 = vst [vmem:[#allocation30_spill] sm:$0xff] %v11566_v18 }
 0xe8d   : > { %13795 = vst [vmem:[#allocation20_spill] sm:$0xff] %v11564_v3 }
 0xe8e   : > { %v11401_v4 = vadd.f32 %v4150_v2, %v4149_v23  ;;  %v11570_v2 = vld [vmem:[#allocation6 + $0x28] sm:$0xff]  ;;  %v11572_v23 = vld [vmem:[#allocation6 + $0x38] sm:$0xff] }
 0xe8f   : > { %13797 = vst [vmem:[#allocation21_spill] sm:$0xff] %v11570_v2  ;;  %13798 = vst [vmem:[#allocation31_spill] sm:$0xff] %v11572_v23 }
 0xe90   : > { %9331 = vtanh.f32 %v11401_v4 }
 0xe9d   : > { %v9332_v62 = vpop.eup %9331 }
 0xe9e   : > { %v4155_v54 = vmul.f32 %v9332_v62, %v4153_v13  ;;  %v11576_v13 = vld [vmem:[#allocation6 + $0x20] sm:$0xff]  ;;  %v11578_v62 = vld [vmem:[#allocation6 + $0x30] sm:$0xff] }
 0xe9f   : > { %13799 = vst [vmem:[#allocation23_spill] sm:$0xff] %v11576_v13  ;;  %13800 = vst [vmem:[#allocation32_spill] sm:$0xff] %v11578_v62 }
 0xea0   : > { %4156 = vst [vmem:[#allocation5 + $0xd] sm:$0x1] %v4155_v54  ;;  %4286 = vmatmul.mubr.f32.vlgmr.msra.gmra.mxu0 %v4155_v54  ;;  %4357 = vmatmul.mubr.f32.vlgmr.msra.gmra.mxu1 %v4155_v54  ;;  %v11582_v54 = vld [vmem:[#allocation6 + $0x8] sm:$0xff] }
 0xea1   : > { %4544 = vmatprep.mubr.f32.mxu0 %v13783_v8  ;;  %4615 = vmatprep.mubr.f32.mxu1 %v13783_v8  ;;  %13801 = vst [vmem:[#allocation25_spill] sm:$0xff] %v11582_v54  ;;  %v11584_v8 = vld [vmem:[#allocation6 + $0x18] sm:$0xff] }
 0xea2   : > { %4481 = vmatpush1.msra.mxu0 %v11412_v25  ;;  %4552 = vmatpush1.msra.mxu1 %v11414_v39  ;;  %13802 = vst [vmem:[#allocation33_spill] sm:$0xff] %v11584_v8 }
 0xea3   : > { %4482 = vmatprep.subr.mxu0 %v11418_v40  ;;  %4553 = vmatprep.subr.mxu1 %v11420_v27 }
 0xea4   : > { %4483 = vmatpush1.msra.mxu0 %v11424_v1  ;;  %4554 = vmatpush1.msra.mxu1 %v11426_v52 }
 0xea5   : > { %4484 = vmatprep.subr.mxu0 %v11430_v20  ;;  %4555 = vmatprep.subr.mxu1 %v11432_v9 }
 0xea6   : > { %4485 = vmatpush1.msra.mxu0 %v11436_v12  ;;  %4556 = vmatpush1.msra.mxu1 %v11438_v24 }
 0xea7   : > { %4486 = vmatprep.subr.mxu0 %v11442_v19  ;;  %4557 = vmatprep.subr.mxu1 %v11444_v6 }
 0xea8   : > { %4487 = vmatpush1.msra.mxu0 %v11448_v26  ;;  %4558 = vmatpush1.msra.mxu1 %v11450_v17 }
 0xea9   : > { %4488 = vmatprep.subr.mxu0 %v11454_v15  ;;  %4559 = vmatprep.subr.mxu1 %v11456_v28 }
 0xeaa   : > { %4489 = vmatpush1.msra.mxu0 %v11460_v14  ;;  %4560 = vmatpush1.msra.mxu1 %v11462_v42 }
 0xeab   : > { %4490 = vmatprep.subr.mxu0 %v11464_v59  ;;  %4561 = vmatprep.subr.mxu1 %v11468_v61 }
 0xeac   : > { %4491 = vmatpush1.msra.mxu0 %v11470_v44  ;;  %4562 = vmatpush1.msra.mxu1 %v11472_v32 }
 0xead   : > { %4492 = vmatprep.subr.mxu0 %v11476_v31  ;;  %4563 = vmatprep.subr.mxu1 %v11478_v38 }
 0xeae   : > { %4493 = vmatpush1.msra.mxu0 %v11480_v30  ;;  %4564 = vmatpush1.msra.mxu1 %v11484_v33 }
 0xeaf   : > { %4494 = vmatprep.subr.mxu0 %v11486_v41  ;;  %4565 = vmatprep.subr.mxu1 %v11488_v37 }
 0xeb0   : > { %4495 = vmatpush1.msra.mxu0 %v11492_v16  ;;  %4566 = vmatpush1.msra.mxu1 %v11494_v43 }
 0xeb1   : > { %4496 = vmatprep.subr.mxu0 %v11498_v36  ;;  %4567 = vmatprep.subr.mxu1 %v11500_v34 }
 0xeb2   : > { %4497 = vmatpush1.msra.mxu0 %v11504_v45  ;;  %4568 = vmatpush1.msra.mxu1 %v11506_v29 }
 0xeb3   : > { %4498 = vmatprep.subr.mxu0 %v11510_v7  ;;  %4569 = vmatprep.subr.mxu1 %v11512_v60 }
 0xeb4   : > { %4499 = vmatpush1.msra.mxu0 %v11516_v10  ;;  %4570 = vmatpush1.msra.mxu1 %v11518_v49 }
 0xeb5   : > { %4500 = vmatprep.subr.mxu0 %v11522_v48  ;;  %4571 = vmatprep.subr.mxu1 %v11524_v57 }
 0xeb6   : > { %4501 = vmatpush1.msra.mxu0 %v11528_v47  ;;  %4572 = vmatpush1.msra.mxu1 %v11530_v50 }
 0xeb7   : > { %4502 = vmatprep.subr.mxu0 %v11534_v63  ;;  %4573 = vmatprep.subr.mxu1 %v11536_v55 }
 0xeb8   : > { %4503 = vmatpush1.msra.mxu0 %v11540_v35  ;;  %4574 = vmatpush1.msra.mxu1 %v11542_v58 }
 0xeb9   : > { %4504 = vmatprep.subr.mxu0 %v11546_v53  ;;  %4575 = vmatprep.subr.mxu1 %v11548_v51 }
 0xeba   : > { %4505 = vmatpush1.msra.mxu0 %v11552_v56  ;;  %4576 = vmatpush1.msra.mxu1 %v11554_v46  ;;  %v11588_v46 = vld [vmem:[#allocation6] sm:$0xff] }
 0xebb   : > { %4506 = vmatprep.subr.mxu0 %v11558_v5  ;;  %4577 = vmatprep.subr.mxu1 %v11560_v0  ;;  %13803 = vst [vmem:[#allocation27_spill] sm:$0xff] %v11588_v46  ;;  %v11590_v5 = vld [vmem:[#allocation6 + $0x10] sm:$0xff] }
 0xebc   : > { %4507 = vmatpush1.msra.mxu0 %v11564_v3  ;;  %4578 = vmatpush1.msra.mxu1 %v11566_v18  ;;  %13804 = vst [vmem:[#allocation34_spill] sm:$0xff] %v11590_v5 }
 0xebd   : > { %4508 = vmatprep.subr.mxu0 %v11570_v2  ;;  %4579 = vmatprep.subr.mxu1 %v11572_v23 }
 0xebe   : > { %4509 = vmatpush1.msra.mxu0 %v11576_v13  ;;  %4580 = vmatpush1.msra.mxu1 %v11578_v62 }
 0xebf   : > { %4510 = vmatprep.subr.mxu0 %v11582_v54  ;;  %4581 = vmatprep.subr.mxu1 %v11584_v8 }
 0xec0   : > { %4511 = vmatpush1.msra.mxu0 %v11588_v46  ;;  %4582 = vmatpush1.msra.mxu1 %v11590_v5  ;;  %v4364_v46 = vld [vmem:[#allocation4 + $0x26] ss:$8 sm:$0xf] }
 0xec1   : > { %4739 = vmatprep.subr.mxu0 %v11406_v21  ;;  %4810 = vmatprep.subr.mxu1 %v11408_v22 }
 0xf60   : > { %v4287_v23 = vpop.f32.mrf.mxu0  ;;  %v4358_v2 = vpop.f32.mrf.mxu1 }
 0xf62   : > { %v4289_v18 = vpop.f32.mrf.mxu0  ;;  %v4360_v3 = vpop.f32.mrf.mxu1 }
 0xf63   : > { %v4369_v0 = vcombine.low %v4287_v23, %v4289_v18  ;;  %v4370_v13 = vcombine.low %v4358_v2, %v4360_v3 }
 0xf65   : > { %v4377_v62 = vrot.slane %v4369_v0, %v10065_v11  ;;  %v4384_v54 = vrot.slane %v4370_v13, %v10065_v11  ;;  %v13814_v13 = vld [vmem:[#allocation30_spill] sm:$0xff] }
 0xf67   : > { %v4385_v56 = vcombine.low %v4377_v62, %v4384_v54  ;;  %v13815_v62 = vld [vmem:[#allocation21_spill] sm:$0xff]  ;;  %v13816_v54 = vld [vmem:[#allocation31_spill] sm:$0xff] }
 0xf69   : > { %v4392_v8 = vrot.slane %v4385_v56, %v10065_v11 }
 0xf6b   : > { %v4394_v51 = vadd.f32 %v4392_v8, %v4364_v46  ;;  %v13812_v46 = vld [vmem:[#allocation29_spill] sm:$0xff] }
 0xf6d   : > { %v9069_v5 = vmul.f32 -1.442695, %v4394_v51  ;;  %v4402_v22 = vrot.slane %v4394_v51, 3  ;;  %v13811_v51 = vld [vmem:[#allocation19_spill] sm:$0xff] }
 0xf6f   : > { %9333 = vpow2.f32 %v9069_v5  ;;  %v13813_v5 = vld [vmem:[#allocation20_spill] sm:$0xff] }
 0xf7c   : > { %v9334_v21 = vpop.eup %9333 }
 0xf7d   : > { %v4398_v53 = vadd.f32 1.0, %v9334_v21  ;;  %v13806_v21 = vld [vmem:[#allocation24_spill] sm:$0xff] }
 0xf7f   : > { %9335 = vrcp.f32 %v4398_v53  ;;  %v13810_v53 = vld [vmem:[#allocation28_spill] sm:$0xff] }
 0xf80   : > { %9337 = vtanh.f32 %v4402_v22  ;;  %v13807_v22 = vld [vmem:[#allocation17_spill] sm:$0xff] }
 0xf8c   : > { %v9336_v58 = vpop.eup %9335 }
 0xf8d   : > { %v4406_v35 = vrot.slane %v9336_v58, 1  ;;  %v9338_v18 = vpop.eup %9337  ;;  %v4412_v56 = vrot.slane %v9336_v58, 2 }
 0xf8e   : > { %v4409_v3 = vmul.f32 %v9338_v18, %v9336_v58  ;;  %v13809_v58 = vld [vmem:[#allocation18_spill] sm:$0xff]  ;;  %v13817_v18 = vld [vmem:[#allocation23_spill] sm:$0xff] }
 0xf8f   : > { %v4408_v0 = vmul.f32 %v4406_v35, %v11401_v4  ;;  %v13805_v4 = vld [vmem:[#allocation16_spill] sm:$0xff]  ;;  %v13808_v35 = vld [vmem:[#allocation26_spill] sm:$0xff] }
 0xf91   : > { %v11604_v2 = vadd.f32 %v4409_v3, %v4408_v0  ;;  %v13818_v3 = vld [vmem:[#allocation32_spill] sm:$0xff]  ;;  %v13819_v0 = vld [vmem:[#allocation25_spill] sm:$0xff] }
 0xf93   : > { %9339 = vtanh.f32 %v11604_v2 }
 0xfa0   : > { %v9340_v23 = vpop.eup %9339 }
 0xfa1   : > { %v4414_v8 = vmul.f32 %v9340_v23, %v4412_v56  ;;  %v13820_v56 = vld [vmem:[#allocation33_spill] sm:$0xff]  ;;  %v13821_v23 = vld [vmem:[#allocation27_spill] sm:$0xff] }
 0xfa3   : > { %4415 = vst [vmem:[#allocation5 + $0xe] sm:$0x1] %v4414_v8  ;;  %4545 = vmatmul.mubr.f32.vlgmr.msra.gmra.mxu0 %v4414_v8  ;;  %4616 = vmatmul.mubr.f32.vlgmr.msra.gmra.mxu1 %v4414_v8  ;;  %v13822_v8 = vmov 0.0  }
 0xfa4   : > { %4740 = vmatpush1.msra.mxu0 %v11412_v25  ;;  %4811 = vmatpush1.msra.mxu1 %v11414_v39 }
 0xfa5   : > { %4741 = vmatprep.subr.mxu0 %v11418_v40  ;;  %4812 = vmatprep.subr.mxu1 %v11420_v27 }
 0xfa6   : > { %4742 = vmatpush1.msra.mxu0 %v11424_v1  ;;  %4813 = vmatpush1.msra.mxu1 %v11426_v52 }
 0xfa7   : > { %4743 = vmatprep.subr.mxu0 %v11430_v20  ;;  %4814 = vmatprep.subr.mxu1 %v11432_v9 }
 0xfa8   : > { %4744 = vmatpush1.msra.mxu0 %v11436_v12  ;;  %4815 = vmatpush1.msra.mxu1 %v11438_v24 }
 0xfa9   : > { %4745 = vmatprep.subr.mxu0 %v11442_v19  ;;  %4816 = vmatprep.subr.mxu1 %v11444_v6 }
 0xfaa   : > { %4746 = vmatpush1.msra.mxu0 %v11448_v26  ;;  %4817 = vmatpush1.msra.mxu1 %v11450_v17 }
 0xfab   : > { %4747 = vmatprep.subr.mxu0 %v11454_v15  ;;  %4818 = vmatprep.subr.mxu1 %v11456_v28 }
 0xfac   : > { %4748 = vmatpush1.msra.mxu0 %v11460_v14  ;;  %4819 = vmatpush1.msra.mxu1 %v11462_v42 }
 0xfad   : > { %4749 = vmatprep.subr.mxu0 %v11464_v59  ;;  %4820 = vmatprep.subr.mxu1 %v11468_v61 }
 0xfae   : > { %4750 = vmatpush1.msra.mxu0 %v11470_v44  ;;  %4821 = vmatpush1.msra.mxu1 %v11472_v32 }
 0xfaf   : > { %4751 = vmatprep.subr.mxu0 %v11476_v31  ;;  %4822 = vmatprep.subr.mxu1 %v11478_v38 }
 0xfb0   : > { %4752 = vmatpush1.msra.mxu0 %v11480_v30  ;;  %4823 = vmatpush1.msra.mxu1 %v11484_v33 }
 0xfb1   : > { %4753 = vmatprep.subr.mxu0 %v11486_v41  ;;  %4824 = vmatprep.subr.mxu1 %v11488_v37 }
 0xfb2   : > { %4754 = vmatpush1.msra.mxu0 %v11492_v16  ;;  %4825 = vmatpush1.msra.mxu1 %v11494_v43 }
 0xfb3   : > { %4755 = vmatprep.subr.mxu0 %v11498_v36  ;;  %4826 = vmatprep.subr.mxu1 %v11500_v34 }
 0xfb4   : > { %4756 = vmatpush1.msra.mxu0 %v11504_v45  ;;  %4827 = vmatpush1.msra.mxu1 %v11506_v29 }
 0xfb5   : > { %4757 = vmatprep.subr.mxu0 %v11510_v7  ;;  %4828 = vmatprep.subr.mxu1 %v11512_v60 }
 0xfb6   : > { %4758 = vmatpush1.msra.mxu0 %v11516_v10  ;;  %4829 = vmatpush1.msra.mxu1 %v11518_v49 }
 0xfb7   : > { %4759 = vmatprep.subr.mxu0 %v11522_v48  ;;  %4830 = vmatprep.subr.mxu1 %v11524_v57 }
 0xfb8   : > { %4760 = vmatpush1.msra.mxu0 %v11528_v47  ;;  %4831 = vmatpush1.msra.mxu1 %v11530_v50 }
 0xfb9   : > { %4761 = vmatprep.subr.mxu0 %v11534_v63  ;;  %4832 = vmatprep.subr.mxu1 %v11536_v55 }
 0xfba   : > { %4762 = vmatpush1.msra.mxu0 %v13805_v4  ;;  %4833 = vmatpush1.msra.mxu1 %v13806_v21 }
 0xfbb   : > { %4763 = vmatprep.subr.mxu0 %v13807_v22  ;;  %4834 = vmatprep.subr.mxu1 %v13808_v35 }
 0xfbc   : > { %4764 = vmatpush1.msra.mxu0 %v13809_v58  ;;  %4835 = vmatpush1.msra.mxu1 %v13810_v53 }
 0xfbd   : > { %4765 = vmatprep.subr.mxu0 %v13811_v51  ;;  %4836 = vmatprep.subr.mxu1 %v13812_v46  ;;  %v13823_v46 = vld [vmem:[#allocation34_spill] sm:$0xff] }
 0xfbe   : > { %4766 = vmatpush1.msra.mxu0 %v13813_v5  ;;  %4837 = vmatpush1.msra.mxu1 %v13814_v13  ;;  %v13824_v13 = vld [vmem:[#allocation15_spill] sm:$0xff] }
 0xfbf   : > { %4767 = vmatprep.subr.mxu0 %v13815_v62  ;;  %4838 = vmatprep.subr.mxu1 %v13816_v54  ;;  %v13825_v62 = vld [vmem:[#allocation22_spill] sm:$0xff] }
 0xfc0   : > { %4768 = vmatpush1.msra.mxu0 %v13817_v18  ;;  %4839 = vmatpush1.msra.mxu1 %v13818_v3 }
 0xfc1   : > { %4769 = vmatprep.subr.mxu0 %v13819_v0  ;;  %4840 = vmatprep.subr.mxu1 %v13820_v56 }
 0xfc2   : > { %4770 = vmatpush1.msra.mxu0 %v13821_v23  ;;  %4803 = vmatprep.mubr.f32.mxu0 %v13822_v8 }
 0xfc3   : > { %4841 = vmatpush1.msra.mxu1 %v13823_v46  ;;  %4874 = vmatprep.mubr.f32.mxu1 %v13822_v8  ;;  %v4623_v46 = vld [vmem:[#allocation4 + $0x27] ss:$8 sm:$0xf] }
 0xfc4   : > { %4998 = vmatprep.subr.mxu0 %v13824_v13  ;;  %5069 = vmatprep.subr.mxu1 %v13825_v62 }
0x1063   : > { %v4546_v54 = vpop.f32.mrf.mxu0  ;;  %v4617_v18 = vpop.f32.mrf.mxu1 }
0x1065   : > { %v4548_v5 = vpop.f32.mrf.mxu0  ;;  %v4619_v3 = vpop.f32.mrf.mxu1 }
0x1066   : > { %v4628_v51 = vcombine.low %v4546_v54, %v4548_v5  ;;  %v4629_v0 = vcombine.low %v4617_v18, %v4619_v3 }
0x1068   : > { %v4636_v56 = vrot.slane %v4628_v51, %v10065_v11  ;;  %v4643_v23 = vrot.slane %v4629_v0, %v10065_v11  ;;  %v13834_v0 = vld [vmem:[#allocation20_spill] sm:$0xff] }
0x106a   : > { %v4644_v53 = vcombine.low %v4636_v56, %v4643_v23  ;;  %v13835_v56 = vld [vmem:[#allocation30_spill] sm:$0xff]  ;;  %v13836_v23 = vld [vmem:[#allocation21_spill] sm:$0xff] }
0x106c   : > { %v4651_v58 = vrot.slane %v4644_v53, %v10065_v11 }
0x106e   : > { %v4653_v35 = vadd.f32 %v4651_v58, %v4623_v46  ;;  %v13831_v46 = vld [vmem:[#allocation28_spill] sm:$0xff] }
0x1070   : > { %v9070_v8 = vmul.f32 -1.442695, %v4653_v35  ;;  %v4661_v62 = vrot.slane %v4653_v35, 3  ;;  %v13830_v35 = vld [vmem:[#allocation18_spill] sm:$0xff] }
0x1072   : > { %9341 = vpow2.f32 %v9070_v8  ;;  %v13837_v8 = vld [vmem:[#allocation31_spill] sm:$0xff] }
0x107f   : > { %v9342_v13 = vpop.eup %9341 }
0x1080   : > { %v4657_v22 = vadd.f32 1.0, %v9342_v13  ;;  %v13832_v13 = vld [vmem:[#allocation19_spill] sm:$0xff] }
0x1082   : > { %9343 = vrcp.f32 %v4657_v22  ;;  %v13829_v22 = vld [vmem:[#allocation26_spill] sm:$0xff] }
0x1083   : > { %9345 = vtanh.f32 %v4661_v62  ;;  %v13833_v62 = vld [vmem:[#allocation29_spill] sm:$0xff] }
0x108f   : > { %v9344_v21 = vpop.eup %9343 }
0x1090   : > { %v4665_v4 = vrot.slane %v9344_v21, 1  ;;  %v9346_v5 = vpop.eup %9345  ;;  %v4671_v53 = vrot.slane %v9344_v21, 2 }
0x1091   : > { %v4668_v54 = vmul.f32 %v9346_v5, %v9344_v21  ;;  %v13828_v21 = vld [vmem:[#allocation17_spill] sm:$0xff]  ;;  %v13838_v5 = vld [vmem:[#allocation23_spill] sm:$0xff] }
0x1092   : > { %v4667_v51 = vmul.f32 %v4665_v4, %v11604_v2  ;;  %v13826_v2 = vld [vmem:[#allocation16_spill] sm:$0xff] }
0x1093   : > { %v13827_v4 = vld [vmem:[#allocation24_spill] sm:$0xff] }
0x1094   : > { %v11677_v18 = vadd.f32 %v4668_v54, %v4667_v51  ;;  %v13839_v54 = vld [vmem:[#allocation32_spill] sm:$0xff]  ;;  %v13840_v51 = vld [vmem:[#allocation25_spill] sm:$0xff] }
0x1096   : > { %9347 = vtanh.f32 %v11677_v18 }
0x10a3   : > { %v9348_v3 = vpop.eup %9347 }
0x10a4   : > { %v4673_v58 = vmul.f32 %v9348_v3, %v4671_v53  ;;  %v13841_v53 = vld [vmem:[#allocation33_spill] sm:$0xff]  ;;  %v13842_v3 = vld [vmem:[#allocation27_spill] sm:$0xff] }
0x10a6   : > { %4674 = vst [vmem:[#allocation5 + $0xf] sm:$0x1] %v4673_v58  ;;  %4804 = vmatmul.mubr.f32.vlgmr.msra.gmra.mxu0 %v4673_v58  ;;  %4875 = vmatmul.mubr.f32.vlgmr.msra.gmra.mxu1 %v4673_v58  ;;  %v13843_v58 = vmov 0.0  }
0x10a7   : > { %4999 = vmatpush1.msra.mxu0 %v11412_v25  ;;  %5070 = vmatpush1.msra.mxu1 %v11414_v39 }
0x10a8   : > { %5000 = vmatprep.subr.mxu0 %v11418_v40  ;;  %5071 = vmatprep.subr.mxu1 %v11420_v27 }
0x10a9   : > { %5001 = vmatpush1.msra.mxu0 %v11424_v1  ;;  %5072 = vmatpush1.msra.mxu1 %v11426_v52 }
0x10aa   : > { %5002 = vmatprep.subr.mxu0 %v11430_v20  ;;  %5073 = vmatprep.subr.mxu1 %v11432_v9 }
0x10ab   : > { %5003 = vmatpush1.msra.mxu0 %v11436_v12  ;;  %5074 = vmatpush1.msra.mxu1 %v11438_v24 }
0x10ac   : > { %5004 = vmatprep.subr.mxu0 %v11442_v19  ;;  %5075 = vmatprep.subr.mxu1 %v11444_v6 }
0x10ad   : > { %5005 = vmatpush1.msra.mxu0 %v11448_v26  ;;  %5076 = vmatpush1.msra.mxu1 %v11450_v17 }
0x10ae   : > { %5006 = vmatprep.subr.mxu0 %v11454_v15  ;;  %5077 = vmatprep.subr.mxu1 %v11456_v28 }
0x10af   : > { %5007 = vmatpush1.msra.mxu0 %v11460_v14  ;;  %5078 = vmatpush1.msra.mxu1 %v11462_v42 }
0x10b0   : > { %5008 = vmatprep.subr.mxu0 %v11464_v59  ;;  %5079 = vmatprep.subr.mxu1 %v11468_v61 }
0x10b1   : > { %5009 = vmatpush1.msra.mxu0 %v11470_v44  ;;  %5080 = vmatpush1.msra.mxu1 %v11472_v32 }
0x10b2   : > { %5010 = vmatprep.subr.mxu0 %v11476_v31  ;;  %5081 = vmatprep.subr.mxu1 %v11478_v38 }
0x10b3   : > { %5011 = vmatpush1.msra.mxu0 %v11480_v30  ;;  %5082 = vmatpush1.msra.mxu1 %v11484_v33 }
0x10b4   : > { %5012 = vmatprep.subr.mxu0 %v11486_v41  ;;  %5083 = vmatprep.subr.mxu1 %v11488_v37 }
0x10b5   : > { %5013 = vmatpush1.msra.mxu0 %v11492_v16  ;;  %5084 = vmatpush1.msra.mxu1 %v11494_v43 }
0x10b6   : > { %5014 = vmatprep.subr.mxu0 %v11498_v36  ;;  %5085 = vmatprep.subr.mxu1 %v11500_v34 }
0x10b7   : > { %5015 = vmatpush1.msra.mxu0 %v11504_v45  ;;  %5086 = vmatpush1.msra.mxu1 %v11506_v29 }
0x10b8   : > { %5016 = vmatprep.subr.mxu0 %v11510_v7  ;;  %5087 = vmatprep.subr.mxu1 %v11512_v60 }
0x10b9   : > { %5017 = vmatpush1.msra.mxu0 %v11516_v10  ;;  %5088 = vmatpush1.msra.mxu1 %v11518_v49 }
0x10ba   : > { %5018 = vmatprep.subr.mxu0 %v11522_v48  ;;  %5089 = vmatprep.subr.mxu1 %v11524_v57 }
0x10bb   : > { %5019 = vmatpush1.msra.mxu0 %v11528_v47  ;;  %5090 = vmatpush1.msra.mxu1 %v11530_v50 }
0x10bc   : > { %5020 = vmatprep.subr.mxu0 %v11534_v63  ;;  %5091 = vmatprep.subr.mxu1 %v11536_v55 }
0x10bd   : > { %5021 = vmatpush1.msra.mxu0 %v13826_v2  ;;  %5092 = vmatpush1.msra.mxu1 %v13827_v4 }
0x10be   : > { %5022 = vmatprep.subr.mxu0 %v13828_v21  ;;  %5093 = vmatprep.subr.mxu1 %v13829_v22 }
0x10bf   : > { %5023 = vmatpush1.msra.mxu0 %v13830_v35  ;;  %5094 = vmatpush1.msra.mxu1 %v13831_v46 }
0x10c0   : > { %5024 = vmatprep.subr.mxu0 %v13832_v13  ;;  %5095 = vmatprep.subr.mxu1 %v13833_v62  ;;  %v13844_v62 = vld [vmem:[#allocation34_spill] sm:$0xff] }
0x10c1   : > { %5025 = vmatpush1.msra.mxu0 %v13834_v0  ;;  %5096 = vmatpush1.msra.mxu1 %v13835_v56  ;;  %v13845_v56 = vld [vmem:[#allocation15_spill] sm:$0xff] }
0x10c2   : > { %5026 = vmatprep.subr.mxu0 %v13836_v23  ;;  %5097 = vmatprep.subr.mxu1 %v13837_v8  ;;  %v13846_v23 = vld [vmem:[#allocation22_spill] sm:$0xff] }
0x10c3   : > { %5027 = vmatpush1.msra.mxu0 %v13838_v5  ;;  %5098 = vmatpush1.msra.mxu1 %v13839_v54 }
0x10c4   : > { %5028 = vmatprep.subr.mxu0 %v13840_v51  ;;  %5099 = vmatprep.subr.mxu1 %v13841_v53 }
0x10c5   : > { %5029 = vmatpush1.msra.mxu0 %v13842_v3  ;;  %5062 = vmatprep.mubr.f32.mxu0 %v13843_v58 }
0x10c6   : > { %5100 = vmatpush1.msra.mxu1 %v13844_v62  ;;  %5133 = vmatprep.mubr.f32.mxu1 %v13843_v58  ;;  %v4882_v62 = vld [vmem:[#allocation4 + $0x40] ss:$8 sm:$0xf] }
0x10c7   : > { %5257 = vmatprep.subr.mxu0 %v13845_v56  ;;  %5328 = vmatprep.subr.mxu1 %v13846_v23 }
0x1166   : > { %v4805_v8 = vpop.f32.mrf.mxu0  ;;  %v4876_v5 = vpop.f32.mrf.mxu1 }
0x1168   : > { %v4807_v0 = vpop.f32.mrf.mxu0  ;;  %v4878_v54 = vpop.f32.mrf.mxu1 }
0x1169   : > { %v4887_v13 = vcombine.low %v4805_v8, %v4807_v0  ;;  %v4888_v51 = vcombine.low %v4876_v5, %v4878_v54 }
0x116b   : > { %v4895_v53 = vrot.slane %v4887_v13, %v10065_v11  ;;  %v4902_v3 = vrot.slane %v4888_v51, %v10065_v11  ;;  %v11844_v51 = vld [vmem:[#allocation6 + $0x1c0] sm:$0xff] }
0x116d   : > { %v4903_v46 = vcombine.low %v4895_v53, %v4902_v3  ;;  %v11846_v53 = vld [vmem:[#allocation6 + $0x1d0] sm:$0xff]  ;;  %v11850_v3 = vld [vmem:[#allocation6 + $0x1a8] sm:$0xff] }
0x116f   : > { %v4910_v35 = vrot.slane %v4903_v46, %v10065_v11 }
0x1171   : > { %v4912_v22 = vadd.f32 %v4910_v35, %v4882_v62  ;;  %v11840_v62 = vld [vmem:[#allocation6 + $0x1d8] sm:$0xff] }
0x1173   : > { %v9071_v58 = vmul.f32 -1.442695, %v4912_v22  ;;  %v4920_v23 = vrot.slane %v4912_v22, 3  ;;  %v11838_v22 = vld [vmem:[#allocation6 + $0x1c8] sm:$0xff] }
0x1175   : > { %9349 = vpow2.f32 %v9071_v58  ;;  %v11852_v58 = vld [vmem:[#allocation6 + $0x1b8] sm:$0xff] }
0x1182   : > { %v9350_v56 = vpop.eup %9349 }
0x1183   : > { %v4916_v21 = vadd.f32 1.0, %v9350_v56  ;;  %v11856_v56 = vld [vmem:[#allocation6 + $0x1a0] sm:$0xff] }
0x1185   : > { %9351 = vrcp.f32 %v4916_v21  ;;  %v11834_v21 = vld [vmem:[#allocation6 + $0x1f0] sm:$0xff] }
0x1186   : > { %9353 = vtanh.f32 %v4920_v23  ;;  %v11858_v23 = vld [vmem:[#allocation6 + $0x1b0] sm:$0xff] }
0x1192   : > { %v9352_v4 = vpop.eup %9351 }
0x1193   : > { %v4924_v2 = vrot.slane %v9352_v4, 1  ;;  %v9354_v0 = vpop.eup %9353  ;;  %v4930_v46 = vrot.slane %v9352_v4, 2 }
0x1194   : > { %v4927_v8 = vmul.f32 %v9354_v0, %v9352_v4  ;;  %v11832_v4 = vld [vmem:[#allocation6 + $0x1e0] sm:$0xff]  ;;  %v11862_v0 = vld [vmem:[#allocation6 + $0x188] sm:$0xff] }
0x1195   : > { %v4926_v13 = vmul.f32 %v4924_v2, %v11677_v18  ;;  %v11826_v18 = vld [vmem:[#allocation6 + $0x1e8] sm:$0xff]  ;;  %v11828_v2 = vld [vmem:[#allocation6 + $0x1f8] sm:$0xff] }
0x1196   : > { %13866 = vst [vmem:[#allocation15_spill] sm:$0xff] %v11826_v18  ;;  %13867 = vst [vmem:[#allocation22_spill] sm:$0xff] %v11828_v2 }
0x1197   : > { %v11750_v5 = vadd.f32 %v4927_v8, %v4926_v13  ;;  %v11864_v8 = vld [vmem:[#allocation6 + $0x198] sm:$0xff]  ;;  %v11868_v13 = vld [vmem:[#allocation6 + $0x180] sm:$0xff] }
0x1199   : > { %9355 = vtanh.f32 %v11750_v5 }
0x11a6   : > { %v9356_v54 = vpop.eup %9355 }
0x11a7   : > { %v4932_v35 = vmul.f32 %v9356_v54, %v4930_v46  ;;  %v11874_v46 = vld [vmem:[#allocation6 + $0x168] sm:$0xff]  ;;  %v11876_v54 = vld [vmem:[#allocation6 + $0x178] sm:$0xff] }
0x11a9   : > { %4933 = vst [vmem:[#allocation5 + $0x10] sm:$0x1] %v4932_v35  ;;  %5063 = vmatmul.mubr.f32.vlgmr.msra.gmra.mxu0 %v4932_v35  ;;  %5134 = vmatmul.mubr.f32.vlgmr.msra.gmra.mxu1 %v4932_v35  ;;  %v11880_v35 = vld [vmem:[#allocation6 + $0x160] sm:$0xff] }
0x11aa   : > { %5258 = vmatpush1.msra.mxu0 %v11412_v25  ;;  %5329 = vmatpush1.msra.mxu1 %v11414_v39  ;;  %v13847_v25 = vld [vmem:[#allocation16_spill] sm:$0xff] }
0x11ab   : > { %5259 = vmatprep.subr.mxu0 %v11418_v40  ;;  %5330 = vmatprep.subr.mxu1 %v11420_v27  ;;  %v13848_v39 = vld [vmem:[#allocation24_spill] sm:$0xff]  ;;  %v13849_v40 = vld [vmem:[#allocation17_spill] sm:$0xff]  ;;  %v13850_v27 = vld [vmem:[#allocation26_spill] sm:$0xff] }
0x11ac   : > { %5260 = vmatpush1.msra.mxu0 %v11424_v1  ;;  %5331 = vmatpush1.msra.mxu1 %v11426_v52  ;;  %v13851_v1 = vld [vmem:[#allocation18_spill] sm:$0xff]  ;;  %v13852_v52 = vld [vmem:[#allocation28_spill] sm:$0xff] }
0x11ad   : > { %5261 = vmatprep.subr.mxu0 %v11430_v20  ;;  %5332 = vmatprep.subr.mxu1 %v11432_v9  ;;  %v13853_v20 = vld [vmem:[#allocation19_spill] sm:$0xff]  ;;  %v13854_v9 = vld [vmem:[#allocation29_spill] sm:$0xff] }
0x11ae   : > { %5262 = vmatpush1.msra.mxu0 %v11436_v12  ;;  %5333 = vmatpush1.msra.mxu1 %v11438_v24  ;;  %v13855_v12 = vld [vmem:[#allocation20_spill] sm:$0xff]  ;;  %v13856_v24 = vld [vmem:[#allocation30_spill] sm:$0xff] }
0x11af   : > { %5263 = vmatprep.subr.mxu0 %v11442_v19  ;;  %5334 = vmatprep.subr.mxu1 %v11444_v6  ;;  %v13857_v19 = vld [vmem:[#allocation21_spill] sm:$0xff]  ;;  %v13858_v6 = vld [vmem:[#allocation31_spill] sm:$0xff] }
0x11b0   : > { %5264 = vmatpush1.msra.mxu0 %v11448_v26  ;;  %5335 = vmatpush1.msra.mxu1 %v11450_v17  ;;  %v13859_v26 = vld [vmem:[#allocation23_spill] sm:$0xff]  ;;  %v13860_v17 = vld [vmem:[#allocation32_spill] sm:$0xff] }
0x11b1   : > { %5265 = vmatprep.subr.mxu0 %v11454_v15  ;;  %5336 = vmatprep.subr.mxu1 %v11456_v28  ;;  %v13861_v15 = vld [vmem:[#allocation25_spill] sm:$0xff] }
0x11b2   : > { %5266 = vmatpush1.msra.mxu0 %v11460_v14  ;;  %5337 = vmatpush1.msra.mxu1 %v11462_v42  ;;  %v13862_v28 = vld [vmem:[#allocation33_spill] sm:$0xff]  ;;  %v13863_v14 = vld [vmem:[#allocation27_spill] sm:$0xff]  ;;  %v13864_v42 = vmov 0.0  }
0x11b3   : > { %5267 = vmatprep.subr.mxu0 %v11464_v59  ;;  %5338 = vmatprep.subr.mxu1 %v11468_v61  ;;  %v13865_v59 = vld [vmem:[#allocation34_spill] sm:$0xff] }
0x11b4   : > { %5268 = vmatpush1.msra.mxu0 %v11470_v44  ;;  %5339 = vmatpush1.msra.mxu1 %v11472_v32 }
0x11b5   : > { %5269 = vmatprep.subr.mxu0 %v11476_v31  ;;  %5340 = vmatprep.subr.mxu1 %v11478_v38 }
0x11b6   : > { %5270 = vmatpush1.msra.mxu0 %v11480_v30  ;;  %5341 = vmatpush1.msra.mxu1 %v11484_v33 }
0x11b7   : > { %5271 = vmatprep.subr.mxu0 %v11486_v41  ;;  %5342 = vmatprep.subr.mxu1 %v11488_v37 }
0x11b8   : > { %5272 = vmatpush1.msra.mxu0 %v11492_v16  ;;  %5343 = vmatpush1.msra.mxu1 %v11494_v43  ;;  %v5141_v43 = vld [vmem:[#allocation4 + $0x41] ss:$8 sm:$0xf] }
0x11b9   : > { %5273 = vmatprep.subr.mxu0 %v11498_v36  ;;  %5344 = vmatprep.subr.mxu1 %v11500_v34 }
0x11ba   : > { %5274 = vmatpush1.msra.mxu0 %v11504_v45  ;;  %5345 = vmatpush1.msra.mxu1 %v11506_v29 }
0x11bb   : > { %5275 = vmatprep.subr.mxu0 %v11510_v7  ;;  %5346 = vmatprep.subr.mxu1 %v11512_v60 }
0x11bc   : > { %5276 = vmatpush1.msra.mxu0 %v11516_v10  ;;  %5347 = vmatpush1.msra.mxu1 %v11518_v49 }
0x11bd   : > { %5277 = vmatprep.subr.mxu0 %v11522_v48  ;;  %5348 = vmatprep.subr.mxu1 %v11524_v57 }
0x11be   : > { %5278 = vmatpush1.msra.mxu0 %v11528_v47  ;;  %5349 = vmatpush1.msra.mxu1 %v11530_v50 }
0x11bf   : > { %5279 = vmatprep.subr.mxu0 %v11534_v63  ;;  %5350 = vmatprep.subr.mxu1 %v11536_v55 }
0x11c0   : > { %5280 = vmatpush1.msra.mxu0 %v13847_v25  ;;  %5351 = vmatpush1.msra.mxu1 %v13848_v39  ;;  %v11882_v25 = vld [vmem:[#allocation6 + $0x170] sm:$0xff]  ;;  %v11884_v39 = vld [vmem:[#allocation6 + $0x148] sm:$0xff] }
0x11c1   : > { %5281 = vmatprep.subr.mxu0 %v13849_v40  ;;  %5352 = vmatprep.subr.mxu1 %v13850_v27  ;;  %v11888_v40 = vld [vmem:[#allocation6 + $0x158] sm:$0xff]  ;;  %v11890_v27 = vld [vmem:[#allocation6 + $0x140] sm:$0xff] }
0x11c2   : > { %5282 = vmatpush1.msra.mxu0 %v13851_v1  ;;  %5353 = vmatpush1.msra.mxu1 %v13852_v52  ;;  %v11892_v1 = vld [vmem:[#allocation6 + $0x150] sm:$0xff]  ;;  %v11896_v52 = vld [vmem:[#allocation6 + $0x128] sm:$0xff] }
0x11c3   : > { %5283 = vmatprep.subr.mxu0 %v13853_v20  ;;  %5354 = vmatprep.subr.mxu1 %v13854_v9  ;;  %v11898_v20 = vld [vmem:[#allocation6 + $0x138] sm:$0xff]  ;;  %v11900_v9 = vld [vmem:[#allocation6 + $0x120] sm:$0xff] }
0x11c4   : > { %5284 = vmatpush1.msra.mxu0 %v13855_v12  ;;  %5355 = vmatpush1.msra.mxu1 %v13856_v24  ;;  %v11904_v12 = vld [vmem:[#allocation6 + $0x130] sm:$0xff]  ;;  %v11906_v24 = vld [vmem:[#allocation6 + $0x108] sm:$0xff] }
0x11c5   : > { %5285 = vmatprep.subr.mxu0 %v13857_v19  ;;  %5356 = vmatprep.subr.mxu1 %v13858_v6  ;;  %v11908_v19 = vld [vmem:[#allocation6 + $0x118] sm:$0xff]  ;;  %v11912_v6 = vld [vmem:[#allocation6 + $0x100] sm:$0xff] }
0x11c6   : > { %5286 = vmatpush1.msra.mxu0 %v13859_v26  ;;  %5357 = vmatpush1.msra.mxu1 %v13860_v17  ;;  %v11914_v26 = vld [vmem:[#allocation6 + $0x110] sm:$0xff]  ;;  %v11918_v17 = vld [vmem:[#allocation6 + $0xe8] sm:$0xff] }
0x11c7   : > { %5287 = vmatprep.subr.mxu0 %v13861_v15  ;;  %5358 = vmatprep.subr.mxu1 %v13862_v28  ;;  %v11920_v15 = vld [vmem:[#allocation6 + $0xf8] sm:$0xff]  ;;  %v11924_v28 = vld [vmem:[#allocation6 + $0xe0] sm:$0xff] }
0x11c8   : > { %5288 = vmatpush1.msra.mxu0 %v13863_v14  ;;  %5321 = vmatprep.mubr.f32.mxu0 %v13864_v42  ;;  %v11926_v14 = vld [vmem:[#allocation6 + $0xf0] sm:$0xff] }
0x11c9   : > { %5359 = vmatpush1.msra.mxu1 %v13865_v59  ;;  %5392 = vmatprep.mubr.f32.mxu1 %v13864_v42  ;;  %v11930_v59 = vld [vmem:[#allocation6 + $0xc8] sm:$0xff] }
0x11ca   : > { %5516 = vmatprep.subr.mxu0 %v11826_v18  ;;  %5587 = vmatprep.subr.mxu1 %v11828_v2 }
0x1269   : > { %v5064_v61 = vpop.f32.mrf.mxu0  ;;  %v5135_v44 = vpop.f32.mrf.mxu1 }
0x126b   : > { %v5066_v32 = vpop.f32.mrf.mxu0  ;;  %v5137_v31 = vpop.f32.mrf.mxu1 }
0x126c   : > { %v5146_v38 = vcombine.low %v5064_v61, %v5066_v32  ;;  %v5147_v30 = vcombine.low %v5135_v44, %v5137_v31  ;;  %v11932_v61 = vld [vmem:[#allocation6 + $0xd8] sm:$0xff]  ;;  %v11936_v44 = vld [vmem:[#allocation6 + $0xc0] sm:$0xff]  ;;  %v11938_v32 = vld [vmem:[#allocation6 + $0xd0] sm:$0xff] }
0x126d   : > { %v11942_v31 = vld [vmem:[#allocation6 + $0xa8] sm:$0xff] }
0x126e   : > { %v5154_v33 = vrot.slane %v5146_v38, %v10065_v11  ;;  %v5161_v41 = vrot.slane %v5147_v30, %v10065_v11  ;;  %v11944_v38 = vld [vmem:[#allocation6 + $0xb8] sm:$0xff]  ;;  %v11948_v30 = vld [vmem:[#allocation6 + $0xa0] sm:$0xff] }
0x1270   : > { %v5162_v37 = vcombine.low %v5154_v33, %v5161_v41  ;;  %v11950_v33 = vld [vmem:[#allocation6 + $0xb0] sm:$0xff]  ;;  %v11954_v41 = vld [vmem:[#allocation6 + $0x88] sm:$0xff] }
0x1272   : > { %v5169_v16 = vrot.slane %v5162_v37, %v10065_v11  ;;  %v11956_v37 = vld [vmem:[#allocation6 + $0x98] sm:$0xff] }
0x1274   : > { %v5171_v36 = vadd.f32 %v5169_v16, %v5141_v43  ;;  %v11960_v16 = vld [vmem:[#allocation6 + $0x80] sm:$0xff]  ;;  %v11962_v43 = vld [vmem:[#allocation6 + $0x90] sm:$0xff] }
0x1275   : > { %13868 = vst [vmem:[#allocation16_spill] sm:$0xff] %v11960_v16  ;;  %13869 = vst [vmem:[#allocation24_spill] sm:$0xff] %v11962_v43 }
0x1276   : > { %v9072_v34 = vmul.f32 -1.442695, %v5171_v36  ;;  %v5179_v7 = vrot.slane %v5171_v36, 3  ;;  %v11966_v36 = vld [vmem:[#allocation6 + $0x68] sm:$0xff] }
0x1277   : > { %13870 = vst [vmem:[#allocation17_spill] sm:$0xff] %v11966_v36 }
0x1278   : > { %9357 = vpow2.f32 %v9072_v34  ;;  %v11968_v34 = vld [vmem:[#allocation6 + $0x78] sm:$0xff] }
0x1279   : > { %13871 = vst [vmem:[#allocation26_spill] sm:$0xff] %v11968_v34 }
0x1285   : > { %v9358_v45 = vpop.eup %9357 }
0x1286   : > { %v5175_v29 = vadd.f32 1.0, %v9358_v45  ;;  %v11972_v45 = vld [vmem:[#allocation6 + $0x60] sm:$0xff] }
0x1287   : > { %13872 = vst [vmem:[#allocation18_spill] sm:$0xff] %v11972_v45 }
0x1288   : > { %9359 = vrcp.f32 %v5175_v29  ;;  %v11974_v29 = vld [vmem:[#allocation6 + $0x70] sm:$0xff] }
0x1289   : > { %9361 = vtanh.f32 %v5179_v7  ;;  %13873 = vst [vmem:[#allocation28_spill] sm:$0xff] %v11974_v29  ;;  %v11978_v7 = vld [vmem:[#allocation6 + $0x48] sm:$0xff] }
0x128a   : > { %13874 = vst [vmem:[#allocation19_spill] sm:$0xff] %v11978_v7 }
0x1295   : > { %v9360_v60 = vpop.eup %9359 }
0x1296   : > { %v5183_v10 = vrot.slane %v9360_v60, 1  ;;  %v9362_v49 = vpop.eup %9361  ;;  %v5189_v50 = vrot.slane %v9360_v60, 2 }
0x1297   : > { %v5186_v48 = vmul.f32 %v9362_v49, %v9360_v60  ;;  %v11980_v60 = vld [vmem:[#allocation6 + $0x58] sm:$0xff]  ;;  %v11986_v49 = vld [vmem:[#allocation6 + $0x50] sm:$0xff] }
0x1298   : > { %v5185_v57 = vmul.f32 %v5183_v10, %v11750_v5  ;;  %v11870_v5 = vld [vmem:[#allocation6 + $0x190] sm:$0xff]  ;;  %13875 = vst [vmem:[#allocation29_spill] sm:$0xff] %v11980_v60  ;;  %v11984_v10 = vld [vmem:[#allocation6 + $0x40] sm:$0xff]  ;;  %13877 = vst [vmem:[#allocation30_spill] sm:$0xff] %v11986_v49 }
0x1299   : > { %13876 = vst [vmem:[#allocation20_spill] sm:$0xff] %v11984_v10 }
0x129a   : > { %v11821_v47 = vadd.f32 %v5186_v48, %v5185_v57  ;;  %v11990_v48 = vld [vmem:[#allocation6 + $0x28] sm:$0xff]  ;;  %v11992_v57 = vld [vmem:[#allocation6 + $0x38] sm:$0xff] }
0x129b   : > { %13878 = vst [vmem:[#allocation21_spill] sm:$0xff] %v11990_v48  ;;  %13879 = vst [vmem:[#allocation31_spill] sm:$0xff] %v11992_v57 }
0x129c   : > { %9363 = vtanh.f32 %v11821_v47 }
0x12a9   : > { %v9364_v63 = vpop.eup %9363 }
0x12aa   : > { %v5191_v55 = vmul.f32 %v9364_v63, %v5189_v50  ;;  %v11996_v50 = vld [vmem:[#allocation6 + $0x20] sm:$0xff]  ;;  %v11998_v63 = vld [vmem:[#allocation6 + $0x30] sm:$0xff] }
0x12ab   : > { %13880 = vst [vmem:[#allocation23_spill] sm:$0xff] %v11996_v50  ;;  %13881 = vst [vmem:[#allocation32_spill] sm:$0xff] %v11998_v63 }
0x12ac   : > { %5192 = vst [vmem:[#allocation5 + $0x11] sm:$0x1] %v5191_v55  ;;  %5322 = vmatmul.mubr.f32.vlgmr.msra.gmra.mxu0 %v5191_v55  ;;  %5393 = vmatmul.mubr.f32.vlgmr.msra.gmra.mxu1 %v5191_v55  ;;  %v12002_v55 = vld [vmem:[#allocation6 + $0x8] sm:$0xff] }
0x12ad   : > { %5580 = vmatprep.mubr.f32.mxu0 %v13864_v42  ;;  %5651 = vmatprep.mubr.f32.mxu1 %v13864_v42  ;;  %13882 = vst [vmem:[#allocation25_spill] sm:$0xff] %v12002_v55  ;;  %v12004_v42 = vld [vmem:[#allocation6 + $0x18] sm:$0xff] }
0x12ae   : > { %5517 = vmatpush1.msra.mxu0 %v11832_v4  ;;  %5588 = vmatpush1.msra.mxu1 %v11834_v21  ;;  %13883 = vst [vmem:[#allocation33_spill] sm:$0xff] %v12004_v42 }
0x12af   : > { %5518 = vmatprep.subr.mxu0 %v11838_v22  ;;  %5589 = vmatprep.subr.mxu1 %v11840_v62 }
0x12b0   : > { %5519 = vmatpush1.msra.mxu0 %v11844_v51  ;;  %5590 = vmatpush1.msra.mxu1 %v11846_v53 }
0x12b1   : > { %5520 = vmatprep.subr.mxu0 %v11850_v3  ;;  %5591 = vmatprep.subr.mxu1 %v11852_v58 }
0x12b2   : > { %5521 = vmatpush1.msra.mxu0 %v11856_v56  ;;  %5592 = vmatpush1.msra.mxu1 %v11858_v23 }
0x12b3   : > { %5522 = vmatprep.subr.mxu0 %v11862_v0  ;;  %5593 = vmatprep.subr.mxu1 %v11864_v8 }
0x12b4   : > { %5523 = vmatpush1.msra.mxu0 %v11868_v13  ;;  %5594 = vmatpush1.msra.mxu1 %v11870_v5 }
0x12b5   : > { %5524 = vmatprep.subr.mxu0 %v11874_v46  ;;  %5595 = vmatprep.subr.mxu1 %v11876_v54 }
0x12b6   : > { %5525 = vmatpush1.msra.mxu0 %v11880_v35  ;;  %5596 = vmatpush1.msra.mxu1 %v11882_v25 }
0x12b7   : > { %5526 = vmatprep.subr.mxu0 %v11884_v39  ;;  %5597 = vmatprep.subr.mxu1 %v11888_v40 }
0x12b8   : > { %5527 = vmatpush1.msra.mxu0 %v11890_v27  ;;  %5598 = vmatpush1.msra.mxu1 %v11892_v1 }
0x12b9   : > { %5528 = vmatprep.subr.mxu0 %v11896_v52  ;;  %5599 = vmatprep.subr.mxu1 %v11898_v20 }
0x12ba   : > { %5529 = vmatpush1.msra.mxu0 %v11900_v9  ;;  %5600 = vmatpush1.msra.mxu1 %v11904_v12 }
0x12bb   : > { %5530 = vmatprep.subr.mxu0 %v11906_v24  ;;  %5601 = vmatprep.subr.mxu1 %v11908_v19 }
0x12bc   : > { %5531 = vmatpush1.msra.mxu0 %v11912_v6  ;;  %5602 = vmatpush1.msra.mxu1 %v11914_v26 }
0x12bd   : > { %5532 = vmatprep.subr.mxu0 %v11918_v17  ;;  %5603 = vmatprep.subr.mxu1 %v11920_v15 }
0x12be   : > { %5533 = vmatpush1.msra.mxu0 %v11924_v28  ;;  %5604 = vmatpush1.msra.mxu1 %v11926_v14 }
0x12bf   : > { %5534 = vmatprep.subr.mxu0 %v11930_v59  ;;  %5605 = vmatprep.subr.mxu1 %v11932_v61 }
0x12c0   : > { %5535 = vmatpush1.msra.mxu0 %v11936_v44  ;;  %5606 = vmatpush1.msra.mxu1 %v11938_v32 }
0x12c1   : > { %5536 = vmatprep.subr.mxu0 %v11942_v31  ;;  %5607 = vmatprep.subr.mxu1 %v11944_v38 }
0x12c2   : > { %5537 = vmatpush1.msra.mxu0 %v11948_v30  ;;  %5608 = vmatpush1.msra.mxu1 %v11950_v33 }
0x12c3   : > { %5538 = vmatprep.subr.mxu0 %v11954_v41  ;;  %5609 = vmatprep.subr.mxu1 %v11956_v37 }
0x12c4   : > { %5539 = vmatpush1.msra.mxu0 %v11960_v16  ;;  %5610 = vmatpush1.msra.mxu1 %v11962_v43 }
0x12c5   : > { %5540 = vmatprep.subr.mxu0 %v11966_v36  ;;  %5611 = vmatprep.subr.mxu1 %v11968_v34 }
0x12c6   : > { %5541 = vmatpush1.msra.mxu0 %v11972_v45  ;;  %5612 = vmatpush1.msra.mxu1 %v11974_v29  ;;  %v12008_v29 = vld [vmem:[#allocation6] sm:$0xff] }
0x12c7   : > { %5542 = vmatprep.subr.mxu0 %v11978_v7  ;;  %5613 = vmatprep.subr.mxu1 %v11980_v60  ;;  %13884 = vst [vmem:[#allocation27_spill] sm:$0xff] %v12008_v29  ;;  %v12010_v7 = vld [vmem:[#allocation6 + $0x10] sm:$0xff] }
0x12c8   : > { %5543 = vmatpush1.msra.mxu0 %v11984_v10  ;;  %5614 = vmatpush1.msra.mxu1 %v11986_v49  ;;  %13885 = vst [vmem:[#allocation34_spill] sm:$0xff] %v12010_v7 }
0x12c9   : > { %5544 = vmatprep.subr.mxu0 %v11990_v48  ;;  %5615 = vmatprep.subr.mxu1 %v11992_v57 }
0x12ca   : > { %5545 = vmatpush1.msra.mxu0 %v11996_v50  ;;  %5616 = vmatpush1.msra.mxu1 %v11998_v63 }
0x12cb   : > { %5546 = vmatprep.subr.mxu0 %v12002_v55  ;;  %5617 = vmatprep.subr.mxu1 %v12004_v42 }
0x12cc   : > { %5547 = vmatpush1.msra.mxu0 %v12008_v29  ;;  %5618 = vmatpush1.msra.mxu1 %v12010_v7  ;;  %v5400_v29 = vld [vmem:[#allocation4 + $0x42] ss:$8 sm:$0xf] }
0x12cd   : > { %5775 = vmatprep.subr.mxu0 %v11826_v18  ;;  %5846 = vmatprep.subr.mxu1 %v11828_v2 }
0x136c   : > { %v5323_v57 = vpop.f32.mrf.mxu0  ;;  %v5394_v48 = vpop.f32.mrf.mxu1 }
0x136e   : > { %v5325_v49 = vpop.f32.mrf.mxu0  ;;  %v5396_v10 = vpop.f32.mrf.mxu1 }
0x136f   : > { %v5405_v60 = vcombine.low %v5323_v57, %v5325_v49  ;;  %v5406_v50 = vcombine.low %v5394_v48, %v5396_v10 }
0x1371   : > { %v5413_v63 = vrot.slane %v5405_v60, %v10065_v11  ;;  %v5420_v55 = vrot.slane %v5406_v50, %v10065_v11  ;;  %v13895_v50 = vld [vmem:[#allocation30_spill] sm:$0xff] }
0x1373   : > { %v5421_v45 = vcombine.low %v5413_v63, %v5420_v55  ;;  %v13896_v63 = vld [vmem:[#allocation21_spill] sm:$0xff]  ;;  %v13897_v55 = vld [vmem:[#allocation31_spill] sm:$0xff] }
0x1375   : > { %v5428_v42 = vrot.slane %v5421_v45, %v10065_v11 }
0x1377   : > { %v5430_v34 = vadd.f32 %v5428_v42, %v5400_v29  ;;  %v13893_v29 = vld [vmem:[#allocation29_spill] sm:$0xff] }
0x1379   : > { %v9073_v7 = vmul.f32 -1.442695, %v5430_v34  ;;  %v5438_v2 = vrot.slane %v5430_v34, 3  ;;  %v13892_v34 = vld [vmem:[#allocation19_spill] sm:$0xff] }
0x137b   : > { %9365 = vpow2.f32 %v9073_v7  ;;  %v13894_v7 = vld [vmem:[#allocation20_spill] sm:$0xff] }
0x1388   : > { %v9366_v18 = vpop.eup %9365 }
0x1389   : > { %v5434_v36 = vadd.f32 1.0, %v9366_v18  ;;  %v13887_v18 = vld [vmem:[#allocation24_spill] sm:$0xff] }
0x138b   : > { %9367 = vrcp.f32 %v5434_v36  ;;  %v13891_v36 = vld [vmem:[#allocation28_spill] sm:$0xff] }
0x138c   : > { %9369 = vtanh.f32 %v5438_v2  ;;  %v13888_v2 = vld [vmem:[#allocation17_spill] sm:$0xff] }
0x1398   : > { %v9368_v43 = vpop.eup %9367 }
0x1399   : > { %v5442_v16 = vrot.slane %v9368_v43, 1  ;;  %v9370_v49 = vpop.eup %9369  ;;  %v5448_v45 = vrot.slane %v9368_v43, 2 }
0x139a   : > { %v5445_v10 = vmul.f32 %v9370_v49, %v9368_v43  ;;  %v13890_v43 = vld [vmem:[#allocation18_spill] sm:$0xff]  ;;  %v13898_v49 = vld [vmem:[#allocation23_spill] sm:$0xff] }
0x139b   : > { %v5444_v60 = vmul.f32 %v5442_v16, %v11821_v47  ;;  %v13886_v47 = vld [vmem:[#allocation16_spill] sm:$0xff]  ;;  %v13889_v16 = vld [vmem:[#allocation26_spill] sm:$0xff] }
0x139d   : > { %v12024_v48 = vadd.f32 %v5445_v10, %v5444_v60  ;;  %v13899_v10 = vld [vmem:[#allocation32_spill] sm:$0xff]  ;;  %v13900_v60 = vld [vmem:[#allocation25_spill] sm:$0xff] }
0x139f   : > { %9371 = vtanh.f32 %v12024_v48 }
0x13ac   : > { %v9372_v57 = vpop.eup %9371 }
0x13ad   : > { %v5450_v42 = vmul.f32 %v9372_v57, %v5448_v45  ;;  %v13901_v45 = vld [vmem:[#allocation33_spill] sm:$0xff]  ;;  %v13902_v57 = vld [vmem:[#allocation27_spill] sm:$0xff] }
0x13af   : > { %5451 = vst [vmem:[#allocation5 + $0x12] sm:$0x1] %v5450_v42  ;;  %5581 = vmatmul.mubr.f32.vlgmr.msra.gmra.mxu0 %v5450_v42  ;;  %5652 = vmatmul.mubr.f32.vlgmr.msra.gmra.mxu1 %v5450_v42  ;;  %v13903_v42 = vmov 0.0  }
0x13b0   : > { %5776 = vmatpush1.msra.mxu0 %v11832_v4  ;;  %5847 = vmatpush1.msra.mxu1 %v11834_v21 }
0x13b1   : > { %5777 = vmatprep.subr.mxu0 %v11838_v22  ;;  %5848 = vmatprep.subr.mxu1 %v11840_v62 }
0x13b2   : > { %5778 = vmatpush1.msra.mxu0 %v11844_v51  ;;  %5849 = vmatpush1.msra.mxu1 %v11846_v53 }
0x13b3   : > { %5779 = vmatprep.subr.mxu0 %v11850_v3  ;;  %5850 = vmatprep.subr.mxu1 %v11852_v58 }
0x13b4   : > { %5780 = vmatpush1.msra.mxu0 %v11856_v56  ;;  %5851 = vmatpush1.msra.mxu1 %v11858_v23 }
0x13b5   : > { %5781 = vmatprep.subr.mxu0 %v11862_v0  ;;  %5852 = vmatprep.subr.mxu1 %v11864_v8 }
0x13b6   : > { %5782 = vmatpush1.msra.mxu0 %v11868_v13  ;;  %5853 = vmatpush1.msra.mxu1 %v11870_v5 }
0x13b7   : > { %5783 = vmatprep.subr.mxu0 %v11874_v46  ;;  %5854 = vmatprep.subr.mxu1 %v11876_v54 }
0x13b8   : > { %5784 = vmatpush1.msra.mxu0 %v11880_v35  ;;  %5855 = vmatpush1.msra.mxu1 %v11882_v25 }
0x13b9   : > { %5785 = vmatprep.subr.mxu0 %v11884_v39  ;;  %5856 = vmatprep.subr.mxu1 %v11888_v40 }
0x13ba   : > { %5786 = vmatpush1.msra.mxu0 %v11890_v27  ;;  %5857 = vmatpush1.msra.mxu1 %v11892_v1 }
0x13bb   : > { %5787 = vmatprep.subr.mxu0 %v11896_v52  ;;  %5858 = vmatprep.subr.mxu1 %v11898_v20 }
0x13bc   : > { %5788 = vmatpush1.msra.mxu0 %v11900_v9  ;;  %5859 = vmatpush1.msra.mxu1 %v11904_v12 }
0x13bd   : > { %5789 = vmatprep.subr.mxu0 %v11906_v24  ;;  %5860 = vmatprep.subr.mxu1 %v11908_v19 }
0x13be   : > { %5790 = vmatpush1.msra.mxu0 %v11912_v6  ;;  %5861 = vmatpush1.msra.mxu1 %v11914_v26 }
0x13bf   : > { %5791 = vmatprep.subr.mxu0 %v11918_v17  ;;  %5862 = vmatprep.subr.mxu1 %v11920_v15 }
0x13c0   : > { %5792 = vmatpush1.msra.mxu0 %v11924_v28  ;;  %5863 = vmatpush1.msra.mxu1 %v11926_v14 }
0x13c1   : > { %5793 = vmatprep.subr.mxu0 %v11930_v59  ;;  %5864 = vmatprep.subr.mxu1 %v11932_v61 }
0x13c2   : > { %5794 = vmatpush1.msra.mxu0 %v11936_v44  ;;  %5865 = vmatpush1.msra.mxu1 %v11938_v32 }
0x13c3   : > { %5795 = vmatprep.subr.mxu0 %v11942_v31  ;;  %5866 = vmatprep.subr.mxu1 %v11944_v38 }
0x13c4   : > { %5796 = vmatpush1.msra.mxu0 %v11948_v30  ;;  %5867 = vmatpush1.msra.mxu1 %v11950_v33 }
0x13c5   : > { %5797 = vmatprep.subr.mxu0 %v11954_v41  ;;  %5868 = vmatprep.subr.mxu1 %v11956_v37 }
0x13c6   : > { %5798 = vmatpush1.msra.mxu0 %v13886_v47  ;;  %5869 = vmatpush1.msra.mxu1 %v13887_v18 }
0x13c7   : > { %5799 = vmatprep.subr.mxu0 %v13888_v2  ;;  %5870 = vmatprep.subr.mxu1 %v13889_v16 }
0x13c8   : > { %5800 = vmatpush1.msra.mxu0 %v13890_v43  ;;  %5871 = vmatpush1.msra.mxu1 %v13891_v36 }
0x13c9   : > { %5801 = vmatprep.subr.mxu0 %v13892_v34  ;;  %5872 = vmatprep.subr.mxu1 %v13893_v29  ;;  %v13904_v29 = vld [vmem:[#allocation34_spill] sm:$0xff] }
0x13ca   : > { %5802 = vmatpush1.msra.mxu0 %v13894_v7  ;;  %5873 = vmatpush1.msra.mxu1 %v13895_v50  ;;  %v13905_v50 = vld [vmem:[#allocation15_spill] sm:$0xff] }
0x13cb   : > { %5803 = vmatprep.subr.mxu0 %v13896_v63  ;;  %5874 = vmatprep.subr.mxu1 %v13897_v55  ;;  %v13906_v63 = vld [vmem:[#allocation22_spill] sm:$0xff] }
0x13cc   : > { %5804 = vmatpush1.msra.mxu0 %v13898_v49  ;;  %5875 = vmatpush1.msra.mxu1 %v13899_v10 }
0x13cd   : > { %5805 = vmatprep.subr.mxu0 %v13900_v60  ;;  %5876 = vmatprep.subr.mxu1 %v13901_v45 }
0x13ce   : > { %5806 = vmatpush1.msra.mxu0 %v13902_v57  ;;  %5839 = vmatprep.mubr.f32.mxu0 %v13903_v42 }
0x13cf   : > { %5877 = vmatpush1.msra.mxu1 %v13904_v29  ;;  %5910 = vmatprep.mubr.f32.mxu1 %v13903_v42  ;;  %v5659_v29 = vld [vmem:[#allocation4 + $0x43] ss:$8 sm:$0xf] }
0x13d0   : > { %6034 = vmatprep.subr.mxu0 %v13905_v50  ;;  %6105 = vmatprep.subr.mxu1 %v13906_v63 }
0x146f   : > { %v5582_v55 = vpop.f32.mrf.mxu0  ;;  %v5653_v49 = vpop.f32.mrf.mxu1 }
0x1471   : > { %v5584_v7 = vpop.f32.mrf.mxu0  ;;  %v5655_v10 = vpop.f32.mrf.mxu1 }
0x1472   : > { %v5664_v34 = vcombine.low %v5582_v55, %v5584_v7  ;;  %v5665_v60 = vcombine.low %v5653_v49, %v5655_v10 }
0x1474   : > { %v5672_v45 = vrot.slane %v5664_v34, %v10065_v11  ;;  %v5679_v57 = vrot.slane %v5665_v60, %v10065_v11  ;;  %v13915_v60 = vld [vmem:[#allocation20_spill] sm:$0xff] }
0x1476   : > { %v5680_v36 = vcombine.low %v5672_v45, %v5679_v57  ;;  %v13916_v45 = vld [vmem:[#allocation30_spill] sm:$0xff]  ;;  %v13917_v57 = vld [vmem:[#allocation21_spill] sm:$0xff] }
0x1478   : > { %v5687_v43 = vrot.slane %v5680_v36, %v10065_v11 }
0x147a   : > { %v5689_v16 = vadd.f32 %v5687_v43, %v5659_v29  ;;  %v13912_v29 = vld [vmem:[#allocation28_spill] sm:$0xff] }
0x147c   : > { %v9074_v42 = vmul.f32 -1.442695, %v5689_v16  ;;  %v5697_v63 = vrot.slane %v5689_v16, 3  ;;  %v13911_v16 = vld [vmem:[#allocation18_spill] sm:$0xff] }
0x147e   : > { %9373 = vpow2.f32 %v9074_v42  ;;  %v13918_v42 = vld [vmem:[#allocation31_spill] sm:$0xff] }
0x148b   : > { %v9374_v50 = vpop.eup %9373 }
0x148c   : > { %v5693_v2 = vadd.f32 1.0, %v9374_v50  ;;  %v13913_v50 = vld [vmem:[#allocation19_spill] sm:$0xff] }
0x148e   : > { %9375 = vrcp.f32 %v5693_v2  ;;  %v13910_v2 = vld [vmem:[#allocation26_spill] sm:$0xff] }
0x148f   : > { %9377 = vtanh.f32 %v5697_v63  ;;  %v13914_v63 = vld [vmem:[#allocation29_spill] sm:$0xff] }
0x149b   : > { %v9376_v18 = vpop.eup %9375 }
0x149c   : > { %v5701_v47 = vrot.slane %v9376_v18, 1  ;;  %v9378_v7 = vpop.eup %9377  ;;  %v5707_v36 = vrot.slane %v9376_v18, 2 }
0x149d   : > { %v5704_v55 = vmul.f32 %v9378_v7, %v9376_v18  ;;  %v13909_v18 = vld [vmem:[#allocation17_spill] sm:$0xff]  ;;  %v13919_v7 = vld [vmem:[#allocation23_spill] sm:$0xff] }
0x149e   : > { %v5703_v34 = vmul.f32 %v5701_v47, %v12024_v48  ;;  %v13907_v48 = vld [vmem:[#allocation16_spill] sm:$0xff] }
0x149f   : > { %v13908_v47 = vld [vmem:[#allocation24_spill] sm:$0xff] }
0x14a0   : > { %v12097_v49 = vadd.f32 %v5704_v55, %v5703_v34  ;;  %v13920_v55 = vld [vmem:[#allocation32_spill] sm:$0xff]  ;;  %v13921_v34 = vld [vmem:[#allocation25_spill] sm:$0xff] }
0x14a2   : > { %9379 = vtanh.f32 %v12097_v49 }
0x14af   : > { %v9380_v10 = vpop.eup %9379 }
0x14b0   : > { %v5709_v43 = vmul.f32 %v9380_v10, %v5707_v36  ;;  %v13922_v36 = vld [vmem:[#allocation33_spill] sm:$0xff]  ;;  %v13923_v10 = vld [vmem:[#allocation27_spill] sm:$0xff] }
0x14b2   : > { %5710 = vst [vmem:[#allocation5 + $0x13] sm:$0x1] %v5709_v43  ;;  %5840 = vmatmul.mubr.f32.vlgmr.msra.gmra.mxu0 %v5709_v43  ;;  %5911 = vmatmul.mubr.f32.vlgmr.msra.gmra.mxu1 %v5709_v43  ;;  %v13924_v43 = vmov 0.0  }
0x14b3   : > { %6035 = vmatpush1.msra.mxu0 %v11832_v4  ;;  %6106 = vmatpush1.msra.mxu1 %v11834_v21 }
0x14b4   : > { %6036 = vmatprep.subr.mxu0 %v11838_v22  ;;  %6107 = vmatprep.subr.mxu1 %v11840_v62 }
0x14b5   : > { %6037 = vmatpush1.msra.mxu0 %v11844_v51  ;;  %6108 = vmatpush1.msra.mxu1 %v11846_v53 }
0x14b6   : > { %6038 = vmatprep.subr.mxu0 %v11850_v3  ;;  %6109 = vmatprep.subr.mxu1 %v11852_v58 }
0x14b7   : > { %6039 = vmatpush1.msra.mxu0 %v11856_v56  ;;  %6110 = vmatpush1.msra.mxu1 %v11858_v23 }
0x14b8   : > { %6040 = vmatprep.subr.mxu0 %v11862_v0  ;;  %6111 = vmatprep.subr.mxu1 %v11864_v8 }
0x14b9   : > { %6041 = vmatpush1.msra.mxu0 %v11868_v13  ;;  %6112 = vmatpush1.msra.mxu1 %v11870_v5 }
0x14ba   : > { %6042 = vmatprep.subr.mxu0 %v11874_v46  ;;  %6113 = vmatprep.subr.mxu1 %v11876_v54 }
0x14bb   : > { %6043 = vmatpush1.msra.mxu0 %v11880_v35  ;;  %6114 = vmatpush1.msra.mxu1 %v11882_v25 }
0x14bc   : > { %6044 = vmatprep.subr.mxu0 %v11884_v39  ;;  %6115 = vmatprep.subr.mxu1 %v11888_v40 }
0x14bd   : > { %6045 = vmatpush1.msra.mxu0 %v11890_v27  ;;  %6116 = vmatpush1.msra.mxu1 %v11892_v1 }
0x14be   : > { %6046 = vmatprep.subr.mxu0 %v11896_v52  ;;  %6117 = vmatprep.subr.mxu1 %v11898_v20 }
0x14bf   : > { %6047 = vmatpush1.msra.mxu0 %v11900_v9  ;;  %6118 = vmatpush1.msra.mxu1 %v11904_v12 }
0x14c0   : > { %6048 = vmatprep.subr.mxu0 %v11906_v24  ;;  %6119 = vmatprep.subr.mxu1 %v11908_v19 }
0x14c1   : > { %6049 = vmatpush1.msra.mxu0 %v11912_v6  ;;  %6120 = vmatpush1.msra.mxu1 %v11914_v26 }
0x14c2   : > { %6050 = vmatprep.subr.mxu0 %v11918_v17  ;;  %6121 = vmatprep.subr.mxu1 %v11920_v15 }
0x14c3   : > { %6051 = vmatpush1.msra.mxu0 %v11924_v28  ;;  %6122 = vmatpush1.msra.mxu1 %v11926_v14 }
0x14c4   : > { %6052 = vmatprep.subr.mxu0 %v11930_v59  ;;  %6123 = vmatprep.subr.mxu1 %v11932_v61 }
0x14c5   : > { %6053 = vmatpush1.msra.mxu0 %v11936_v44  ;;  %6124 = vmatpush1.msra.mxu1 %v11938_v32 }
0x14c6   : > { %6054 = vmatprep.subr.mxu0 %v11942_v31  ;;  %6125 = vmatprep.subr.mxu1 %v11944_v38 }
0x14c7   : > { %6055 = vmatpush1.msra.mxu0 %v11948_v30  ;;  %6126 = vmatpush1.msra.mxu1 %v11950_v33 }
0x14c8   : > { %6056 = vmatprep.subr.mxu0 %v11954_v41  ;;  %6127 = vmatprep.subr.mxu1 %v11956_v37 }
0x14c9   : > { %6057 = vmatpush1.msra.mxu0 %v13907_v48  ;;  %6128 = vmatpush1.msra.mxu1 %v13908_v47 }
0x14ca   : > { %6058 = vmatprep.subr.mxu0 %v13909_v18  ;;  %6129 = vmatprep.subr.mxu1 %v13910_v2 }
0x14cb   : > { %6059 = vmatpush1.msra.mxu0 %v13911_v16  ;;  %6130 = vmatpush1.msra.mxu1 %v13912_v29 }
0x14cc   : > { %6060 = vmatprep.subr.mxu0 %v13913_v50  ;;  %6131 = vmatprep.subr.mxu1 %v13914_v63  ;;  %v13925_v63 = vld [vmem:[#allocation34_spill] sm:$0xff] }
0x14cd   : > { %6061 = vmatpush1.msra.mxu0 %v13915_v60  ;;  %6132 = vmatpush1.msra.mxu1 %v13916_v45  ;;  %v13926_v45 = vld [vmem:[#allocation15_spill] sm:$0xff] }
0x14ce   : > { %6062 = vmatprep.subr.mxu0 %v13917_v57  ;;  %6133 = vmatprep.subr.mxu1 %v13918_v42  ;;  %v13927_v57 = vld [vmem:[#allocation22_spill] sm:$0xff] }
0x14cf   : > { %6063 = vmatpush1.msra.mxu0 %v13919_v7  ;;  %6134 = vmatpush1.msra.mxu1 %v13920_v55 }
0x14d0   : > { %6064 = vmatprep.subr.mxu0 %v13921_v34  ;;  %6135 = vmatprep.subr.mxu1 %v13922_v36 }
0x14d1   : > { %6065 = vmatpush1.msra.mxu0 %v13923_v10  ;;  %6098 = vmatprep.mubr.f32.mxu0 %v13924_v43 }
0x14d2   : > { %6136 = vmatpush1.msra.mxu1 %v13925_v63  ;;  %6169 = vmatprep.mubr.f32.mxu1 %v13924_v43  ;;  %v5918_v63 = vld [vmem:[#allocation4 + $0x44] ss:$8 sm:$0xf] }
0x14d3   : > { %6293 = vmatprep.subr.mxu0 %v13926_v45  ;;  %6364 = vmatprep.subr.mxu1 %v13927_v57 }
0x1572   : > { %v5841_v42 = vpop.f32.mrf.mxu0  ;;  %v5912_v7 = vpop.f32.mrf.mxu1 }
0x1574   : > { %v5843_v60 = vpop.f32.mrf.mxu0  ;;  %v5914_v55 = vpop.f32.mrf.mxu1 }
0x1575   : > { %v5923_v50 = vcombine.low %v5841_v42, %v5843_v60  ;;  %v5924_v34 = vcombine.low %v5912_v7, %v5914_v55 }
0x1577   : > { %v5931_v36 = vrot.slane %v5923_v50, %v10065_v11  ;;  %v5938_v10 = vrot.slane %v5924_v34, %v10065_v11  ;;  %v12264_v34 = vld [vmem:[#allocation6 + $0x1c0] sm:$0xff] }
0x1579   : > { %v5939_v29 = vcombine.low %v5931_v36, %v5938_v10  ;;  %v12266_v36 = vld [vmem:[#allocation6 + $0x1d0] sm:$0xff]  ;;  %v12270_v10 = vld [vmem:[#allocation6 + $0x1a8] sm:$0xff] }
0x157b   : > { %v5946_v16 = vrot.slane %v5939_v29, %v10065_v11 }
0x157d   : > { %v5948_v2 = vadd.f32 %v5946_v16, %v5918_v63  ;;  %v12260_v63 = vld [vmem:[#allocation6 + $0x1d8] sm:$0xff] }
0x157f   : > { %v9075_v43 = vmul.f32 -1.442695, %v5948_v2  ;;  %v5956_v57 = vrot.slane %v5948_v2, 3  ;;  %v12258_v2 = vld [vmem:[#allocation6 + $0x1c8] sm:$0xff] }
0x1581   : > { %9381 = vpow2.f32 %v9075_v43  ;;  %v12272_v43 = vld [vmem:[#allocation6 + $0x1b8] sm:$0xff] }
0x158e   : > { %v9382_v45 = vpop.eup %9381 }
0x158f   : > { %v5952_v18 = vadd.f32 1.0, %v9382_v45  ;;  %v12276_v45 = vld [vmem:[#allocation6 + $0x1a0] sm:$0xff] }
0x1591   : > { %9383 = vrcp.f32 %v5952_v18  ;;  %v12254_v18 = vld [vmem:[#allocation6 + $0x1f0] sm:$0xff] }
0x1592   : > { %9385 = vtanh.f32 %v5956_v57  ;;  %v12278_v57 = vld [vmem:[#allocation6 + $0x1b0] sm:$0xff] }
0x159e   : > { %v9384_v47 = vpop.eup %9383 }
0x159f   : > { %v5960_v48 = vrot.slane %v9384_v47, 1  ;;  %v9386_v60 = vpop.eup %9385  ;;  %v5966_v29 = vrot.slane %v9384_v47, 2 }
0x15a0   : > { %v5963_v42 = vmul.f32 %v9386_v60, %v9384_v47  ;;  %v12252_v47 = vld [vmem:[#allocation6 + $0x1e0] sm:$0xff]  ;;  %v12282_v60 = vld [vmem:[#allocation6 + $0x188] sm:$0xff] }
0x15a1   : > { %v5962_v50 = vmul.f32 %v5960_v48, %v12097_v49  ;;  %v12246_v49 = vld [vmem:[#allocation6 + $0x1e8] sm:$0xff]  ;;  %v12248_v48 = vld [vmem:[#allocation6 + $0x1f8] sm:$0xff] }
0x15a2   : > { %13947 = vst [vmem:[#allocation15_spill] sm:$0xff] %v12246_v49  ;;  %13948 = vst [vmem:[#allocation22_spill] sm:$0xff] %v12248_v48 }
0x15a3   : > { %v12170_v7 = vadd.f32 %v5963_v42, %v5962_v50  ;;  %v12284_v42 = vld [vmem:[#allocation6 + $0x198] sm:$0xff]  ;;  %v12288_v50 = vld [vmem:[#allocation6 + $0x180] sm:$0xff] }
0x15a5   : > { %9387 = vtanh.f32 %v12170_v7 }
0x15b2   : > { %v9388_v55 = vpop.eup %9387 }
0x15b3   : > { %v5968_v16 = vmul.f32 %v9388_v55, %v5966_v29  ;;  %v12294_v29 = vld [vmem:[#allocation6 + $0x168] sm:$0xff]  ;;  %v12296_v55 = vld [vmem:[#allocation6 + $0x178] sm:$0xff] }
0x15b5   : > { %5969 = vst [vmem:[#allocation5 + $0x14] sm:$0x1] %v5968_v16  ;;  %6099 = vmatmul.mubr.f32.vlgmr.msra.gmra.mxu0 %v5968_v16  ;;  %6170 = vmatmul.mubr.f32.vlgmr.msra.gmra.mxu1 %v5968_v16  ;;  %v12300_v16 = vld [vmem:[#allocation6 + $0x160] sm:$0xff] }
0x15b6   : > { %6294 = vmatpush1.msra.mxu0 %v11832_v4  ;;  %6365 = vmatpush1.msra.mxu1 %v11834_v21  ;;  %v13928_v4 = vld [vmem:[#allocation16_spill] sm:$0xff] }
0x15b7   : > { %6295 = vmatprep.subr.mxu0 %v11838_v22  ;;  %6366 = vmatprep.subr.mxu1 %v11840_v62  ;;  %v13929_v21 = vld [vmem:[#allocation24_spill] sm:$0xff]  ;;  %v13930_v22 = vld [vmem:[#allocation17_spill] sm:$0xff]  ;;  %v13931_v62 = vld [vmem:[#allocation26_spill] sm:$0xff] }
0x15b8   : > { %6296 = vmatpush1.msra.mxu0 %v11844_v51  ;;  %6367 = vmatpush1.msra.mxu1 %v11846_v53  ;;  %v13932_v51 = vld [vmem:[#allocation18_spill] sm:$0xff]  ;;  %v13933_v53 = vld [vmem:[#allocation28_spill] sm:$0xff] }
0x15b9   : > { %6297 = vmatprep.subr.mxu0 %v11850_v3  ;;  %6368 = vmatprep.subr.mxu1 %v11852_v58  ;;  %v13934_v3 = vld [vmem:[#allocation19_spill] sm:$0xff]  ;;  %v13935_v58 = vld [vmem:[#allocation29_spill] sm:$0xff] }
0x15ba   : > { %6298 = vmatpush1.msra.mxu0 %v11856_v56  ;;  %6369 = vmatpush1.msra.mxu1 %v11858_v23  ;;  %v13936_v56 = vld [vmem:[#allocation20_spill] sm:$0xff]  ;;  %v13937_v23 = vld [vmem:[#allocation30_spill] sm:$0xff] }
0x15bb   : > { %6299 = vmatprep.subr.mxu0 %v11862_v0  ;;  %6370 = vmatprep.subr.mxu1 %v11864_v8  ;;  %v13938_v0 = vld [vmem:[#allocation21_spill] sm:$0xff]  ;;  %v13939_v8 = vld [vmem:[#allocation31_spill] sm:$0xff] }
0x15bc   : > { %6300 = vmatpush1.msra.mxu0 %v11868_v13  ;;  %6371 = vmatpush1.msra.mxu1 %v11870_v5  ;;  %v13940_v13 = vld [vmem:[#allocation23_spill] sm:$0xff]  ;;  %v13941_v5 = vld [vmem:[#allocation32_spill] sm:$0xff] }
0x15bd   : > { %6301 = vmatprep.subr.mxu0 %v11874_v46  ;;  %6372 = vmatprep.subr.mxu1 %v11876_v54  ;;  %v13942_v46 = vld [vmem:[#allocation25_spill] sm:$0xff] }
0x15be   : > { %6302 = vmatpush1.msra.mxu0 %v11880_v35  ;;  %6373 = vmatpush1.msra.mxu1 %v11882_v25  ;;  %v13943_v54 = vld [vmem:[#allocation33_spill] sm:$0xff]  ;;  %v13944_v35 = vld [vmem:[#allocation27_spill] sm:$0xff]  ;;  %v13945_v25 = vmov 0.0  }
0x15bf   : > { %6303 = vmatprep.subr.mxu0 %v11884_v39  ;;  %6374 = vmatprep.subr.mxu1 %v11888_v40  ;;  %v13946_v39 = vld [vmem:[#allocation34_spill] sm:$0xff] }
0x15c0   : > { %6304 = vmatpush1.msra.mxu0 %v11890_v27  ;;  %6375 = vmatpush1.msra.mxu1 %v11892_v1 }
0x15c1   : > { %6305 = vmatprep.subr.mxu0 %v11896_v52  ;;  %6376 = vmatprep.subr.mxu1 %v11898_v20 }
0x15c2   : > { %6306 = vmatpush1.msra.mxu0 %v11900_v9  ;;  %6377 = vmatpush1.msra.mxu1 %v11904_v12 }
0x15c3   : > { %6307 = vmatprep.subr.mxu0 %v11906_v24  ;;  %6378 = vmatprep.subr.mxu1 %v11908_v19 }
0x15c4   : > { %6308 = vmatpush1.msra.mxu0 %v11912_v6  ;;  %6379 = vmatpush1.msra.mxu1 %v11914_v26  ;;  %v6177_v26 = vld [vmem:[#allocation4 + $0x45] ss:$8 sm:$0xf] }
0x15c5   : > { %6309 = vmatprep.subr.mxu0 %v11918_v17  ;;  %6380 = vmatprep.subr.mxu1 %v11920_v15 }
0x15c6   : > { %6310 = vmatpush1.msra.mxu0 %v11924_v28  ;;  %6381 = vmatpush1.msra.mxu1 %v11926_v14 }
0x15c7   : > { %6311 = vmatprep.subr.mxu0 %v11930_v59  ;;  %6382 = vmatprep.subr.mxu1 %v11932_v61 }
0x15c8   : > { %6312 = vmatpush1.msra.mxu0 %v11936_v44  ;;  %6383 = vmatpush1.msra.mxu1 %v11938_v32 }
0x15c9   : > { %6313 = vmatprep.subr.mxu0 %v11942_v31  ;;  %6384 = vmatprep.subr.mxu1 %v11944_v38 }
0x15ca   : > { %6314 = vmatpush1.msra.mxu0 %v11948_v30  ;;  %6385 = vmatpush1.msra.mxu1 %v11950_v33 }
0x15cb   : > { %6315 = vmatprep.subr.mxu0 %v11954_v41  ;;  %6386 = vmatprep.subr.mxu1 %v11956_v37 }
0x15cc   : > { %6316 = vmatpush1.msra.mxu0 %v13928_v4  ;;  %6387 = vmatpush1.msra.mxu1 %v13929_v21  ;;  %v12302_v4 = vld [vmem:[#allocation6 + $0x170] sm:$0xff]  ;;  %v12304_v21 = vld [vmem:[#allocation6 + $0x148] sm:$0xff] }
0x15cd   : > { %6317 = vmatprep.subr.mxu0 %v13930_v22  ;;  %6388 = vmatprep.subr.mxu1 %v13931_v62  ;;  %v12308_v22 = vld [vmem:[#allocation6 + $0x158] sm:$0xff]  ;;  %v12310_v62 = vld [vmem:[#allocation6 + $0x140] sm:$0xff] }
0x15ce   : > { %6318 = vmatpush1.msra.mxu0 %v13932_v51  ;;  %6389 = vmatpush1.msra.mxu1 %v13933_v53  ;;  %v12312_v51 = vld [vmem:[#allocation6 + $0x150] sm:$0xff]  ;;  %v12316_v53 = vld [vmem:[#allocation6 + $0x128] sm:$0xff] }
0x15cf   : > { %6319 = vmatprep.subr.mxu0 %v13934_v3  ;;  %6390 = vmatprep.subr.mxu1 %v13935_v58  ;;  %v12318_v3 = vld [vmem:[#allocation6 + $0x138] sm:$0xff]  ;;  %v12320_v58 = vld [vmem:[#allocation6 + $0x120] sm:$0xff] }
0x15d0   : > { %6320 = vmatpush1.msra.mxu0 %v13936_v56  ;;  %6391 = vmatpush1.msra.mxu1 %v13937_v23  ;;  %v12324_v56 = vld [vmem:[#allocation6 + $0x130] sm:$0xff]  ;;  %v12326_v23 = vld [vmem:[#allocation6 + $0x108] sm:$0xff] }
0x15d1   : > { %6321 = vmatprep.subr.mxu0 %v13938_v0  ;;  %6392 = vmatprep.subr.mxu1 %v13939_v8  ;;  %v12328_v0 = vld [vmem:[#allocation6 + $0x118] sm:$0xff]  ;;  %v12332_v8 = vld [vmem:[#allocation6 + $0x100] sm:$0xff] }
0x15d2   : > { %6322 = vmatpush1.msra.mxu0 %v13940_v13  ;;  %6393 = vmatpush1.msra.mxu1 %v13941_v5  ;;  %v12334_v13 = vld [vmem:[#allocation6 + $0x110] sm:$0xff]  ;;  %v12338_v5 = vld [vmem:[#allocation6 + $0xe8] sm:$0xff] }
0x15d3   : > { %6323 = vmatprep.subr.mxu0 %v13942_v46  ;;  %6394 = vmatprep.subr.mxu1 %v13943_v54  ;;  %v12340_v46 = vld [vmem:[#allocation6 + $0xf8] sm:$0xff]  ;;  %v12344_v54 = vld [vmem:[#allocation6 + $0xe0] sm:$0xff] }
0x15d4   : > { %6324 = vmatpush1.msra.mxu0 %v13944_v35  ;;  %6357 = vmatprep.mubr.f32.mxu0 %v13945_v25  ;;  %v12346_v35 = vld [vmem:[#allocation6 + $0xf0] sm:$0xff] }
0x15d5   : > { %6395 = vmatpush1.msra.mxu1 %v13946_v39  ;;  %6428 = vmatprep.mubr.f32.mxu1 %v13945_v25  ;;  %v12350_v39 = vld [vmem:[#allocation6 + $0xc8] sm:$0xff] }
0x15d6   : > { %6552 = vmatprep.subr.mxu0 %v12246_v49  ;;  %6623 = vmatprep.subr.mxu1 %v12248_v48 }
0x1675   : > { %v6100_v40 = vpop.f32.mrf.mxu0  ;;  %v6171_v27 = vpop.f32.mrf.mxu1 }
0x1677   : > { %v6102_v1 = vpop.f32.mrf.mxu0  ;;  %v6173_v52 = vpop.f32.mrf.mxu1 }
0x1678   : > { %v6182_v20 = vcombine.low %v6100_v40, %v6102_v1  ;;  %v6183_v9 = vcombine.low %v6171_v27, %v6173_v52  ;;  %v12352_v40 = vld [vmem:[#allocation6 + $0xd8] sm:$0xff]  ;;  %v12356_v27 = vld [vmem:[#allocation6 + $0xc0] sm:$0xff]  ;;  %v12358_v1 = vld [vmem:[#allocation6 + $0xd0] sm:$0xff] }
0x1679   : > { %v12362_v52 = vld [vmem:[#allocation6 + $0xa8] sm:$0xff] }
0x167a   : > { %v6190_v12 = vrot.slane %v6182_v20, %v10065_v11  ;;  %v6197_v24 = vrot.slane %v6183_v9, %v10065_v11  ;;  %v12364_v20 = vld [vmem:[#allocation6 + $0xb8] sm:$0xff]  ;;  %v12368_v9 = vld [vmem:[#allocation6 + $0xa0] sm:$0xff] }
0x167c   : > { %v6198_v19 = vcombine.low %v6190_v12, %v6197_v24  ;;  %v12370_v12 = vld [vmem:[#allocation6 + $0xb0] sm:$0xff]  ;;  %v12374_v24 = vld [vmem:[#allocation6 + $0x88] sm:$0xff] }
0x167e   : > { %v6205_v6 = vrot.slane %v6198_v19, %v10065_v11  ;;  %v12376_v19 = vld [vmem:[#allocation6 + $0x98] sm:$0xff] }
0x1680   : > { %v6207_v17 = vadd.f32 %v6205_v6, %v6177_v26  ;;  %v12380_v6 = vld [vmem:[#allocation6 + $0x80] sm:$0xff]  ;;  %v12382_v26 = vld [vmem:[#allocation6 + $0x90] sm:$0xff] }
0x1681   : > { %13949 = vst [vmem:[#allocation16_spill] sm:$0xff] %v12380_v6  ;;  %13950 = vst [vmem:[#allocation24_spill] sm:$0xff] %v12382_v26 }
0x1682   : > { %v9076_v15 = vmul.f32 -1.442695, %v6207_v17  ;;  %v6215_v59 = vrot.slane %v6207_v17, 3  ;;  %v12386_v17 = vld [vmem:[#allocation6 + $0x68] sm:$0xff] }
0x1683   : > { %13951 = vst [vmem:[#allocation17_spill] sm:$0xff] %v12386_v17 }
0x1684   : > { %9389 = vpow2.f32 %v9076_v15  ;;  %v12388_v15 = vld [vmem:[#allocation6 + $0x78] sm:$0xff] }
0x1685   : > { %13952 = vst [vmem:[#allocation26_spill] sm:$0xff] %v12388_v15 }
0x1691   : > { %v9390_v28 = vpop.eup %9389 }
0x1692   : > { %v6211_v14 = vadd.f32 1.0, %v9390_v28  ;;  %v12392_v28 = vld [vmem:[#allocation6 + $0x60] sm:$0xff] }
0x1693   : > { %13953 = vst [vmem:[#allocation18_spill] sm:$0xff] %v12392_v28 }
0x1694   : > { %9391 = vrcp.f32 %v6211_v14  ;;  %v12394_v14 = vld [vmem:[#allocation6 + $0x70] sm:$0xff] }
0x1695   : > { %9393 = vtanh.f32 %v6215_v59  ;;  %13954 = vst [vmem:[#allocation28_spill] sm:$0xff] %v12394_v14  ;;  %v12398_v59 = vld [vmem:[#allocation6 + $0x48] sm:$0xff] }
0x1696   : > { %13955 = vst [vmem:[#allocation19_spill] sm:$0xff] %v12398_v59 }
0x16a1   : > { %v9392_v61 = vpop.eup %9391 }
0x16a2   : > { %v6219_v44 = vrot.slane %v9392_v61, 1  ;;  %v9394_v32 = vpop.eup %9393  ;;  %v6225_v33 = vrot.slane %v9392_v61, 2 }
0x16a3   : > { %v6222_v31 = vmul.f32 %v9394_v32, %v9392_v61  ;;  %v12400_v61 = vld [vmem:[#allocation6 + $0x58] sm:$0xff]  ;;  %v12406_v32 = vld [vmem:[#allocation6 + $0x50] sm:$0xff] }
0x16a4   : > { %v6221_v38 = vmul.f32 %v6219_v44, %v12170_v7  ;;  %v12290_v7 = vld [vmem:[#allocation6 + $0x190] sm:$0xff]  ;;  %13956 = vst [vmem:[#allocation29_spill] sm:$0xff] %v12400_v61  ;;  %v12404_v44 = vld [vmem:[#allocation6 + $0x40] sm:$0xff]  ;;  %13958 = vst [vmem:[#allocation30_spill] sm:$0xff] %v12406_v32 }
0x16a5   : > { %13957 = vst [vmem:[#allocation20_spill] sm:$0xff] %v12404_v44 }
0x16a6   : > { %v12241_v30 = vadd.f32 %v6222_v31, %v6221_v38  ;;  %v12410_v31 = vld [vmem:[#allocation6 + $0x28] sm:$0xff]  ;;  %v12412_v38 = vld [vmem:[#allocation6 + $0x38] sm:$0xff] }
0x16a7   : > { %13959 = vst [vmem:[#allocation21_spill] sm:$0xff] %v12410_v31  ;;  %13960 = vst [vmem:[#allocation31_spill] sm:$0xff] %v12412_v38 }
0x16a8   : > { %9395 = vtanh.f32 %v12241_v30 }
0x16b5   : > { %v9396_v41 = vpop.eup %9395 }
0x16b6   : > { %v6227_v37 = vmul.f32 %v9396_v41, %v6225_v33  ;;  %v12416_v33 = vld [vmem:[#allocation6 + $0x20] sm:$0xff]  ;;  %v12418_v41 = vld [vmem:[#allocation6 + $0x30] sm:$0xff] }
0x16b7   : > { %13961 = vst [vmem:[#allocation23_spill] sm:$0xff] %v12416_v33  ;;  %13962 = vst [vmem:[#allocation32_spill] sm:$0xff] %v12418_v41 }
0x16b8   : > { %6228 = vst [vmem:[#allocation5 + $0x15] sm:$0x1] %v6227_v37  ;;  %6358 = vmatmul.mubr.f32.vlgmr.msra.gmra.mxu0 %v6227_v37  ;;  %6429 = vmatmul.mubr.f32.vlgmr.msra.gmra.mxu1 %v6227_v37  ;;  %v12422_v37 = vld [vmem:[#allocation6 + $0x8] sm:$0xff] }
0x16b9   : > { %6616 = vmatprep.mubr.f32.mxu0 %v13945_v25  ;;  %6687 = vmatprep.mubr.f32.mxu1 %v13945_v25  ;;  %13963 = vst [vmem:[#allocation25_spill] sm:$0xff] %v12422_v37  ;;  %v12424_v25 = vld [vmem:[#allocation6 + $0x18] sm:$0xff] }
0x16ba   : > { %6553 = vmatpush1.msra.mxu0 %v12252_v47  ;;  %6624 = vmatpush1.msra.mxu1 %v12254_v18  ;;  %13964 = vst [vmem:[#allocation33_spill] sm:$0xff] %v12424_v25 }
0x16bb   : > { %6554 = vmatprep.subr.mxu0 %v12258_v2  ;;  %6625 = vmatprep.subr.mxu1 %v12260_v63 }
0x16bc   : > { %6555 = vmatpush1.msra.mxu0 %v12264_v34  ;;  %6626 = vmatpush1.msra.mxu1 %v12266_v36 }
0x16bd   : > { %6556 = vmatprep.subr.mxu0 %v12270_v10  ;;  %6627 = vmatprep.subr.mxu1 %v12272_v43 }
0x16be   : > { %6557 = vmatpush1.msra.mxu0 %v12276_v45  ;;  %6628 = vmatpush1.msra.mxu1 %v12278_v57 }
0x16bf   : > { %6558 = vmatprep.subr.mxu0 %v12282_v60  ;;  %6629 = vmatprep.subr.mxu1 %v12284_v42 }
0x16c0   : > { %6559 = vmatpush1.msra.mxu0 %v12288_v50  ;;  %6630 = vmatpush1.msra.mxu1 %v12290_v7 }
0x16c1   : > { %6560 = vmatprep.subr.mxu0 %v12294_v29  ;;  %6631 = vmatprep.subr.mxu1 %v12296_v55 }
0x16c2   : > { %6561 = vmatpush1.msra.mxu0 %v12300_v16  ;;  %6632 = vmatpush1.msra.mxu1 %v12302_v4 }
0x16c3   : > { %6562 = vmatprep.subr.mxu0 %v12304_v21  ;;  %6633 = vmatprep.subr.mxu1 %v12308_v22 }
0x16c4   : > { %6563 = vmatpush1.msra.mxu0 %v12310_v62  ;;  %6634 = vmatpush1.msra.mxu1 %v12312_v51 }
0x16c5   : > { %6564 = vmatprep.subr.mxu0 %v12316_v53  ;;  %6635 = vmatprep.subr.mxu1 %v12318_v3 }
0x16c6   : > { %6565 = vmatpush1.msra.mxu0 %v12320_v58  ;;  %6636 = vmatpush1.msra.mxu1 %v12324_v56 }
0x16c7   : > { %6566 = vmatprep.subr.mxu0 %v12326_v23  ;;  %6637 = vmatprep.subr.mxu1 %v12328_v0 }
0x16c8   : > { %6567 = vmatpush1.msra.mxu0 %v12332_v8  ;;  %6638 = vmatpush1.msra.mxu1 %v12334_v13 }
0x16c9   : > { %6568 = vmatprep.subr.mxu0 %v12338_v5  ;;  %6639 = vmatprep.subr.mxu1 %v12340_v46 }
0x16ca   : > { %6569 = vmatpush1.msra.mxu0 %v12344_v54  ;;  %6640 = vmatpush1.msra.mxu1 %v12346_v35 }
0x16cb   : > { %6570 = vmatprep.subr.mxu0 %v12350_v39  ;;  %6641 = vmatprep.subr.mxu1 %v12352_v40 }
0x16cc   : > { %6571 = vmatpush1.msra.mxu0 %v12356_v27  ;;  %6642 = vmatpush1.msra.mxu1 %v12358_v1 }
0x16cd   : > { %6572 = vmatprep.subr.mxu0 %v12362_v52  ;;  %6643 = vmatprep.subr.mxu1 %v12364_v20 }
0x16ce   : > { %6573 = vmatpush1.msra.mxu0 %v12368_v9  ;;  %6644 = vmatpush1.msra.mxu1 %v12370_v12 }
0x16cf   : > { %6574 = vmatprep.subr.mxu0 %v12374_v24  ;;  %6645 = vmatprep.subr.mxu1 %v12376_v19 }
0x16d0   : > { %6575 = vmatpush1.msra.mxu0 %v12380_v6  ;;  %6646 = vmatpush1.msra.mxu1 %v12382_v26 }
0x16d1   : > { %6576 = vmatprep.subr.mxu0 %v12386_v17  ;;  %6647 = vmatprep.subr.mxu1 %v12388_v15 }
0x16d2   : > { %6577 = vmatpush1.msra.mxu0 %v12392_v28  ;;  %6648 = vmatpush1.msra.mxu1 %v12394_v14  ;;  %v12428_v14 = vld [vmem:[#allocation6] sm:$0xff] }
0x16d3   : > { %6578 = vmatprep.subr.mxu0 %v12398_v59  ;;  %6649 = vmatprep.subr.mxu1 %v12400_v61  ;;  %13965 = vst [vmem:[#allocation27_spill] sm:$0xff] %v12428_v14  ;;  %v12430_v59 = vld [vmem:[#allocation6 + $0x10] sm:$0xff] }
0x16d4   : > { %6579 = vmatpush1.msra.mxu0 %v12404_v44  ;;  %6650 = vmatpush1.msra.mxu1 %v12406_v32  ;;  %13966 = vst [vmem:[#allocation34_spill] sm:$0xff] %v12430_v59 }
0x16d5   : > { %6580 = vmatprep.subr.mxu0 %v12410_v31  ;;  %6651 = vmatprep.subr.mxu1 %v12412_v38 }
0x16d6   : > { %6581 = vmatpush1.msra.mxu0 %v12416_v33  ;;  %6652 = vmatpush1.msra.mxu1 %v12418_v41 }
0x16d7   : > { %6582 = vmatprep.subr.mxu0 %v12422_v37  ;;  %6653 = vmatprep.subr.mxu1 %v12424_v25 }
0x16d8   : > { %6583 = vmatpush1.msra.mxu0 %v12428_v14  ;;  %6654 = vmatpush1.msra.mxu1 %v12430_v59  ;;  %v6436_v14 = vld [vmem:[#allocation4 + $0x46] ss:$8 sm:$0xf] }
0x16d9   : > { %6811 = vmatprep.subr.mxu0 %v12246_v49  ;;  %6882 = vmatprep.subr.mxu1 %v12248_v48 }
0x1778   : > { %v6359_v38 = vpop.f32.mrf.mxu0  ;;  %v6430_v31 = vpop.f32.mrf.mxu1 }
0x177a   : > { %v6361_v32 = vpop.f32.mrf.mxu0  ;;  %v6432_v44 = vpop.f32.mrf.mxu1 }
0x177b   : > { %v6441_v61 = vcombine.low %v6359_v38, %v6361_v32  ;;  %v6442_v33 = vcombine.low %v6430_v31, %v6432_v44 }
0x177d   : > { %v6449_v41 = vrot.slane %v6441_v61, %v10065_v11  ;;  %v6456_v37 = vrot.slane %v6442_v33, %v10065_v11  ;;  %v13976_v33 = vld [vmem:[#allocation30_spill] sm:$0xff] }
0x177f   : > { %v6457_v28 = vcombine.low %v6449_v41, %v6456_v37  ;;  %v13977_v41 = vld [vmem:[#allocation21_spill] sm:$0xff]  ;;  %v13978_v37 = vld [vmem:[#allocation31_spill] sm:$0xff] }
0x1781   : > { %v6464_v25 = vrot.slane %v6457_v28, %v10065_v11 }
0x1783   : > { %v6466_v15 = vadd.f32 %v6464_v25, %v6436_v14  ;;  %v13974_v14 = vld [vmem:[#allocation29_spill] sm:$0xff] }
0x1785   : > { %v9077_v59 = vmul.f32 -1.442695, %v6466_v15  ;;  %v6474_v48 = vrot.slane %v6466_v15, 3  ;;  %v13973_v15 = vld [vmem:[#allocation19_spill] sm:$0xff] }
0x1787   : > { %9397 = vpow2.f32 %v9077_v59  ;;  %v13975_v59 = vld [vmem:[#allocation20_spill] sm:$0xff] }
0x1794   : > { %v9398_v49 = vpop.eup %9397 }
0x1795   : > { %v6470_v17 = vadd.f32 1.0, %v9398_v49  ;;  %v13968_v49 = vld [vmem:[#allocation24_spill] sm:$0xff] }
0x1797   : > { %9399 = vrcp.f32 %v6470_v17  ;;  %v13972_v17 = vld [vmem:[#allocation28_spill] sm:$0xff] }
0x1798   : > { %9401 = vtanh.f32 %v6474_v48  ;;  %v13969_v48 = vld [vmem:[#allocation17_spill] sm:$0xff] }
0x17a4   : > { %v9400_v26 = vpop.eup %9399 }
0x17a5   : > { %v6478_v6 = vrot.slane %v9400_v26, 1  ;;  %v9402_v32 = vpop.eup %9401  ;;  %v6484_v28 = vrot.slane %v9400_v26, 2 }
0x17a6   : > { %v6481_v44 = vmul.f32 %v9402_v32, %v9400_v26  ;;  %v13971_v26 = vld [vmem:[#allocation18_spill] sm:$0xff]  ;;  %v13979_v32 = vld [vmem:[#allocation23_spill] sm:$0xff] }
0x17a7   : > { %v6480_v61 = vmul.f32 %v6478_v6, %v12241_v30  ;;  %v13967_v30 = vld [vmem:[#allocation16_spill] sm:$0xff]  ;;  %v13970_v6 = vld [vmem:[#allocation26_spill] sm:$0xff] }
0x17a9   : > { %v12444_v31 = vadd.f32 %v6481_v44, %v6480_v61  ;;  %v13980_v44 = vld [vmem:[#allocation32_spill] sm:$0xff]  ;;  %v13981_v61 = vld [vmem:[#allocation25_spill] sm:$0xff] }
0x17ab   : > { %9403 = vtanh.f32 %v12444_v31 }
0x17b8   : > { %v9404_v38 = vpop.eup %9403 }
0x17b9   : > { %v6486_v25 = vmul.f32 %v9404_v38, %v6484_v28  ;;  %v13982_v28 = vld [vmem:[#allocation33_spill] sm:$0xff]  ;;  %v13983_v38 = vld [vmem:[#allocation27_spill] sm:$0xff] }
0x17bb   : > { %6487 = vst [vmem:[#allocation5 + $0x16] sm:$0x1] %v6486_v25  ;;  %6617 = vmatmul.mubr.f32.vlgmr.msra.gmra.mxu0 %v6486_v25  ;;  %6688 = vmatmul.mubr.f32.vlgmr.msra.gmra.mxu1 %v6486_v25  ;;  %v13984_v25 = vmov 0.0  }
0x17bc   : > { %6812 = vmatpush1.msra.mxu0 %v12252_v47  ;;  %6883 = vmatpush1.msra.mxu1 %v12254_v18 }
0x17bd   : > { %6813 = vmatprep.subr.mxu0 %v12258_v2  ;;  %6884 = vmatprep.subr.mxu1 %v12260_v63 }
0x17be   : > { %6814 = vmatpush1.msra.mxu0 %v12264_v34  ;;  %6885 = vmatpush1.msra.mxu1 %v12266_v36 }
0x17bf   : > { %6815 = vmatprep.subr.mxu0 %v12270_v10  ;;  %6886 = vmatprep.subr.mxu1 %v12272_v43 }
0x17c0   : > { %6816 = vmatpush1.msra.mxu0 %v12276_v45  ;;  %6887 = vmatpush1.msra.mxu1 %v12278_v57 }
0x17c1   : > { %6817 = vmatprep.subr.mxu0 %v12282_v60  ;;  %6888 = vmatprep.subr.mxu1 %v12284_v42 }
0x17c2   : > { %6818 = vmatpush1.msra.mxu0 %v12288_v50  ;;  %6889 = vmatpush1.msra.mxu1 %v12290_v7 }
0x17c3   : > { %6819 = vmatprep.subr.mxu0 %v12294_v29  ;;  %6890 = vmatprep.subr.mxu1 %v12296_v55 }
0x17c4   : > { %6820 = vmatpush1.msra.mxu0 %v12300_v16  ;;  %6891 = vmatpush1.msra.mxu1 %v12302_v4 }
0x17c5   : > { %6821 = vmatprep.subr.mxu0 %v12304_v21  ;;  %6892 = vmatprep.subr.mxu1 %v12308_v22 }
0x17c6   : > { %6822 = vmatpush1.msra.mxu0 %v12310_v62  ;;  %6893 = vmatpush1.msra.mxu1 %v12312_v51 }
0x17c7   : > { %6823 = vmatprep.subr.mxu0 %v12316_v53  ;;  %6894 = vmatprep.subr.mxu1 %v12318_v3 }
0x17c8   : > { %6824 = vmatpush1.msra.mxu0 %v12320_v58  ;;  %6895 = vmatpush1.msra.mxu1 %v12324_v56 }
0x17c9   : > { %6825 = vmatprep.subr.mxu0 %v12326_v23  ;;  %6896 = vmatprep.subr.mxu1 %v12328_v0 }
0x17ca   : > { %6826 = vmatpush1.msra.mxu0 %v12332_v8  ;;  %6897 = vmatpush1.msra.mxu1 %v12334_v13 }
0x17cb   : > { %6827 = vmatprep.subr.mxu0 %v12338_v5  ;;  %6898 = vmatprep.subr.mxu1 %v12340_v46 }
0x17cc   : > { %6828 = vmatpush1.msra.mxu0 %v12344_v54  ;;  %6899 = vmatpush1.msra.mxu1 %v12346_v35 }
0x17cd   : > { %6829 = vmatprep.subr.mxu0 %v12350_v39  ;;  %6900 = vmatprep.subr.mxu1 %v12352_v40 }
0x17ce   : > { %6830 = vmatpush1.msra.mxu0 %v12356_v27  ;;  %6901 = vmatpush1.msra.mxu1 %v12358_v1 }
0x17cf   : > { %6831 = vmatprep.subr.mxu0 %v12362_v52  ;;  %6902 = vmatprep.subr.mxu1 %v12364_v20 }
0x17d0   : > { %6832 = vmatpush1.msra.mxu0 %v12368_v9  ;;  %6903 = vmatpush1.msra.mxu1 %v12370_v12 }
0x17d1   : > { %6833 = vmatprep.subr.mxu0 %v12374_v24  ;;  %6904 = vmatprep.subr.mxu1 %v12376_v19 }
0x17d2   : > { %6834 = vmatpush1.msra.mxu0 %v13967_v30  ;;  %6905 = vmatpush1.msra.mxu1 %v13968_v49 }
0x17d3   : > { %6835 = vmatprep.subr.mxu0 %v13969_v48  ;;  %6906 = vmatprep.subr.mxu1 %v13970_v6 }
0x17d4   : > { %6836 = vmatpush1.msra.mxu0 %v13971_v26  ;;  %6907 = vmatpush1.msra.mxu1 %v13972_v17 }
0x17d5   : > { %6837 = vmatprep.subr.mxu0 %v13973_v15  ;;  %6908 = vmatprep.subr.mxu1 %v13974_v14  ;;  %v13985_v14 = vld [vmem:[#allocation34_spill] sm:$0xff] }
0x17d6   : > { %6838 = vmatpush1.msra.mxu0 %v13975_v59  ;;  %6909 = vmatpush1.msra.mxu1 %v13976_v33  ;;  %v13986_v33 = vld [vmem:[#allocation15_spill] sm:$0xff] }
0x17d7   : > { %6839 = vmatprep.subr.mxu0 %v13977_v41  ;;  %6910 = vmatprep.subr.mxu1 %v13978_v37  ;;  %v13987_v41 = vld [vmem:[#allocation22_spill] sm:$0xff] }
0x17d8   : > { %6840 = vmatpush1.msra.mxu0 %v13979_v32  ;;  %6911 = vmatpush1.msra.mxu1 %v13980_v44 }
0x17d9   : > { %6841 = vmatprep.subr.mxu0 %v13981_v61  ;;  %6912 = vmatprep.subr.mxu1 %v13982_v28 }
0x17da   : > { %6842 = vmatpush1.msra.mxu0 %v13983_v38  ;;  %6875 = vmatprep.mubr.f32.mxu0 %v13984_v25 }
0x17db   : > { %6913 = vmatpush1.msra.mxu1 %v13985_v14  ;;  %6946 = vmatprep.mubr.f32.mxu1 %v13984_v25  ;;  %v6695_v14 = vld [vmem:[#allocation4 + $0x47] ss:$8 sm:$0xf] }
0x17dc   : > { %7070 = vmatprep.subr.mxu0 %v13986_v33  ;;  %7141 = vmatprep.subr.mxu1 %v13987_v41 }
0x187b   : > { %v6618_v37 = vpop.f32.mrf.mxu0  ;;  %v6689_v32 = vpop.f32.mrf.mxu1 }
0x187d   : > { %v6620_v59 = vpop.f32.mrf.mxu0  ;;  %v6691_v44 = vpop.f32.mrf.mxu1 }
0x187e   : > { %v6700_v15 = vcombine.low %v6618_v37, %v6620_v59  ;;  %v6701_v61 = vcombine.low %v6689_v32, %v6691_v44 }
0x1880   : > { %v6708_v28 = vrot.slane %v6700_v15, %v10065_v11  ;;  %v6715_v38 = vrot.slane %v6701_v61, %v10065_v11  ;;  %v13996_v61 = vld [vmem:[#allocation20_spill] sm:$0xff] }
0x1882   : > { %v6716_v17 = vcombine.low %v6708_v28, %v6715_v38  ;;  %v13997_v28 = vld [vmem:[#allocation30_spill] sm:$0xff]  ;;  %v13998_v38 = vld [vmem:[#allocation21_spill] sm:$0xff] }
0x1884   : > { %v6723_v26 = vrot.slane %v6716_v17, %v10065_v11 }
0x1886   : > { %v6725_v6 = vadd.f32 %v6723_v26, %v6695_v14  ;;  %v13993_v14 = vld [vmem:[#allocation28_spill] sm:$0xff] }
0x1888   : > { %v9078_v25 = vmul.f32 -1.442695, %v6725_v6  ;;  %v6733_v41 = vrot.slane %v6725_v6, 3  ;;  %v13992_v6 = vld [vmem:[#allocation18_spill] sm:$0xff] }
0x188a   : > { %9405 = vpow2.f32 %v9078_v25  ;;  %v13999_v25 = vld [vmem:[#allocation31_spill] sm:$0xff] }
0x1897   : > { %v9406_v33 = vpop.eup %9405 }
0x1898   : > { %v6729_v48 = vadd.f32 1.0, %v9406_v33  ;;  %v13994_v33 = vld [vmem:[#allocation19_spill] sm:$0xff] }
0x189a   : > { %9407 = vrcp.f32 %v6729_v48  ;;  %v13991_v48 = vld [vmem:[#allocation26_spill] sm:$0xff] }
0x189b   : > { %9409 = vtanh.f32 %v6733_v41  ;;  %v13995_v41 = vld [vmem:[#allocation29_spill] sm:$0xff] }
0x18a7   : > { %v9408_v49 = vpop.eup %9407 }
0x18a8   : > { %v6737_v30 = vrot.slane %v9408_v49, 1  ;;  %v9410_v59 = vpop.eup %9409  ;;  %v6743_v17 = vrot.slane %v9408_v49, 2 }
0x18a9   : > { %v6740_v37 = vmul.f32 %v9410_v59, %v9408_v49  ;;  %v13990_v49 = vld [vmem:[#allocation17_spill] sm:$0xff]  ;;  %v14000_v59 = vld [vmem:[#allocation23_spill] sm:$0xff] }
0x18aa   : > { %v6739_v15 = vmul.f32 %v6737_v30, %v12444_v31  ;;  %v13988_v31 = vld [vmem:[#allocation16_spill] sm:$0xff] }
0x18ab   : > { %v13989_v30 = vld [vmem:[#allocation24_spill] sm:$0xff] }
0x18ac   : > { %v12517_v32 = vadd.f32 %v6740_v37, %v6739_v15  ;;  %v14001_v37 = vld [vmem:[#allocation32_spill] sm:$0xff]  ;;  %v14002_v15 = vld [vmem:[#allocation25_spill] sm:$0xff] }
0x18ae   : > { %9411 = vtanh.f32 %v12517_v32 }
0x18bb   : > { %v9412_v44 = vpop.eup %9411 }
0x18bc   : > { %v6745_v26 = vmul.f32 %v9412_v44, %v6743_v17  ;;  %v14003_v17 = vld [vmem:[#allocation33_spill] sm:$0xff]  ;;  %v14004_v44 = vld [vmem:[#allocation27_spill] sm:$0xff] }
0x18be   : > { %6746 = vst [vmem:[#allocation5 + $0x17] sm:$0x1] %v6745_v26  ;;  %6876 = vmatmul.mubr.f32.vlgmr.msra.gmra.mxu0 %v6745_v26  ;;  %6947 = vmatmul.mubr.f32.vlgmr.msra.gmra.mxu1 %v6745_v26  ;;  %v14005_v26 = vmov 0.0  }
0x18bf   : > { %7071 = vmatpush1.msra.mxu0 %v12252_v47  ;;  %7142 = vmatpush1.msra.mxu1 %v12254_v18 }
0x18c0   : > { %7072 = vmatprep.subr.mxu0 %v12258_v2  ;;  %7143 = vmatprep.subr.mxu1 %v12260_v63 }
0x18c1   : > { %7073 = vmatpush1.msra.mxu0 %v12264_v34  ;;  %7144 = vmatpush1.msra.mxu1 %v12266_v36 }
0x18c2   : > { %7074 = vmatprep.subr.mxu0 %v12270_v10  ;;  %7145 = vmatprep.subr.mxu1 %v12272_v43 }
0x18c3   : > { %7075 = vmatpush1.msra.mxu0 %v12276_v45  ;;  %7146 = vmatpush1.msra.mxu1 %v12278_v57 }
0x18c4   : > { %7076 = vmatprep.subr.mxu0 %v12282_v60  ;;  %7147 = vmatprep.subr.mxu1 %v12284_v42 }
0x18c5   : > { %7077 = vmatpush1.msra.mxu0 %v12288_v50  ;;  %7148 = vmatpush1.msra.mxu1 %v12290_v7 }
0x18c6   : > { %7078 = vmatprep.subr.mxu0 %v12294_v29  ;;  %7149 = vmatprep.subr.mxu1 %v12296_v55 }
0x18c7   : > { %7079 = vmatpush1.msra.mxu0 %v12300_v16  ;;  %7150 = vmatpush1.msra.mxu1 %v12302_v4 }
0x18c8   : > { %7080 = vmatprep.subr.mxu0 %v12304_v21  ;;  %7151 = vmatprep.subr.mxu1 %v12308_v22 }
0x18c9   : > { %7081 = vmatpush1.msra.mxu0 %v12310_v62  ;;  %7152 = vmatpush1.msra.mxu1 %v12312_v51 }
0x18ca   : > { %7082 = vmatprep.subr.mxu0 %v12316_v53  ;;  %7153 = vmatprep.subr.mxu1 %v12318_v3 }
0x18cb   : > { %7083 = vmatpush1.msra.mxu0 %v12320_v58  ;;  %7154 = vmatpush1.msra.mxu1 %v12324_v56 }
0x18cc   : > { %7084 = vmatprep.subr.mxu0 %v12326_v23  ;;  %7155 = vmatprep.subr.mxu1 %v12328_v0 }
0x18cd   : > { %7085 = vmatpush1.msra.mxu0 %v12332_v8  ;;  %7156 = vmatpush1.msra.mxu1 %v12334_v13 }
0x18ce   : > { %7086 = vmatprep.subr.mxu0 %v12338_v5  ;;  %7157 = vmatprep.subr.mxu1 %v12340_v46 }
0x18cf   : > { %7087 = vmatpush1.msra.mxu0 %v12344_v54  ;;  %7158 = vmatpush1.msra.mxu1 %v12346_v35 }
0x18d0   : > { %7088 = vmatprep.subr.mxu0 %v12350_v39  ;;  %7159 = vmatprep.subr.mxu1 %v12352_v40 }
0x18d1   : > { %7089 = vmatpush1.msra.mxu0 %v12356_v27  ;;  %7160 = vmatpush1.msra.mxu1 %v12358_v1 }
0x18d2   : > { %7090 = vmatprep.subr.mxu0 %v12362_v52  ;;  %7161 = vmatprep.subr.mxu1 %v12364_v20 }
0x18d3   : > { %7091 = vmatpush1.msra.mxu0 %v12368_v9  ;;  %7162 = vmatpush1.msra.mxu1 %v12370_v12 }
0x18d4   : > { %7092 = vmatprep.subr.mxu0 %v12374_v24  ;;  %7163 = vmatprep.subr.mxu1 %v12376_v19 }
0x18d5   : > { %7093 = vmatpush1.msra.mxu0 %v13988_v31  ;;  %7164 = vmatpush1.msra.mxu1 %v13989_v30 }
0x18d6   : > { %7094 = vmatprep.subr.mxu0 %v13990_v49  ;;  %7165 = vmatprep.subr.mxu1 %v13991_v48 }
0x18d7   : > { %7095 = vmatpush1.msra.mxu0 %v13992_v6  ;;  %7166 = vmatpush1.msra.mxu1 %v13993_v14 }
0x18d8   : > { %7096 = vmatprep.subr.mxu0 %v13994_v33  ;;  %7167 = vmatprep.subr.mxu1 %v13995_v41  ;;  %v14006_v41 = vld [vmem:[#allocation34_spill] sm:$0xff] }
0x18d9   : > { %7097 = vmatpush1.msra.mxu0 %v13996_v61  ;;  %7168 = vmatpush1.msra.mxu1 %v13997_v28  ;;  %v14007_v28 = vld [vmem:[#allocation15_spill] sm:$0xff] }
0x18da   : > { %7098 = vmatprep.subr.mxu0 %v13998_v38  ;;  %7169 = vmatprep.subr.mxu1 %v13999_v25  ;;  %v14008_v38 = vld [vmem:[#allocation22_spill] sm:$0xff] }
0x18db   : > { %7099 = vmatpush1.msra.mxu0 %v14000_v59  ;;  %7170 = vmatpush1.msra.mxu1 %v14001_v37 }
0x18dc   : > { %7100 = vmatprep.subr.mxu0 %v14002_v15  ;;  %7171 = vmatprep.subr.mxu1 %v14003_v17 }
0x18dd   : > { %7101 = vmatpush1.msra.mxu0 %v14004_v44  ;;  %7134 = vmatprep.mubr.f32.mxu0 %v14005_v26 }
0x18de   : > { %7172 = vmatpush1.msra.mxu1 %v14006_v41  ;;  %7205 = vmatprep.mubr.f32.mxu1 %v14005_v26  ;;  %v6954_v41 = vld [vmem:[#allocation4 + $0x60] ss:$8 sm:$0xf] }
0x18df   : > { %7329 = vmatprep.subr.mxu0 %v14007_v28  ;;  %7400 = vmatprep.subr.mxu1 %v14008_v38 }
0x197e   : > { %v6877_v25 = vpop.f32.mrf.mxu0  ;;  %v6948_v59 = vpop.f32.mrf.mxu1 }
0x1980   : > { %v6879_v61 = vpop.f32.mrf.mxu0  ;;  %v6950_v37 = vpop.f32.mrf.mxu1 }
0x1981   : > { %v6959_v33 = vcombine.low %v6877_v25, %v6879_v61  ;;  %v6960_v15 = vcombine.low %v6948_v59, %v6950_v37 }
0x1983   : > { %v6967_v17 = vrot.slane %v6959_v33, %v10065_v11  ;;  %v6974_v44 = vrot.slane %v6960_v15, %v10065_v11  ;;  %v12684_v15 = vld [vmem:[#allocation6 + $0x1c0] sm:$0xff] }
0x1985   : > { %v6975_v14 = vcombine.low %v6967_v17, %v6974_v44  ;;  %v12686_v17 = vld [vmem:[#allocation6 + $0x1d0] sm:$0xff]  ;;  %v12690_v44 = vld [vmem:[#allocation6 + $0x1a8] sm:$0xff] }
0x1987   : > { %v6982_v6 = vrot.slane %v6975_v14, %v10065_v11 }
0x1989   : > { %v6984_v48 = vadd.f32 %v6982_v6, %v6954_v41  ;;  %v12680_v41 = vld [vmem:[#allocation6 + $0x1d8] sm:$0xff] }
0x198b   : > { %v9079_v26 = vmul.f32 -1.442695, %v6984_v48  ;;  %v6992_v38 = vrot.slane %v6984_v48, 3  ;;  %v12678_v48 = vld [vmem:[#allocation6 + $0x1c8] sm:$0xff] }
0x198d   : > { %9413 = vpow2.f32 %v9079_v26  ;;  %v12692_v26 = vld [vmem:[#allocation6 + $0x1b8] sm:$0xff] }
0x199a   : > { %v9414_v28 = vpop.eup %9413 }
0x199b   : > { %v6988_v49 = vadd.f32 1.0, %v9414_v28  ;;  %v12696_v28 = vld [vmem:[#allocation6 + $0x1a0] sm:$0xff] }
0x199d   : > { %9415 = vrcp.f32 %v6988_v49  ;;  %v12674_v49 = vld [vmem:[#allocation6 + $0x1f0] sm:$0xff] }
0x199e   : > { %9417 = vtanh.f32 %v6992_v38  ;;  %v12698_v38 = vld [vmem:[#allocation6 + $0x1b0] sm:$0xff] }
0x19aa   : > { %v9416_v30 = vpop.eup %9415 }
0x19ab   : > { %v6996_v31 = vrot.slane %v9416_v30, 1  ;;  %v9418_v61 = vpop.eup %9417  ;;  %v7002_v14 = vrot.slane %v9416_v30, 2 }
0x19ac   : > { %v6999_v25 = vmul.f32 %v9418_v61, %v9416_v30  ;;  %v12672_v30 = vld [vmem:[#allocation6 + $0x1e0] sm:$0xff]  ;;  %v12702_v61 = vld [vmem:[#allocation6 + $0x188] sm:$0xff] }
0x19ad   : > { %v6998_v33 = vmul.f32 %v6996_v31, %v12517_v32  ;;  %v12666_v32 = vld [vmem:[#allocation6 + $0x1e8] sm:$0xff]  ;;  %v12668_v31 = vld [vmem:[#allocation6 + $0x1f8] sm:$0xff] }
0x19ae   : > { %14028 = vst [vmem:[#allocation15_spill] sm:$0xff] %v12666_v32  ;;  %14029 = vst [vmem:[#allocation22_spill] sm:$0xff] %v12668_v31 }
0x19af   : > { %v12590_v59 = vadd.f32 %v6999_v25, %v6998_v33  ;;  %v12704_v25 = vld [vmem:[#allocation6 + $0x198] sm:$0xff]  ;;  %v12708_v33 = vld [vmem:[#allocation6 + $0x180] sm:$0xff] }
0x19b1   : > { %9419 = vtanh.f32 %v12590_v59 }
0x19be   : > { %v9420_v37 = vpop.eup %9419 }
0x19bf   : > { %v7004_v6 = vmul.f32 %v9420_v37, %v7002_v14  ;;  %v12714_v14 = vld [vmem:[#allocation6 + $0x168] sm:$0xff]  ;;  %v12716_v37 = vld [vmem:[#allocation6 + $0x178] sm:$0xff] }
0x19c1   : > { %7005 = vst [vmem:[#allocation5 + $0x18] sm:$0x1] %v7004_v6  ;;  %7135 = vmatmul.mubr.f32.vlgmr.msra.gmra.mxu0 %v7004_v6  ;;  %7206 = vmatmul.mubr.f32.vlgmr.msra.gmra.mxu1 %v7004_v6  ;;  %v12720_v6 = vld [vmem:[#allocation6 + $0x160] sm:$0xff] }
0x19c2   : > { %7330 = vmatpush1.msra.mxu0 %v12252_v47  ;;  %7401 = vmatpush1.msra.mxu1 %v12254_v18  ;;  %v14009_v47 = vld [vmem:[#allocation16_spill] sm:$0xff] }
0x19c3   : > { %7331 = vmatprep.subr.mxu0 %v12258_v2  ;;  %7402 = vmatprep.subr.mxu1 %v12260_v63  ;;  %v14010_v18 = vld [vmem:[#allocation24_spill] sm:$0xff]  ;;  %v14011_v2 = vld [vmem:[#allocation17_spill] sm:$0xff]  ;;  %v14012_v63 = vld [vmem:[#allocation26_spill] sm:$0xff] }
0x19c4   : > { %7332 = vmatpush1.msra.mxu0 %v12264_v34  ;;  %7403 = vmatpush1.msra.mxu1 %v12266_v36  ;;  %v14013_v34 = vld [vmem:[#allocation18_spill] sm:$0xff]  ;;  %v14014_v36 = vld [vmem:[#allocation28_spill] sm:$0xff] }
0x19c5   : > { %7333 = vmatprep.subr.mxu0 %v12270_v10  ;;  %7404 = vmatprep.subr.mxu1 %v12272_v43  ;;  %v14015_v10 = vld [vmem:[#allocation19_spill] sm:$0xff]  ;;  %v14016_v43 = vld [vmem:[#allocation29_spill] sm:$0xff] }
0x19c6   : > { %7334 = vmatpush1.msra.mxu0 %v12276_v45  ;;  %7405 = vmatpush1.msra.mxu1 %v12278_v57  ;;  %v14017_v45 = vld [vmem:[#allocation20_spill] sm:$0xff]  ;;  %v14018_v57 = vld [vmem:[#allocation30_spill] sm:$0xff] }
0x19c7   : > { %7335 = vmatprep.subr.mxu0 %v12282_v60  ;;  %7406 = vmatprep.subr.mxu1 %v12284_v42  ;;  %v14019_v60 = vld [vmem:[#allocation21_spill] sm:$0xff]  ;;  %v14020_v42 = vld [vmem:[#allocation31_spill] sm:$0xff] }
0x19c8   : > { %7336 = vmatpush1.msra.mxu0 %v12288_v50  ;;  %7407 = vmatpush1.msra.mxu1 %v12290_v7  ;;  %v14021_v50 = vld [vmem:[#allocation23_spill] sm:$0xff]  ;;  %v14022_v7 = vld [vmem:[#allocation32_spill] sm:$0xff] }
0x19c9   : > { %7337 = vmatprep.subr.mxu0 %v12294_v29  ;;  %7408 = vmatprep.subr.mxu1 %v12296_v55  ;;  %v14023_v29 = vld [vmem:[#allocation25_spill] sm:$0xff] }
0x19ca   : > { %7338 = vmatpush1.msra.mxu0 %v12300_v16  ;;  %7409 = vmatpush1.msra.mxu1 %v12302_v4  ;;  %v14024_v55 = vld [vmem:[#allocation33_spill] sm:$0xff]  ;;  %v14025_v16 = vld [vmem:[#allocation27_spill] sm:$0xff]  ;;  %v14026_v4 = vmov 0.0  }
0x19cb   : > { %7339 = vmatprep.subr.mxu0 %v12304_v21  ;;  %7410 = vmatprep.subr.mxu1 %v12308_v22  ;;  %v14027_v21 = vld [vmem:[#allocation34_spill] sm:$0xff] }
0x19cc   : > { %7340 = vmatpush1.msra.mxu0 %v12310_v62  ;;  %7411 = vmatpush1.msra.mxu1 %v12312_v51 }
0x19cd   : > { %7341 = vmatprep.subr.mxu0 %v12316_v53  ;;  %7412 = vmatprep.subr.mxu1 %v12318_v3 }
0x19ce   : > { %7342 = vmatpush1.msra.mxu0 %v12320_v58  ;;  %7413 = vmatpush1.msra.mxu1 %v12324_v56 }
0x19cf   : > { %7343 = vmatprep.subr.mxu0 %v12326_v23  ;;  %7414 = vmatprep.subr.mxu1 %v12328_v0 }
0x19d0   : > { %7344 = vmatpush1.msra.mxu0 %v12332_v8  ;;  %7415 = vmatpush1.msra.mxu1 %v12334_v13  ;;  %v7213_v13 = vld [vmem:[#allocation4 + $0x61] ss:$8 sm:$0xf] }
0x19d1   : > { %7345 = vmatprep.subr.mxu0 %v12338_v5  ;;  %7416 = vmatprep.subr.mxu1 %v12340_v46 }
0x19d2   : > { %7346 = vmatpush1.msra.mxu0 %v12344_v54  ;;  %7417 = vmatpush1.msra.mxu1 %v12346_v35 }
0x19d3   : > { %7347 = vmatprep.subr.mxu0 %v12350_v39  ;;  %7418 = vmatprep.subr.mxu1 %v12352_v40 }
0x19d4   : > { %7348 = vmatpush1.msra.mxu0 %v12356_v27  ;;  %7419 = vmatpush1.msra.mxu1 %v12358_v1 }
0x19d5   : > { %7349 = vmatprep.subr.mxu0 %v12362_v52  ;;  %7420 = vmatprep.subr.mxu1 %v12364_v20 }
0x19d6   : > { %7350 = vmatpush1.msra.mxu0 %v12368_v9  ;;  %7421 = vmatpush1.msra.mxu1 %v12370_v12 }
0x19d7   : > { %7351 = vmatprep.subr.mxu0 %v12374_v24  ;;  %7422 = vmatprep.subr.mxu1 %v12376_v19 }
0x19d8   : > { %7352 = vmatpush1.msra.mxu0 %v14009_v47  ;;  %7423 = vmatpush1.msra.mxu1 %v14010_v18  ;;  %v12722_v47 = vld [vmem:[#allocation6 + $0x170] sm:$0xff]  ;;  %v12724_v18 = vld [vmem:[#allocation6 + $0x148] sm:$0xff] }
0x19d9   : > { %7353 = vmatprep.subr.mxu0 %v14011_v2  ;;  %7424 = vmatprep.subr.mxu1 %v14012_v63  ;;  %v12728_v2 = vld [vmem:[#allocation6 + $0x158] sm:$0xff]  ;;  %v12730_v63 = vld [vmem:[#allocation6 + $0x140] sm:$0xff] }
0x19da   : > { %7354 = vmatpush1.msra.mxu0 %v14013_v34  ;;  %7425 = vmatpush1.msra.mxu1 %v14014_v36  ;;  %v12732_v34 = vld [vmem:[#allocation6 + $0x150] sm:$0xff]  ;;  %v12736_v36 = vld [vmem:[#allocation6 + $0x128] sm:$0xff] }
0x19db   : > { %7355 = vmatprep.subr.mxu0 %v14015_v10  ;;  %7426 = vmatprep.subr.mxu1 %v14016_v43  ;;  %v12738_v10 = vld [vmem:[#allocation6 + $0x138] sm:$0xff]  ;;  %v12740_v43 = vld [vmem:[#allocation6 + $0x120] sm:$0xff] }
0x19dc   : > { %7356 = vmatpush1.msra.mxu0 %v14017_v45  ;;  %7427 = vmatpush1.msra.mxu1 %v14018_v57  ;;  %v12744_v45 = vld [vmem:[#allocation6 + $0x130] sm:$0xff]  ;;  %v12746_v57 = vld [vmem:[#allocation6 + $0x108] sm:$0xff] }
0x19dd   : > { %7357 = vmatprep.subr.mxu0 %v14019_v60  ;;  %7428 = vmatprep.subr.mxu1 %v14020_v42  ;;  %v12748_v60 = vld [vmem:[#allocation6 + $0x118] sm:$0xff]  ;;  %v12752_v42 = vld [vmem:[#allocation6 + $0x100] sm:$0xff] }
0x19de   : > { %7358 = vmatpush1.msra.mxu0 %v14021_v50  ;;  %7429 = vmatpush1.msra.mxu1 %v14022_v7  ;;  %v12754_v50 = vld [vmem:[#allocation6 + $0x110] sm:$0xff]  ;;  %v12758_v7 = vld [vmem:[#allocation6 + $0xe8] sm:$0xff] }
0x19df   : > { %7359 = vmatprep.subr.mxu0 %v14023_v29  ;;  %7430 = vmatprep.subr.mxu1 %v14024_v55  ;;  %v12760_v29 = vld [vmem:[#allocation6 + $0xf8] sm:$0xff]  ;;  %v12764_v55 = vld [vmem:[#allocation6 + $0xe0] sm:$0xff] }
0x19e0   : > { %7360 = vmatpush1.msra.mxu0 %v14025_v16  ;;  %7393 = vmatprep.mubr.f32.mxu0 %v14026_v4  ;;  %v12766_v16 = vld [vmem:[#allocation6 + $0xf0] sm:$0xff] }
0x19e1   : > { %7431 = vmatpush1.msra.mxu1 %v14027_v21  ;;  %7464 = vmatprep.mubr.f32.mxu1 %v14026_v4  ;;  %v12770_v21 = vld [vmem:[#allocation6 + $0xc8] sm:$0xff] }
0x19e2   : > { %7588 = vmatprep.subr.mxu0 %v12666_v32  ;;  %7659 = vmatprep.subr.mxu1 %v12668_v31 }
0x1a81   : > { %v7136_v22 = vpop.f32.mrf.mxu0  ;;  %v7207_v62 = vpop.f32.mrf.mxu1 }
0x1a83   : > { %v7138_v51 = vpop.f32.mrf.mxu0  ;;  %v7209_v53 = vpop.f32.mrf.mxu1 }
0x1a84   : > { %v7218_v3 = vcombine.low %v7136_v22, %v7138_v51  ;;  %v7219_v58 = vcombine.low %v7207_v62, %v7209_v53  ;;  %v12772_v22 = vld [vmem:[#allocation6 + $0xd8] sm:$0xff]  ;;  %v12776_v62 = vld [vmem:[#allocation6 + $0xc0] sm:$0xff]  ;;  %v12778_v51 = vld [vmem:[#allocation6 + $0xd0] sm:$0xff] }
0x1a85   : > { %v12782_v53 = vld [vmem:[#allocation6 + $0xa8] sm:$0xff] }
0x1a86   : > { %v7226_v56 = vrot.slane %v7218_v3, %v10065_v11  ;;  %v7233_v23 = vrot.slane %v7219_v58, %v10065_v11  ;;  %v12784_v3 = vld [vmem:[#allocation6 + $0xb8] sm:$0xff]  ;;  %v12788_v58 = vld [vmem:[#allocation6 + $0xa0] sm:$0xff] }
0x1a88   : > { %v7234_v0 = vcombine.low %v7226_v56, %v7233_v23  ;;  %v12790_v56 = vld [vmem:[#allocation6 + $0xb0] sm:$0xff]  ;;  %v12794_v23 = vld [vmem:[#allocation6 + $0x88] sm:$0xff] }
0x1a8a   : > { %v7241_v8 = vrot.slane %v7234_v0, %v10065_v11  ;;  %v12796_v0 = vld [vmem:[#allocation6 + $0x98] sm:$0xff] }
0x1a8c   : > { %v7243_v5 = vadd.f32 %v7241_v8, %v7213_v13  ;;  %v12800_v8 = vld [vmem:[#allocation6 + $0x80] sm:$0xff]  ;;  %v12802_v13 = vld [vmem:[#allocation6 + $0x90] sm:$0xff] }
0x1a8d   : > { %14030 = vst [vmem:[#allocation16_spill] sm:$0xff] %v12800_v8  ;;  %14031 = vst [vmem:[#allocation24_spill] sm:$0xff] %v12802_v13 }
0x1a8e   : > { %v9080_v46 = vmul.f32 -1.442695, %v7243_v5  ;;  %v7251_v39 = vrot.slane %v7243_v5, 3  ;;  %v12806_v5 = vld [vmem:[#allocation6 + $0x68] sm:$0xff] }
0x1a8f   : > { %14032 = vst [vmem:[#allocation17_spill] sm:$0xff] %v12806_v5 }
0x1a90   : > { %9421 = vpow2.f32 %v9080_v46  ;;  %v12808_v46 = vld [vmem:[#allocation6 + $0x78] sm:$0xff] }
0x1a91   : > { %14033 = vst [vmem:[#allocation26_spill] sm:$0xff] %v12808_v46 }
0x1a9d   : > { %v9422_v54 = vpop.eup %9421 }
0x1a9e   : > { %v7247_v35 = vadd.f32 1.0, %v9422_v54  ;;  %v12812_v54 = vld [vmem:[#allocation6 + $0x60] sm:$0xff] }
0x1a9f   : > { %14034 = vst [vmem:[#allocation18_spill] sm:$0xff] %v12812_v54 }
0x1aa0   : > { %9423 = vrcp.f32 %v7247_v35  ;;  %v12814_v35 = vld [vmem:[#allocation6 + $0x70] sm:$0xff] }
0x1aa1   : > { %9425 = vtanh.f32 %v7251_v39  ;;  %14035 = vst [vmem:[#allocation28_spill] sm:$0xff] %v12814_v35  ;;  %v12818_v39 = vld [vmem:[#allocation6 + $0x48] sm:$0xff] }
0x1aa2   : > { %14036 = vst [vmem:[#allocation19_spill] sm:$0xff] %v12818_v39 }
0x1aad   : > { %v9424_v40 = vpop.eup %9423 }
0x1aae   : > { %v7255_v27 = vrot.slane %v9424_v40, 1  ;;  %v9426_v1 = vpop.eup %9425  ;;  %v7261_v12 = vrot.slane %v9424_v40, 2 }
0x1aaf   : > { %v7258_v52 = vmul.f32 %v9426_v1, %v9424_v40  ;;  %v12820_v40 = vld [vmem:[#allocation6 + $0x58] sm:$0xff]  ;;  %v12826_v1 = vld [vmem:[#allocation6 + $0x50] sm:$0xff] }
0x1ab0   : > { %v7257_v20 = vmul.f32 %v7255_v27, %v12590_v59  ;;  %v12710_v59 = vld [vmem:[#allocation6 + $0x190] sm:$0xff]  ;;  %14037 = vst [vmem:[#allocation29_spill] sm:$0xff] %v12820_v40  ;;  %v12824_v27 = vld [vmem:[#allocation6 + $0x40] sm:$0xff]  ;;  %14039 = vst [vmem:[#allocation30_spill] sm:$0xff] %v12826_v1 }
0x1ab1   : > { %14038 = vst [vmem:[#allocation20_spill] sm:$0xff] %v12824_v27 }
0x1ab2   : > { %v12661_v9 = vadd.f32 %v7258_v52, %v7257_v20  ;;  %v12830_v52 = vld [vmem:[#allocation6 + $0x28] sm:$0xff]  ;;  %v12832_v20 = vld [vmem:[#allocation6 + $0x38] sm:$0xff] }
0x1ab3   : > { %14040 = vst [vmem:[#allocation21_spill] sm:$0xff] %v12830_v52  ;;  %14041 = vst [vmem:[#allocation31_spill] sm:$0xff] %v12832_v20 }
0x1ab4   : > { %9427 = vtanh.f32 %v12661_v9 }
0x1ac1   : > { %v9428_v24 = vpop.eup %9427 }
0x1ac2   : > { %v7263_v19 = vmul.f32 %v9428_v24, %v7261_v12  ;;  %v12836_v12 = vld [vmem:[#allocation6 + $0x20] sm:$0xff]  ;;  %v12838_v24 = vld [vmem:[#allocation6 + $0x30] sm:$0xff] }
0x1ac3   : > { %14042 = vst [vmem:[#allocation23_spill] sm:$0xff] %v12836_v12  ;;  %14043 = vst [vmem:[#allocation32_spill] sm:$0xff] %v12838_v24 }
0x1ac4   : > { %7264 = vst [vmem:[#allocation5 + $0x19] sm:$0x1] %v7263_v19  ;;  %7394 = vmatmul.mubr.f32.vlgmr.msra.gmra.mxu0 %v7263_v19  ;;  %7465 = vmatmul.mubr.f32.vlgmr.msra.gmra.mxu1 %v7263_v19  ;;  %v12842_v19 = vld [vmem:[#allocation6 + $0x8] sm:$0xff] }
0x1ac5   : > { %7652 = vmatprep.mubr.f32.mxu0 %v14026_v4  ;;  %7723 = vmatprep.mubr.f32.mxu1 %v14026_v4  ;;  %14044 = vst [vmem:[#allocation25_spill] sm:$0xff] %v12842_v19  ;;  %v12844_v4 = vld [vmem:[#allocation6 + $0x18] sm:$0xff] }
0x1ac6   : > { %7589 = vmatpush1.msra.mxu0 %v12672_v30  ;;  %7660 = vmatpush1.msra.mxu1 %v12674_v49  ;;  %14045 = vst [vmem:[#allocation33_spill] sm:$0xff] %v12844_v4 }
0x1ac7   : > { %7590 = vmatprep.subr.mxu0 %v12678_v48  ;;  %7661 = vmatprep.subr.mxu1 %v12680_v41 }
0x1ac8   : > { %7591 = vmatpush1.msra.mxu0 %v12684_v15  ;;  %7662 = vmatpush1.msra.mxu1 %v12686_v17 }
0x1ac9   : > { %7592 = vmatprep.subr.mxu0 %v12690_v44  ;;  %7663 = vmatprep.subr.mxu1 %v12692_v26 }
0x1aca   : > { %7593 = vmatpush1.msra.mxu0 %v12696_v28  ;;  %7664 = vmatpush1.msra.mxu1 %v12698_v38 }
0x1acb   : > { %7594 = vmatprep.subr.mxu0 %v12702_v61  ;;  %7665 = vmatprep.subr.mxu1 %v12704_v25 }
0x1acc   : > { %7595 = vmatpush1.msra.mxu0 %v12708_v33  ;;  %7666 = vmatpush1.msra.mxu1 %v12710_v59 }
0x1acd   : > { %7596 = vmatprep.subr.mxu0 %v12714_v14  ;;  %7667 = vmatprep.subr.mxu1 %v12716_v37 }
0x1ace   : > { %7597 = vmatpush1.msra.mxu0 %v12720_v6  ;;  %7668 = vmatpush1.msra.mxu1 %v12722_v47 }
0x1acf   : > { %7598 = vmatprep.subr.mxu0 %v12724_v18  ;;  %7669 = vmatprep.subr.mxu1 %v12728_v2 }
0x1ad0   : > { %7599 = vmatpush1.msra.mxu0 %v12730_v63  ;;  %7670 = vmatpush1.msra.mxu1 %v12732_v34 }
0x1ad1   : > { %7600 = vmatprep.subr.mxu0 %v12736_v36  ;;  %7671 = vmatprep.subr.mxu1 %v12738_v10 }
0x1ad2   : > { %7601 = vmatpush1.msra.mxu0 %v12740_v43  ;;  %7672 = vmatpush1.msra.mxu1 %v12744_v45 }
0x1ad3   : > { %7602 = vmatprep.subr.mxu0 %v12746_v57  ;;  %7673 = vmatprep.subr.mxu1 %v12748_v60 }
0x1ad4   : > { %7603 = vmatpush1.msra.mxu0 %v12752_v42  ;;  %7674 = vmatpush1.msra.mxu1 %v12754_v50 }
0x1ad5   : > { %7604 = vmatprep.subr.mxu0 %v12758_v7  ;;  %7675 = vmatprep.subr.mxu1 %v12760_v29 }
0x1ad6   : > { %7605 = vmatpush1.msra.mxu0 %v12764_v55  ;;  %7676 = vmatpush1.msra.mxu1 %v12766_v16 }
0x1ad7   : > { %7606 = vmatprep.subr.mxu0 %v12770_v21  ;;  %7677 = vmatprep.subr.mxu1 %v12772_v22 }
0x1ad8   : > { %7607 = vmatpush1.msra.mxu0 %v12776_v62  ;;  %7678 = vmatpush1.msra.mxu1 %v12778_v51 }
0x1ad9   : > { %7608 = vmatprep.subr.mxu0 %v12782_v53  ;;  %7679 = vmatprep.subr.mxu1 %v12784_v3 }
0x1ada   : > { %7609 = vmatpush1.msra.mxu0 %v12788_v58  ;;  %7680 = vmatpush1.msra.mxu1 %v12790_v56 }
0x1adb   : > { %7610 = vmatprep.subr.mxu0 %v12794_v23  ;;  %7681 = vmatprep.subr.mxu1 %v12796_v0 }
0x1adc   : > { %7611 = vmatpush1.msra.mxu0 %v12800_v8  ;;  %7682 = vmatpush1.msra.mxu1 %v12802_v13 }
0x1add   : > { %7612 = vmatprep.subr.mxu0 %v12806_v5  ;;  %7683 = vmatprep.subr.mxu1 %v12808_v46 }
0x1ade   : > { %7613 = vmatpush1.msra.mxu0 %v12812_v54  ;;  %7684 = vmatpush1.msra.mxu1 %v12814_v35  ;;  %v12848_v35 = vld [vmem:[#allocation6] sm:$0xff] }
0x1adf   : > { %7614 = vmatprep.subr.mxu0 %v12818_v39  ;;  %7685 = vmatprep.subr.mxu1 %v12820_v40  ;;  %14046 = vst [vmem:[#allocation27_spill] sm:$0xff] %v12848_v35  ;;  %v12850_v39 = vld [vmem:[#allocation6 + $0x10] sm:$0xff] }
0x1ae0   : > { %7615 = vmatpush1.msra.mxu0 %v12824_v27  ;;  %7686 = vmatpush1.msra.mxu1 %v12826_v1  ;;  %14047 = vst [vmem:[#allocation34_spill] sm:$0xff] %v12850_v39 }
0x1ae1   : > { %7616 = vmatprep.subr.mxu0 %v12830_v52  ;;  %7687 = vmatprep.subr.mxu1 %v12832_v20 }
0x1ae2   : > { %7617 = vmatpush1.msra.mxu0 %v12836_v12  ;;  %7688 = vmatpush1.msra.mxu1 %v12838_v24 }
0x1ae3   : > { %7618 = vmatprep.subr.mxu0 %v12842_v19  ;;  %7689 = vmatprep.subr.mxu1 %v12844_v4 }
0x1ae4   : > { %7619 = vmatpush1.msra.mxu0 %v12848_v35  ;;  %7690 = vmatpush1.msra.mxu1 %v12850_v39  ;;  %v7472_v35 = vld [vmem:[#allocation4 + $0x62] ss:$8 sm:$0xf] }
0x1ae5   : > { %7847 = vmatprep.subr.mxu0 %v12666_v32  ;;  %7918 = vmatprep.subr.mxu1 %v12668_v31 }
0x1b84   : > { %v7395_v20 = vpop.f32.mrf.mxu0  ;;  %v7466_v52 = vpop.f32.mrf.mxu1 }
0x1b86   : > { %v7397_v1 = vpop.f32.mrf.mxu0  ;;  %v7468_v27 = vpop.f32.mrf.mxu1 }
0x1b87   : > { %v7477_v40 = vcombine.low %v7395_v20, %v7397_v1  ;;  %v7478_v12 = vcombine.low %v7466_v52, %v7468_v27 }
0x1b89   : > { %v7485_v24 = vrot.slane %v7477_v40, %v10065_v11  ;;  %v7492_v19 = vrot.slane %v7478_v12, %v10065_v11  ;;  %v14057_v12 = vld [vmem:[#allocation30_spill] sm:$0xff] }
0x1b8b   : > { %v7493_v54 = vcombine.low %v7485_v24, %v7492_v19  ;;  %v14058_v24 = vld [vmem:[#allocation21_spill] sm:$0xff]  ;;  %v14059_v19 = vld [vmem:[#allocation31_spill] sm:$0xff] }
0x1b8d   : > { %v7500_v4 = vrot.slane %v7493_v54, %v10065_v11 }
0x1b8f   : > { %v7502_v46 = vadd.f32 %v7500_v4, %v7472_v35  ;;  %v14055_v35 = vld [vmem:[#allocation29_spill] sm:$0xff] }
0x1b91   : > { %v9081_v39 = vmul.f32 -1.442695, %v7502_v46  ;;  %v7510_v31 = vrot.slane %v7502_v46, 3  ;;  %v14054_v46 = vld [vmem:[#allocation19_spill] sm:$0xff] }
0x1b93   : > { %9429 = vpow2.f32 %v9081_v39  ;;  %v14056_v39 = vld [vmem:[#allocation20_spill] sm:$0xff] }
0x1ba0   : > { %v9430_v32 = vpop.eup %9429 }
0x1ba1   : > { %v7506_v5 = vadd.f32 1.0, %v9430_v32  ;;  %v14049_v32 = vld [vmem:[#allocation24_spill] sm:$0xff] }
0x1ba3   : > { %9431 = vrcp.f32 %v7506_v5  ;;  %v14053_v5 = vld [vmem:[#allocation28_spill] sm:$0xff] }
0x1ba4   : > { %9433 = vtanh.f32 %v7510_v31  ;;  %v14050_v31 = vld [vmem:[#allocation17_spill] sm:$0xff] }
0x1bb0   : > { %v9432_v13 = vpop.eup %9431 }
0x1bb1   : > { %v7514_v8 = vrot.slane %v9432_v13, 1  ;;  %v9434_v1 = vpop.eup %9433  ;;  %v7520_v54 = vrot.slane %v9432_v13, 2 }
0x1bb2   : > { %v7517_v27 = vmul.f32 %v9434_v1, %v9432_v13  ;;  %v14052_v13 = vld [vmem:[#allocation18_spill] sm:$0xff]  ;;  %v14060_v1 = vld [vmem:[#allocation23_spill] sm:$0xff] }
0x1bb3   : > { %v7516_v40 = vmul.f32 %v7514_v8, %v12661_v9  ;;  %v14048_v9 = vld [vmem:[#allocation16_spill] sm:$0xff]  ;;  %v14051_v8 = vld [vmem:[#allocation26_spill] sm:$0xff] }
0x1bb5   : > { %v12864_v52 = vadd.f32 %v7517_v27, %v7516_v40  ;;  %v14061_v27 = vld [vmem:[#allocation32_spill] sm:$0xff]  ;;  %v14062_v40 = vld [vmem:[#allocation25_spill] sm:$0xff] }
0x1bb7   : > { %9435 = vtanh.f32 %v12864_v52 }
0x1bc4   : > { %v9436_v20 = vpop.eup %9435 }
0x1bc5   : > { %v7522_v4 = vmul.f32 %v9436_v20, %v7520_v54  ;;  %v14063_v54 = vld [vmem:[#allocation33_spill] sm:$0xff]  ;;  %v14064_v20 = vld [vmem:[#allocation27_spill] sm:$0xff] }
0x1bc7   : > { %7523 = vst [vmem:[#allocation5 + $0x1a] sm:$0x1] %v7522_v4  ;;  %7653 = vmatmul.mubr.f32.vlgmr.msra.gmra.mxu0 %v7522_v4  ;;  %7724 = vmatmul.mubr.f32.vlgmr.msra.gmra.mxu1 %v7522_v4  ;;  %v14065_v4 = vmov 0.0  }
0x1bc8   : > { %7848 = vmatpush1.msra.mxu0 %v12672_v30  ;;  %7919 = vmatpush1.msra.mxu1 %v12674_v49 }
0x1bc9   : > { %7849 = vmatprep.subr.mxu0 %v12678_v48  ;;  %7920 = vmatprep.subr.mxu1 %v12680_v41 }
0x1bca   : > { %7850 = vmatpush1.msra.mxu0 %v12684_v15  ;;  %7921 = vmatpush1.msra.mxu1 %v12686_v17 }
0x1bcb   : > { %7851 = vmatprep.subr.mxu0 %v12690_v44  ;;  %7922 = vmatprep.subr.mxu1 %v12692_v26 }
0x1bcc   : > { %7852 = vmatpush1.msra.mxu0 %v12696_v28  ;;  %7923 = vmatpush1.msra.mxu1 %v12698_v38 }
0x1bcd   : > { %7853 = vmatprep.subr.mxu0 %v12702_v61  ;;  %7924 = vmatprep.subr.mxu1 %v12704_v25 }
0x1bce   : > { %7854 = vmatpush1.msra.mxu0 %v12708_v33  ;;  %7925 = vmatpush1.msra.mxu1 %v12710_v59 }
0x1bcf   : > { %7855 = vmatprep.subr.mxu0 %v12714_v14  ;;  %7926 = vmatprep.subr.mxu1 %v12716_v37 }
0x1bd0   : > { %7856 = vmatpush1.msra.mxu0 %v12720_v6  ;;  %7927 = vmatpush1.msra.mxu1 %v12722_v47 }
0x1bd1   : > { %7857 = vmatprep.subr.mxu0 %v12724_v18  ;;  %7928 = vmatprep.subr.mxu1 %v12728_v2 }
0x1bd2   : > { %7858 = vmatpush1.msra.mxu0 %v12730_v63  ;;  %7929 = vmatpush1.msra.mxu1 %v12732_v34 }
0x1bd3   : > { %7859 = vmatprep.subr.mxu0 %v12736_v36  ;;  %7930 = vmatprep.subr.mxu1 %v12738_v10 }
0x1bd4   : > { %7860 = vmatpush1.msra.mxu0 %v12740_v43  ;;  %7931 = vmatpush1.msra.mxu1 %v12744_v45 }
0x1bd5   : > { %7861 = vmatprep.subr.mxu0 %v12746_v57  ;;  %7932 = vmatprep.subr.mxu1 %v12748_v60 }
0x1bd6   : > { %7862 = vmatpush1.msra.mxu0 %v12752_v42  ;;  %7933 = vmatpush1.msra.mxu1 %v12754_v50 }
0x1bd7   : > { %7863 = vmatprep.subr.mxu0 %v12758_v7  ;;  %7934 = vmatprep.subr.mxu1 %v12760_v29 }
0x1bd8   : > { %7864 = vmatpush1.msra.mxu0 %v12764_v55  ;;  %7935 = vmatpush1.msra.mxu1 %v12766_v16 }
0x1bd9   : > { %7865 = vmatprep.subr.mxu0 %v12770_v21  ;;  %7936 = vmatprep.subr.mxu1 %v12772_v22 }
0x1bda   : > { %7866 = vmatpush1.msra.mxu0 %v12776_v62  ;;  %7937 = vmatpush1.msra.mxu1 %v12778_v51 }
0x1bdb   : > { %7867 = vmatprep.subr.mxu0 %v12782_v53  ;;  %7938 = vmatprep.subr.mxu1 %v12784_v3 }
0x1bdc   : > { %7868 = vmatpush1.msra.mxu0 %v12788_v58  ;;  %7939 = vmatpush1.msra.mxu1 %v12790_v56 }
0x1bdd   : > { %7869 = vmatprep.subr.mxu0 %v12794_v23  ;;  %7940 = vmatprep.subr.mxu1 %v12796_v0 }
0x1bde   : > { %7870 = vmatpush1.msra.mxu0 %v14048_v9  ;;  %7941 = vmatpush1.msra.mxu1 %v14049_v32 }
0x1bdf   : > { %7871 = vmatprep.subr.mxu0 %v14050_v31  ;;  %7942 = vmatprep.subr.mxu1 %v14051_v8 }
0x1be0   : > { %7872 = vmatpush1.msra.mxu0 %v14052_v13  ;;  %7943 = vmatpush1.msra.mxu1 %v14053_v5 }
0x1be1   : > { %7873 = vmatprep.subr.mxu0 %v14054_v46  ;;  %7944 = vmatprep.subr.mxu1 %v14055_v35  ;;  %v14066_v35 = vld [vmem:[#allocation34_spill] sm:$0xff] }
0x1be2   : > { %7874 = vmatpush1.msra.mxu0 %v14056_v39  ;;  %7945 = vmatpush1.msra.mxu1 %v14057_v12  ;;  %v14067_v12 = vld [vmem:[#allocation15_spill] sm:$0xff] }
0x1be3   : > { %7875 = vmatprep.subr.mxu0 %v14058_v24  ;;  %7946 = vmatprep.subr.mxu1 %v14059_v19  ;;  %v14068_v24 = vld [vmem:[#allocation22_spill] sm:$0xff] }
0x1be4   : > { %7876 = vmatpush1.msra.mxu0 %v14060_v1  ;;  %7947 = vmatpush1.msra.mxu1 %v14061_v27 }
0x1be5   : > { %7877 = vmatprep.subr.mxu0 %v14062_v40  ;;  %7948 = vmatprep.subr.mxu1 %v14063_v54 }
0x1be6   : > { %7878 = vmatpush1.msra.mxu0 %v14064_v20  ;;  %7911 = vmatprep.mubr.f32.mxu0 %v14065_v4 }
0x1be7   : > { %7949 = vmatpush1.msra.mxu1 %v14066_v35  ;;  %7982 = vmatprep.mubr.f32.mxu1 %v14065_v4  ;;  %v7731_v35 = vld [vmem:[#allocation4 + $0x63] ss:$8 sm:$0xf] }
0x1be8   : > { %8106 = vmatprep.subr.mxu0 %v14067_v12  ;;  %8177 = vmatprep.subr.mxu1 %v14068_v24 }
0x1c87   : > { %v7654_v19 = vpop.f32.mrf.mxu0  ;;  %v7725_v1 = vpop.f32.mrf.mxu1 }
0x1c89   : > { %v7656_v39 = vpop.f32.mrf.mxu0  ;;  %v7727_v27 = vpop.f32.mrf.mxu1 }
0x1c8a   : > { %v7736_v46 = vcombine.low %v7654_v19, %v7656_v39  ;;  %v7737_v40 = vcombine.low %v7725_v1, %v7727_v27 }
0x1c8c   : > { %v7744_v54 = vrot.slane %v7736_v46, %v10065_v11  ;;  %v7751_v20 = vrot.slane %v7737_v40, %v10065_v11  ;;  %v14077_v40 = vld [vmem:[#allocation20_spill] sm:$0xff] }
0x1c8e   : > { %v7752_v5 = vcombine.low %v7744_v54, %v7751_v20  ;;  %v14078_v54 = vld [vmem:[#allocation30_spill] sm:$0xff]  ;;  %v14079_v20 = vld [vmem:[#allocation21_spill] sm:$0xff] }
0x1c90   : > { %v7759_v13 = vrot.slane %v7752_v5, %v10065_v11 }
0x1c92   : > { %v7761_v8 = vadd.f32 %v7759_v13, %v7731_v35  ;;  %v14074_v35 = vld [vmem:[#allocation28_spill] sm:$0xff] }
0x1c94   : > { %v9082_v4 = vmul.f32 -1.442695, %v7761_v8  ;;  %v7769_v24 = vrot.slane %v7761_v8, 3  ;;  %v14073_v8 = vld [vmem:[#allocation18_spill] sm:$0xff] }
0x1c96   : > { %9437 = vpow2.f32 %v9082_v4  ;;  %v14080_v4 = vld [vmem:[#allocation31_spill] sm:$0xff] }
0x1ca3   : > { %v9438_v12 = vpop.eup %9437 }
0x1ca4   : > { %v7765_v31 = vadd.f32 1.0, %v9438_v12  ;;  %v14075_v12 = vld [vmem:[#allocation19_spill] sm:$0xff] }
0x1ca6   : > { %9439 = vrcp.f32 %v7765_v31  ;;  %v14072_v31 = vld [vmem:[#allocation26_spill] sm:$0xff] }
0x1ca7   : > { %9441 = vtanh.f32 %v7769_v24  ;;  %v14076_v24 = vld [vmem:[#allocation29_spill] sm:$0xff] }
0x1cb3   : > { %v9440_v32 = vpop.eup %9439 }
0x1cb4   : > { %v7773_v9 = vrot.slane %v9440_v32, 1  ;;  %v9442_v39 = vpop.eup %9441  ;;  %v7779_v5 = vrot.slane %v9440_v32, 2 }
0x1cb5   : > { %v7776_v19 = vmul.f32 %v9442_v39, %v9440_v32  ;;  %v14071_v32 = vld [vmem:[#allocation17_spill] sm:$0xff]  ;;  %v14081_v39 = vld [vmem:[#allocation23_spill] sm:$0xff] }
0x1cb6   : > { %v7775_v46 = vmul.f32 %v7773_v9, %v12864_v52  ;;  %v14069_v52 = vld [vmem:[#allocation16_spill] sm:$0xff] }
0x1cb7   : > { %v14070_v9 = vld [vmem:[#allocation24_spill] sm:$0xff] }
0x1cb8   : > { %v12937_v1 = vadd.f32 %v7776_v19, %v7775_v46  ;;  %v14082_v19 = vld [vmem:[#allocation32_spill] sm:$0xff]  ;;  %v14083_v46 = vld [vmem:[#allocation25_spill] sm:$0xff] }
0x1cba   : > { %9443 = vtanh.f32 %v12937_v1 }
0x1cc7   : > { %v9444_v27 = vpop.eup %9443 }
0x1cc8   : > { %v7781_v13 = vmul.f32 %v9444_v27, %v7779_v5  ;;  %v14084_v5 = vld [vmem:[#allocation33_spill] sm:$0xff]  ;;  %v14085_v27 = vld [vmem:[#allocation27_spill] sm:$0xff] }
0x1cca   : > { %7782 = vst [vmem:[#allocation5 + $0x1b] sm:$0x1] %v7781_v13  ;;  %7912 = vmatmul.mubr.f32.vlgmr.msra.gmra.mxu0 %v7781_v13  ;;  %7983 = vmatmul.mubr.f32.vlgmr.msra.gmra.mxu1 %v7781_v13  ;;  %v14086_v13 = vmov 0.0  }
0x1ccb   : > { %8107 = vmatpush1.msra.mxu0 %v12672_v30  ;;  %8178 = vmatpush1.msra.mxu1 %v12674_v49 }
0x1ccc   : > { %8108 = vmatprep.subr.mxu0 %v12678_v48  ;;  %8179 = vmatprep.subr.mxu1 %v12680_v41 }
0x1ccd   : > { %8109 = vmatpush1.msra.mxu0 %v12684_v15  ;;  %8180 = vmatpush1.msra.mxu1 %v12686_v17 }
0x1cce   : > { %8110 = vmatprep.subr.mxu0 %v12690_v44  ;;  %8181 = vmatprep.subr.mxu1 %v12692_v26 }
0x1ccf   : > { %8111 = vmatpush1.msra.mxu0 %v12696_v28  ;;  %8182 = vmatpush1.msra.mxu1 %v12698_v38 }
0x1cd0   : > { %8112 = vmatprep.subr.mxu0 %v12702_v61  ;;  %8183 = vmatprep.subr.mxu1 %v12704_v25 }
0x1cd1   : > { %8113 = vmatpush1.msra.mxu0 %v12708_v33  ;;  %8184 = vmatpush1.msra.mxu1 %v12710_v59 }
0x1cd2   : > { %8114 = vmatprep.subr.mxu0 %v12714_v14  ;;  %8185 = vmatprep.subr.mxu1 %v12716_v37 }
0x1cd3   : > { %8115 = vmatpush1.msra.mxu0 %v12720_v6  ;;  %8186 = vmatpush1.msra.mxu1 %v12722_v47 }
0x1cd4   : > { %8116 = vmatprep.subr.mxu0 %v12724_v18  ;;  %8187 = vmatprep.subr.mxu1 %v12728_v2 }
0x1cd5   : > { %8117 = vmatpush1.msra.mxu0 %v12730_v63  ;;  %8188 = vmatpush1.msra.mxu1 %v12732_v34 }
0x1cd6   : > { %8118 = vmatprep.subr.mxu0 %v12736_v36  ;;  %8189 = vmatprep.subr.mxu1 %v12738_v10 }
0x1cd7   : > { %8119 = vmatpush1.msra.mxu0 %v12740_v43  ;;  %8190 = vmatpush1.msra.mxu1 %v12744_v45 }
0x1cd8   : > { %8120 = vmatprep.subr.mxu0 %v12746_v57  ;;  %8191 = vmatprep.subr.mxu1 %v12748_v60 }
0x1cd9   : > { %8121 = vmatpush1.msra.mxu0 %v12752_v42  ;;  %8192 = vmatpush1.msra.mxu1 %v12754_v50 }
0x1cda   : > { %8122 = vmatprep.subr.mxu0 %v12758_v7  ;;  %8193 = vmatprep.subr.mxu1 %v12760_v29 }
0x1cdb   : > { %8123 = vmatpush1.msra.mxu0 %v12764_v55  ;;  %8194 = vmatpush1.msra.mxu1 %v12766_v16 }
0x1cdc   : > { %8124 = vmatprep.subr.mxu0 %v12770_v21  ;;  %8195 = vmatprep.subr.mxu1 %v12772_v22 }
0x1cdd   : > { %8125 = vmatpush1.msra.mxu0 %v12776_v62  ;;  %8196 = vmatpush1.msra.mxu1 %v12778_v51 }
0x1cde   : > { %8126 = vmatprep.subr.mxu0 %v12782_v53  ;;  %8197 = vmatprep.subr.mxu1 %v12784_v3 }
0x1cdf   : > { %8127 = vmatpush1.msra.mxu0 %v12788_v58  ;;  %8198 = vmatpush1.msra.mxu1 %v12790_v56 }
0x1ce0   : > { %8128 = vmatprep.subr.mxu0 %v12794_v23  ;;  %8199 = vmatprep.subr.mxu1 %v12796_v0 }
0x1ce1   : > { %8129 = vmatpush1.msra.mxu0 %v14069_v52  ;;  %8200 = vmatpush1.msra.mxu1 %v14070_v9 }
0x1ce2   : > { %8130 = vmatprep.subr.mxu0 %v14071_v32  ;;  %8201 = vmatprep.subr.mxu1 %v14072_v31 }
0x1ce3   : > { %8131 = vmatpush1.msra.mxu0 %v14073_v8  ;;  %8202 = vmatpush1.msra.mxu1 %v14074_v35 }
0x1ce4   : > { %8132 = vmatprep.subr.mxu0 %v14075_v12  ;;  %8203 = vmatprep.subr.mxu1 %v14076_v24  ;;  %v14087_v24 = vld [vmem:[#allocation34_spill] sm:$0xff] }
0x1ce5   : > { %8133 = vmatpush1.msra.mxu0 %v14077_v40  ;;  %8204 = vmatpush1.msra.mxu1 %v14078_v54  ;;  %v14088_v54 = vld [vmem:[#allocation15_spill] sm:$0xff] }
0x1ce6   : > { %8134 = vmatprep.subr.mxu0 %v14079_v20  ;;  %8205 = vmatprep.subr.mxu1 %v14080_v4  ;;  %v14089_v20 = vld [vmem:[#allocation22_spill] sm:$0xff] }
0x1ce7   : > { %8135 = vmatpush1.msra.mxu0 %v14081_v39  ;;  %8206 = vmatpush1.msra.mxu1 %v14082_v19 }
0x1ce8   : > { %8136 = vmatprep.subr.mxu0 %v14083_v46  ;;  %8207 = vmatprep.subr.mxu1 %v14084_v5 }
0x1ce9   : > { %8137 = vmatpush1.msra.mxu0 %v14085_v27  ;;  %8170 = vmatprep.mubr.f32.mxu0 %v14086_v13 }
0x1cea   : > { %8208 = vmatpush1.msra.mxu1 %v14087_v24  ;;  %8241 = vmatprep.mubr.f32.mxu1 %v14086_v13  ;;  %v7990_v24 = vld [vmem:[#allocation4 + $0x64] ss:$8 sm:$0xf] }
0x1ceb   : > { %8365 = vmatprep.subr.mxu0 %v14088_v54  ;;  %8436 = vmatprep.subr.mxu1 %v14089_v20 }
0x1d8a   : > { %v7913_v4 = vpop.f32.mrf.mxu0  ;;  %v7984_v39 = vpop.f32.mrf.mxu1 }
0x1d8c   : > { %v7915_v40 = vpop.f32.mrf.mxu0  ;;  %v7986_v19 = vpop.f32.mrf.mxu1 }
0x1d8d   : > { %v7995_v12 = vcombine.low %v7913_v4, %v7915_v40  ;;  %v7996_v46 = vcombine.low %v7984_v39, %v7986_v19 }
0x1d8f   : > { %v8003_v5 = vrot.slane %v7995_v12, %v10065_v11  ;;  %v8010_v27 = vrot.slane %v7996_v46, %v10065_v11  ;;  %v8619_v46 = vld [vmem:[#allocation6 + $0x1d8] sm:$0xff] }
0x1d91   : > { %v8011_v35 = vcombine.low %v8003_v5, %v8010_v27  ;;  %v8613_v5 = vld [vmem:[#allocation6 + $0x1a8] sm:$0xff]  ;;  %v8618_v27 = vld [vmem:[#allocation6 + $0x1d0] sm:$0xff] }
0x1d93   : > { %v8018_v8 = vrot.slane %v8011_v35, %v10065_v11 }
0x1d95   : > { %v8020_v31 = vadd.f32 %v8018_v8, %v7990_v24  ;;  %v8616_v24 = vld [vmem:[#allocation6 + $0x1c0] sm:$0xff] }
0x1d97   : > { %v9083_v13 = vmul.f32 -1.442695, %v8020_v31  ;;  %v8028_v20 = vrot.slane %v8020_v31, 3  ;;  %v8622_v31 = vld [vmem:[#allocation6 + $0x1f0] sm:$0xff] }
0x1d99   : > { %9445 = vpow2.f32 %v9083_v13  ;;  %v8612_v13 = vld [vmem:[#allocation6 + $0x1a0] sm:$0xff] }
0x1da6   : > { %v9446_v54 = vpop.eup %9445 }
0x1da7   : > { %v8024_v32 = vadd.f32 1.0, %v9446_v54  ;;  %v8615_v54 = vld [vmem:[#allocation6 + $0x1b8] sm:$0xff] }
0x1da9   : > { %9447 = vrcp.f32 %v8024_v32  ;;  %v8617_v32 = vld [vmem:[#allocation6 + $0x1c8] sm:$0xff] }
0x1daa   : > { %9449 = vtanh.f32 %v8028_v20  ;;  %v8609_v20 = vld [vmem:[#allocation6 + $0x188] sm:$0xff] }
0x1db6   : > { %v9448_v9 = vpop.eup %9447 }
0x1db7   : > { %v8032_v52 = vrot.slane %v9448_v9, 1  ;;  %v9450_v40 = vpop.eup %9449  ;;  %v8038_v35 = vrot.slane %v9448_v9, 2 }
0x1db8   : > { %v8035_v4 = vmul.f32 %v9450_v40, %v9448_v9  ;;  %v8623_v9 = vld [vmem:[#allocation6 + $0x1f8] sm:$0xff]  ;;  %v8614_v40 = vld [vmem:[#allocation6 + $0x1b0] sm:$0xff] }
0x1db9   : > { %v8034_v12 = vmul.f32 %v8032_v52, %v12937_v1  ;;  %v8621_v1 = vld [vmem:[#allocation6 + $0x1e8] sm:$0xff]  ;;  %v8620_v52 = vld [vmem:[#allocation6 + $0x1e0] sm:$0xff] }
0x1dbb   : > { %v13010_v39 = vadd.f32 %v8035_v4, %v8034_v12  ;;  %v8608_v4 = vld [vmem:[#allocation6 + $0x180] sm:$0xff]  ;;  %v8611_v12 = vld [vmem:[#allocation6 + $0x198] sm:$0xff] }
0x1dbd   : > { %9451 = vtanh.f32 %v13010_v39 }
0x1dca   : > { %v9452_v19 = vpop.eup %9451 }
0x1dcb   : > { %v8040_v8 = vmul.f32 %v9452_v19, %v8038_v35  ;;  %v8610_v35 = vld [vmem:[#allocation6 + $0x190] sm:$0xff]  ;;  %v8604_v19 = vld [vmem:[#allocation6 + $0x160] sm:$0xff] }
0x1dcd   : > { %8041 = vst [vmem:[#allocation5 + $0x1c] sm:$0x1] %v8040_v8  ;;  %8171 = vmatmul.mubr.f32.vlgmr.msra.gmra.mxu0 %v8040_v8  ;;  %8242 = vmatmul.mubr.f32.vlgmr.msra.gmra.mxu1 %v8040_v8  ;;  %v8607_v8 = vld [vmem:[#allocation6 + $0x178] sm:$0xff] }
0x1dce   : > { %8366 = vmatpush1.msra.mxu0 %v12672_v30  ;;  %8437 = vmatpush1.msra.mxu1 %v12674_v49  ;;  %v14090_v30 = vld [vmem:[#allocation16_spill] sm:$0xff] }
0x1dcf   : > { %8367 = vmatprep.subr.mxu0 %v12678_v48  ;;  %8438 = vmatprep.subr.mxu1 %v12680_v41  ;;  %v14091_v49 = vld [vmem:[#allocation24_spill] sm:$0xff]  ;;  %v14092_v48 = vld [vmem:[#allocation17_spill] sm:$0xff]  ;;  %v14093_v41 = vld [vmem:[#allocation26_spill] sm:$0xff] }
0x1dd0   : > { %8368 = vmatpush1.msra.mxu0 %v12684_v15  ;;  %8439 = vmatpush1.msra.mxu1 %v12686_v17  ;;  %v14094_v15 = vld [vmem:[#allocation18_spill] sm:$0xff]  ;;  %v14095_v17 = vld [vmem:[#allocation28_spill] sm:$0xff] }
0x1dd1   : > { %8369 = vmatprep.subr.mxu0 %v12690_v44  ;;  %8440 = vmatprep.subr.mxu1 %v12692_v26  ;;  %v14096_v44 = vld [vmem:[#allocation19_spill] sm:$0xff]  ;;  %v14097_v26 = vld [vmem:[#allocation29_spill] sm:$0xff] }
0x1dd2   : > { %8370 = vmatpush1.msra.mxu0 %v12696_v28  ;;  %8441 = vmatpush1.msra.mxu1 %v12698_v38  ;;  %v14098_v28 = vld [vmem:[#allocation20_spill] sm:$0xff]  ;;  %v14099_v38 = vld [vmem:[#allocation30_spill] sm:$0xff] }
0x1dd3   : > { %8371 = vmatprep.subr.mxu0 %v12702_v61  ;;  %8442 = vmatprep.subr.mxu1 %v12704_v25  ;;  %v14100_v61 = vld [vmem:[#allocation21_spill] sm:$0xff]  ;;  %v14101_v25 = vld [vmem:[#allocation31_spill] sm:$0xff] }
0x1dd4   : > { %8372 = vmatpush1.msra.mxu0 %v12708_v33  ;;  %8443 = vmatpush1.msra.mxu1 %v12710_v59  ;;  %v14102_v33 = vld [vmem:[#allocation23_spill] sm:$0xff]  ;;  %v14103_v59 = vld [vmem:[#allocation32_spill] sm:$0xff] }
0x1dd5   : > { %8373 = vmatprep.subr.mxu0 %v12714_v14  ;;  %8444 = vmatprep.subr.mxu1 %v12716_v37  ;;  %v14104_v14 = vld [vmem:[#allocation25_spill] sm:$0xff] }
0x1dd6   : > { %8374 = vmatpush1.msra.mxu0 %v12720_v6  ;;  %8445 = vmatpush1.msra.mxu1 %v12722_v47  ;;  %v14105_v37 = vld [vmem:[#allocation33_spill] sm:$0xff]  ;;  %v14106_v6 = vld [vmem:[#allocation27_spill] sm:$0xff]  ;;  %v14107_v47 = vmov 0.0  }
0x1dd7   : > { %8375 = vmatprep.subr.mxu0 %v12724_v18  ;;  %8446 = vmatprep.subr.mxu1 %v12728_v2  ;;  %v14108_v18 = vld [vmem:[#allocation34_spill] sm:$0xff] }
0x1dd8   : > { %8376 = vmatpush1.msra.mxu0 %v12730_v63  ;;  %8447 = vmatpush1.msra.mxu1 %v12732_v34 }
0x1dd9   : > { %8377 = vmatprep.subr.mxu0 %v12736_v36  ;;  %8448 = vmatprep.subr.mxu1 %v12738_v10 }
0x1dda   : > { %8378 = vmatpush1.msra.mxu0 %v12740_v43  ;;  %8449 = vmatpush1.msra.mxu1 %v12744_v45 }
0x1ddb   : > { %8379 = vmatprep.subr.mxu0 %v12746_v57  ;;  %8450 = vmatprep.subr.mxu1 %v12748_v60 }
0x1ddc   : > { %8380 = vmatpush1.msra.mxu0 %v12752_v42  ;;  %8451 = vmatpush1.msra.mxu1 %v12754_v50  ;;  %v8249_v50 = vld [vmem:[#allocation4 + $0x65] ss:$8 sm:$0xf] }
0x1ddd   : > { %8381 = vmatprep.subr.mxu0 %v12758_v7  ;;  %8452 = vmatprep.subr.mxu1 %v12760_v29 }
0x1dde   : > { %8382 = vmatpush1.msra.mxu0 %v12764_v55  ;;  %8453 = vmatpush1.msra.mxu1 %v12766_v16 }
0x1ddf   : > { %8383 = vmatprep.subr.mxu0 %v12770_v21  ;;  %8454 = vmatprep.subr.mxu1 %v12772_v22 }
0x1de0   : > { %8384 = vmatpush1.msra.mxu0 %v12776_v62  ;;  %8455 = vmatpush1.msra.mxu1 %v12778_v51 }
0x1de1   : > { %8385 = vmatprep.subr.mxu0 %v12782_v53  ;;  %8456 = vmatprep.subr.mxu1 %v12784_v3 }
0x1de2   : > { %8386 = vmatpush1.msra.mxu0 %v12788_v58  ;;  %8457 = vmatpush1.msra.mxu1 %v12790_v56 }
0x1de3   : > { %8387 = vmatprep.subr.mxu0 %v12794_v23  ;;  %8458 = vmatprep.subr.mxu1 %v12796_v0 }
0x1de4   : > { %8388 = vmatpush1.msra.mxu0 %v14090_v30  ;;  %8459 = vmatpush1.msra.mxu1 %v14091_v49  ;;  %v8601_v30 = vld [vmem:[#allocation6 + $0x148] sm:$0xff]  ;;  %v8606_v49 = vld [vmem:[#allocation6 + $0x170] sm:$0xff] }
0x1de5   : > { %8389 = vmatprep.subr.mxu0 %v14092_v48  ;;  %8460 = vmatprep.subr.mxu1 %v14093_v41  ;;  %v8600_v48 = vld [vmem:[#allocation6 + $0x140] sm:$0xff]  ;;  %v8603_v41 = vld [vmem:[#allocation6 + $0x158] sm:$0xff] }
0x1de6   : > { %8390 = vmatpush1.msra.mxu0 %v14094_v15  ;;  %8461 = vmatpush1.msra.mxu1 %v14095_v17  ;;  %v8597_v15 = vld [vmem:[#allocation6 + $0x128] sm:$0xff]  ;;  %v8602_v17 = vld [vmem:[#allocation6 + $0x150] sm:$0xff] }
0x1de7   : > { %8391 = vmatprep.subr.mxu0 %v14096_v44  ;;  %8462 = vmatprep.subr.mxu1 %v14097_v26  ;;  %v8596_v44 = vld [vmem:[#allocation6 + $0x120] sm:$0xff]  ;;  %v8599_v26 = vld [vmem:[#allocation6 + $0x138] sm:$0xff] }
0x1de8   : > { %8392 = vmatpush1.msra.mxu0 %v14098_v28  ;;  %8463 = vmatpush1.msra.mxu1 %v14099_v38  ;;  %v8593_v28 = vld [vmem:[#allocation6 + $0x108] sm:$0xff]  ;;  %v8598_v38 = vld [vmem:[#allocation6 + $0x130] sm:$0xff] }
0x1de9   : > { %8393 = vmatprep.subr.mxu0 %v14100_v61  ;;  %8464 = vmatprep.subr.mxu1 %v14101_v25  ;;  %v8592_v61 = vld [vmem:[#allocation6 + $0x100] sm:$0xff]  ;;  %v8595_v25 = vld [vmem:[#allocation6 + $0x118] sm:$0xff] }
0x1dea   : > { %8394 = vmatpush1.msra.mxu0 %v14102_v33  ;;  %8465 = vmatpush1.msra.mxu1 %v14103_v59  ;;  %v8589_v33 = vld [vmem:[#allocation6 + $0xe8] sm:$0xff]  ;;  %v8594_v59 = vld [vmem:[#allocation6 + $0x110] sm:$0xff] }
0x1deb   : > { %8395 = vmatprep.subr.mxu0 %v14104_v14  ;;  %8466 = vmatprep.subr.mxu1 %v14105_v37  ;;  %v8588_v14 = vld [vmem:[#allocation6 + $0xe0] sm:$0xff]  ;;  %v8591_v37 = vld [vmem:[#allocation6 + $0xf8] sm:$0xff] }
0x1dec   : > { %8396 = vmatpush1.msra.mxu0 %v14106_v6  ;;  %8429 = vmatprep.mubr.f32.mxu0 %v14107_v47  ;;  %v8585_v6 = vld [vmem:[#allocation6 + $0xc8] sm:$0xff] }
0x1ded   : > { %8467 = vmatpush1.msra.mxu1 %v14108_v18  ;;  %8500 = vmatprep.mubr.f32.mxu1 %v14107_v47  ;;  %v8584_v18 = vld [vmem:[#allocation6 + $0xc0] sm:$0xff] }
0x1dee   : > { %8624 = vmatprep.subr.mxu0 %v8621_v1  ;;  %8695 = vmatprep.subr.mxu1 %v8623_v9  ;;  %v8563_v1 = vld [vmem:[#allocation6 + $0x18] sm:$0xff] }
0x1def   : > { %v8840_v9 = vld [vmem:[#allocation9 + $0x78] sm:$0xff] }
0x1e8d   : > { %v8172_v2 = vpop.f32.mrf.mxu0  ;;  %v8243_v63 = vpop.f32.mrf.mxu1 }
0x1e8f   : > { %v8174_v34 = vpop.f32.mrf.mxu0  ;;  %v8245_v36 = vpop.f32.mrf.mxu1 }
0x1e90   : > { %v8254_v10 = vcombine.low %v8172_v2, %v8174_v34  ;;  %v8255_v43 = vcombine.low %v8243_v63, %v8245_v36  ;;  %v8587_v2 = vld [vmem:[#allocation6 + $0xd8] sm:$0xff]  ;;  %v8581_v63 = vld [vmem:[#allocation6 + $0xa8] sm:$0xff]  ;;  %v8586_v34 = vld [vmem:[#allocation6 + $0xd0] sm:$0xff] }
0x1e91   : > { %v8580_v36 = vld [vmem:[#allocation6 + $0xa0] sm:$0xff] }
0x1e92   : > { %v8262_v45 = vrot.slane %v8254_v10, %v10065_v11  ;;  %v8269_v57 = vrot.slane %v8255_v43, %v10065_v11  ;;  %v8583_v10 = vld [vmem:[#allocation6 + $0xb8] sm:$0xff]  ;;  %v8577_v43 = vld [vmem:[#allocation6 + $0x88] sm:$0xff] }
0x1e94   : > { %v8270_v60 = vcombine.low %v8262_v45, %v8269_v57  ;;  %v8582_v45 = vld [vmem:[#allocation6 + $0xb0] sm:$0xff]  ;;  %v8576_v57 = vld [vmem:[#allocation6 + $0x80] sm:$0xff] }
0x1e96   : > { %v8277_v42 = vrot.slane %v8270_v60, %v10065_v11  ;;  %v8579_v60 = vld [vmem:[#allocation6 + $0x98] sm:$0xff] }
0x1e98   : > { %v8279_v7 = vadd.f32 %v8277_v42, %v8249_v50  ;;  %v8573_v42 = vld [vmem:[#allocation6 + $0x68] sm:$0xff]  ;;  %v8578_v50 = vld [vmem:[#allocation6 + $0x90] sm:$0xff] }
0x1e9a   : > { %v9084_v29 = vmul.f32 -1.442695, %v8279_v7  ;;  %v8287_v21 = vrot.slane %v8279_v7, 3  ;;  %v8572_v7 = vld [vmem:[#allocation6 + $0x60] sm:$0xff] }
0x1e9c   : > { %9453 = vpow2.f32 %v9084_v29  ;;  %v8575_v29 = vld [vmem:[#allocation6 + $0x78] sm:$0xff] }
0x1ea9   : > { %v9454_v55 = vpop.eup %9453 }
0x1eaa   : > { %v8283_v16 = vadd.f32 1.0, %v9454_v55  ;;  %v8569_v55 = vld [vmem:[#allocation6 + $0x48] sm:$0xff] }
0x1eac   : > { %9455 = vrcp.f32 %v8283_v16  ;;  %v8574_v16 = vld [vmem:[#allocation6 + $0x70] sm:$0xff] }
0x1ead   : > { %9457 = vtanh.f32 %v8287_v21  ;;  %v8568_v21 = vld [vmem:[#allocation6 + $0x40] sm:$0xff] }
0x1eb9   : > { %v9456_v22 = vpop.eup %9455 }
0x1eba   : > { %v8291_v62 = vrot.slane %v9456_v22, 1  ;;  %v9458_v51 = vpop.eup %9457  ;;  %v8297_v56 = vrot.slane %v9456_v22, 2 }
0x1ebb   : > { %v8294_v53 = vmul.f32 %v9458_v51, %v9456_v22  ;;  %v8571_v22 = vld [vmem:[#allocation6 + $0x58] sm:$0xff]  ;;  %v8570_v51 = vld [vmem:[#allocation6 + $0x50] sm:$0xff] }
0x1ebc   : > { %v8293_v3 = vmul.f32 %v8291_v62, %v13010_v39  ;;  %v8605_v39 = vld [vmem:[#allocation6 + $0x168] sm:$0xff] }
0x1ebd   : > { %v8565_v62 = vld [vmem:[#allocation6 + $0x28] sm:$0xff] }
0x1ebe   : > { %v13081_v58 = vadd.f32 %v8294_v53, %v8293_v3  ;;  %v8564_v53 = vld [vmem:[#allocation6 + $0x20] sm:$0xff]  ;;  %v8567_v3 = vld [vmem:[#allocation6 + $0x38] sm:$0xff] }
0x1ec0   : > { %9459 = vtanh.f32 %v13081_v58 }
0x1ecd   : > { %v9460_v23 = vpop.eup %9459 }
0x1ece   : > { %v8299_v0 = vmul.f32 %v9460_v23, %v8297_v56  ;;  %v8561_v56 = vld [vmem:[#allocation6 + $0x8] sm:$0xff]  ;;  %v8566_v23 = vld [vmem:[#allocation6 + $0x30] sm:$0xff] }
0x1ed0   : > { %8300 = vst [vmem:[#allocation5 + $0x1d] sm:$0x1] %v8299_v0  ;;  %8430 = vmatmul.mubr.f32.vlgmr.msra.gmra.mxu0 %v8299_v0  ;;  %8501 = vmatmul.mubr.f32.vlgmr.msra.gmra.mxu1 %v8299_v0  ;;  %v8560_v0 = vld [vmem:[#allocation6] sm:$0xff] }
0x1ed1   : > { %8688 = vmatprep.mubr.f32.mxu0 %v14107_v47  ;;  %8759 = vmatprep.mubr.f32.mxu1 %v14107_v47  ;;  %v8590_v47 = vld [vmem:[#allocation6 + $0xf0] sm:$0xff] }
0x1ed2   : > { %8625 = vmatpush1.msra.mxu0 %v8620_v52  ;;  %8696 = vmatpush1.msra.mxu1 %v8622_v31  ;;  %v8562_v52 = vld [vmem:[#allocation6 + $0x10] sm:$0xff] }
0x1ed3   : > { %8626 = vmatprep.subr.mxu0 %v8617_v32  ;;  %8697 = vmatprep.subr.mxu1 %v8619_v46 }
0x1ed4   : > { %8627 = vmatpush1.msra.mxu0 %v8616_v24  ;;  %8698 = vmatpush1.msra.mxu1 %v8618_v27 }
0x1ed5   : > { %8628 = vmatprep.subr.mxu0 %v8613_v5  ;;  %8699 = vmatprep.subr.mxu1 %v8615_v54 }
0x1ed6   : > { %8629 = vmatpush1.msra.mxu0 %v8612_v13  ;;  %8700 = vmatpush1.msra.mxu1 %v8614_v40 }
0x1ed7   : > { %8630 = vmatprep.subr.mxu0 %v8609_v20  ;;  %8701 = vmatprep.subr.mxu1 %v8611_v12 }
0x1ed8   : > { %8631 = vmatpush1.msra.mxu0 %v8608_v4  ;;  %8702 = vmatpush1.msra.mxu1 %v8610_v35  ;;  %v8508_v4 = vld [vmem:[#allocation4 + $0x66] ss:$8 sm:$0xf] }
0x1ed9   : > { %8632 = vmatprep.subr.mxu0 %v8605_v39  ;;  %8703 = vmatprep.subr.mxu1 %v8607_v8 }
0x1eda   : > { %8633 = vmatpush1.msra.mxu0 %v8604_v19  ;;  %8704 = vmatpush1.msra.mxu1 %v8606_v49 }
0x1edb   : > { %8634 = vmatprep.subr.mxu0 %v8601_v30  ;;  %8705 = vmatprep.subr.mxu1 %v8603_v41 }
0x1edc   : > { %8635 = vmatpush1.msra.mxu0 %v8600_v48  ;;  %8706 = vmatpush1.msra.mxu1 %v8602_v17 }
0x1edd   : > { %8636 = vmatprep.subr.mxu0 %v8597_v15  ;;  %8707 = vmatprep.subr.mxu1 %v8599_v26 }
0x1ede   : > { %8637 = vmatpush1.msra.mxu0 %v8596_v44  ;;  %8708 = vmatpush1.msra.mxu1 %v8598_v38  ;;  %v8839_v38 = vld [vmem:[#allocation9 + $0x70] sm:$0xff] }
0x1edf   : > { %8638 = vmatprep.subr.mxu0 %v8593_v28  ;;  %8709 = vmatprep.subr.mxu1 %v8595_v25  ;;  %v8838_v25 = vld [vmem:[#allocation9 + $0x68] sm:$0xff] }
0x1ee0   : > { %8639 = vmatpush1.msra.mxu0 %v8592_v61  ;;  %8710 = vmatpush1.msra.mxu1 %v8594_v59  ;;  %v8821_v61 = vld [vmem:[#allocation5] sm:$0xff]  ;;  %v8835_v59 = vld [vmem:[#allocation9 + $0x50] sm:$0xff] }
0x1ee1   : > { %8640 = vmatprep.subr.mxu0 %v8589_v33  ;;  %8711 = vmatprep.subr.mxu1 %v8591_v37  ;;  %v8837_v33 = vld [vmem:[#allocation9 + $0x60] sm:$0xff] }
0x1ee2   : > { %8641 = vmatpush1.msra.mxu0 %v8588_v14  ;;  %8712 = vmatpush1.msra.mxu1 %v8590_v47  ;;  %v8834_v14 = vld [vmem:[#allocation9 + $0x48] sm:$0xff]  ;;  %v8833_v37 = vld [vmem:[#allocation9 + $0x40] sm:$0xff]  ;;  %v8831_v47 = vld [vmem:[#allocation9 + $0x30] sm:$0xff] }
0x1ee3   : > { %8642 = vmatprep.subr.mxu0 %v8585_v6  ;;  %8713 = vmatprep.subr.mxu1 %v8587_v2  ;;  %v8832_v6 = vld [vmem:[#allocation9 + $0x38] sm:$0xff]  ;;  %v8829_v2 = vld [vmem:[#allocation9 + $0x20] sm:$0xff] }
0x1ee4   : > { %8643 = vmatpush1.msra.mxu0 %v8584_v18  ;;  %8714 = vmatpush1.msra.mxu1 %v8586_v34  ;;  %v8830_v18 = vld [vmem:[#allocation9 + $0x28] sm:$0xff]  ;;  %v8827_v34 = vld [vmem:[#allocation9 + $0x10] sm:$0xff] }
0x1ee5   : > { %8644 = vmatprep.subr.mxu0 %v8581_v63  ;;  %8715 = vmatprep.subr.mxu1 %v8583_v10  ;;  %v8828_v63 = vld [vmem:[#allocation9 + $0x18] sm:$0xff]  ;;  %v8825_v10 = vld [vmem:[#allocation9] sm:$0xff] }
0x1ee6   : > { %8645 = vmatpush1.msra.mxu0 %v8580_v36  ;;  %8716 = vmatpush1.msra.mxu1 %v8582_v45  ;;  %v8826_v36 = vld [vmem:[#allocation9 + $0x8] sm:$0xff]  ;;  %v8823_v45 = vld [vmem:[#allocation5 + $0x10] sm:$0xff] }
0x1ee7   : > { %8646 = vmatprep.subr.mxu0 %v8577_v43  ;;  %8717 = vmatprep.subr.mxu1 %v8579_v60  ;;  %v8822_v43 = vld [vmem:[#allocation5 + $0x8] sm:$0xff] }
0x1ee8   : > { %8647 = vmatpush1.msra.mxu0 %v8576_v57  ;;  %8718 = vmatpush1.msra.mxu1 %v8578_v50 }
0x1ee9   : > { %8648 = vmatprep.subr.mxu0 %v8573_v42  ;;  %8719 = vmatprep.subr.mxu1 %v8575_v29 }
0x1eea   : > { %8649 = vmatpush1.msra.mxu0 %v8572_v7  ;;  %8720 = vmatpush1.msra.mxu1 %v8574_v16 }
0x1eeb   : > { %8650 = vmatprep.subr.mxu0 %v8569_v55  ;;  %8721 = vmatprep.subr.mxu1 %v8571_v22 }
0x1eec   : > { %8651 = vmatpush1.msra.mxu0 %v8568_v21  ;;  %8722 = vmatpush1.msra.mxu1 %v8570_v51 }
0x1eed   : > { %8652 = vmatprep.subr.mxu0 %v8565_v62  ;;  %8723 = vmatprep.subr.mxu1 %v8567_v3  ;;  %v8767_v62 = vld [vmem:[#allocation4 + $0x67] ss:$8 sm:$0xf] }
0x1eee   : > { %8653 = vmatpush1.msra.mxu0 %v8564_v53  ;;  %8724 = vmatpush1.msra.mxu1 %v8566_v23 }
0x1eef   : > { %8654 = vmatprep.subr.mxu0 %v8561_v56  ;;  %8725 = vmatprep.subr.mxu1 %v8563_v1 }
0x1ef0   : > { %8655 = vmatpush1.msra.mxu0 %v8560_v0  ;;  %8726 = vmatpush1.msra.mxu1 %v8562_v52  ;;  %v9087_v0 = vld [vmem:[%s13160_s5] ss:$0 sm:$0xff] }
0x1ef1   : > { %9114 = vmatprep.subr.mxu0 %v8840_v9 }
0x1f90   : > { %v8431_v32 = vpop.f32.mrf.mxu0  ;;  %v8502_v31 = vpop.f32.mrf.mxu1 }
0x1f92   : > { %v8433_v24 = vpop.f32.mrf.mxu0  ;;  %v8504_v46 = vpop.f32.mrf.mxu1 }
0x1f93   : > { %v8513_v5 = vcombine.low %v8431_v32, %v8433_v24  ;;  %v8514_v27 = vcombine.low %v8502_v31, %v8504_v46 }
0x1f95   : > { %v8521_v13 = vrot.slane %v8513_v5, %v10065_v11  ;;  %v8528_v54 = vrot.slane %v8514_v27, %v10065_v11 }
0x1f97   : > { %v8529_v20 = vcombine.low %v8521_v13, %v8528_v54 }
0x1f99   : > { %v8536_v40 = vrot.slane %v8529_v20, %v10065_v11 }
0x1f9b   : > { %v8538_v12 = vadd.f32 %v8536_v40, %v8508_v4 }
0x1f9d   : > { %v9085_v39 = vmul.f32 -1.442695, %v8538_v12  ;;  %v8546_v8 = vrot.slane %v8538_v12, 3 }
0x1f9f   : > { %9461 = vpow2.f32 %v9085_v39 }
0x1fac   : > { %v9462_v35 = vpop.eup %9461 }
0x1fad   : > { %v8542_v19 = vadd.f32 1.0, %v9462_v35 }
0x1faf   : > { %9463 = vrcp.f32 %v8542_v19 }
0x1fb0   : > { %9465 = vtanh.f32 %v8546_v8 }
0x1fbc   : > { %v9464_v30 = vpop.eup %9463 }
0x1fbd   : > { %v8550_v49 = vrot.slane %v9464_v30, 1  ;;  %v9466_v48 = vpop.eup %9465  ;;  %v8556_v44 = vrot.slane %v9464_v30, 2 }
0x1fbe   : > { %v8553_v41 = vmul.f32 %v9466_v48, %v9464_v30 }
0x1fbf   : > { %v8552_v15 = vmul.f32 %v8550_v49, %v13081_v58  ;;  %v8836_v58 = vld [vmem:[#allocation9 + $0x58] sm:$0xff] }
0x1fc1   : > { %v13090_v17 = vadd.f32 %v8553_v41, %v8552_v15 }
0x1fc3   : > { %9467 = vtanh.f32 %v13090_v17 }
0x1fd0   : > { %v9468_v26 = vpop.eup %9467 }
0x1fd1   : > { %v8558_v28 = vmul.f32 %v9468_v26, %v8556_v44 }
0x1fd3   : > { %8559 = vst [vmem:[#allocation5 + $0x1e] sm:$0x1] %v8558_v28  ;;  %8689 = vmatmul.mubr.f32.vlgmr.msra.gmra.mxu0 %v8558_v28  ;;  %8760 = vmatmul.mubr.f32.vlgmr.msra.gmra.mxu1 %v8558_v28 }
0x1fd4   : > { %9115 = vmatpush3.msra.mxu0 %v8840_v9  ;;  %9146 = vmatprep.mubr.f32.mxu0 %v8821_v61 }
0x1fd5   : > { %9116 = vmatprep.subr.mxu0 %v8839_v38 }
0x1fd6   : > { %9117 = vmatpush3.msra.mxu0 %v8839_v38 }
0x1fd7   : > { %9118 = vmatprep.subr.mxu0 %v8838_v25 }
0x1fd8   : > { %9119 = vmatpush3.msra.mxu0 %v8838_v25 }
0x1fd9   : > { %9120 = vmatprep.subr.mxu0 %v8837_v33 }
0x1fda   : > { %9121 = vmatpush3.msra.mxu0 %v8837_v33 }
0x1fdb   : > { %9122 = vmatprep.subr.mxu0 %v8836_v58 }
0x1fdc   : > { %9123 = vmatpush3.msra.mxu0 %v8836_v58 }
0x1fdd   : > { %9124 = vmatprep.subr.mxu0 %v8835_v59 }
0x1fde   : > { %9125 = vmatpush3.msra.mxu0 %v8835_v59 }
0x1fdf   : > { %9126 = vmatprep.subr.mxu0 %v8834_v14 }
0x1fe0   : > { %9127 = vmatpush3.msra.mxu0 %v8834_v14 }
0x1fe1   : > { %9128 = vmatprep.subr.mxu0 %v8833_v37 }
0x1fe2   : > { %9129 = vmatpush3.msra.mxu0 %v8833_v37 }
0x1fe3   : > { %9130 = vmatprep.subr.mxu0 %v8832_v6 }
0x1fe4   : > { %9131 = vmatpush3.msra.mxu0 %v8832_v6 }
0x1fe5   : > { %9132 = vmatprep.subr.mxu0 %v8831_v47 }
0x1fe6   : > { %9133 = vmatpush3.msra.mxu0 %v8831_v47 }
0x1fe7   : > { %9134 = vmatprep.subr.mxu0 %v8830_v18 }
0x1fe8   : > { %9135 = vmatpush3.msra.mxu0 %v8830_v18 }
0x1fe9   : > { %9136 = vmatprep.subr.mxu0 %v8829_v2 }
0x1fea   : > { %9137 = vmatpush3.msra.mxu0 %v8829_v2 }
0x1feb   : > { %9138 = vmatprep.subr.mxu0 %v8828_v63 }
0x1fec   : > { %9139 = vmatpush3.msra.mxu0 %v8828_v63 }
0x1fed   : > { %9140 = vmatprep.subr.mxu0 %v8827_v34 }
0x1fee   : > { %9141 = vmatpush3.msra.mxu0 %v8827_v34 }
0x1fef   : > { %9142 = vmatprep.subr.mxu0 %v8826_v36 }
0x1ff0   : > { %9143 = vmatpush3.msra.mxu0 %v8826_v36 }
0x1ff1   : > { %9144 = vmatprep.subr.mxu0 %v8825_v10 }
0x1ff2   : > { %9145 = vmatpush3.msra.mxu0 %v8825_v10 }
0x1ff3   : > { %9147 = vmatmul.mubr.f32.vlgmr.msra.gmra.mxu0 %v8822_v43 }
0x1ff4   : > { %9149 = vmatprep.mubr.f32.mxu0 %v8823_v45 }
0x2093   : > { %v8690_v57 = vpop.f32.mrf.mxu0  ;;  %v8761_v60 = vpop.f32.mrf.mxu1 }
0x2095   : > { %v8692_v42 = vpop.f32.mrf.mxu0  ;;  %v8763_v50 = vpop.f32.mrf.mxu1 }
0x2096   : > { %v8772_v7 = vcombine.low %v8690_v57, %v8692_v42  ;;  %v8773_v29 = vcombine.low %v8761_v60, %v8763_v50 }
0x2098   : > { %v8780_v55 = vrot.slane %v8772_v7, %v10065_v11  ;;  %v8787_v16 = vrot.slane %v8773_v29, %v10065_v11 }
0x209a   : > { %v8788_v21 = vcombine.low %v8780_v55, %v8787_v16 }
0x209c   : > { %v8795_v22 = vrot.slane %v8788_v21, %v10065_v11 }
0x209e   : > { %v8797_v51 = vadd.f32 %v8795_v22, %v8767_v62 }
0x20a0   : > { %v9086_v53 = vmul.f32 -1.442695, %v8797_v51  ;;  %v8805_v23 = vrot.slane %v8797_v51, 3 }
0x20a2   : > { %9469 = vpow2.f32 %v9086_v53 }
0x20af   : > { %v9470_v3 = vpop.eup %9469 }
0x20b0   : > { %v8801_v56 = vadd.f32 1.0, %v9470_v3 }
0x20b2   : > { %9471 = vrcp.f32 %v8801_v56 }
0x20b3   : > { %v9148_v1 = vpop.f32.mrf.mxu0  ;;  %9473 = vtanh.f32 %v8805_v23 }
0x20b4   : > { %v8920_v52 = vadd.f32 %v9148_v1, %v9087_v0 }
0x20b5   : > { %v8914_v9 = vpop.f32.mrf.mxu0 }
0x20b6   : > { %8934 = vst [vmem:[%s9745_s17 + $0x8] sm:$0xff] %v8920_v52  ;;  %v8915_v32 = vadd.f32 %v9087_v0, %v8914_v9 }
0x20b8   : > { %8933 = vst [vmem:[%s9745_s17] sm:$0xff] %v8915_v32 }
0x20bf   : > { %v9472_v11 = vpop.eup %9471 }
0x20c0   : > { %v8809_v31 = vrot.slane %v9472_v11, 1  ;;  %v9474_v24 = vpop.eup %9473  ;;  %v8815_v13 = vrot.slane %v9472_v11, 2 }
0x20c1   : > { %v8812_v5 = vmul.f32 %v9474_v24, %v9472_v11 }
0x20c2   : > { %v8811_v46 = vmul.f32 %v8809_v31, %v13090_v17 }
0x20c4   : > { %v8813_v27 = vadd.f32 %v8812_v5, %v8811_v46 }
0x20c6   : > { %9475 = vtanh.f32 %v8813_v27  ;;  %8820 = vst [vmem:[#allocation3] sm:$0x1] %v8813_v27 }
0x20d3   : > { %v9476_v54 = vpop.eup %9475 }
0x20d4   : > { %v8817_v20 = vmul.f32 %v9476_v54, %v8815_v13 }
0x20d6   : > { %8818 = vst [vmem:[#allocation5 + $0x1f] sm:$0x1] %v8817_v20  ;;  %8819 = vst [vmem:[#allocation2] sm:$0x1] %v8817_v20 }
0x20dd   : > { %v8824_v40 = vld [vmem:[#allocation5 + $0x18] sm:$0xff] }
0x20de   : > { %9150 = vmatmul.mubr.f32.gmra.mxu0 %v8824_v40 }
0x219e   : > { %v9151_v4 = vpop.f32.mrf.mxu0 }
0x219f   : > { %v8930_v12 = vadd.f32 %v9151_v4, %v9087_v0 }
0x21a0   : > { %v8924_v39 = vpop.f32.mrf.mxu0 }
0x21a1   : > { %8936 = vst [vmem:[%s9745_s17 + $0x18] sm:$0xff] %v8930_v12  ;;  %v8925_v35 = vadd.f32 %v9087_v0, %v8924_v39 }
0x21a3   : > { %8935 = vst [vmem:[%s9745_s17 + $0x10] sm:$0xff] %v8925_v35 }
0x21a4   : > { %9542 = shalt.err (!%p9539_p3)
}
0x21a5   : > { %s9543_s11 = scalar_lea.hbm %s13107_s15, 512  ;;  %s9547_s28 = scalar_lea.hbm %s13161_s6, 1536 }
0x21a6   : > { %p9544_p7 = scmp.ne.s32.totalorder %s13107_s15, %s9543_s11  ;;  %p9548_p10 = scmp.lt.s32.totalorder %s13107_s15, %s13161_s6 }
0x21a7   : > { %p9549_p11 = scmp.lt.s32.totalorder %s9547_s28, %s9543_s11 }
0x21a8   : > { %p9545_p9 = pnand %p9544_p7, %p9684_p5 }
0x21a9   : > { %p9550_p13 = por %p9549_p11, %p9548_p10 }
0x21aa   : > { %p9546_p6 = pneg %p9545_p9 }
0x21ac   : > { %p9551_p0 = pnand %p9550_p13, %p9546_p6 }
0x21ae   : > { %9554 = shalt.err (!%p9551_p0)
}
0x21af   : > { %s9609_s12 = smov 128   ;;  %s9610_s13 = smov 8  }
0x21b0   : > { %9160 = dma.vmem_to_hbm [thread:$0]  (%p9684_p5), %s13109_s9, 512, %s13107_s15, %s13115_s18, %s9609_s12, %s9609_s12, %s9610_s13  }
0x21b1 PF: > { %p9177_p8 = scmp.ge.s32.totalorder %s9597_s24, 2  ;;  %s8966_s14 = sand.u32 1, %s9585_s21  }
0x21b2   : > { %p14109_p12 = scmp.ne.s32.totalorder %s13490_s8, 0  ;;  %s8967_s25 = scalar_lea.sflag [#allocation8], %s8966_s14 }
0x21b4   : > { %p9170_p1 = pnand %p9177_p8, %p14109_p12 }
0x21b6   : > { %p9171_p2 = pneg %p9170_p1 }
0x21b8   : > { %9580 = dma.done.wait (%p9171_p2), %s8967_s25, 512  }
0x21b9   : > { %9582 = vsyncadd (%p9171_p2), %s8967_s25, 4294966784  ;;  %p18_p4 = scmp.ge.s32.totalorder %s9671_s27, 5   ;;  %s14110_s21 = smov %s9589_s22 }
0x21ba   : > { %s14111_s22 = smov %s9593_s23  ;;  %s14112_s23 = smov %s9682_s30 }
0x21bb   : > { %s14113_s24 = smov %s9671_s27  ;;  %20 = sbr.rel (!%p18_p4) target bundleno = 5 (0x5), region = 123 }
0x21c0   :  { %8972 = vsyncpa [#allocation7], 1 }
0x21c1   :  { %8974 = vsyncpa [#allocation7 + $0x1], 1 }
0x21c2   :  { %8975 = vsyncpa [#allocation10], 1 }
0x21c3   :  { %8976 = vsyncpa [#allocation8], 1 }
0x21c4   :  { %8978 = vsyncpa [#allocation8 + $0x1], 1 }

</bundles_post_ra>
